<compile_context>
chip_gen: v6e
topology: v6e:2x2x1
jax: 0.10.0
libtpu: 0.0.40
codegen_flags: <defaults>
</compile_context>

<pallas_src>
import jax
import jax.numpy as jnp
from jax.experimental import pallas as pl
from jax.experimental.pallas import tpu as pltpu

H1 = 1024          # first hidden width
H2 = 2048          # second hidden width (= output width)
DIN_PAD = 512      # common (zero-padded) input width = max projector in_dim
TK = 1024          # tile of the H2 reduction dim (rows of W3 / cols of W2)
NK = H2 // TK      # number of reduction tiles (innermost grid axis)
EPS = 1e-12        # torch.nn.functional.normalize default eps


def _fused_projector_kernel(x_ref, w1_ref, b1_ref, w2_ref, b2_ref,
                            w3_ref, b3_ref, y_ref, h1_ref):
    # Grid = (p, k): p = projection index, k = W3-row / W2-col reduction tile.
    k = pl.program_id(1)

    @pl.when(k == 0)
    def _():
        # h1 = relu(x @ W1 + b1); computed once per projector, kept resident.
        h1 = jnp.dot(x_ref[...], w1_ref[...],
                     preferred_element_type=jnp.float32) + b1_ref[...]
        h1_ref[...] = jnp.maximum(h1, 0.0).astype(jnp.bfloat16)
        # The output block doubles as the layer-3 f32 accumulator; seed with b3.
        y_ref[...] = jnp.broadcast_to(b3_ref[...], y_ref.shape)

    # h2_k = relu(h1 @ W2[:, k*TK:(k+1)*TK] + b2_k)                 -> (B, TK)
    h2 = jnp.dot(h1_ref[...], w2_ref[...],
                 preferred_element_type=jnp.float32) + b2_ref[...]
    h2 = jnp.maximum(h2, 0.0)

    # y += h2_k @ W3[k*TK:(k+1)*TK, :]                              -> (B, H2)
    y_ref[...] += jnp.dot(h2.astype(jnp.bfloat16), w3_ref[...],
                          preferred_element_type=jnp.float32)

    @pl.when(k == pl.num_programs(1) - 1)
    def _():
        # Fused L2 normalization (full rows are resident since TN == H2).
        # Matches torch: v / max(||v||_2, eps).
        y = y_ref[...]
        sumsq = jnp.sum(y * y, axis=-1, keepdims=True)
        y_ref[...] = y * jax.lax.rsqrt(jnp.maximum(sumsq, EPS * EPS))


@jax.jit
def fused_projector_forward(xs, w1s, b1s, w2s, b2s, w3s, b3s):
    """xs: (P, B, DIN_PAD) bf16; weights bf16; biases f32 with shape (P, 1, D).

    Returns L2-normalized projections of shape (P, B, 2048) f32.
    """
    P, B, dpad = xs.shape
    assert dpad == DIN_PAD
    assert w1s.shape == (P, DIN_PAD, H1) and w2s.shape == (P, H1, H2)
    assert w3s.shape == (P, H2, H2)

    grid_spec = pltpu.PrefetchScalarGridSpec(
        num_scalar_prefetch=0,
        grid=(P, NK),
        in_specs=[
            pl.BlockSpec((None, B, DIN_PAD), lambda p, k: (p, 0, 0)),    # x
            pl.BlockSpec((None, DIN_PAD, H1), lambda p, k: (p, 0, 0)),   # W1
            pl.BlockSpec((None, 1, H1), lambda p, k: (p, 0, 0)),         # b1
            pl.BlockSpec((None, H1, TK), lambda p, k: (p, 0, k)),        # W2 col tile
            pl.BlockSpec((None, 1, TK), lambda p, k: (p, 0, k)),         # b2 tile
            pl.BlockSpec((None, TK, H2), lambda p, k: (p, k, 0)),        # W3 row tile
            pl.BlockSpec((None, 1, H2), lambda p, k: (p, 0, 0)),         # b3
        ],
        # Out-block index independent of k + k innermost => accumulator stays
        # resident in VMEM across the reduction.
        out_specs=pl.BlockSpec((None, B, H2), lambda p, k: (p, 0, 0)),
        scratch_shapes=[
            pltpu.VMEM((B, H1), jnp.bfloat16),   # resident layer-1 activations
        ],
    )

    return pl.pallas_call(
        _fused_projector_kernel,
        out_shape=jax.ShapeDtypeStruct((P, B, H2), jnp.float32),
        grid_spec=grid_spec,
        compiler_params=pltpu.CompilerParams(
            dimension_semantics=("parallel", "arbitrary"),
            vmem_limit_bytes=32 << 20,
        ),
    )(xs, w1s, b1s, w2s, b2s, w3s, b3s)


def _init_mlp_params(key, in_dim):
    """Deterministic parameters for Linear(in,1024)->Linear(1024,2048)->Linear(2048,2048).

    Weights stored as (in, out) -- transposed vs. torch.nn.Linear -- in bf16.
    W1 is zero-padded along its input dim to DIN_PAD so all projectors stack.
    """
    ks = jax.random.split(key, 6)

    def lin(kw, kb, din, dout):
        scale = 1.0 / jnp.sqrt(jnp.float32(din))
        w = jax.random.uniform(kw, (din, dout), jnp.float32, -scale, scale)
        b = jax.random.uniform(kb, (dout,), jnp.float32, -scale, scale)
        return w, b

    w1, b1 = lin(ks[0], ks[1], in_dim, H1)
    w2, b2 = lin(ks[2], ks[3], H1, H2)
    w3, b3 = lin(ks[4], ks[5], H2, H2)
    w1p = jnp.zeros((DIN_PAD, H1), jnp.float32).at[:in_dim].set(w1)
    return dict(
        w1=w1p.astype(jnp.bfloat16),
        b1=b1.reshape(1, H1),
        w2=w2.astype(jnp.bfloat16),
        b2=b2.reshape(1, H2),
        w3=w3.astype(jnp.bfloat16),
        b3=b3.reshape(1, H2),
    )


class Projector:
    """JAX/Pallas port of the PyTorch Projector module."""

    IN_DIMS = {0: 64, 1: 128, 2: 256, 3: 512, 4: 512, 5: 512}

    def __init__(self, key):
        keys = jax.random.split(key, 6)
        self.params = {i: _init_mlp_params(keys[i], d)
                       for i, d in self.IN_DIMS.items()}
        self._stack_cache = {}   # per-index-string stacked weights (one-time cost)

    def _stacked_weights(self, ids):
        key = tuple(ids)
        if key not in self._stack_cache:
            ps = [self.params[i] for i in ids]
            self._stack_cache[key] = tuple(
                jnp.stack([p[name] for p in ps])
                for name in ("w1", "b1", "w2", "b2", "w3", "b3"))
        return self._stack_cache[key]

    def __call__(self, inputs, index):
        """inputs: list of NCHW arrays; index: comma-separated projector ids."""
        ids = [int(s) for s in index.split(',')]
        assert len(inputs) == len(ids)

        codes = [x.reshape(x.shape[0], -1) for x in inputs]
        B = codes[0].shape[0]
        assert all(c.shape[0] == B for c in codes), \
            "fused projector kernel requires a common batch size"
        for c, pid in zip(codes, ids):
            assert c.shape[1] == self.IN_DIMS[pid], (c.shape, pid)

        # Zero-pad every flattened input to DIN_PAD, cast to bf16 (weights are
        # bf16; matmuls accumulate in f32), and stack -> (P, B, DIN_PAD).
        xs = jnp.stack([
            jnp.pad(c.astype(jnp.float32), ((0, 0), (0, DIN_PAD - c.shape[1])))
            for c in codes]).astype(jnp.bfloat16)
        w1s, b1s, w2s, b2s, w3s, b3s = self._stacked_weights(ids)

        y = fused_projector_forward(xs, w1s, b1s, w2s, b2s, w3s, b3s)
        return [y[i] for i in range(len(ids))]


if __name__ == "__main__":
    root = jax.random.PRNGKey(0)
    k_param, k0, k1, k2 = jax.random.split(root, 4)

    model = Projector(k_param)

    B = 8
    # NCHW inputs whose flattened feature sizes match projector in_dims:
    #   projector0 expects 64  -> (B, 4, 4, 4)
    #   projector2 expects 256 -> (B, 16, 4, 4)
    #   projector4 expects 512 -> (B, 32, 4, 4)
    inputs = [
        jax.random.normal(k0, (B, 4, 4, 4), jnp.float32),
        jax.random.normal(k1, (B, 16, 4, 4), jnp.float32),
        jax.random.normal(k2, (B, 32, 4, 4), jnp.float32),
    ]
    index = "0,2,4"

    outs = model(inputs, index)
    outs = [jax.block_until_ready(o) for o in outs]

    # Sanity checks: shapes and unit-norm rows (normalization is done in f32
    # inside the kernel epilogue, so norms are ~1 to f32 precision).
    for o in outs:
        assert o.shape == (B, 2048), o.shape
        norms = jnp.linalg.norm(o.astype(jnp.float32), axis=1)
        assert bool(jnp.all(jnp.abs(norms - 1.0) < 1e-4)), norms

    print("KERNEL_OK")
</pallas_src>

<mosaic_0001>
module attributes {stable_mosaic.version = 11 : i64} {
  func.func @_fused_projector_kernel(%arg0: i32, %arg1: i32, %arg2: memref<1x8x512xbf16, #tpu.memory_space<vmem>>, %arg3: memref<1x512x1024xbf16, #tpu.memory_space<vmem>>, %arg4: memref<1x1x1024xf32, #tpu.memory_space<vmem>>, %arg5: memref<1x1024x1024xbf16, #tpu.memory_space<vmem>>, %arg6: memref<1x1x1024xf32, #tpu.memory_space<vmem>>, %arg7: memref<1x1024x2048xbf16, #tpu.memory_space<vmem>>, %arg8: memref<1x1x2048xf32, #tpu.memory_space<vmem>>, %arg9: memref<1x8x2048xf32, #tpu.memory_space<vmem>>, %arg10: memref<8x1024xbf16, #tpu.memory_space<vmem>>) attributes {dimension_semantics = [#tpu.dimension_semantics<parallel>, #tpu.dimension_semantics<arbitrary>], iteration_bounds = array<i64: 3, 2>, scalar_prefetch = 0 : i64, scratch_operands = 1 : i64, tpu.core_type = #tpu.core_type<tc>, window_params = [{transform_indices = @transform_0, window_bounds = array<i64: 1, 8, 512>}, {transform_indices = @transform_1, window_bounds = array<i64: 1, 512, 1024>}, {transform_indices = @transform_2, window_bounds = array<i64: 1, 1, 1024>}, {transform_indices = @transform_3, window_bounds = array<i64: 1, 1024, 1024>}, {transform_indices = @transform_4, window_bounds = array<i64: 1, 1, 1024>}, {transform_indices = @transform_5, window_bounds = array<i64: 1, 1024, 2048>}, {transform_indices = @transform_6, window_bounds = array<i64: 1, 1, 2048>}, {transform_indices = @transform_7, window_bounds = array<i64: 1, 8, 2048>}]} {
    %c0_i32 = arith.constant 0 : i32
    %0 = arith.cmpi eq, %arg1, %c0_i32 : i32
    %1 = arith.extui %0 : i1 to i32
    %c0_i32_0 = arith.constant 0 : i32
    %2 = arith.cmpi ne, %1, %c0_i32_0 : i32
    scf.if %2 {
      %c0_20 = arith.constant 0 : index
      %c0_21 = arith.constant 0 : index
      %c0_22 = arith.constant 0 : index
      %26 = vector.load %arg2[%c0_20, %c0_21, %c0_22] : memref<1x8x512xbf16, #tpu.memory_space<vmem>>, vector<1x8x512xbf16>
      %27 = vector.shape_cast %26 : vector<1x8x512xbf16> to vector<8x512xbf16>
      %c0_23 = arith.constant 0 : index
      %c0_24 = arith.constant 0 : index
      %c0_25 = arith.constant 0 : index
      %28 = vector.load %arg3[%c0_23, %c0_24, %c0_25] : memref<1x512x1024xbf16, #tpu.memory_space<vmem>>, vector<1x512x1024xbf16>
      %29 = vector.shape_cast %28 : vector<1x512x1024xbf16> to vector<512x1024xbf16>
      %cst_26 = arith.constant dense<0.000000e+00> : vector<8x1024xf32>
      %30 = tpu.matmul %27, %29, %cst_26 {dimension_numbers = #tpu.dot_dimension_numbers<[1], [0], [0], [1], [0, 0, 1, 1], [], []>} : vector<8x512xbf16>, vector<512x1024xbf16>, vector<8x1024xf32> -> vector<8x1024xf32>
      %c0_27 = arith.constant 0 : index
      %c0_28 = arith.constant 0 : index
      %c0_29 = arith.constant 0 : index
      %31 = vector.load %arg4[%c0_27, %c0_28, %c0_29] : memref<1x1x1024xf32, #tpu.memory_space<vmem>>, vector<1x1x1024xf32>
      %32 = vector.shape_cast %31 : vector<1x1x1024xf32> to vector<1x1024xf32>
      %33 = vector.broadcast %32 : vector<1x1024xf32> to vector<8x1024xf32>
      %34 = arith.addf %30, %33 : vector<8x1024xf32>
      %cst_30 = arith.constant 0.000000e+00 : f32
      %35 = vector.broadcast %cst_30 : f32 to vector<8x1024xf32>
      %36 = arith.maximumf %34, %35 : vector<8x1024xf32>
      %37 = arith.truncf %36 : vector<8x1024xf32> to vector<8x1024xbf16>
      %c0_31 = arith.constant 0 : index
      %c0_32 = arith.constant 0 : index
      %38 = vector.load %arg10[%c0_31, %c0_32] : memref<8x1024xbf16, #tpu.memory_space<vmem>>, vector<8x1024xbf16>
      tpu.vector_store %arg10[%c0_31, %c0_32], %37 {strides = array<i32>} : memref<8x1024xbf16, #tpu.memory_space<vmem>>, vector<8x1024xbf16>,
      %c0_33 = arith.constant 0 : index
      %c0_34 = arith.constant 0 : index
      %c0_35 = arith.constant 0 : index
      %39 = vector.load %arg8[%c0_33, %c0_34, %c0_35] : memref<1x1x2048xf32, #tpu.memory_space<vmem>>, vector<1x1x2048xf32>
      %40 = vector.shape_cast %39 : vector<1x1x2048xf32> to vector<1x2048xf32>
      %41 = vector.shape_cast %40 : vector<1x2048xf32> to vector<1x2048xf32>
      %42 = vector.broadcast %41 : vector<1x2048xf32> to vector<8x2048xf32>
      %c0_36 = arith.constant 0 : index
      %c0_37 = arith.constant 0 : index
      %c0_38 = arith.constant 0 : index
      %43 = vector.load %arg9[%c0_36, %c0_37, %c0_38] : memref<1x8x2048xf32, #tpu.memory_space<vmem>>, vector<1x8x2048xf32>
      %44 = vector.shape_cast %43 : vector<1x8x2048xf32> to vector<8x2048xf32>
      %45 = vector.shape_cast %42 : vector<8x2048xf32> to vector<1x8x2048xf32>
      tpu.vector_store %arg9[%c0_36, %c0_37, %c0_38], %45 {strides = array<i32>} : memref<1x8x2048xf32, #tpu.memory_space<vmem>>, vector<1x8x2048xf32>,
    } else {
    }
    %c0 = arith.constant 0 : index
    %c0_1 = arith.constant 0 : index
    %3 = vector.load %arg10[%c0, %c0_1] : memref<8x1024xbf16, #tpu.memory_space<vmem>>, vector<8x1024xbf16>
    %c0_2 = arith.constant 0 : index
    %c0_3 = arith.constant 0 : index
    %c0_4 = arith.constant 0 : index
    %4 = vector.load %arg5[%c0_2, %c0_3, %c0_4] : memref<1x1024x1024xbf16, #tpu.memory_space<vmem>>, vector<1x1024x1024xbf16>
    %5 = vector.shape_cast %4 : vector<1x1024x1024xbf16> to vector<1024x1024xbf16>
    %cst = arith.constant dense<0.000000e+00> : vector<8x1024xf32>
    %6 = tpu.matmul %3, %5, %cst {dimension_numbers = #tpu.dot_dimension_numbers<[1], [0], [0], [1], [0, 0, 1, 1], [], []>} : vector<8x1024xbf16>, vector<1024x1024xbf16>, vector<8x1024xf32> -> vector<8x1024xf32>
    %c0_5 = arith.constant 0 : index
    %c0_6 = arith.constant 0 : index
    %c0_7 = arith.constant 0 : index
    %7 = vector.load %arg6[%c0_5, %c0_6, %c0_7] : memref<1x1x1024xf32, #tpu.memory_space<vmem>>, vector<1x1x1024xf32>
    %8 = vector.shape_cast %7 : vector<1x1x1024xf32> to vector<1x1024xf32>
    %9 = vector.broadcast %8 : vector<1x1024xf32> to vector<8x1024xf32>
    %10 = arith.addf %6, %9 : vector<8x1024xf32>
    %cst_8 = arith.constant 0.000000e+00 : f32
    %11 = vector.broadcast %cst_8 : f32 to vector<8x1024xf32>
    %12 = arith.maximumf %10, %11 : vector<8x1024xf32>
    %c0_9 = arith.constant 0 : index
    %c0_10 = arith.constant 0 : index
    %c0_11 = arith.constant 0 : index
    %13 = vector.load %arg9[%c0_9, %c0_10, %c0_11] : memref<1x8x2048xf32, #tpu.memory_space<vmem>>, vector<1x8x2048xf32>
    %14 = vector.shape_cast %13 : vector<1x8x2048xf32> to vector<8x2048xf32>
    %15 = arith.truncf %12 : vector<8x1024xf32> to vector<8x1024xbf16>
    %c0_12 = arith.constant 0 : index
    %c0_13 = arith.constant 0 : index
    %c0_14 = arith.constant 0 : index
    %16 = vector.load %arg7[%c0_12, %c0_13, %c0_14] : memref<1x1024x2048xbf16, #tpu.memory_space<vmem>>, vector<1x1024x2048xbf16>
    %17 = vector.shape_cast %16 : vector<1x1024x2048xbf16> to vector<1024x2048xbf16>
    %cst_15 = arith.constant dense<0.000000e+00> : vector<8x2048xf32>
    %18 = tpu.matmul %15, %17, %cst_15 {dimension_numbers = #tpu.dot_dimension_numbers<[1], [0], [0], [1], [0, 0, 1, 1], [], []>} : vector<8x1024xbf16>, vector<1024x2048xbf16>, vector<8x2048xf32> -> vector<8x2048xf32>
    %19 = arith.addf %14, %18 : vector<8x2048xf32>
    %c0_16 = arith.constant 0 : index
    %c0_17 = arith.constant 0 : index
    %c0_18 = arith.constant 0 : index
    %20 = vector.load %arg9[%c0_16, %c0_17, %c0_18] : memref<1x8x2048xf32, #tpu.memory_space<vmem>>, vector<1x8x2048xf32>
    %21 = vector.shape_cast %20 : vector<1x8x2048xf32> to vector<8x2048xf32>
    %22 = vector.shape_cast %19 : vector<8x2048xf32> to vector<1x8x2048xf32>
    tpu.vector_store %arg9[%c0_16, %c0_17, %c0_18], %22 {strides = array<i32>} : memref<1x8x2048xf32, #tpu.memory_space<vmem>>, vector<1x8x2048xf32>,
    %c1_i32 = arith.constant 1 : i32
    %23 = arith.cmpi eq, %arg1, %c1_i32 : i32
    %24 = arith.extui %23 : i1 to i32
    %c0_i32_19 = arith.constant 0 : i32
    %25 = arith.cmpi ne, %24, %c0_i32_19 : i32
    scf.if %25 {
      %c0_20 = arith.constant 0 : index
      %c0_21 = arith.constant 0 : index
      %c0_22 = arith.constant 0 : index
      %26 = vector.load %arg9[%c0_20, %c0_21, %c0_22] : memref<1x8x2048xf32, #tpu.memory_space<vmem>>, vector<1x8x2048xf32>
      %27 = vector.shape_cast %26 : vector<1x8x2048xf32> to vector<8x2048xf32>
      %28 = arith.mulf %27, %27 : vector<8x2048xf32>
      %cst_23 = arith.constant dense<0.000000e+00> : vector<8xf32>
      %29 = vector.multi_reduction <add>, %28, %cst_23 [1] : vector<8x2048xf32> to vector<8xf32>
      %30 = vector.shape_cast %29 : vector<8xf32> to vector<8x1xf32>
      %cst_24 = arith.constant 1.000000e-24 : f32
      %31 = vector.broadcast %cst_24 : f32 to vector<8x1xf32>
      %32 = arith.maximumf %30, %31 : vector<8x1xf32>
      %33 = math.rsqrt %32 : vector<8x1xf32>
      %34 = vector.broadcast %33 : vector<8x1xf32> to vector<8x2048xf32>
      %35 = arith.mulf %27, %34 : vector<8x2048xf32>
      %c0_25 = arith.constant 0 : index
      %c0_26 = arith.constant 0 : index
      %c0_27 = arith.constant 0 : index
      %36 = vector.load %arg9[%c0_25, %c0_26, %c0_27] : memref<1x8x2048xf32, #tpu.memory_space<vmem>>, vector<1x8x2048xf32>
      %37 = vector.shape_cast %36 : vector<1x8x2048xf32> to vector<8x2048xf32>
      %38 = vector.shape_cast %35 : vector<8x2048xf32> to vector<1x8x2048xf32>
      tpu.vector_store %arg9[%c0_25, %c0_26, %c0_27], %38 {strides = array<i32>} : memref<1x8x2048xf32, #tpu.memory_space<vmem>>, vector<1x8x2048xf32>,
    } else {
    }
    return
  }
  func.func @transform_0(%arg0: i32, %arg1: i32) -> (i32, i32, i32) {
    %c0_i32 = arith.constant 0 : i32
    %c0_i32_0 = arith.constant 0 : i32
    %c0_i32_1 = arith.constant 0 : i32
    return %arg0, %c0_i32, %c0_i32_0 : i32, i32, i32
  }
  func.func @transform_1(%arg0: i32, %arg1: i32) -> (i32, i32, i32) {
    %c0_i32 = arith.constant 0 : i32
    %c0_i32_0 = arith.constant 0 : i32
    %c0_i32_1 = arith.constant 0 : i32
    return %arg0, %c0_i32, %c0_i32_0 : i32, i32, i32
  }
  func.func @transform_2(%arg0: i32, %arg1: i32) -> (i32, i32, i32) {
    %c0_i32 = arith.constant 0 : i32
    %c0_i32_0 = arith.constant 0 : i32
    %c0_i32_1 = arith.constant 0 : i32
    return %arg0, %c0_i32, %c0_i32_0 : i32, i32, i32
  }
  func.func @transform_3(%arg0: i32, %arg1: i32) -> (i32, i32, i32) {
    %c0_i32 = arith.constant 0 : i32
    %c0_i32_0 = arith.constant 0 : i32
    return %arg0, %c0_i32, %arg1 : i32, i32, i32
  }
  func.func @transform_4(%arg0: i32, %arg1: i32) -> (i32, i32, i32) {
    %c0_i32 = arith.constant 0 : i32
    %c0_i32_0 = arith.constant 0 : i32
    return %arg0, %c0_i32, %arg1 : i32, i32, i32
  }
  func.func @transform_5(%arg0: i32, %arg1: i32) -> (i32, i32, i32) {
    %c0_i32 = arith.constant 0 : i32
    %c0_i32_0 = arith.constant 0 : i32
    return %arg0, %arg1, %c0_i32 : i32, i32, i32
  }
  func.func @transform_6(%arg0: i32, %arg1: i32) -> (i32, i32, i32) {
    %c0_i32 = arith.constant 0 : i32
    %c0_i32_0 = arith.constant 0 : i32
    %c0_i32_1 = arith.constant 0 : i32
    return %arg0, %c0_i32, %c0_i32_0 : i32, i32, i32
  }
  func.func @transform_7(%arg0: i32, %arg1: i32) -> (i32, i32, i32) {
    %c0_i32 = arith.constant 0 : i32
    %c0_i32_0 = arith.constant 0 : i32
    %c0_i32_1 = arith.constant 0 : i32
    return %arg0, %c0_i32, %c0_i32_0 : i32, i32, i32
  }
}

</mosaic_0001>

<bundles_post_ra>
// kernel: fused_projector_forward.1
= control target key start
LH: loop header
LB: loop body
LE: loop exit
PB: predicated region body
PF: predicated region fallthrough
CT: control target
= control target key end

     0   :  { %s19346_s0 = inlined_call_operand.hbm [shape: bf16[3,8,512], index: 0, kind: input, shape index: {}]   ;;  %s19347_s1 = inlined_call_operand.hbm [shape: bf16[3,512,1024], index: 1, kind: input, shape index: {}]   ;;  %s19348_s2 = inlined_call_operand.hbm [shape: f32[3,1,1024], index: 2, kind: input, shape index: {}]   ;;  %s19349_s3 = inlined_call_operand.hbm [shape: bf16[3,1024,2048], index: 3, kind: input, shape index: {}]   ;;  %s19350_s4 = inlined_call_operand.hbm [shape: f32[3,1,2048], index: 4, kind: input, shape index: {}]   ;;  %s19351_s5 = inlined_call_operand.hbm [shape: bf16[3,2048,2048], index: 5, kind: input, shape index: {}]   ;;  %s19352_s6 = inlined_call_operand.hbm [shape: f32[3,1,2048], index: 6, kind: input, shape index: {}]   ;;  %s19353_s7 = inlined_call_operand.hbm [shape: f32[3,8,2048], index: 7, kind: output, shape index: {}]  }
   0x1   :  { %19379 = sst [smem:[#allocation38_spill]] %s19347_s1 }
   0x2   :  { %19380 = sst [smem:[#allocation39_spill]] %s19349_s3 }
   0x3   :  { %19381 = sst [smem:[#allocation40_spill]] %s19350_s4 }
   0x4   :  { %19382 = sst [smem:[#allocation41_spill]] %s19353_s7 }
   0x5   :  { %12 = vsyncpa [#allocation4], 0 }
   0x6   :  { %14 = vsyncpa [#allocation4 + $0x1], 0 }
   0x7   :  { %15 = vsyncpa [#allocation7], 0 }
   0x8   :  { %17 = vsyncpa [#allocation7 + $0x1], 0 }
   0x9   :  { %18 = vsyncpa [#allocation10], 0 }
   0xa   :  { %20 = vsyncpa [#allocation10 + $0x1], 0 }
   0xb   :  { %21 = vsyncpa [#allocation13], 0 }
   0xc   :  { %23 = vsyncpa [#allocation13 + $0x1], 0 }
   0xd   :  { %24 = vsyncpa [#allocation5], 0 }
   0xe   :  { %26 = vsyncpa [#allocation5 + $0x1], 0  ;;  %s16662_s24 = smov 0   ;;  %s16664_s25 = smov 0  }
   0xf   :  { %s16666_s26 = smov 0   ;;  %s16668_s27 = smov 0  }
  0x10   :  { %s16670_s28 = smov 0   ;;  %s16672_s29 = smov 0  }
  0x11   :  { %s16674_s30 = smov 0   ;;  %s16676_s8 = smov 0  }
  0x12   :  { %s16678_s9 = smov 0   ;;  %s16680_s10 = smov 0  }
  0x13   :  { %s16682_s11 = smov 0  }
  0x14 LB: > { %19383 = sst [smem:[#allocation22_spill]] %s16572_s25  ;;  %s16718_s12 = sadd.s32 4294967295, %s16608_s11   ;;  %s16608_s11 = sphi %s16682_s11, %s32_s11   ;;  %s16604_s10 = sphi %s16680_s10, %s19447_s10   ;;  %s16600_s9 = sphi %s16678_s9, %s19446_s9   ;;  %s16596_s8 = sphi %s16676_s8, %s19445_s8   ;;  %s16592_s30 = sphi %s16674_s30, %s19444_s30   ;;  %s16588_s29 = sphi %s16672_s29, %s19441_s29   ;;  %s16584_s28 = sphi %s16670_s28, %s19440_s28   ;;  %s16580_s27 = sphi %s16668_s27, %s19439_s27   ;;  %s16576_s26 = sphi %s16666_s26, %s19438_s26   ;;  %s16572_s25 = sphi %s16664_s25, %s19437_s25   ;;  %s16568_s24 = sphi %s16662_s24, %s19436_s24  }
  0x15   : > { %19384 = sst [smem:[#allocation23_spill]] %s16576_s26  ;;  %s14262_s13 = sadd.s32 4294967294, %s16608_s11  }
  0x16   : > { %19385 = sst [smem:[#allocation24_spill]] %s16580_s27  ;;  %p58_p0 = scmp.ne.s32.totalorder %s16588_s29, %s16584_s28 }
  0x17   : > { %19386 = sst [smem:[#allocation25_spill]] %s16584_s28  ;;  %p59_p1 = scmp.eq.s32.totalorder %s16608_s11, 0 }
  0x18   : > { %19387 = sst [smem:[#allocation26_spill]] %s16588_s29  ;;  %p64_p2 = scmp.ne.s32.totalorder %s16584_s28, %s16580_s27 }
  0x19   : > { %19388 = sst [smem:[#allocation27_spill]] %s16592_s30  ;;  %p65_p3 = scmp.eq.s32.totalorder %s16718_s12, 0 }
  0x1a   : > { %19389 = sst [smem:[#allocation28_spill]] %s16596_s8  ;;  %p250_p4 = scmp.eq.s32.totalorder %s16718_s12, 5 }
  0x1b   : > { %19390 = sst [smem:[#allocation29_spill]] %s16718_s12  ;;  %p60_p5 = por %p59_p1, %p58_p0 }
  0x1c   : > { %p256_p6 = scmp.eq.s32.totalorder %s14262_s13, 5  ;;  %p16733_p7 = por %p65_p3, %p64_p2 }
  0x1d   : > { %p16737_p8 = por %p250_p4, %p58_p0  ;;  %p19361_p10 = scmp.lt.s32.totalorder %s16608_s11, 6 }
  0x1e   : > { %s19391_s15 = scalar_select %p16733_p7, 1, 0 }
  0x1f   : > { %s19393_s16 = scalar_select %p16737_p8, 1, 0 }
  0x20   : > { %19392 = sst [smem:[#allocation30_spill]] %s19391_s15  ;;  %p16741_p9 = por %p256_p6, %p64_p2 }
  0x21   : > { %19394 = sst [smem:[#allocation31_spill]] %s19393_s16  ;;  %s16747_s18 = sand.u32 1, %s16588_s29  }
  0x22   : > { %s19395_s17 = scalar_select %p16741_p9, 1, 0 }
  0x23   : > { %s16750_s19 = sand.u32 1, %s16608_s11   ;;  %s14268_s20 = sshll.u32 %s16747_s18, 11 }
  0x24   : > { %19396 = sst [smem:[#allocation32_spill]] %s19395_s17  ;;  %p16755_p11 = pnand %p19361_p10, %p60_p5 }
  0x25   : > { %s16115_s22 = sshll.u32 %s16604_s10, 15  ;;  %s19398_s1 = sld [smem:[#allocation38_spill]] }
  0x26   : > { %s299_s17 = scalar_lea.vmem [#allocation6], %s14268_s20  ;;  %s19362_s7 = scalar_lea.sflag [#allocation7], %s16750_s19 }
  0x27   : > { %s306_s27 = sshll.u32 %s299_s17, 4  ;;  %p19371_p12 = pneg %p16755_p11  ;;  %s307_s27 = int_to_ptr.vmem [resolvable:$true] %s306_s27 }
  0x28   : > { %s16289_s16 = scalar_lea.vmem %s307_s27, 32768  ;;  %s16610_s8 = smov [#allocation6]  }
  0x29   : > { %p16290_p13 = scmp.ne.s32.totalorder %s307_s27, %s16289_s16  ;;  %s16294_s30 = sshll.u32 %s16610_s8, 4  ;;  %s16295_s30 = int_to_ptr.vmem [resolvable:$false] %s16294_s30 }
  0x2a   : > { %s16296_s15 = scalar_lea.vmem %s16295_s30, 65536  ;;  %p16297_p4 = scmp.lt.s32.totalorder %s307_s27, %s16295_s30 }
  0x2b   : > { %s305_s14 = scalar_lea.hbm %s19398_s1, %s16115_s22  ;;  %p16292_p0 = pnand %p16290_p13, %p19371_p12 }
  0x2c   : > { %p16298_p5 = scmp.lt.s32.totalorder %s16296_s15, %s16289_s16 }
  0x2d   : > { %p16293_p2 = pneg %p16292_p0 }
  0x2e   : > { %p16299_p6 = por %p16298_p5, %p16297_p4 }
  0x30   : > { %p16300_p10 = pnand %p16299_p6, %p16293_p2 }
  0x32   : > { %16303 = shalt.err (!%p16300_p10)
}
  0x33   : > { %s19363_s17 = smov 512   ;;  %s19364_s30 = smov 32  }
  0x34   : > { %16146 = dma.hbm_to_vmem [thread:$0]  (!%p16755_p11), %s305_s14, 32768, %s307_s27, %s19362_s7, %s19363_s17, %s19363_s17, %s19364_s30  }
  0x35   : > { %p14290_p10 = scmp.ge.s32.totalorder %s16608_s11, 1  ;;  %p420_p13 = scmp.lt.s32.totalorder %s16608_s11, 7 }
  0x36   : > { %s41_s15 = sadd.s32 1, %s16600_s9  ;;  %s44_s16 = sadd.s32 1, %s16604_s10 }
  0x37   : > { %p16778_p0 = pnand %p14290_p10, %p420_p13  ;;  %p42_p2 = scmp.ge.s32.totalorder %s41_s15, 2 }
  0x38   : > { %s131_s20 = sadd.s32 1, %s16576_s26  ;;  %p138_p4 = scmp.ne.s32.totalorder %s16576_s26, %s16572_s25 }
  0x39   : > { %s19399_s8 = scalar_select %p16778_p0, 1, 0 }
  0x3a   : > { %s19449_s15 = smov (%p42_p2, %s41_s15), 0  ;;  %s19451_s16 = smov (!%p42_p2, %s44_s16), %s16604_s10 }
  0x3b   : > { %19400 = sst [smem:[#allocation33_spill]] %s19399_s8  ;;  %s127_s27 = ssub.s32 %s16600_s9, %s19449_s15 }
  0x3c   : > { %19401 = sst [smem:[#allocation34_spill]] %s19449_s15  ;;  %p16794_p5 = por %p138_p4, %p59_p1 }
  0x3d   : > { %p46_p6 = scmp.ge.s32.totalorder %s19451_s16, 3  ;;  %p144_p10 = scmp.ne.s32.totalorder %s16572_s25, %s16568_s24 }
  0x3e   : > { %s16801_s22 = sand.u32 1, %s16576_s26   ;;  %s19372_s24 = sshll.u32 %s16600_s9, 3 }
  0x3f   : > { %s19453_s16 = smov (%p46_p6, %s19451_s16), 0  ;;  %p16807_p13 = por %p144_p10, %p65_p3 }
  0x40   : > { %19403 = sst [smem:[#allocation35_spill]] %s19453_s16  ;;  %s14274_s13 = sshll.u32 %s16801_s22, 12 }
  0x41   : > { %s48_s7 = ssub.s32 %s16604_s10, %s19453_s16  ;;  %s19405_s30 = sadd.s32 1, %s16588_s29 }
  0x42   : > { %p49_p1 = scmp.eq.s32.totalorder %s48_s7, 0  ;;  %s128_s17 = sor.u32 %s127_s27, %s48_s7 }
  0x43   : > { %p129_p2 = scmp.eq.s32.totalorder %s128_s17, 0  ;;  %s14276_s25 = sshll.u32 %s16604_s10, 11 }
  0x44   : > { %s16818_s1 = scalar_select %p49_p1, %s16588_s29, %s19405_s30  }
  0x45   : > { %s16821_s15 = scalar_select %p129_p2, %s16576_s26, %s131_s20  }
  0x46   : > { %19406 = sst [smem:[#allocation36_spill]] %s16818_s1  ;;  %s339_s12 = scalar_lea.vmem [#allocation9], %s14274_s13 }
  0x47   : > { %19407 = sst [smem:[#allocation37_spill]] %s16821_s15  ;;  %s348_s28 = sshll.u32 %s339_s12, 4  ;;  %s349_s28 = int_to_ptr.vmem [resolvable:$true] %s348_s28 }
  0x48   : > { %s345_s8 = sadd.s32 %s14276_s25, %s19372_s24  ;;  %p19408_p3 = scmp.lt.s32.totalorder %s16608_s11, 6 }
  0x49   : > { %s14277_s4 = sshll.u32 %s345_s8, 6  ;;  %s19410_s3 = sld [smem:[#allocation39_spill]] }
  0x4a   : > { %p16830_p4 = pnand %p19408_p3, %p16794_p5  ;;  %s19377_s20 = scalar_lea.sflag [#allocation10], %s16750_s19 }
  0x4b   : > { %s16317_s12 = scalar_lea.vmem %s349_s28, 65536  ;;  %s16613_s25 = smov [#allocation9]  }
  0x4c   : > { %p19375_p6 = pneg %p16830_p4  ;;  %p16318_p10 = scmp.ne.s32.totalorder %s349_s28, %s16317_s12 }
  0x4d   : > { %s16322_s8 = sshll.u32 %s16613_s25, 4  ;;  %s16323_s8 = int_to_ptr.vmem [resolvable:$false] %s16322_s8 }
  0x4e   : > { %p16320_p1 = pnand %p16318_p10, %p19375_p6  ;;  %s16324_s27 = scalar_lea.vmem %s16323_s8, 131072 }
  0x4f   : > { %s347_s30 = scalar_lea.hbm %s19410_s3, %s14277_s4  ;;  %p16325_p5 = scmp.lt.s32.totalorder %s349_s28, %s16323_s8 }
  0x50   : > { %p16321_p2 = pneg %p16320_p1  ;;  %p16326_p3 = scmp.lt.s32.totalorder %s16324_s27, %s16317_s12 }
  0x52   : > { %p16327_p12 = por %p16326_p3, %p16325_p5 }
  0x54   : > { %p16328_p9 = pnand %p16327_p12, %p16321_p2 }
  0x56   : > { %16331 = shalt.err (!%p16328_p9)
}
  0x57   : > { %s16614_s14 = smov 1024   ;;  %s19411_s4 = smov 32  }
  0x58   : > { %s19412_s13 = smov 512   ;;  %s14282_s7 = sshll.u32 %s16801_s22, 13 }
  0x59   : > { %16152 = dma.hbm_to_vmem [thread:$0]  (!%p16830_p4), %s347_s30, 65536, %s349_s28, %s19377_s20, %s16614_s14, %s19412_s13, %s19411_s4  }
  0x5a   : > { %s16117_s17 = sshll.u32 %s16600_s9, 11  ;;  %s14285_s12 = sshll.u32 %s16604_s10, 12 }
  0x5b   : > { %s390_s25 = sadd.s32 %s16117_s17, %s14285_s12  ;;  %s383_s8 = scalar_lea.vmem [#allocation12], %s14282_s7 }
  0x5c   : > { %s393_s27 = sshll.u32 %s383_s8, 4  ;;  %s14286_s24 = sshll.u32 %s390_s25, 6  ;;  %s394_s27 = int_to_ptr.vmem [resolvable:$true] %s393_s27 }
  0x5d   : > { %s392_s29 = scalar_lea.hbm %s19351_s5, %s14286_s24  ;;  %s19376_s15 = scalar_lea.sflag [#allocation13], %s16750_s19 }
  0x5e   : > { %s16345_s26 = scalar_lea.vmem %s394_s27, 131072  ;;  %s16615_s28 = smov [#allocation12]  }
  0x5f   : > { %p16346_p9 = scmp.ne.s32.totalorder %s394_s27, %s16345_s26  ;;  %s16350_s30 = sshll.u32 %s16615_s28, 4  ;;  %s16351_s30 = int_to_ptr.vmem [resolvable:$false] %s16350_s30 }
  0x60   : > { %s16352_s4 = scalar_lea.vmem %s16351_s30, 262144  ;;  %p16353_p1 = scmp.lt.s32.totalorder %s394_s27, %s16351_s30 }
  0x61   : > { %p16348_p12 = pnand %p16346_p9, %p19375_p6  ;;  %p16354_p2 = scmp.lt.s32.totalorder %s16352_s4, %s16345_s26 }
  0x63   : > { %p16349_p10 = pneg %p16348_p12  ;;  %p16355_p5 = por %p16354_p2, %p16353_p1 }
  0x65   : > { %p16356_p3 = pnand %p16355_p5, %p16349_p10 }
  0x67   : > { %16359 = shalt.err (!%p16356_p3)
}
  0x68   : > { %s16616_s13 = smov 64   ;;  %s14265_s1 = sshll.u32 %s16747_s18, 4 }
  0x69   : > { %16158 = dma.hbm_to_vmem [thread:$0]  (!%p16830_p4), %s392_s29, 131072, %s394_s27, %s19376_s15, %s16614_s14, %s16614_s14, %s16616_s13  }
  0x6a   : > { %s16114_s3 = sshll.u32 %s16604_s10, 8  ;;  %s280_s17 = scalar_lea.vmem [#allocation3], %s14265_s1 }
  0x6b   : > { %s286_s7 = scalar_lea.hbm %s19346_s0, %s16114_s3  ;;  %s288_s12 = sshll.u32 %s280_s17, 4  ;;  %s289_s12 = int_to_ptr.vmem [resolvable:$true] %s288_s12 }
  0x6c   : > { %s277_s25 = scalar_lea.sflag [#allocation4], %s16747_s18  ;;  %s16373_s8 = scalar_lea.vmem %s289_s12, 256 }
  0x6d   : > { %p16374_p9 = scmp.ne.s32.totalorder %s289_s12, %s16373_s8  ;;  %p19413_p12 = pneg %p16755_p11 }
  0x6e   : > { %s16617_s28 = smov [#allocation3]  }
  0x6f   : > { %p16376_p10 = pnand %p16374_p9, %p19413_p12  ;;  %s16378_s30 = sshll.u32 %s16617_s28, 4  ;;  %s16379_s30 = int_to_ptr.vmem [resolvable:$false] %s16378_s30 }
  0x70   : > { %s16380_s29 = scalar_lea.vmem %s16379_s30, 512  ;;  %p16381_p2 = scmp.lt.s32.totalorder %s289_s12, %s16379_s30 }
  0x71   : > { %p16377_p1 = pneg %p16376_p10  ;;  %p16382_p5 = scmp.lt.s32.totalorder %s16380_s29, %s16373_s8 }
  0x73   : > { %p16383_p3 = por %p16382_p5, %p16381_p2 }
  0x75   : > { %p16384_p6 = pnand %p16383_p3, %p16377_p1 }
  0x77   : > { %16387 = shalt.err (!%p16384_p6)
}
  0x78   : > { %16143 = dma.hbm_to_vmem [thread:$0]  (!%p16755_p11), %s286_s7, 256, %s289_s12, %s277_s25  }
  0x79   : > { %s16882_s4 = scalar_lea.hbm %s19352_s6, %s16114_s3  ;;  %s14271_s13 = sshll.u32 %s16747_s18, 3 }
  0x7a   : > { %s16116_s24 = sshll.u32 %s16604_s10, 7  ;;  %s320_s28 = scalar_lea.vmem [#allocation8], %s14271_s13 }
  0x7b   : > { %s326_s8 = scalar_lea.hbm %s19348_s2, %s16116_s24  ;;  %s328_s30 = sshll.u32 %s320_s28, 4  ;;  %s329_s30 = int_to_ptr.vmem [resolvable:$true] %s328_s30 }
  0x7c   : > { %s14278_s29 = sshll.u32 %s16801_s22, 3  ;;  %s16401_s15 = scalar_lea.vmem %s329_s30, 128 }
  0x7d   : > { %p16402_p6 = scmp.ne.s32.totalorder %s329_s30, %s16401_s15  ;;  %p19414_p9 = pmov %p19413_p12 }
  0x7e   : > { %s16618_s7 = smov [#allocation8]  }
  0x7f   : > { %p16404_p12 = pnand %p16402_p6, %p19414_p9  ;;  %s16406_s12 = sshll.u32 %s16618_s7, 4  ;;  %s16407_s12 = int_to_ptr.vmem [resolvable:$false] %s16406_s12 }
  0x80   : > { %s16408_s3 = scalar_lea.vmem %s16407_s12, 256  ;;  %p16409_p1 = scmp.lt.s32.totalorder %s329_s30, %s16407_s12 }
  0x81   : > { %p16405_p10 = pneg %p16404_p12  ;;  %p16410_p2 = scmp.lt.s32.totalorder %s16408_s3, %s16401_s15 }
  0x83   : > { %p16411_p5 = por %p16410_p2, %p16409_p1 }
  0x85   : > { %p16412_p3 = pnand %p16411_p5, %p16405_p10 }
  0x87   : > { %16415 = shalt.err (!%p16412_p3)
}
  0x88   : > { %s19415_s25 = scalar_lea.sflag [#allocation7], %s16750_s19  ;;  %s14280_s22 = sshll.u32 %s16604_s10, 4 }
  0x89   : > { %16149 = dma.hbm_to_vmem [thread:$0]  (!%p16755_p11), %s326_s8, 128, %s329_s30, %s19415_s25  }
  0x8a   : > { %s19416_s14 = sshll.u32 %s16600_s9, 3  ;;  %s362_s13 = scalar_lea.vmem [#allocation11], %s14278_s29 }
  0x8b   : > { %s368_s27 = sadd.s32 %s14280_s22, %s19416_s14  ;;  %s372_s24 = sshll.u32 %s362_s13, 4  ;;  %s373_s24 = int_to_ptr.vmem [resolvable:$true] %s372_s24 }
  0x8c   : > { %s14281_s26 = sshll.u32 %s368_s27, 4  ;;  %s19417_s28 = sld [smem:[#allocation40_spill]] }
  0x8d   : > { %s407_s12 = scalar_lea.vmem [#allocation14], %s14265_s1  ;;  %s16429_s20 = scalar_lea.vmem %s373_s24, 128 }
  0x8e   : > { %s415_s3 = sshll.u32 %s407_s12, 4  ;;  %p16430_p6 = scmp.ne.s32.totalorder %s373_s24, %s16429_s20  ;;  %s416_s3 = int_to_ptr.vmem [resolvable:$true] %s415_s3 }
  0x8f   : > { %p19418_p9 = pneg %p16830_p4  ;;  %s16619_s8 = smov [#allocation11]  }
  0x90   : > { %s16434_s30 = sshll.u32 %s16619_s8, 4  ;;  %s16435_s30 = int_to_ptr.vmem [resolvable:$false] %s16434_s30 }
  0x91   : > { %p16432_p12 = pnand %p16430_p6, %p19418_p9  ;;  %s16436_s29 = scalar_lea.vmem %s16435_s30, 256 }
  0x92   : > { %s370_s7 = scalar_lea.hbm %s19417_s28, %s14281_s26  ;;  %p16437_p1 = scmp.lt.s32.totalorder %s373_s24, %s16435_s30 }
  0x93   : > { %p16433_p10 = pneg %p16432_p12  ;;  %p16438_p2 = scmp.lt.s32.totalorder %s16436_s29, %s16429_s20 }
  0x95   : > { %p16439_p5 = por %p16438_p2, %p16437_p1 }
  0x97   : > { %p16440_p3 = pnand %p16439_p5, %p16433_p10 }
  0x99   : > { %16443 = shalt.err (!%p16440_p3)
}
  0x9a   : > { %s19419_s18 = scalar_lea.sflag [#allocation10], %s16750_s19  ;;  %s16457_s1 = scalar_lea.vmem %s416_s3, 256 }
  0x9b   : > { %16155 = dma.hbm_to_vmem [thread:$0]  (!%p16830_p4), %s370_s7, 128, %s373_s24, %s19419_s18  }
  0x9c   : > { %p16458_p8 = scmp.ne.s32.totalorder %s416_s3, %s16457_s1  ;;  %p19420_p6 = pneg %p16755_p11 }
  0x9d   : > { %s16620_s25 = smov [#allocation14]  }
  0x9e   : > { %p16460_p9 = pnand %p16458_p8, %p19420_p6  ;;  %s16462_s22 = sshll.u32 %s16620_s25, 4  ;;  %s16463_s22 = int_to_ptr.vmem [resolvable:$false] %s16462_s22 }
  0x9f   : > { %s16464_s20 = scalar_lea.vmem %s16463_s22, 512  ;;  %p16465_p1 = scmp.lt.s32.totalorder %s416_s3, %s16463_s22 }
  0xa0   : > { %p16461_p12 = pneg %p16460_p9  ;;  %p16466_p10 = scmp.lt.s32.totalorder %s16464_s20, %s16457_s1 }
  0xa2   : > { %p16467_p2 = por %p16466_p10, %p16465_p1 }
  0xa4   : > { %p16468_p5 = pnand %p16467_p2, %p16461_p12 }
  0xa6   : > { %16471 = shalt.err (!%p16468_p5)
}
  0xa7   : > { %s19421_s16 = scalar_lea.sflag [#allocation13], %s16750_s19  ;;  %424 = sbr.rel (%p16778_p0) target bundleno = 2724 (0xaa4), region = 48 }
  0xa8   : > { %16161 = dma.hbm_to_vmem [thread:$0]  (!%p16755_p11), %s16882_s4, 256, %s416_s3, %s19421_s16  }
  0xa9   : > { %s19423_s27 = sld [smem:[#allocation25_spill]] (!%p16778_p0) }
  0xaf   : > { %s16923_s24 = sand.u32 1, %s19423_s27  }
  0xb0   : > { %s14291_s26 = sshll.u32 %s16923_s24, 4  ;;  %s427_s15 = scalar_lea.sflag [#allocation4], %s16923_s24 }
  0xb1   : > { %s16927_s17 = scalar_lea.vmem [#allocation3], %s14291_s26 }
  0xb2   : > { %16543 = dma.done.wait (%p16733_p7), %s427_s15, 256  }
  0xb3   : > { %16545 = vsyncadd (%p16733_p7), %s427_s15, 4294967040  ;;  %s19425_s19 = sld [smem:[#allocation29_spill]]  ;;  %s14292_s4 = sshll.u32 %s16923_s24, 11 }
  0xb4   : > { %s16935_s7 = scalar_lea.vmem [#allocation6], %s14292_s4 }
  0xb9   : > { %s435_s21 = sand.u32 1, %s19425_s19  }
  0xba   : > { %s436_s28 = scalar_lea.sflag [#allocation7], %s435_s21 }
  0xbb   : > { %16547 = dma.done.wait (%p16733_p7), %s436_s28, 32896  }
  0xbc   : > { %16549 = vsyncadd (%p16733_p7), %s436_s28, 4294934400  ;;  %s19426_s12 = sld [smem:[#allocation22_spill]]  ;;  %s14293_s3 = sshll.u32 %s16923_s24, 3 }
  0xbd   : > { %s16943_s29 = scalar_lea.vmem [#allocation8], %s14293_s3  ;;  %s454_s18 = scalar_lea.sflag [#allocation10], %s435_s21 }
  0xc2   : > { %s455_s8 = sand.u32 1, %s19426_s12  }
  0xc3   : > { %s14294_s30 = sshll.u32 %s455_s8, 12 }
  0xc4   : > { %s16945_s1 = scalar_lea.vmem [#allocation9], %s14294_s30 }
  0xc5   : > { %16551 = dma.done.wait (%p16807_p13), %s454_s18, 65664  }
  0xc6   : > { %16553 = vsyncadd (%p16807_p13), %s454_s18, 4294901632  ;;  %s14295_s25 = sshll.u32 %s455_s8, 3  ;;  %s14296_s22 = sshll.u32 %s455_s8, 13 }
  0xc7   : > { %s16951_s20 = scalar_lea.vmem [#allocation11], %s14295_s25  ;;  %s472_s16 = scalar_lea.sflag [#allocation13], %s435_s21 }
  0xc8   : > { %s16953_s14 = scalar_lea.vmem [#allocation12], %s14296_s22 }
  0xc9   : > { %16555 = dma.done.wait (%p16807_p13), %s472_s16, 131072  }
  0xca   : > { %16557 = vsyncadd (%p16807_p13), %s472_s16, 4294836224  ;;  %s16959_s27 = scalar_lea.vmem [#allocation14], %s14291_s26 }
  0xcb   : > { %16559 = dma.done.wait (%p16733_p7), %s472_s16, 256  }
  0xcc   : > { %16561 = vsyncadd (%p16733_p7), %s472_s16, 4294967040  ;;  %s14298_s15 = sshll.u32 %s16923_s24, 7  ;;  %s19427_s21 = sld [smem:[#allocation27_spill]] }
  0xcd   : > { %s16966_s19 = scalar_lea.vmem [#allocation15], %s14298_s15 }
  0xd2   : > { %p14299_p8 = scmp.ne.s32.totalorder %s19427_s21, 0 }
  0xd4   : > { %551 = sbr.rel (%p14299_p8) target bundleno = 682 (0x2aa), region = 80 }
  0xd9   : > { %v610_v0 = vld [vmem:[%s16935_s7 + $0x1c0] sm:$0xff]  ;;  %v17001_v54 = vld [vmem:[%s16927_s17 + $0x8] sm:$0xff] }
  0xda   : > { %v614_v1 = vld [vmem:[%s16935_s7 + $0x1e0] sm:$0xff]  ;;  %v17011_v59 = vcombine.high %v17001_v54, %v17001_v54 }
  0xdb   : > { %v738_v2 = vld [vmem:[%s16935_s7 + $0x5c0] sm:$0xff]  ;;  %v14361_v3 = vcombine.high %v610_v0, %v614_v1  ;;  %v14360_v5 = vcombine.low %v610_v0, %v614_v1 }
  0xdc   : > { %v742_v4 = vld [vmem:[%s16935_s7 + $0x5e0] sm:$0xff]  ;;  %2219 = vmatprep.mubr.bf16.mxu1 %v17011_v59 }
  0xdd   : > { %v602_v6 = vld [vmem:[%s16935_s7 + $0x180] sm:$0xff]  ;;  %v14489_v8 = vcombine.high %v738_v2, %v742_v4  ;;  %v14488_v9 = vcombine.low %v738_v2, %v742_v4  ;;  %2146 = vmatprep.subr.bf16.mxu0 %v14361_v3 }
  0xde   : > { %v606_v7 = vld [vmem:[%s16935_s7 + $0x1a0] sm:$0xff]  ;;  %2147 = vmatpush1.bf16.msra.mxu0 %v14360_v5 }
  0xdf   : > { %v14353_v10 = vcombine.high %v602_v6, %v606_v7  ;;  %v730_v11 = vld [vmem:[%s16935_s7 + $0x580] sm:$0xff]  ;;  %2187 = vmatprep.subr.bf16.mxu1 %v14489_v8  ;;  %v14352_v18 = vcombine.low %v602_v6, %v606_v7 }
  0xe0   : > { %v734_v12 = vld [vmem:[%s16935_s7 + $0x5a0] sm:$0xff]  ;;  %2188 = vmatpush1.bf16.msra.mxu1 %v14488_v9 }
  0xe1   : > { %v594_v13 = vld [vmem:[%s16935_s7 + $0x140] sm:$0xff]  ;;  %v14481_v14 = vcombine.high %v730_v11, %v734_v12  ;;  %2148 = vmatprep.subr.bf16.mxu0 %v14353_v10  ;;  %v14480_v19 = vcombine.low %v730_v11, %v734_v12 }
  0xe2   : > { %v598_v15 = vld [vmem:[%s16935_s7 + $0x160] sm:$0xff]  ;;  %2149 = vmatpush1.bf16.msra.mxu0 %v14352_v18 }
  0xe3   : > { %v722_v16 = vld [vmem:[%s16935_s7 + $0x540] sm:$0xff]  ;;  %v14345_v20 = vcombine.high %v594_v13, %v598_v15  ;;  %2189 = vmatprep.subr.bf16.mxu1 %v14481_v14  ;;  %v14344_v26 = vcombine.low %v594_v13, %v598_v15 }
  0xe4   : > { %v726_v17 = vld [vmem:[%s16935_s7 + $0x560] sm:$0xff]  ;;  %2190 = vmatpush1.bf16.msra.mxu1 %v14480_v19 }
  0xe5   : > { %v14473_v21 = vcombine.high %v722_v16, %v726_v17  ;;  %v586_v22 = vld [vmem:[%s16935_s7 + $0x100] sm:$0xff]  ;;  %2150 = vmatprep.subr.bf16.mxu0 %v14345_v20  ;;  %v14472_v27 = vcombine.low %v722_v16, %v726_v17 }
  0xe6   : > { %v590_v23 = vld [vmem:[%s16935_s7 + $0x120] sm:$0xff]  ;;  %2151 = vmatpush1.bf16.msra.mxu0 %v14344_v26 }
  0xe7   : > { %v714_v24 = vld [vmem:[%s16935_s7 + $0x500] sm:$0xff]  ;;  %v14337_v28 = vcombine.high %v586_v22, %v590_v23  ;;  %2191 = vmatprep.subr.bf16.mxu1 %v14473_v21  ;;  %v14336_v34 = vcombine.low %v586_v22, %v590_v23 }
  0xe8   : > { %v718_v25 = vld [vmem:[%s16935_s7 + $0x520] sm:$0xff]  ;;  %2192 = vmatpush1.bf16.msra.mxu1 %v14472_v27 }
  0xe9   : > { %v14465_v29 = vcombine.high %v714_v24, %v718_v25  ;;  %v578_v30 = vld [vmem:[%s16935_s7 + $0xc0] sm:$0xff]  ;;  %2152 = vmatprep.subr.bf16.mxu0 %v14337_v28  ;;  %v14464_v35 = vcombine.low %v714_v24, %v718_v25 }
  0xea   : > { %v582_v31 = vld [vmem:[%s16935_s7 + $0xe0] sm:$0xff]  ;;  %2153 = vmatpush1.bf16.msra.mxu0 %v14336_v34 }
  0xeb   : > { %v706_v32 = vld [vmem:[%s16935_s7 + $0x4c0] sm:$0xff]  ;;  %v14329_v36 = vcombine.high %v578_v30, %v582_v31  ;;  %2193 = vmatprep.subr.bf16.mxu1 %v14465_v29  ;;  %v14328_v42 = vcombine.low %v578_v30, %v582_v31 }
  0xec   : > { %v710_v33 = vld [vmem:[%s16935_s7 + $0x4e0] sm:$0xff]  ;;  %2194 = vmatpush1.bf16.msra.mxu1 %v14464_v35 }
  0xed   : > { %v14457_v37 = vcombine.high %v706_v32, %v710_v33  ;;  %v570_v38 = vld [vmem:[%s16935_s7 + $0x80] sm:$0xff]  ;;  %2154 = vmatprep.subr.bf16.mxu0 %v14329_v36  ;;  %v14456_v43 = vcombine.low %v706_v32, %v710_v33 }
  0xee   : > { %v574_v39 = vld [vmem:[%s16935_s7 + $0xa0] sm:$0xff]  ;;  %2155 = vmatpush1.bf16.msra.mxu0 %v14328_v42 }
  0xef   : > { %v698_v40 = vld [vmem:[%s16935_s7 + $0x480] sm:$0xff]  ;;  %v14321_v44 = vcombine.high %v570_v38, %v574_v39  ;;  %2195 = vmatprep.subr.bf16.mxu1 %v14457_v37  ;;  %v14320_v50 = vcombine.low %v570_v38, %v574_v39 }
  0xf0   : > { %v702_v41 = vld [vmem:[%s16935_s7 + $0x4a0] sm:$0xff]  ;;  %2196 = vmatpush1.bf16.msra.mxu1 %v14456_v43 }
  0xf1   : > { %v14449_v45 = vcombine.high %v698_v40, %v702_v41  ;;  %v562_v46 = vld [vmem:[%s16935_s7 + $0x40] sm:$0xff]  ;;  %2156 = vmatprep.subr.bf16.mxu0 %v14321_v44  ;;  %v14448_v51 = vcombine.low %v698_v40, %v702_v41 }
  0xf2   : > { %v566_v47 = vld [vmem:[%s16935_s7 + $0x60] sm:$0xff]  ;;  %2157 = vmatpush1.bf16.msra.mxu0 %v14320_v50 }
  0xf3   : > { %v690_v48 = vld [vmem:[%s16935_s7 + $0x440] sm:$0xff]  ;;  %v14313_v52 = vcombine.high %v562_v46, %v566_v47  ;;  %2197 = vmatprep.subr.bf16.mxu1 %v14449_v45  ;;  %v14312_v62 = vcombine.low %v562_v46, %v566_v47 }
  0xf4   : > { %v694_v49 = vld [vmem:[%s16935_s7 + $0x460] sm:$0xff]  ;;  %2198 = vmatpush1.bf16.msra.mxu1 %v14448_v51 }
  0xf5   : > { %v16998_v53 = vld [vmem:[%s16927_s17] sm:$0xff]  ;;  %v14441_v55 = vcombine.high %v690_v48, %v694_v49  ;;  %2158 = vmatprep.subr.bf16.mxu0 %v14313_v52  ;;  %v14440_v63 = vcombine.low %v690_v48, %v694_v49 }
  0xf6   : > { %v554_v56 = vld [vmem:[%s16935_s7] sm:$0xff]  ;;  %v17007_v58 = vcombine.high %v16998_v53, %v16998_v53  ;;  %2159 = vmatpush1.bf16.msra.mxu0 %v14312_v62 }
  0xf7   : > { %v558_v57 = vld [vmem:[%s16935_s7 + $0x20] sm:$0xff]  ;;  %2199 = vmatprep.subr.bf16.mxu1 %v14441_v55 }
  0xf8   : > { %v682_v60 = vld [vmem:[%s16935_s7 + $0x400] sm:$0xff]  ;;  %2178 = vmatprep.mubr.bf16.mxu0 %v17007_v58  ;;  %v14305_v0 = vcombine.high %v554_v56, %v558_v57  ;;  %v14304_v6 = vcombine.low %v554_v56, %v558_v57  ;;  %2200 = vmatpush1.bf16.msra.mxu1 %v14440_v63 }
  0xf9   : > { %v686_v61 = vld [vmem:[%s16935_s7 + $0x420] sm:$0xff] }
  0xfa   : > { %v14433_v1 = vcombine.high %v682_v60, %v686_v61  ;;  %v674_v2 = vld [vmem:[%s16935_s7 + $0x3c0] sm:$0xff]  ;;  %2160 = vmatprep.subr.bf16.mxu0 %v14305_v0  ;;  %v14432_v7 = vcombine.low %v682_v60, %v686_v61 }
  0xfb   : > { %v678_v3 = vld [vmem:[%s16935_s7 + $0x3e0] sm:$0xff]  ;;  %2161 = vmatpush1.bf16.msra.mxu0 %v14304_v6  ;;  %v611_v6 = vld [vmem:[%s16935_s7 + $0x1c8] sm:$0xff] }
  0xfc   : > { %v802_v4 = vld [vmem:[%s16935_s7 + $0x7c0] sm:$0xff]  ;;  %v14425_v8 = vcombine.high %v674_v2, %v678_v3  ;;  %2201 = vmatprep.subr.bf16.mxu1 %v14433_v1  ;;  %v14424_v14 = vcombine.low %v674_v2, %v678_v3 }
  0xfd   : > { %v806_v5 = vld [vmem:[%s16935_s7 + $0x7e0] sm:$0xff]  ;;  %2202 = vmatpush1.bf16.msra.mxu1 %v14432_v7  ;;  %v615_v7 = vld [vmem:[%s16935_s7 + $0x1e8] sm:$0xff] }
  0xfe   : > { %v14553_v9 = vcombine.high %v802_v4, %v806_v5  ;;  %v666_v10 = vld [vmem:[%s16935_s7 + $0x380] sm:$0xff]  ;;  %2162 = vmatprep.subr.bf16.mxu0 %v14425_v8  ;;  %v14552_v15 = vcombine.low %v802_v4, %v806_v5  ;;  %v739_v8 = vld [vmem:[%s16935_s7 + $0x5c8] sm:$0xff] }
  0xff   : > { %v670_v11 = vld [vmem:[%s16935_s7 + $0x3a0] sm:$0xff]  ;;  %2163 = vmatpush2.bf16.msra.mxu0 %v14424_v14  ;;  %v603_v14 = vld [vmem:[%s16935_s7 + $0x188] sm:$0xff] }
 0x100   : > { %v794_v12 = vld [vmem:[%s16935_s7 + $0x780] sm:$0xff]  ;;  %v14417_v16 = vcombine.high %v666_v10, %v670_v11  ;;  %2203 = vmatprep.subr.bf16.mxu1 %v14553_v9  ;;  %v14416_v22 = vcombine.low %v666_v10, %v670_v11  ;;  %v743_v9 = vld [vmem:[%s16935_s7 + $0x5e8] sm:$0xff] }
 0x101   : > { %v798_v13 = vld [vmem:[%s16935_s7 + $0x7a0] sm:$0xff]  ;;  %2204 = vmatpush2.bf16.msra.mxu1 %v14552_v15  ;;  %v607_v15 = vld [vmem:[%s16935_s7 + $0x1a8] sm:$0xff] }
 0x102   : > { %v14545_v17 = vcombine.high %v794_v12, %v798_v13  ;;  %v658_v18 = vld [vmem:[%s16935_s7 + $0x340] sm:$0xff]  ;;  %2164 = vmatprep.subr.bf16.mxu0 %v14417_v16  ;;  %v14544_v23 = vcombine.low %v794_v12, %v798_v13  ;;  %v14363_v12 = vcombine.high %v611_v6, %v615_v7  ;;  %v14491_v13 = vcombine.high %v739_v8, %v743_v9 }
 0x103   : > { %v662_v19 = vld [vmem:[%s16935_s7 + $0x360] sm:$0xff]  ;;  %2165 = vmatpush2.bf16.msra.mxu0 %v14416_v22  ;;  %v17057_v16 = vcombine.low %v16998_v53, %v16998_v53  ;;  %v14355_v22 = vcombine.high %v603_v14, %v607_v15  ;;  %v599_v53 = vld [vmem:[%s16935_s7 + $0x168] sm:$0xff] }
 0x104   : > { %v786_v20 = vld [vmem:[%s16935_s7 + $0x740] sm:$0xff]  ;;  %v14409_v24 = vcombine.high %v658_v18, %v662_v19  ;;  %2205 = vmatprep.subr.bf16.mxu1 %v14545_v17  ;;  %v14408_v30 = vcombine.low %v658_v18, %v662_v19  ;;  %v731_v17 = vld [vmem:[%s16935_s7 + $0x588] sm:$0xff]  ;;  %v17063_v19 = vcombine.low %v17001_v54, %v17001_v54  ;;  %v14354_v54 = vcombine.low %v603_v14, %v607_v15 }
 0x105   : > { %v790_v21 = vld [vmem:[%s16935_s7 + $0x760] sm:$0xff]  ;;  %2206 = vmatpush2.bf16.msra.mxu1 %v14544_v23  ;;  %v735_v18 = vld [vmem:[%s16935_s7 + $0x5a8] sm:$0xff] }
 0x106   : > { %v14537_v25 = vcombine.high %v786_v20, %v790_v21  ;;  %v650_v26 = vld [vmem:[%s16935_s7 + $0x300] sm:$0xff]  ;;  %2166 = vmatprep.subr.bf16.mxu0 %v14409_v24  ;;  %v14536_v31 = vcombine.low %v786_v20, %v790_v21  ;;  %v14362_v20 = vcombine.low %v611_v6, %v615_v7  ;;  %v14490_v21 = vcombine.low %v739_v8, %v743_v9  ;;  %v595_v24 = vld [vmem:[%s16935_s7 + $0x148] sm:$0xff] }
 0x107   : > { %v654_v27 = vld [vmem:[%s16935_s7 + $0x320] sm:$0xff]  ;;  %2167 = vmatpush2.bf16.msra.mxu0 %v14408_v30  ;;  %v14483_v23 = vcombine.high %v731_v17, %v735_v18  ;;  %v587_v30 = vld [vmem:[%s16935_s7 + $0x108] sm:$0xff] }
 0x108   : > { %v778_v28 = vld [vmem:[%s16935_s7 + $0x700] sm:$0xff]  ;;  %v14401_v32 = vcombine.high %v650_v26, %v654_v27  ;;  %2207 = vmatprep.subr.bf16.mxu1 %v14537_v25  ;;  %v14400_v38 = vcombine.low %v650_v26, %v654_v27  ;;  %v723_v25 = vld [vmem:[%s16935_s7 + $0x548] sm:$0xff]  ;;  %v14482_v27 = vcombine.low %v731_v17, %v735_v18 }
 0x109   : > { %v782_v29 = vld [vmem:[%s16935_s7 + $0x720] sm:$0xff]  ;;  %2208 = vmatpush2.bf16.msra.mxu1 %v14536_v31  ;;  %v727_v26 = vld [vmem:[%s16935_s7 + $0x568] sm:$0xff] }
 0x10a   : > { %v14529_v33 = vcombine.high %v778_v28, %v782_v29  ;;  %v642_v34 = vld [vmem:[%s16935_s7 + $0x2c0] sm:$0xff]  ;;  %2168 = vmatprep.subr.bf16.mxu0 %v14401_v32  ;;  %v14528_v39 = vcombine.low %v778_v28, %v782_v29  ;;  %v14347_v28 = vcombine.high %v595_v24, %v599_v53  ;;  %v14475_v29 = vcombine.high %v723_v25, %v727_v26  ;;  %v591_v31 = vld [vmem:[%s16935_s7 + $0x128] sm:$0xff] }
 0x10b   : > { %v646_v35 = vld [vmem:[%s16935_s7 + $0x2e0] sm:$0xff]  ;;  %2169 = vmatpush2.bf16.msra.mxu0 %v14400_v38  ;;  %v715_v32 = vld [vmem:[%s16935_s7 + $0x508] sm:$0xff] }
 0x10c   : > { %v770_v36 = vld [vmem:[%s16935_s7 + $0x6c0] sm:$0xff]  ;;  %v14393_v40 = vcombine.high %v642_v34, %v646_v35  ;;  %2209 = vmatprep.subr.bf16.mxu1 %v14529_v33  ;;  %v14392_v46 = vcombine.low %v642_v34, %v646_v35  ;;  %v719_v33 = vld [vmem:[%s16935_s7 + $0x528] sm:$0xff]  ;;  %v14346_v34 = vcombine.low %v595_v24, %v599_v53  ;;  %v14474_v35 = vcombine.low %v723_v25, %v727_v26 }
 0x10d   : > { %v774_v37 = vld [vmem:[%s16935_s7 + $0x6e0] sm:$0xff]  ;;  %2210 = vmatpush2.bf16.msra.mxu1 %v14528_v39  ;;  %v579_v38 = vld [vmem:[%s16935_s7 + $0xc8] sm:$0xff] }
 0x10e   : > { %v14521_v41 = vcombine.high %v770_v36, %v774_v37  ;;  %v634_v42 = vld [vmem:[%s16935_s7 + $0x280] sm:$0xff]  ;;  %2170 = vmatprep.subr.bf16.mxu0 %v14393_v40  ;;  %v14520_v47 = vcombine.low %v770_v36, %v774_v37  ;;  %v14339_v36 = vcombine.high %v587_v30, %v591_v31  ;;  %v14467_v37 = vcombine.high %v715_v32, %v719_v33  ;;  %v583_v39 = vld [vmem:[%s16935_s7 + $0xe8] sm:$0xff] }
 0x10f   : > { %v638_v43 = vld [vmem:[%s16935_s7 + $0x2a0] sm:$0xff]  ;;  %2171 = vmatpush2.bf16.msra.mxu0 %v14392_v46  ;;  %v707_v40 = vld [vmem:[%s16935_s7 + $0x4c8] sm:$0xff] }
 0x110   : > { %v762_v44 = vld [vmem:[%s16935_s7 + $0x680] sm:$0xff]  ;;  %v14385_v48 = vcombine.high %v634_v42, %v638_v43  ;;  %2211 = vmatprep.subr.bf16.mxu1 %v14521_v41  ;;  %v14384_v56 = vcombine.low %v634_v42, %v638_v43  ;;  %v711_v41 = vld [vmem:[%s16935_s7 + $0x4e8] sm:$0xff]  ;;  %v14338_v42 = vcombine.low %v587_v30, %v591_v31  ;;  %v14466_v43 = vcombine.low %v715_v32, %v719_v33 }
 0x111   : > { %v766_v45 = vld [vmem:[%s16935_s7 + $0x6a0] sm:$0xff]  ;;  %2212 = vmatpush2.bf16.msra.mxu1 %v14520_v47  ;;  %v571_v46 = vld [vmem:[%s16935_s7 + $0x88] sm:$0xff] }
 0x112   : > { %v14513_v49 = vcombine.high %v762_v44, %v766_v45  ;;  %v626_v50 = vld [vmem:[%s16935_s7 + $0x240] sm:$0xff]  ;;  %2172 = vmatprep.subr.bf16.mxu0 %v14385_v48  ;;  %v14512_v57 = vcombine.low %v762_v44, %v766_v45  ;;  %v14331_v44 = vcombine.high %v579_v38, %v583_v39  ;;  %v14459_v45 = vcombine.high %v707_v40, %v711_v41  ;;  %v575_v47 = vld [vmem:[%s16935_s7 + $0xa8] sm:$0xff] }
 0x113   : > { %v630_v51 = vld [vmem:[%s16935_s7 + $0x260] sm:$0xff]  ;;  %2173 = vmatpush2.bf16.msra.mxu0 %v14384_v56  ;;  %v699_v48 = vld [vmem:[%s16935_s7 + $0x488] sm:$0xff] }
 0x114   : > { %v754_v52 = vld [vmem:[%s16935_s7 + $0x640] sm:$0xff]  ;;  %v14377_v60 = vcombine.high %v626_v50, %v630_v51  ;;  %2213 = vmatprep.subr.bf16.mxu1 %v14513_v49  ;;  %v14376_v2 = vcombine.low %v626_v50, %v630_v51  ;;  %v703_v49 = vld [vmem:[%s16935_s7 + $0x4a8] sm:$0xff]  ;;  %v14330_v50 = vcombine.low %v579_v38, %v583_v39  ;;  %v14458_v51 = vcombine.low %v707_v40, %v711_v41 }
 0x115   : > { %v758_v55 = vld [vmem:[%s16935_s7 + $0x660] sm:$0xff]  ;;  %2214 = vmatpush2.bf16.msra.mxu1 %v14512_v57  ;;  %v563_v56 = vld [vmem:[%s16935_s7 + $0x48] sm:$0xff] }
 0x116   : > { %v14505_v61 = vcombine.high %v754_v52, %v758_v55  ;;  %v618_v62 = vld [vmem:[%s16935_s7 + $0x200] sm:$0xff]  ;;  %2174 = vmatprep.subr.bf16.mxu0 %v14377_v60  ;;  %v14504_v3 = vcombine.low %v754_v52, %v758_v55  ;;  %v14323_v52 = vcombine.high %v571_v46, %v575_v47  ;;  %v14451_v55 = vcombine.high %v699_v48, %v703_v49  ;;  %v567_v57 = vld [vmem:[%s16935_s7 + $0x68] sm:$0xff] }
 0x117   : > { %v622_v63 = vld [vmem:[%s16935_s7 + $0x220] sm:$0xff]  ;;  %2175 = vmatpush2.bf16.msra.mxu0 %v14376_v2  ;;  %v691_v60 = vld [vmem:[%s16935_s7 + $0x448] sm:$0xff]  ;;  %v14314_v6 = vcombine.low %v563_v56, %v567_v57 }
 0x118   : > { %v746_v0 = vld [vmem:[%s16935_s7 + $0x600] sm:$0xff]  ;;  %v14369_v4 = vcombine.high %v618_v62, %v622_v63  ;;  %2215 = vmatprep.subr.bf16.mxu1 %v14505_v61  ;;  %v14368_v10 = vcombine.low %v618_v62, %v622_v63  ;;  %v695_v61 = vld [vmem:[%s16935_s7 + $0x468] sm:$0xff]  ;;  %v14322_v62 = vcombine.low %v571_v46, %v575_v47  ;;  %v14450_v63 = vcombine.low %v699_v48, %v703_v49 }
 0x119   : > { %v750_v1 = vld [vmem:[%s16935_s7 + $0x620] sm:$0xff]  ;;  %2216 = vmatpush2.bf16.msra.mxu1 %v14504_v3  ;;  %v555_v2 = vld [vmem:[%s16935_s7 + $0x8] sm:$0xff]  ;;  %v14442_v7 = vcombine.low %v691_v60, %v695_v61 }
 0x11a   : > { %v14497_v5 = vcombine.high %v746_v0, %v750_v1  ;;  %2176 = vmatprep.subr.bf16.mxu0 %v14369_v4  ;;  %v14496_v11 = vcombine.low %v746_v0, %v750_v1  ;;  %v14315_v0 = vcombine.high %v563_v56, %v567_v57  ;;  %v14443_v1 = vcombine.high %v691_v60, %v695_v61  ;;  %v559_v3 = vld [vmem:[%s16935_s7 + $0x28] sm:$0xff] }
 0x11b   : > { %2177 = vmatpush2.bf16.msra.mxu0 %v14368_v10  ;;  %v683_v4 = vld [vmem:[%s16935_s7 + $0x408] sm:$0xff]  ;;  %v14307_v8 = vcombine.high %v555_v2, %v559_v3  ;;  %v14306_v14 = vcombine.low %v555_v2, %v559_v3 }
 0x11c   : > { %2217 = vmatprep.subr.bf16.mxu1 %v14497_v5  ;;  %2228 = vmatprep.subr.bf16.mxu0 %v14363_v12  ;;  %v687_v5 = vld [vmem:[%s16935_s7 + $0x428] sm:$0xff] }
 0x11d   : > { %2218 = vmatpush2.bf16.msra.mxu1 %v14496_v11  ;;  %v14435_v9 = vcombine.high %v683_v4, %v687_v5  ;;  %v675_v10 = vld [vmem:[%s16935_s7 + $0x3c8] sm:$0xff]  ;;  %v14434_v15 = vcombine.low %v683_v4, %v687_v5 }
 0x11e   : > { %2269 = vmatprep.subr.bf16.mxu1 %v14491_v13  ;;  %2179 = vmatmul.mubr.bf16.vlgmr.msra.gmra.mxu0 %v17057_v16  ;;  %v679_v11 = vld [vmem:[%s16935_s7 + $0x3e8] sm:$0xff] }
 0x11f   : > { %2229 = vmatpush1.bf16.msra.mxu0 %v14362_v20  ;;  %2260 = vmatprep.mubr.bf16.mxu0 %v17007_v58  ;;  %v803_v12 = vld [vmem:[%s16935_s7 + $0x7c8] sm:$0xff]  ;;  %v14427_v17 = vcombine.high %v675_v10, %v679_v11  ;;  %v14426_v24 = vcombine.low %v675_v10, %v679_v11 }
 0x120   : > { %2220 = vmatmul.mubr.bf16.vlgmr.msra.gmra.mxu1 %v17063_v19  ;;  %2230 = vmatprep.subr.bf16.mxu0 %v14355_v22  ;;  %v807_v13 = vld [vmem:[%s16935_s7 + $0x7e8] sm:$0xff] }
 0x121   : > { %2270 = vmatpush1.bf16.msra.mxu1 %v14490_v21  ;;  %2301 = vmatprep.mubr.bf16.mxu1 %v17011_v59  ;;  %v14555_v18 = vcombine.high %v803_v12, %v807_v13  ;;  %v667_v20 = vld [vmem:[%s16935_s7 + $0x388] sm:$0xff]  ;;  %v14554_v53 = vcombine.low %v803_v12, %v807_v13 }
 0x122   : > { %2271 = vmatprep.subr.bf16.mxu1 %v14483_v23  ;;  %v671_v21 = vld [vmem:[%s16935_s7 + $0x3a8] sm:$0xff] }
 0x123   : > { %2231 = vmatpush1.bf16.msra.mxu0 %v14354_v54  ;;  %v795_v22 = vld [vmem:[%s16935_s7 + $0x788] sm:$0xff]  ;;  %v14419_v25 = vcombine.high %v667_v20, %v671_v21  ;;  %v14418_v30 = vcombine.low %v667_v20, %v671_v21 }
 0x124   : > { %2232 = vmatprep.subr.bf16.mxu0 %v14347_v28  ;;  %v799_v23 = vld [vmem:[%s16935_s7 + $0x7a8] sm:$0xff] }
 0x125   : > { %2272 = vmatpush1.bf16.msra.mxu1 %v14482_v27  ;;  %v14547_v26 = vcombine.high %v795_v22, %v799_v23  ;;  %v659_v54 = vld [vmem:[%s16935_s7 + $0x348] sm:$0xff]  ;;  %v14546_v31 = vcombine.low %v795_v22, %v799_v23 }
 0x126   : > { %2273 = vmatprep.subr.bf16.mxu1 %v14475_v29  ;;  %v663_v27 = vld [vmem:[%s16935_s7 + $0x368] sm:$0xff] }
 0x127   : > { %2233 = vmatpush1.bf16.msra.mxu0 %v14346_v34  ;;  %v787_v28 = vld [vmem:[%s16935_s7 + $0x748] sm:$0xff]  ;;  %v14411_v32 = vcombine.high %v659_v54, %v663_v27  ;;  %v14410_v38 = vcombine.low %v659_v54, %v663_v27  ;;  %v736_v54 = vld [vmem:[%s16935_s7 + $0x5b0] sm:$0xff] }
 0x128   : > { %2234 = vmatprep.subr.bf16.mxu0 %v14339_v36  ;;  %v791_v29 = vld [vmem:[%s16935_s7 + $0x768] sm:$0xff] }
 0x129   : > { %2274 = vmatpush1.bf16.msra.mxu1 %v14474_v35  ;;  %v14539_v33 = vcombine.high %v787_v28, %v791_v29  ;;  %v651_v34 = vld [vmem:[%s16935_s7 + $0x308] sm:$0xff]  ;;  %v14538_v39 = vcombine.low %v787_v28, %v791_v29 }
 0x12a   : > { %2275 = vmatprep.subr.bf16.mxu1 %v14467_v37  ;;  %v655_v35 = vld [vmem:[%s16935_s7 + $0x328] sm:$0xff] }
 0x12b   : > { %2235 = vmatpush1.bf16.msra.mxu0 %v14338_v42  ;;  %v779_v36 = vld [vmem:[%s16935_s7 + $0x708] sm:$0xff]  ;;  %v14403_v40 = vcombine.high %v651_v34, %v655_v35  ;;  %v14402_v46 = vcombine.low %v651_v34, %v655_v35  ;;  %v724_v34 = vld [vmem:[%s16935_s7 + $0x550] sm:$0xff] }
 0x12c   : > { %2236 = vmatprep.subr.bf16.mxu0 %v14331_v44  ;;  %v783_v37 = vld [vmem:[%s16935_s7 + $0x728] sm:$0xff]  ;;  %v728_v35 = vld [vmem:[%s16935_s7 + $0x570] sm:$0xff] }
 0x12d   : > { %2276 = vmatpush1.bf16.msra.mxu1 %v14466_v43  ;;  %v14531_v41 = vcombine.high %v779_v36, %v783_v37  ;;  %v643_v42 = vld [vmem:[%s16935_s7 + $0x2c8] sm:$0xff]  ;;  %v14530_v47 = vcombine.low %v779_v36, %v783_v37 }
 0x12e   : > { %2277 = vmatprep.subr.bf16.mxu1 %v14459_v45  ;;  %v647_v43 = vld [vmem:[%s16935_s7 + $0x2e8] sm:$0xff] }
 0x12f   : > { %2237 = vmatpush1.bf16.msra.mxu0 %v14330_v50  ;;  %v771_v44 = vld [vmem:[%s16935_s7 + $0x6c8] sm:$0xff]  ;;  %v14395_v48 = vcombine.high %v643_v42, %v647_v43  ;;  %v14394_v56 = vcombine.low %v643_v42, %v647_v43 }
 0x130   : > { %2238 = vmatprep.subr.bf16.mxu0 %v14323_v52  ;;  %v775_v45 = vld [vmem:[%s16935_s7 + $0x6e8] sm:$0xff] }
 0x131   : > { %2278 = vmatpush1.bf16.msra.mxu1 %v14458_v51  ;;  %v14523_v49 = vcombine.high %v771_v44, %v775_v45  ;;  %v635_v50 = vld [vmem:[%s16935_s7 + $0x288] sm:$0xff]  ;;  %v14522_v57 = vcombine.low %v771_v44, %v775_v45  ;;  %v14477_v44 = vcombine.high %v724_v34, %v728_v35  ;;  %v588_v45 = vld [vmem:[%s16935_s7 + $0x110] sm:$0xff] }
 0x132   : > { %2279 = vmatprep.subr.bf16.mxu1 %v14451_v55  ;;  %v639_v51 = vld [vmem:[%s16935_s7 + $0x2a8] sm:$0xff] }
 0x133   : > { %2239 = vmatpush1.bf16.msra.mxu0 %v14322_v62  ;;  %v763_v52 = vld [vmem:[%s16935_s7 + $0x688] sm:$0xff]  ;;  %v14387_v60 = vcombine.high %v635_v50, %v639_v51  ;;  %v14386_v2 = vcombine.low %v635_v50, %v639_v51 }
 0x134   : > { %2240 = vmatprep.subr.bf16.mxu0 %v14315_v0  ;;  %v767_v55 = vld [vmem:[%s16935_s7 + $0x6a8] sm:$0xff] }
 0x135   : > { %2280 = vmatpush1.bf16.msra.mxu1 %v14450_v63  ;;  %v14515_v61 = vcombine.high %v763_v52, %v767_v55  ;;  %v627_v62 = vld [vmem:[%s16935_s7 + $0x248] sm:$0xff]  ;;  %v14514_v3 = vcombine.low %v763_v52, %v767_v55  ;;  %v14476_v55 = vcombine.low %v724_v34, %v728_v35 }
 0x136   : > { %2281 = vmatprep.subr.bf16.mxu1 %v14443_v1  ;;  %v631_v63 = vld [vmem:[%s16935_s7 + $0x268] sm:$0xff] }
 0x137   : > { %2241 = vmatpush1.bf16.msra.mxu0 %v14314_v6  ;;  %v755_v0 = vld [vmem:[%s16935_s7 + $0x648] sm:$0xff]  ;;  %v14379_v4 = vcombine.high %v627_v62, %v631_v63  ;;  %v14378_v10 = vcombine.low %v627_v62, %v631_v63  ;;  %v708_v62 = vld [vmem:[%s16935_s7 + $0x4d0] sm:$0xff] }
 0x138   : > { %2242 = vmatprep.subr.bf16.mxu0 %v14307_v8  ;;  %v759_v1 = vld [vmem:[%s16935_s7 + $0x668] sm:$0xff]  ;;  %v712_v63 = vld [vmem:[%s16935_s7 + $0x4f0] sm:$0xff] }
 0x139   : > { %2282 = vmatpush1.bf16.msra.mxu1 %v14442_v7  ;;  %v14507_v5 = vcombine.high %v755_v0, %v759_v1  ;;  %v619_v6 = vld [vmem:[%s16935_s7 + $0x208] sm:$0xff]  ;;  %v14506_v11 = vcombine.low %v755_v0, %v759_v1 }
 0x13a   : > { %2283 = vmatprep.subr.bf16.mxu1 %v14435_v9  ;;  %v623_v7 = vld [vmem:[%s16935_s7 + $0x228] sm:$0xff] }
 0x13b   : > { %2243 = vmatpush1.bf16.msra.mxu0 %v14306_v14  ;;  %v747_v8 = vld [vmem:[%s16935_s7 + $0x608] sm:$0xff]  ;;  %v14371_v12 = vcombine.high %v619_v6, %v623_v7  ;;  %v612_v14 = vld [vmem:[%s16935_s7 + $0x1d0] sm:$0xff]  ;;  %v14370_v20 = vcombine.low %v619_v6, %v623_v7 }
 0x13c   : > { %2244 = vmatprep.subr.bf16.mxu0 %v14427_v17  ;;  %v751_v9 = vld [vmem:[%s16935_s7 + $0x628] sm:$0xff]  ;;  %v740_v17 = vld [vmem:[%s16935_s7 + $0x5d0] sm:$0xff] }
 0x13d   : > { %2284 = vmatpush1.bf16.msra.mxu1 %v14434_v15  ;;  %v14499_v13 = vcombine.high %v747_v8, %v751_v9  ;;  %v616_v15 = vld [vmem:[%s16935_s7 + $0x1f0] sm:$0xff]  ;;  %v14498_v21 = vcombine.low %v747_v8, %v751_v9  ;;  %v14460_v9 = vcombine.low %v708_v62, %v712_v63 }
 0x13e   : > { %2285 = vmatprep.subr.bf16.mxu1 %v14555_v18  ;;  %v744_v18 = vld [vmem:[%s16935_s7 + $0x5f0] sm:$0xff]  ;;  %v14365_v22 = vcombine.high %v612_v14, %v616_v15  ;;  %v14364_v27 = vcombine.low %v612_v14, %v616_v15 }
 0x13f   : > { %2245 = vmatpush2.bf16.msra.mxu0 %v14426_v24  ;;  %v14493_v23 = vcombine.high %v740_v17, %v744_v18  ;;  %v604_v24 = vld [vmem:[%s16935_s7 + $0x190] sm:$0xff]  ;;  %v14492_v29 = vcombine.low %v740_v17, %v744_v18 }
 0x140   : > { %2246 = vmatprep.subr.bf16.mxu0 %v14419_v25  ;;  %v812_v25 = vlaneseq  ;;  %v700_v6 = vld [vmem:[%s16935_s7 + $0x490] sm:$0xff] }
 0x141   : > { %2286 = vmatpush2.bf16.msra.mxu1 %v14554_v53  ;;  %v608_v53 = vld [vmem:[%s16935_s7 + $0x1b0] sm:$0xff] }
 0x142   : > { %2287 = vmatprep.subr.bf16.mxu1 %v14547_v26  ;;  %v732_v26 = vld [vmem:[%s16935_s7 + $0x590] sm:$0xff]  ;;  %v17133_v28 = vshrl.u32 %v812_v25, 7  ;;  %v14356_v37 = vcombine.low %v604_v24, %v608_v53 }
 0x143   : > { %2247 = vmatpush2.bf16.msra.mxu0 %v14418_v30  ;;  %v14357_v30 = vcombine.high %v604_v24, %v608_v53  ;;  %v704_v7 = vld [vmem:[%s16935_s7 + $0x4b0] sm:$0xff] }
 0x144   : > { %2248 = vmatprep.subr.bf16.mxu0 %v14411_v32  ;;  %v596_v32 = vld [vmem:[%s16935_s7 + $0x150] sm:$0xff]  ;;  %v17141_v36 = vsub.s32 0, %v17133_v28  ;;  %v14452_v18 = vcombine.low %v700_v6, %v704_v7 }
 0x145   : > { %2288 = vmatpush2.bf16.msra.mxu1 %v14546_v31  ;;  %v14485_v31 = vcombine.high %v732_v26, %v736_v54  ;;  %v692_v14 = vld [vmem:[%s16935_s7 + $0x450] sm:$0xff] }
 0x146   : > { %2289 = vmatprep.subr.bf16.mxu1 %v14539_v33  ;;  %v600_v33 = vld [vmem:[%s16935_s7 + $0x170] sm:$0xff] }
 0x147   : > { %2249 = vmatpush2.bf16.msra.mxu0 %v14410_v38  ;;  %v14484_v38 = vcombine.low %v732_v26, %v736_v54  ;;  %v14348_v50 = vcombine.low %v596_v32, %v600_v33  ;;  %v696_v15 = vld [vmem:[%s16935_s7 + $0x470] sm:$0xff] }
 0x148   : > { %2250 = vmatprep.subr.bf16.mxu0 %v14403_v40  ;;  %v17148_v40 = vld [vmem:[%s16959_s27 + $0x8] sm:$0xff]  ;;  %v684_v24 = vld [vmem:[%s16935_s7 + $0x410] sm:$0xff]  ;;  %v14444_v26 = vcombine.low %v692_v14, %v696_v15 }
 0x149   : > { %2290 = vmatpush2.bf16.msra.mxu1 %v14538_v39  ;;  %v17145_v39 = vld [vmem:[%s16959_s27] sm:$0xff]  ;;  %v2557_v43 = vrot.slane %v17148_v40, %v17141_v36 }
 0x14a   : > { %2291 = vmatprep.subr.bf16.mxu1 %v14531_v41  ;;  %v14349_v41 = vcombine.high %v596_v32, %v600_v33  ;;  %v2525_v42 = vrot.slane %v17145_v39, %v17141_v36  ;;  %v688_v53 = vld [vmem:[%s16935_s7 + $0x430] sm:$0xff] }
 0x14b   : > { %2251 = vmatpush2.bf16.msra.mxu0 %v14402_v46  ;;  %v592_v46 = vld [vmem:[%s16935_s7 + $0x130] sm:$0xff]  ;;  %2610 = vst [vmem:[%s16966_s19 + $0x40] sm:$0xff] %v2557_v43  ;;  %v14436_v34 = vcombine.low %v684_v24, %v688_v53 }
 0x14c   : > { %2252 = vmatprep.subr.bf16.mxu0 %v14395_v48  ;;  %v716_v48 = vld [vmem:[%s16935_s7 + $0x510] sm:$0xff]  ;;  %2602 = vst [vmem:[%s16966_s19] sm:$0xff] %v2525_v42  ;;  %v14340_v0 = vcombine.low %v588_v45, %v592_v46 }
 0x14d   : > { %2292 = vmatpush2.bf16.msra.mxu1 %v14530_v47  ;;  %v17158_v47 = vsub.s32 1, %v17133_v28  ;;  %v808_v32 = vld [vmem:[%s16935_s7 + $0x7f0] sm:$0xff] }
 0x14e   : > { %2293 = vmatprep.subr.bf16.mxu1 %v14523_v49  ;;  %v720_v49 = vld [vmem:[%s16935_s7 + $0x530] sm:$0xff] }
 0x14f   : > { %2253 = vmatpush2.bf16.msra.mxu0 %v14394_v56  ;;  %v2529_v51 = vrot.slane %v17145_v39, %v17158_v47  ;;  %v2561_v52 = vrot.slane %v17148_v40, %v17158_v47  ;;  %v14341_v56 = vcombine.high %v588_v45, %v592_v46  ;;  %v14468_v1 = vcombine.low %v716_v48, %v720_v49  ;;  %v796_v42 = vld [vmem:[%s16935_s7 + $0x790] sm:$0xff] }
 0x150   : > { %2254 = vmatprep.subr.bf16.mxu0 %v14387_v60  ;;  %v580_v60 = vld [vmem:[%s16935_s7 + $0xd0] sm:$0xff] }
 0x151   : > { %2294 = vmatpush2.bf16.msra.mxu1 %v14522_v57  ;;  %v14469_v57 = vcombine.high %v716_v48, %v720_v49  ;;  %2603 = vst [vmem:[%s16966_s19 + $0x8] sm:$0xff] %v2529_v51  ;;  %2611 = vst [vmem:[%s16966_s19 + $0x48] sm:$0xff] %v2561_v52  ;;  %v800_v43 = vld [vmem:[%s16935_s7 + $0x7b0] sm:$0xff] }
 0x152   : > { %2295 = vmatprep.subr.bf16.mxu1 %v14515_v61  ;;  %v584_v61 = vld [vmem:[%s16935_s7 + $0xf0] sm:$0xff]  ;;  %v14549_v48 = vcombine.high %v796_v42, %v800_v43 }
 0x153   : > { %2255 = vmatpush2.bf16.msra.mxu0 %v14386_v2  ;;  %v14333_v2 = vcombine.high %v580_v60, %v584_v61  ;;  %v14332_v8 = vcombine.low %v580_v60, %v584_v61  ;;  %v660_v49 = vld [vmem:[%s16935_s7 + $0x350] sm:$0xff] }
 0x154   : > { %2256 = vmatprep.subr.bf16.mxu0 %v14379_v4  ;;  %v572_v4 = vld [vmem:[%s16935_s7 + $0x90] sm:$0xff] }
 0x155   : > { %2296 = vmatpush2.bf16.msra.mxu1 %v14514_v3  ;;  %v14461_v3 = vcombine.high %v708_v62, %v712_v63  ;;  %v788_v51 = vld [vmem:[%s16935_s7 + $0x750] sm:$0xff] }
 0x156   : > { %2297 = vmatprep.subr.bf16.mxu1 %v14507_v5  ;;  %v576_v5 = vld [vmem:[%s16935_s7 + $0xb0] sm:$0xff] }
 0x157   : > { %2257 = vmatpush2.bf16.msra.mxu0 %v14378_v10  ;;  %v14325_v10 = vcombine.high %v572_v4, %v576_v5  ;;  %v14324_v17 = vcombine.low %v572_v4, %v576_v5  ;;  %v792_v52 = vld [vmem:[%s16935_s7 + $0x770] sm:$0xff] }
 0x158   : > { %2258 = vmatprep.subr.bf16.mxu0 %v14371_v12  ;;  %v564_v12 = vld [vmem:[%s16935_s7 + $0x50] sm:$0xff]  ;;  %v14541_v60 = vcombine.high %v788_v51, %v792_v52 }
 0x159   : > { %2298 = vmatpush2.bf16.msra.mxu1 %v14506_v11  ;;  %v14453_v11 = vcombine.high %v700_v6, %v704_v7  ;;  %v652_v61 = vld [vmem:[%s16935_s7 + $0x310] sm:$0xff] }
 0x15a   : > { %2299 = vmatprep.subr.bf16.mxu1 %v14499_v13  ;;  %v568_v13 = vld [vmem:[%s16935_s7 + $0x70] sm:$0xff] }
 0x15b   : > { %2259 = vmatpush2.bf16.msra.mxu0 %v14370_v20  ;;  %v14317_v20 = vcombine.high %v564_v12, %v568_v13  ;;  %v14316_v25 = vcombine.low %v564_v12, %v568_v13  ;;  %v656_v62 = vld [vmem:[%s16935_s7 + $0x330] sm:$0xff] }
 0x15c   : > { %2310 = vmatprep.subr.bf16.mxu0 %v14365_v22  ;;  %v556_v22 = vld [vmem:[%s16935_s7 + $0x10] sm:$0xff] }
 0x15d   : > { %2300 = vmatpush2.bf16.msra.mxu1 %v14498_v21  ;;  %v14445_v21 = vcombine.high %v692_v14, %v696_v15  ;;  %v780_v63 = vld [vmem:[%s16935_s7 + $0x710] sm:$0xff] }
 0x15e   : > { %2351 = vmatprep.subr.bf16.mxu1 %v14493_v23  ;;  %2261 = vmatmul.mubr.bf16.vlgmr.msra.gmra.mxu0 %v17057_v16  ;;  %v560_v23 = vld [vmem:[%s16935_s7 + $0x30] sm:$0xff] }
 0x15f   : > { %2311 = vmatpush1.bf16.msra.mxu0 %v14364_v27  ;;  %2342 = vmatprep.mubr.bf16.mxu0 %v17007_v58  ;;  %v14309_v54 = vcombine.high %v556_v22, %v560_v23  ;;  %v14437_v27 = vcombine.high %v684_v24, %v688_v53  ;;  %v14308_v33 = vcombine.low %v556_v22, %v560_v23  ;;  %v644_v5 = vld [vmem:[%s16935_s7 + $0x2d0] sm:$0xff] }
 0x160   : > { %2302 = vmatmul.mubr.bf16.vlgmr.msra.gmra.mxu1 %v17063_v19  ;;  %2312 = vmatprep.subr.bf16.mxu0 %v14357_v30  ;;  %v680_v30 = vld [vmem:[%s16935_s7 + $0x3f0] sm:$0xff] }
 0x161   : > { %2352 = vmatpush1.bf16.msra.mxu1 %v14492_v29  ;;  %2383 = vmatprep.mubr.bf16.mxu1 %v17011_v59  ;;  %v676_v29 = vld [vmem:[%s16935_s7 + $0x3d0] sm:$0xff] }
 0x162   : > { %2353 = vmatprep.subr.bf16.mxu1 %v14485_v31  ;;  %v804_v31 = vld [vmem:[%s16935_s7 + $0x7d0] sm:$0xff]  ;;  %v14429_v35 = vcombine.high %v676_v29, %v680_v30 }
 0x163   : > { %2313 = vmatpush1.bf16.msra.mxu0 %v14356_v37  ;;  %v14557_v37 = vcombine.high %v804_v31, %v808_v32  ;;  %v14556_v45 = vcombine.low %v804_v31, %v808_v32  ;;  %v648_v6 = vld [vmem:[%s16935_s7 + $0x2f0] sm:$0xff] }
 0x164   : > { %2314 = vmatprep.subr.bf16.mxu0 %v14349_v41  ;;  %v672_v41 = vld [vmem:[%s16935_s7 + $0x3b0] sm:$0xff] }
 0x165   : > { %2354 = vmatpush1.bf16.msra.mxu1 %v14484_v38  ;;  %v668_v38 = vld [vmem:[%s16935_s7 + $0x390] sm:$0xff] }
 0x166   : > { %2355 = vmatprep.subr.bf16.mxu1 %v14477_v44  ;;  %v14428_v44 = vcombine.low %v676_v29, %v680_v30  ;;  %v14421_v46 = vcombine.high %v668_v38, %v672_v41  ;;  %v772_v7 = vld [vmem:[%s16935_s7 + $0x6d0] sm:$0xff] }
 0x167   : > { %2315 = vmatpush1.bf16.msra.mxu0 %v14348_v50  ;;  %v664_v50 = vld [vmem:[%s16935_s7 + $0x370] sm:$0xff] }
 0x168   : > { %2316 = vmatprep.subr.bf16.mxu0 %v14341_v56  ;;  %v14548_v56 = vcombine.low %v796_v42, %v800_v43  ;;  %v636_v13 = vld [vmem:[%s16935_s7 + $0x290] sm:$0xff]  ;;  %v617_v42 = vld [vmem:[%s16935_s7 + $0x1f8] sm:$0xff] }
 0x169   : > { %2356 = vmatpush1.bf16.msra.mxu1 %v14476_v55  ;;  %v14420_v55 = vcombine.low %v668_v38, %v672_v41  ;;  %v640_v14 = vld [vmem:[%s16935_s7 + $0x2b0] sm:$0xff]  ;;  %v613_v41 = vld [vmem:[%s16935_s7 + $0x1d8] sm:$0xff] }
 0x16a   : > { %2357 = vmatprep.subr.bf16.mxu1 %v14469_v57  ;;  %v14413_v57 = vcombine.high %v660_v49, %v664_v50  ;;  %v764_v15 = vld [vmem:[%s16935_s7 + $0x690] sm:$0xff]  ;;  %v741_v43 = vld [vmem:[%s16935_s7 + $0x5d8] sm:$0xff] }
 0x16b   : > { %2317 = vmatpush1.bf16.msra.mxu0 %v14340_v0  ;;  %v784_v0 = vld [vmem:[%s16935_s7 + $0x730] sm:$0xff] }
 0x16c   : > { %2318 = vmatprep.subr.bf16.mxu0 %v14333_v2  ;;  %v14540_v2 = vcombine.low %v788_v51, %v792_v52  ;;  %v14533_v4 = vcombine.high %v780_v63, %v784_v0  ;;  %v628_v23 = vld [vmem:[%s16935_s7 + $0x250] sm:$0xff]  ;;  %v609_v51 = vld [vmem:[%s16935_s7 + $0x1b8] sm:$0xff] }
 0x16d   : > { %2358 = vmatpush1.bf16.msra.mxu1 %v14468_v1  ;;  %v14412_v1 = vcombine.low %v660_v49, %v664_v50  ;;  %v632_v24 = vld [vmem:[%s16935_s7 + $0x270] sm:$0xff]  ;;  %v605_v50 = vld [vmem:[%s16935_s7 + $0x198] sm:$0xff] }
 0x16e   : > { %2359 = vmatprep.subr.bf16.mxu1 %v14461_v3  ;;  %v14405_v3 = vcombine.high %v652_v61, %v656_v62  ;;  %v756_v53 = vld [vmem:[%s16935_s7 + $0x650] sm:$0xff]  ;;  %v733_v52 = vld [vmem:[%s16935_s7 + $0x598] sm:$0xff] }
 0x16f   : > { %2319 = vmatpush1.bf16.msra.mxu0 %v14332_v8  ;;  %v776_v8 = vld [vmem:[%s16935_s7 + $0x6f0] sm:$0xff] }
 0x170   : > { %2320 = vmatprep.subr.bf16.mxu0 %v14325_v10  ;;  %v14532_v10 = vcombine.low %v780_v63, %v784_v0  ;;  %v14525_v12 = vcombine.high %v772_v7, %v776_v8  ;;  %v620_v30 = vld [vmem:[%s16935_s7 + $0x210] sm:$0xff]  ;;  %v601_v63 = vld [vmem:[%s16935_s7 + $0x178] sm:$0xff]  ;;  %v17230_v0 = vsub.s32 2, %v17133_v28 }
 0x171   : > { %2360 = vmatpush1.bf16.msra.mxu1 %v14460_v9  ;;  %v14404_v9 = vcombine.low %v652_v61, %v656_v62  ;;  %v624_v31 = vld [vmem:[%s16935_s7 + $0x230] sm:$0xff]  ;;  %v597_v62 = vld [vmem:[%s16935_s7 + $0x158] sm:$0xff] }
 0x172   : > { %2361 = vmatprep.subr.bf16.mxu1 %v14453_v11  ;;  %v14397_v11 = vcombine.high %v644_v5, %v648_v6  ;;  %v748_v32 = vld [vmem:[%s16935_s7 + $0x610] sm:$0xff] }
 0x173   : > { %2321 = vmatpush1.bf16.msra.mxu0 %v14324_v17  ;;  %v768_v17 = vld [vmem:[%s16935_s7 + $0x6b0] sm:$0xff] }
 0x174   : > { %2322 = vmatprep.subr.bf16.mxu0 %v14317_v20  ;;  %v14524_v20 = vcombine.low %v772_v7, %v776_v8  ;;  %v14517_v22 = vcombine.high %v764_v15, %v768_v17  ;;  %v14351_v7 = vcombine.high %v597_v62, %v601_v63 }
 0x175   : > { %2362 = vmatpush1.bf16.msra.mxu1 %v14452_v18  ;;  %v14396_v18 = vcombine.low %v644_v5, %v648_v6  ;;  %v2565_v5 = vrot.slane %v17148_v40, %v17230_v0 }
 0x176   : > { %2363 = vmatprep.subr.bf16.mxu1 %v14445_v21  ;;  %v14389_v21 = vcombine.high %v636_v13, %v640_v14 }
 0x177   : > { %2323 = vmatpush1.bf16.msra.mxu0 %v14316_v25  ;;  %v760_v25 = vld [vmem:[%s16935_s7 + $0x670] sm:$0xff]  ;;  %2612 = vst [vmem:[%s16966_s19 + $0x50] sm:$0xff] %v2565_v5  ;;  %v673_v5 = vld [vmem:[%s16935_s7 + $0x3b8] sm:$0xff] }
 0x178   : > { %2324 = vmatprep.subr.bf16.mxu0 %v14309_v54  ;;  %v14516_v54 = vcombine.low %v764_v15, %v768_v17  ;;  %v14509_v29 = vcombine.high %v756_v53, %v760_v25 }
 0x179   : > { %2364 = vmatpush1.bf16.msra.mxu1 %v14444_v26  ;;  %v14388_v26 = vcombine.low %v636_v13, %v640_v14  ;;  %v721_v13 = vld [vmem:[%s16935_s7 + $0x538] sm:$0xff]  ;;  %v14350_v14 = vcombine.low %v597_v62, %v601_v63 }
 0x17a   : > { %2365 = vmatprep.subr.bf16.mxu1 %v14437_v27  ;;  %v14381_v27 = vcombine.high %v628_v23, %v632_v24  ;;  %v809_v62 = vld [vmem:[%s16935_s7 + $0x7f8] sm:$0xff] }
 0x17b   : > { %2325 = vmatpush1.bf16.msra.mxu0 %v14308_v33  ;;  %v752_v33 = vld [vmem:[%s16935_s7 + $0x630] sm:$0xff] }
 0x17c   : > { %2326 = vmatprep.subr.bf16.mxu0 %v14429_v35  ;;  %v14508_v35 = vcombine.low %v756_v53, %v760_v25  ;;  %v14501_v38 = vcombine.high %v748_v32, %v752_v33 }
 0x17d   : > { %2366 = vmatpush1.bf16.msra.mxu1 %v14436_v34  ;;  %v14380_v34 = vcombine.low %v628_v23, %v632_v24  ;;  %v713_v23 = vld [vmem:[%s16935_s7 + $0x4f8] sm:$0xff] }
 0x17e   : > { %2367 = vmatprep.subr.bf16.mxu1 %v14557_v37  ;;  %v14373_v37 = vcombine.high %v620_v30, %v624_v31 }
 0x17f   : > { %2327 = vmatpush2.bf16.msra.mxu0 %v14428_v44  ;;  %v745_v44 = vld [vmem:[%s16935_s7 + $0x5f8] sm:$0xff] }
 0x180   : > { %2328 = vmatprep.subr.bf16.mxu0 %v14421_v46  ;;  %v14500_v46 = vcombine.low %v748_v32, %v752_v33  ;;  %v14495_v49 = vcombine.high %v741_v43, %v745_v44 }
 0x181   : > { %2368 = vmatpush2.bf16.msra.mxu1 %v14556_v45  ;;  %v14372_v45 = vcombine.low %v620_v30, %v624_v31  ;;  %v705_v30 = vld [vmem:[%s16935_s7 + $0x4b8] sm:$0xff] }
 0x182   : > { %2369 = vmatprep.subr.bf16.mxu1 %v14549_v48  ;;  %v14367_v48 = vcombine.high %v613_v41, %v617_v42 }
 0x183   : > { %2329 = vmatpush2.bf16.msra.mxu0 %v14420_v55  ;;  %v737_v55 = vld [vmem:[%s16935_s7 + $0x5b8] sm:$0xff] }
 0x184   : > { %2330 = vmatprep.subr.bf16.mxu0 %v14413_v57  ;;  %v14494_v57 = vcombine.low %v741_v43, %v745_v44  ;;  %v14487_v61 = vcombine.high %v733_v52, %v737_v55  ;;  %v14486_v6 = vcombine.low %v733_v52, %v737_v55 }
 0x185   : > { %2370 = vmatpush2.bf16.msra.mxu1 %v14548_v56  ;;  %v14366_v56 = vcombine.low %v613_v41, %v617_v42  ;;  %v697_v41 = vld [vmem:[%s16935_s7 + $0x478] sm:$0xff] }
 0x186   : > { %2371 = vmatprep.subr.bf16.mxu1 %v14541_v60  ;;  %v14359_v60 = vcombine.high %v605_v50, %v609_v51 }
 0x187   : > { %2331 = vmatpush2.bf16.msra.mxu0 %v14412_v1  ;;  %v725_v1 = vld [vmem:[%s16935_s7 + $0x558] sm:$0xff] }
 0x188   : > { %2332 = vmatprep.subr.bf16.mxu0 %v14405_v3  ;;  %v14358_v3 = vcombine.low %v605_v50, %v609_v51  ;;  %v689_v50 = vld [vmem:[%s16935_s7 + $0x438] sm:$0xff] }
 0x189   : > { %2372 = vmatpush2.bf16.msra.mxu1 %v14540_v2  ;;  %v729_v2 = vld [vmem:[%s16935_s7 + $0x578] sm:$0xff] }
 0x18a   : > { %2373 = vmatprep.subr.bf16.mxu1 %v14533_v4  ;;  %v2533_v4 = vrot.slane %v17145_v39, %v17230_v0  ;;  %v14479_v8 = vcombine.high %v725_v1, %v729_v2  ;;  %v14478_v17 = vcombine.low %v725_v1, %v729_v2 }
 0x18b   : > { %2333 = vmatpush2.bf16.msra.mxu0 %v14404_v9  ;;  %v589_v9 = vld [vmem:[%s16935_s7 + $0x118] sm:$0xff] }
 0x18c   : > { %2334 = vmatprep.subr.bf16.mxu0 %v14397_v11  ;;  %2604 = vst [vmem:[%s16966_s19 + $0x10] sm:$0xff] %v2533_v4  ;;  %v17246_v11 = vsub.s32 3, %v17133_v28  ;;  %v669_v4 = vld [vmem:[%s16935_s7 + $0x398] sm:$0xff] }
 0x18d   : > { %2374 = vmatpush2.bf16.msra.mxu1 %v14532_v10  ;;  %v593_v10 = vld [vmem:[%s16935_s7 + $0x138] sm:$0xff] }
 0x18e   : > { %2375 = vmatprep.subr.bf16.mxu1 %v14525_v12  ;;  %v717_v12 = vld [vmem:[%s16935_s7 + $0x518] sm:$0xff]  ;;  %v2569_v15 = vrot.slane %v17148_v40, %v17246_v11  ;;  %v14342_v24 = vcombine.low %v589_v9, %v593_v10 }
 0x18f   : > { %2335 = vmatpush2.bf16.msra.mxu0 %v14396_v18  ;;  %v14343_v18 = vcombine.high %v589_v9, %v593_v10  ;;  %v14470_v53 = vcombine.low %v717_v12, %v721_v13  ;;  %v14423_v10 = vcombine.high %v669_v4, %v673_v5 }
 0x190   : > { %2336 = vmatprep.subr.bf16.mxu0 %v14389_v21  ;;  %v581_v21 = vld [vmem:[%s16935_s7 + $0xd8] sm:$0xff]  ;;  %2613 = vst [vmem:[%s16966_s19 + $0x58] sm:$0xff] %v2569_v15 }
 0x191   : > { %2376 = vmatpush2.bf16.msra.mxu1 %v14524_v20  ;;  %v14471_v20 = vcombine.high %v717_v12, %v721_v13  ;;  %v661_v13 = vld [vmem:[%s16935_s7 + $0x358] sm:$0xff] }
 0x192   : > { %2377 = vmatprep.subr.bf16.mxu1 %v14517_v22  ;;  %v709_v22 = vld [vmem:[%s16935_s7 + $0x4d8] sm:$0xff] }
 0x193   : > { %2337 = vmatpush2.bf16.msra.mxu0 %v14388_v26  ;;  %v14463_v26 = vcombine.high %v709_v22, %v713_v23  ;;  %v14462_v32 = vcombine.low %v709_v22, %v713_v23  ;;  %v793_v15 = vld [vmem:[%s16935_s7 + $0x778] sm:$0xff] }
 0x194   : > { %2338 = vmatprep.subr.bf16.mxu0 %v14381_v27  ;;  %v577_v27 = vld [vmem:[%s16935_s7 + $0xb8] sm:$0xff] }
 0x195   : > { %2378 = vmatpush2.bf16.msra.mxu1 %v14516_v54  ;;  %v573_v54 = vld [vmem:[%s16935_s7 + $0x98] sm:$0xff] }
 0x196   : > { %2379 = vmatprep.subr.bf16.mxu1 %v14509_v29  ;;  %v701_v29 = vld [vmem:[%s16935_s7 + $0x498] sm:$0xff]  ;;  %v14327_v33 = vcombine.high %v573_v54, %v577_v27  ;;  %v14326_v42 = vcombine.low %v573_v54, %v577_v27 }
 0x197   : > { %2339 = vmatpush2.bf16.msra.mxu0 %v14380_v34  ;;  %v14455_v34 = vcombine.high %v701_v29, %v705_v30  ;;  %v14454_v43 = vcombine.low %v701_v29, %v705_v30  ;;  %v657_v22 = vld [vmem:[%s16935_s7 + $0x338] sm:$0xff] }
 0x198   : > { %2340 = vmatprep.subr.bf16.mxu0 %v14373_v37  ;;  %v569_v37 = vld [vmem:[%s16935_s7 + $0x78] sm:$0xff] }
 0x199   : > { %2380 = vmatpush2.bf16.msra.mxu1 %v14508_v35  ;;  %v565_v35 = vld [vmem:[%s16935_s7 + $0x58] sm:$0xff] }
 0x19a   : > { %2381 = vmatprep.subr.bf16.mxu1 %v14501_v38  ;;  %v693_v38 = vld [vmem:[%s16935_s7 + $0x458] sm:$0xff]  ;;  %v14319_v44 = vcombine.high %v565_v35, %v569_v37  ;;  %v14318_v51 = vcombine.low %v565_v35, %v569_v37 }
 0x19b   : > { %2341 = vmatpush2.bf16.msra.mxu0 %v14372_v45  ;;  %v14447_v45 = vcombine.high %v693_v38, %v697_v41  ;;  %v14446_v52 = vcombine.low %v693_v38, %v697_v41  ;;  %v781_v23 = vld [vmem:[%s16935_s7 + $0x718] sm:$0xff] }
 0x19c   : > { %2392 = vmatprep.subr.bf16.mxu0 %v14367_v48  ;;  %v561_v48 = vld [vmem:[%s16935_s7 + $0x38] sm:$0xff] }
 0x19d   : > { %2382 = vmatpush2.bf16.msra.mxu1 %v14500_v46  ;;  %v557_v46 = vld [vmem:[%s16935_s7 + $0x18] sm:$0xff] }
 0x19e   : > { %2433 = vmatprep.subr.bf16.mxu1 %v14495_v49  ;;  %2343 = vmatmul.mubr.bf16.vlgmr.msra.gmra.mxu0 %v17057_v16  ;;  %v685_v49 = vld [vmem:[%s16935_s7 + $0x418] sm:$0xff]  ;;  %v14311_v55 = vcombine.high %v557_v46, %v561_v48  ;;  %v14310_v63 = vcombine.low %v557_v46, %v561_v48 }
 0x19f   : > { %2393 = vmatpush1.bf16.msra.mxu0 %v14366_v56  ;;  %2424 = vmatprep.mubr.bf16.mxu0 %v17007_v58  ;;  %v2537_v58 = vrot.slane %v17145_v39, %v17246_v11  ;;  %v14439_v56 = vcombine.high %v685_v49, %v689_v50  ;;  %v14438_v1 = vcombine.low %v685_v49, %v689_v50  ;;  %v645_v27 = vld [vmem:[%s16935_s7 + $0x2d8] sm:$0xff] }
 0x1a0   : > { %2384 = vmatmul.mubr.bf16.vlgmr.msra.gmra.mxu1 %v17063_v19  ;;  %2394 = vmatprep.subr.bf16.mxu0 %v14359_v60  ;;  %v681_v60 = vld [vmem:[%s16935_s7 + $0x3f8] sm:$0xff] }
 0x1a1   : > { %2434 = vmatpush1.bf16.msra.mxu1 %v14494_v57  ;;  %2465 = vmatprep.mubr.bf16.mxu1 %v17011_v59  ;;  %v585_v59 = vld [vmem:[%s16935_s7 + $0xf8] sm:$0xff]  ;;  %2605 = vst [vmem:[%s16966_s19 + $0x18] sm:$0xff] %v2537_v58 }
 0x1a2   : > { %2435 = vmatprep.subr.bf16.mxu1 %v14487_v61  ;;  %v14335_v25 = vcombine.high %v581_v21, %v585_v59  ;;  %v14334_v31 = vcombine.low %v581_v21, %v585_v59  ;;  %v677_v57 = vld [vmem:[%s16935_s7 + $0x3d8] sm:$0xff] }
 0x1a3   : > { %2395 = vmatpush1.bf16.msra.mxu0 %v14358_v3  ;;  %v805_v61 = vld [vmem:[%s16935_s7 + $0x7d8] sm:$0xff]  ;;  %v14431_v2 = vcombine.high %v677_v57, %v681_v60 }
 0x1a4   : > { %2396 = vmatprep.subr.bf16.mxu0 %v14351_v7  ;;  %v14559_v3 = vcombine.high %v805_v61, %v809_v62  ;;  %v801_v7 = vld [vmem:[%s16935_s7 + $0x7b8] sm:$0xff]  ;;  %v14558_v9 = vcombine.low %v805_v61, %v809_v62 }
 0x1a5   : > { %2436 = vmatpush1.bf16.msra.mxu1 %v14486_v6  ;;  %v797_v6 = vld [vmem:[%s16935_s7 + $0x798] sm:$0xff] }
 0x1a6   : > { %2437 = vmatprep.subr.bf16.mxu1 %v14479_v8  ;;  %v14430_v8 = vcombine.low %v677_v57, %v681_v60  ;;  %v14551_v12 = vcombine.high %v797_v6, %v801_v7  ;;  %v789_v58 = vld [vmem:[%s16935_s7 + $0x758] sm:$0xff] }
 0x1a7   : > { %2397 = vmatpush1.bf16.msra.mxu0 %v14350_v14  ;;  %v665_v14 = vld [vmem:[%s16935_s7 + $0x378] sm:$0xff]  ;;  %v14543_v21 = vcombine.high %v789_v58, %v793_v15 }
 0x1a8   : > { %2398 = vmatprep.subr.bf16.mxu0 %v14343_v18  ;;  %v14550_v18 = vcombine.low %v797_v6, %v801_v7  ;;  %v653_v59 = vld [vmem:[%s16935_s7 + $0x318] sm:$0xff]  ;;  %v17306_v7 = vld [vmem:[%s16943_s29] sm:$0xff] }
 0x1a9   : > { %2438 = vmatpush1.bf16.msra.mxu1 %v14478_v17  ;;  %v14422_v17 = vcombine.low %v669_v4, %v673_v5  ;;  %v649_v29 = vld [vmem:[%s16935_s7 + $0x2f8] sm:$0xff] }
 0x1aa   : > { %2439 = vmatprep.subr.bf16.mxu1 %v14471_v20  ;;  %v14415_v20 = vcombine.high %v661_v13, %v665_v14  ;;  %v773_v30 = vld [vmem:[%s16935_s7 + $0x6d8] sm:$0xff] }
 0x1ab   : > { %2399 = vmatpush1.bf16.msra.mxu0 %v14342_v24  ;;  %v785_v24 = vld [vmem:[%s16935_s7 + $0x738] sm:$0xff] }
 0x1ac   : > { %2400 = vmatprep.subr.bf16.mxu0 %v14335_v25  ;;  %v14542_v25 = vcombine.low %v789_v58, %v793_v15  ;;  %v14535_v54 = vcombine.high %v781_v23, %v785_v24  ;;  %v637_v37 = vld [vmem:[%s16935_s7 + $0x298] sm:$0xff] }
 0x1ad   : > { %2440 = vmatpush1.bf16.msra.mxu1 %v14470_v53  ;;  %v14414_v53 = vcombine.low %v661_v13, %v665_v14  ;;  %v641_v38 = vld [vmem:[%s16935_s7 + $0x2b8] sm:$0xff] }
 0x1ae   : > { %2441 = vmatprep.subr.bf16.mxu1 %v14463_v26  ;;  %v14407_v26 = vcombine.high %v653_v59, %v657_v22  ;;  %v765_v41 = vld [vmem:[%s16935_s7 + $0x698] sm:$0xff] }
 0x1af   : > { %2401 = vmatpush1.bf16.msra.mxu0 %v14334_v31  ;;  %v777_v31 = vld [vmem:[%s16935_s7 + $0x6f8] sm:$0xff] }
 0x1b0   : > { %2402 = vmatprep.subr.bf16.mxu0 %v14327_v33  ;;  %v14534_v33 = vcombine.low %v781_v23, %v785_v24  ;;  %v14527_v35 = vcombine.high %v773_v30, %v777_v31  ;;  %v629_v48 = vld [vmem:[%s16935_s7 + $0x258] sm:$0xff] }
 0x1b1   : > { %2442 = vmatpush1.bf16.msra.mxu1 %v14462_v32  ;;  %v14406_v32 = vcombine.low %v653_v59, %v657_v22  ;;  %v633_v49 = vld [vmem:[%s16935_s7 + $0x278] sm:$0xff] }
 0x1b2   : > { %2443 = vmatprep.subr.bf16.mxu1 %v14455_v34  ;;  %v14399_v34 = vcombine.high %v645_v27, %v649_v29  ;;  %v757_v50 = vld [vmem:[%s16935_s7 + $0x658] sm:$0xff] }
 0x1b3   : > { %2403 = vmatpush1.bf16.msra.mxu0 %v14326_v42  ;;  %v769_v42 = vld [vmem:[%s16935_s7 + $0x6b8] sm:$0xff] }
 0x1b4   : > { %2404 = vmatprep.subr.bf16.mxu0 %v14319_v44  ;;  %v14526_v44 = vcombine.low %v773_v30, %v777_v31  ;;  %v14519_v46 = vcombine.high %v765_v41, %v769_v42  ;;  %v621_v60 = vld [vmem:[%s16935_s7 + $0x218] sm:$0xff] }
 0x1b5   : > { %2444 = vmatpush1.bf16.msra.mxu1 %v14454_v43  ;;  %v14398_v43 = vcombine.low %v645_v27, %v649_v29  ;;  %v625_v61 = vld [vmem:[%s16935_s7 + $0x238] sm:$0xff]  ;;  %v827_v27 = vrot.slane %v17306_v7, %v17246_v11  ;;  %v838_v29 = vsub.s32 6, %v17133_v28 }
 0x1b6   : > { %2445 = vmatprep.subr.bf16.mxu1 %v14447_v45  ;;  %v14391_v45 = vcombine.high %v637_v37, %v641_v38  ;;  %v749_v62 = vld [vmem:[%s16935_s7 + $0x618] sm:$0xff]  ;;  %v14374_v5 = vcombine.low %v621_v60, %v625_v61 }
 0x1b7   : > { %2405 = vmatpush1.bf16.msra.mxu0 %v14318_v51  ;;  %v761_v51 = vld [vmem:[%s16935_s7 + $0x678] sm:$0xff] }
 0x1b8   : > { %2406 = vmatprep.subr.bf16.mxu0 %v14311_v55  ;;  %v14518_v55 = vcombine.low %v765_v41, %v769_v42  ;;  %v14511_v57 = vcombine.high %v757_v50, %v761_v51 }
 0x1b9   : > { %2446 = vmatpush1.bf16.msra.mxu1 %v14446_v52  ;;  %v14390_v52 = vcombine.low %v637_v37, %v641_v38 }
 0x1ba   : > { %2447 = vmatprep.subr.bf16.mxu1 %v14439_v56  ;;  %v14383_v56 = vcombine.high %v629_v48, %v633_v49 }
 0x1bb   : > { %2407 = vmatpush1.bf16.msra.mxu0 %v14310_v63  ;;  %v753_v63 = vld [vmem:[%s16935_s7 + $0x638] sm:$0xff] }
 0x1bc   : > { %2408 = vmatprep.subr.bf16.mxu0 %v14431_v2  ;;  %v14510_v2 = vcombine.low %v757_v50, %v761_v51  ;;  %v14503_v4 = vcombine.high %v749_v62, %v753_v63  ;;  %v14502_v6 = vcombine.low %v749_v62, %v753_v63 }
 0x1bd   : > { %2448 = vmatpush1.bf16.msra.mxu1 %v14438_v1  ;;  %v14382_v1 = vcombine.low %v629_v48, %v633_v49 }
 0x1be   : > { %2449 = vmatprep.subr.bf16.mxu1 %v14559_v3  ;;  %v14375_v3 = vcombine.high %v621_v60, %v625_v61 }
 0x1bf   : > { %2409 = vmatpush2.bf16.msra.mxu0 %v14430_v8  ;;  %v815_v8 = vrot.slane %v17306_v7, %v17141_v36 }
 0x1c0   : > { %2410 = vmatprep.subr.bf16.mxu0 %v14423_v10  ;;  %v830_v10 = vsub.s32 4, %v17133_v28 }
 0x1c1   : > { %2450 = vmatpush2.bf16.msra.mxu1 %v14558_v9  ;;  %v819_v9 = vrot.slane %v17306_v7, %v17158_v47  ;;  %v834_v47 = vsub.s32 5, %v17133_v28 }
 0x1c2   : > { %2451 = vmatprep.subr.bf16.mxu1 %v14551_v12  ;;  %v2541_v58 = vrot.slane %v17145_v39, %v830_v10  ;;  %v2573_v15 = vrot.slane %v17148_v40, %v830_v10 }
 0x1c3   : > { %2411 = vmatpush2.bf16.msra.mxu0 %v14422_v17  ;;  %v2577_v23 = vrot.slane %v17148_v40, %v834_v47 }
 0x1c4   : > { %2412 = vmatprep.subr.bf16.mxu0 %v14415_v20  ;;  %2606 = vst [vmem:[%s16966_s19 + $0x20] sm:$0xff] %v2541_v58  ;;  %2614 = vst [vmem:[%s16966_s19 + $0x60] sm:$0xff] %v2573_v15 }
 0x1c5   : > { %2452 = vmatpush2.bf16.msra.mxu1 %v14550_v18  ;;  %2615 = vst [vmem:[%s16966_s19 + $0x68] sm:$0xff] %v2577_v23 }
 0x1c6   : > { %2453 = vmatprep.subr.bf16.mxu1 %v14543_v21 }
 0x1c7   : > { %2413 = vmatpush2.bf16.msra.mxu0 %v14414_v53 }
 0x1c8   : > { %2414 = vmatprep.subr.bf16.mxu0 %v14407_v26 }
 0x1c9   : > { %2454 = vmatpush2.bf16.msra.mxu1 %v14542_v25 }
 0x1ca   : > { %2455 = vmatprep.subr.bf16.mxu1 %v14535_v54  ;;  %v823_v54 = vrot.slane %v17306_v7, %v17230_v0  ;;  %v842_v0 = vsub.s32 7, %v17133_v28 }
 0x1cb   : > { %2415 = vmatpush2.bf16.msra.mxu0 %v14406_v32 }
 0x1cc   : > { %2416 = vmatprep.subr.bf16.mxu0 %v14399_v34  ;;  %v2581_v34 = vrot.slane %v17148_v40, %v838_v29 }
 0x1cd   : > { %2456 = vmatpush2.bf16.msra.mxu1 %v14534_v33  ;;  %v2549_v33 = vrot.slane %v17145_v39, %v838_v29 }
 0x1ce   : > { %2457 = vmatprep.subr.bf16.mxu1 %v14527_v35  ;;  %2616 = vst [vmem:[%s16966_s19 + $0x70] sm:$0xff] %v2581_v34 }
 0x1cf   : > { %2417 = vmatpush2.bf16.msra.mxu0 %v14398_v43  ;;  %2608 = vst [vmem:[%s16966_s19 + $0x30] sm:$0xff] %v2549_v33 }
 0x1d0   : > { %2418 = vmatprep.subr.bf16.mxu0 %v14391_v45  ;;  %v2553_v45 = vrot.slane %v17145_v39, %v842_v0 }
 0x1d1   : > { %2458 = vmatpush2.bf16.msra.mxu1 %v14526_v44 }
 0x1d2   : > { %2459 = vmatprep.subr.bf16.mxu1 %v14519_v46  ;;  %v2585_v46 = vrot.slane %v17148_v40, %v842_v0  ;;  %2609 = vst [vmem:[%s16966_s19 + $0x38] sm:$0xff] %v2553_v45 }
 0x1d3   : > { %2419 = vmatpush2.bf16.msra.mxu0 %v14390_v52  ;;  %v831_v52 = vrot.slane %v17306_v7, %v830_v10 }
 0x1d4   : > { %2420 = vmatprep.subr.bf16.mxu0 %v14383_v56  ;;  %2617 = vst [vmem:[%s16966_s19 + $0x78] sm:$0xff] %v2585_v46 }
 0x1d5   : > { %2460 = vmatpush2.bf16.msra.mxu1 %v14518_v55  ;;  %v835_v55 = vrot.slane %v17306_v7, %v834_v47 }
 0x1d6   : > { %2461 = vmatprep.subr.bf16.mxu1 %v14511_v57 }
 0x1d7   : > { %2421 = vmatpush2.bf16.msra.mxu0 %v14382_v1 }
 0x1d8   : > { %2422 = vmatprep.subr.bf16.mxu0 %v14375_v3 }
 0x1d9   : > { %2462 = vmatpush2.bf16.msra.mxu1 %v14510_v2 }
 0x1da   : > { %2463 = vmatprep.subr.bf16.mxu1 %v14503_v4 }
 0x1db   : > { %2423 = vmatpush2.bf16.msra.mxu0 %v14374_v5 }
 0x1dd   : > { %2464 = vmatpush2.bf16.msra.mxu1 %v14502_v6 }
 0x1de   : > { %v2180_v12 = vpop.f32.mrf.mxu0  ;;  %2425 = vmatmul.mubr.bf16.vlgmr.msra.gmra.mxu0 %v17057_v16 }
 0x1df   : > { %v2181_v13 = vadd.f32 %v2180_v12, %v815_v8  ;;  %v839_v8 = vrot.slane %v17306_v7, %v838_v29 }
 0x1e0   : > { %v2221_v14 = vpop.f32.mrf.mxu1  ;;  %2466 = vmatmul.mubr.bf16.vlgmr.msra.gmra.mxu1 %v17063_v19  ;;  %v2182_v17 = vpop.f32.mrf.mxu0  ;;  %v2545_v19 = vrot.slane %v17145_v39, %v834_v47 }
 0x1e1   : > { %v2222_v36 = vadd.f32 %v2221_v14, %v2181_v13  ;;  %v2183_v18 = vadd.f32 %v2182_v17, %v819_v9  ;;  %v843_v9 = vrot.slane %v17306_v7, %v842_v0 }
 0x1e2   : > { %v2223_v20 = vpop.f32.mrf.mxu1  ;;  %v2184_v21 = vpop.f32.mrf.mxu0  ;;  %2607 = vst [vmem:[%s16966_s19 + $0x28] sm:$0xff] %v2545_v19 }
 0x1e3   : > { %v2474_v16 = vmax.f32 %v2222_v36, 0.0  ;;  %v2224_v59 = vadd.f32 %v2223_v20, %v2183_v18 }
 0x1e4   : > { %v2225_v22 = vpop.f32.mrf.mxu1  ;;  %v2185_v24 = vpop.f32.mrf.mxu0 }
 0x1e5   : > { %v2475_v53 = vmax.f32 %v2224_v59, 0.0 }
 0x1e6   : > { %v2226_v25 = vpop.f32.mrf.mxu1 }
 0x1e7   : > { %v16119_v26 = vpack.c.bf16 %v2475_v53, %v2474_v16 }
 0x1e9   : > { %2514 = vst [vmem:[#allocation2 + $0x10] sm:$0xff] %v16119_v26 }
 0x21e   : > { %v2262_v30 = vpop.f32.mrf.mxu0 }
 0x21f   : > { %v2263_v31 = vadd.f32 %v2262_v30, %v823_v54 }
 0x220   : > { %v2303_v32 = vpop.f32.mrf.mxu1  ;;  %v2264_v35 = vpop.f32.mrf.mxu0 }
 0x221   : > { %v2304_v37 = vadd.f32 %v2303_v32, %v2263_v31  ;;  %v2265_v38 = vadd.f32 %v2264_v35, %v827_v27 }
 0x222   : > { %v2305_v41 = vpop.f32.mrf.mxu1  ;;  %v2266_v11 = vpop.f32.mrf.mxu0 }
 0x223   : > { %v2476_v42 = vmax.f32 %v2304_v37, 0.0  ;;  %v2306_v43 = vadd.f32 %v2305_v41, %v2265_v38 }
 0x224   : > { %v2307_v44 = vpop.f32.mrf.mxu1  ;;  %v2267_v48 = vpop.f32.mrf.mxu0 }
 0x225   : > { %v2477_v49 = vmax.f32 %v2306_v43, 0.0 }
 0x226   : > { %v2308_v50 = vpop.f32.mrf.mxu1 }
 0x227   : > { %v16120_v51 = vpack.c.bf16 %v2477_v49, %v2476_v42 }
 0x229   : > { %2515 = vst [vmem:[#allocation2] sm:$0xff] %v16120_v51 }
 0x25e   : > { %v2344_v28 = vpop.f32.mrf.mxu0 }
 0x25f   : > { %v2345_v56 = vadd.f32 %v2344_v28, %v831_v52 }
 0x260   : > { %v2385_v57 = vpop.f32.mrf.mxu1  ;;  %v2346_v60 = vpop.f32.mrf.mxu0 }
 0x261   : > { %v2386_v61 = vadd.f32 %v2385_v57, %v2345_v56  ;;  %v2347_v62 = vadd.f32 %v2346_v60, %v835_v55 }
 0x262   : > { %v2387_v39 = vpop.f32.mrf.mxu1  ;;  %v2348_v63 = vpop.f32.mrf.mxu0 }
 0x263   : > { %v2478_v40 = vmax.f32 %v2386_v61, 0.0  ;;  %v2388_v1 = vadd.f32 %v2387_v39, %v2347_v62 }
 0x264   : > { %v2389_v2 = vpop.f32.mrf.mxu1  ;;  %v2349_v3 = vpop.f32.mrf.mxu0 }
 0x265   : > { %v2479_v4 = vmax.f32 %v2388_v1, 0.0 }
 0x266   : > { %v2390_v5 = vpop.f32.mrf.mxu1 }
 0x267   : > { %v16121_v6 = vpack.c.bf16 %v2479_v4, %v2478_v40 }
 0x269   : > { %2516 = vst [vmem:[#allocation2 + $0x18] sm:$0xff] %v16121_v6 }
 0x29e   : > { %v2426_v10 = vpop.f32.mrf.mxu0 }
 0x29f   : > { %v2427_v12 = vadd.f32 %v2426_v10, %v839_v8 }
 0x2a0   : > { %v2467_v13 = vpop.f32.mrf.mxu1  ;;  %v2428_v14 = vpop.f32.mrf.mxu0 }
 0x2a1   : > { %v2468_v58 = vadd.f32 %v2467_v13, %v2427_v12  ;;  %v2429_v15 = vadd.f32 %v2428_v14, %v843_v9 }
 0x2a2   : > { %v2469_v17 = vpop.f32.mrf.mxu1  ;;  %v2430_v36 = vpop.f32.mrf.mxu0 }
 0x2a3   : > { %v2470_v18 = vadd.f32 %v2469_v17, %v2429_v15  ;;  %v2480_v21 = vmax.f32 %v2468_v58, 0.0 }
 0x2a4   : > { %v2471_v20 = vpop.f32.mrf.mxu1  ;;  %v2431_v47 = vpop.f32.mrf.mxu0 }
 0x2a5   : > { %v2481_v16 = vmax.f32 %v2470_v18, 0.0 }
 0x2a6   : > { %v2472_v59 = vpop.f32.mrf.mxu1 }
 0x2a7   : > { %v16122_v22 = vpack.c.bf16 %v2481_v16, %v2480_v21 }
 0x2a9   : > { %2517 = vst [vmem:[#allocation2 + $0x8] sm:$0xff] %v16122_v22 }
 0x2aa PF: > { %v2678_v7 = vld [vmem:[%s16945_s1 + $0x1c0] sm:$0xff]  ;;  %v17372_v15 = vld [vmem:[#allocation2] sm:$0xff]  ;;  %s19428_s23 = sld [smem:[#allocation27_spill]] }
 0x2ab   : > { %v2682_v19 = vld [vmem:[%s16945_s1 + $0x1e0] sm:$0xff]  ;;  %v17382_v47 = vcombine.high %v17372_v15, %v17372_v15 }
 0x2ac   : > { %v2806_v23 = vld [vmem:[%s16945_s1 + $0x5c0] sm:$0xff]  ;;  %v14629_v24 = vcombine.high %v2678_v7, %v2682_v19  ;;  %v14628_v25 = vcombine.low %v2678_v7, %v2682_v19 }
 0x2ad   : > { %v2810_v53 = vld [vmem:[%s16945_s1 + $0x5e0] sm:$0xff]  ;;  %5837 = vmatprep.mubr.bf16.mxu1 %v17382_v47 }
 0x2ae   : > { %v2670_v26 = vld [vmem:[%s16945_s1 + $0x180] sm:$0xff]  ;;  %v14757_v27 = vcombine.high %v2806_v23, %v2810_v53  ;;  %v14756_v29 = vcombine.low %v2806_v23, %v2810_v53  ;;  %5764 = vmatprep.subr.bf16.mxu0 %v14629_v24 }
 0x2af   : > { %v2674_v54 = vld [vmem:[%s16945_s1 + $0x1a0] sm:$0xff]  ;;  %5765 = vmatpush1.bf16.msra.mxu0 %v14628_v25 }
 0x2b0   : > { %v14621_v30 = vcombine.high %v2670_v26, %v2674_v54  ;;  %v2798_v31 = vld [vmem:[%s16945_s1 + $0x580] sm:$0xff]  ;;  %5805 = vmatprep.subr.bf16.mxu1 %v14757_v27  ;;  %v14620_v41 = vcombine.low %v2670_v26, %v2674_v54  ;;  %p16108_p7 = scmp.ne.s32.totalorder %s19428_s23, 1 }
 0x2b1   : > { %v2802_v32 = vld [vmem:[%s16945_s1 + $0x5a0] sm:$0xff]  ;;  %5806 = vmatpush1.bf16.msra.mxu1 %v14756_v29 }
 0x2b2   : > { %v2662_v33 = vld [vmem:[%s16945_s1 + $0x140] sm:$0xff]  ;;  %v14749_v34 = vcombine.high %v2798_v31, %v2802_v32  ;;  %5766 = vmatprep.subr.bf16.mxu0 %v14621_v30  ;;  %v14748_v0 = vcombine.low %v2798_v31, %v2802_v32 }
 0x2b3   : > { %v2666_v35 = vld [vmem:[%s16945_s1 + $0x160] sm:$0xff]  ;;  %5767 = vmatpush1.bf16.msra.mxu0 %v14620_v41 }
 0x2b4   : > { %v2790_v37 = vld [vmem:[%s16945_s1 + $0x540] sm:$0xff]  ;;  %v14613_v11 = vcombine.high %v2662_v33, %v2666_v35  ;;  %5807 = vmatprep.subr.bf16.mxu1 %v14749_v34  ;;  %v14612_v48 = vcombine.low %v2662_v33, %v2666_v35 }
 0x2b5   : > { %v2794_v38 = vld [vmem:[%s16945_s1 + $0x560] sm:$0xff]  ;;  %5808 = vmatpush1.bf16.msra.mxu1 %v14748_v0 }
 0x2b6   : > { %v14741_v42 = vcombine.high %v2790_v37, %v2794_v38  ;;  %v2654_v43 = vld [vmem:[%s16945_s1 + $0x100] sm:$0xff]  ;;  %5768 = vmatprep.subr.bf16.mxu0 %v14613_v11  ;;  %v14740_v49 = vcombine.low %v2790_v37, %v2794_v38 }
 0x2b7   : > { %v2658_v44 = vld [vmem:[%s16945_s1 + $0x120] sm:$0xff]  ;;  %5769 = vmatpush1.bf16.msra.mxu0 %v14612_v48 }
 0x2b8   : > { %v2782_v45 = vld [vmem:[%s16945_s1 + $0x500] sm:$0xff]  ;;  %v14605_v50 = vcombine.high %v2654_v43, %v2658_v44  ;;  %5809 = vmatprep.subr.bf16.mxu1 %v14741_v42  ;;  %v14604_v57 = vcombine.low %v2654_v43, %v2658_v44 }
 0x2b9   : > { %v2786_v46 = vld [vmem:[%s16945_s1 + $0x520] sm:$0xff]  ;;  %5810 = vmatpush1.bf16.msra.mxu1 %v14740_v49 }
 0x2ba   : > { %v14733_v51 = vcombine.high %v2782_v45, %v2786_v46  ;;  %v2646_v52 = vld [vmem:[%s16945_s1 + $0xc0] sm:$0xff]  ;;  %5770 = vmatprep.subr.bf16.mxu0 %v14605_v50  ;;  %v14732_v60 = vcombine.low %v2782_v45, %v2786_v46 }
 0x2bb   : > { %v2650_v55 = vld [vmem:[%s16945_s1 + $0xe0] sm:$0xff]  ;;  %5771 = vmatpush1.bf16.msra.mxu0 %v14604_v57 }
 0x2bc   : > { %v2774_v28 = vld [vmem:[%s16945_s1 + $0x4c0] sm:$0xff]  ;;  %v14597_v61 = vcombine.high %v2646_v52, %v2650_v55  ;;  %5811 = vmatprep.subr.bf16.mxu1 %v14733_v51  ;;  %v14596_v2 = vcombine.low %v2646_v52, %v2650_v55 }
 0x2bd   : > { %v2778_v56 = vld [vmem:[%s16945_s1 + $0x4e0] sm:$0xff]  ;;  %5812 = vmatpush1.bf16.msra.mxu1 %v14732_v60 }
 0x2be   : > { %v14725_v62 = vcombine.high %v2774_v28, %v2778_v56  ;;  %v2638_v39 = vld [vmem:[%s16945_s1 + $0x80] sm:$0xff]  ;;  %5772 = vmatprep.subr.bf16.mxu0 %v14597_v61  ;;  %v14724_v3 = vcombine.low %v2774_v28, %v2778_v56 }
 0x2bf   : > { %v2642_v63 = vld [vmem:[%s16945_s1 + $0xa0] sm:$0xff]  ;;  %5773 = vmatpush1.bf16.msra.mxu0 %v14596_v2 }
 0x2c0   : > { %v2766_v40 = vld [vmem:[%s16945_s1 + $0x480] sm:$0xff]  ;;  %v14589_v4 = vcombine.high %v2638_v39, %v2642_v63  ;;  %5813 = vmatprep.subr.bf16.mxu1 %v14725_v62  ;;  %v14588_v12 = vcombine.low %v2638_v39, %v2642_v63 }
 0x2c1   : > { %v2770_v1 = vld [vmem:[%s16945_s1 + $0x4a0] sm:$0xff]  ;;  %5814 = vmatpush1.bf16.msra.mxu1 %v14724_v3 }
 0x2c2   : > { %v14717_v5 = vcombine.high %v2766_v40, %v2770_v1  ;;  %v2630_v6 = vld [vmem:[%s16945_s1 + $0x40] sm:$0xff]  ;;  %5774 = vmatprep.subr.bf16.mxu0 %v14589_v4  ;;  %v14716_v13 = vcombine.low %v2766_v40, %v2770_v1 }
 0x2c3   : > { %v2634_v8 = vld [vmem:[%s16945_s1 + $0x60] sm:$0xff]  ;;  %5775 = vmatpush1.bf16.msra.mxu0 %v14588_v12 }
 0x2c4   : > { %v2758_v9 = vld [vmem:[%s16945_s1 + $0x440] sm:$0xff]  ;;  %v14581_v14 = vcombine.high %v2630_v6, %v2634_v8  ;;  %5815 = vmatprep.subr.bf16.mxu1 %v14717_v5  ;;  %v14580_v59 = vcombine.low %v2630_v6, %v2634_v8 }
 0x2c5   : > { %v2762_v10 = vld [vmem:[%s16945_s1 + $0x460] sm:$0xff]  ;;  %5816 = vmatpush1.bf16.msra.mxu1 %v14716_v13 }
 0x2c6   : > { %v17370_v58 = vld [vmem:[#allocation2 + $0x10] sm:$0xff]  ;;  %v14709_v17 = vcombine.high %v2758_v9, %v2762_v10  ;;  %5776 = vmatprep.subr.bf16.mxu0 %v14581_v14  ;;  %v14708_v22 = vcombine.low %v2758_v9, %v2762_v10 }
 0x2c7   : > { %v2622_v36 = vld [vmem:[%s16945_s1] sm:$0xff]  ;;  %v17378_v20 = vcombine.high %v17370_v58, %v17370_v58  ;;  %5777 = vmatpush1.bf16.msra.mxu0 %v14580_v59 }
 0x2c8   : > { %v2626_v18 = vld [vmem:[%s16945_s1 + $0x20] sm:$0xff]  ;;  %5817 = vmatprep.subr.bf16.mxu1 %v14709_v17 }
 0x2c9   : > { %v2750_v21 = vld [vmem:[%s16945_s1 + $0x400] sm:$0xff]  ;;  %5796 = vmatprep.mubr.bf16.mxu0 %v17378_v20  ;;  %v14573_v7 = vcombine.high %v2622_v36, %v2626_v18  ;;  %v14572_v26 = vcombine.low %v2622_v36, %v2626_v18  ;;  %5818 = vmatpush1.bf16.msra.mxu1 %v14708_v22 }
 0x2ca   : > { %v2754_v16 = vld [vmem:[%s16945_s1 + $0x420] sm:$0xff] }
 0x2cb   : > { %v14701_v19 = vcombine.high %v2750_v21, %v2754_v16  ;;  %v2742_v23 = vld [vmem:[%s16945_s1 + $0x3c0] sm:$0xff]  ;;  %5778 = vmatprep.subr.bf16.mxu0 %v14573_v7  ;;  %v14700_v54 = vcombine.low %v2750_v21, %v2754_v16 }
 0x2cc   : > { %v2746_v24 = vld [vmem:[%s16945_s1 + $0x3e0] sm:$0xff]  ;;  %5779 = vmatpush1.bf16.msra.mxu0 %v14572_v26 }
 0x2cd   : > { %v2870_v53 = vld [vmem:[%s16945_s1 + $0x7c0] sm:$0xff]  ;;  %v14693_v27 = vcombine.high %v2742_v23, %v2746_v24  ;;  %5819 = vmatprep.subr.bf16.mxu1 %v14701_v19  ;;  %v14692_v34 = vcombine.low %v2742_v23, %v2746_v24 }
 0x2ce   : > { %v2874_v25 = vld [vmem:[%s16945_s1 + $0x7e0] sm:$0xff]  ;;  %5820 = vmatpush1.bf16.msra.mxu1 %v14700_v54 }
 0x2cf   : > { %v14821_v29 = vcombine.high %v2870_v53, %v2874_v25  ;;  %v2734_v30 = vld [vmem:[%s16945_s1 + $0x380] sm:$0xff]  ;;  %5780 = vmatprep.subr.bf16.mxu0 %v14693_v27  ;;  %v14820_v35 = vcombine.low %v2870_v53, %v2874_v25 }
 0x2d0   : > { %v2738_v31 = vld [vmem:[%s16945_s1 + $0x3a0] sm:$0xff]  ;;  %5781 = vmatpush2.bf16.msra.mxu0 %v14692_v34 }
 0x2d1   : > { %v2862_v32 = vld [vmem:[%s16945_s1 + $0x780] sm:$0xff]  ;;  %v14685_v37 = vcombine.high %v2734_v30, %v2738_v31  ;;  %5821 = vmatprep.subr.bf16.mxu1 %v14821_v29  ;;  %v14684_v43 = vcombine.low %v2734_v30, %v2738_v31 }
 0x2d2   : > { %v2866_v33 = vld [vmem:[%s16945_s1 + $0x7a0] sm:$0xff]  ;;  %5822 = vmatpush2.bf16.msra.mxu1 %v14820_v35 }
 0x2d3   : > { %v14813_v38 = vcombine.high %v2862_v32, %v2866_v33  ;;  %v2726_v41 = vld [vmem:[%s16945_s1 + $0x340] sm:$0xff]  ;;  %5782 = vmatprep.subr.bf16.mxu0 %v14685_v37  ;;  %v14812_v44 = vcombine.low %v2862_v32, %v2866_v33  ;;  %v17428_v37 = vcombine.low %v17370_v58, %v17370_v58 }
 0x2d4   : > { %v2730_v0 = vld [vmem:[%s16945_s1 + $0x360] sm:$0xff]  ;;  %5783 = vmatpush2.bf16.msra.mxu0 %v14684_v43  ;;  %v17438_v43 = vld [vmem:[#allocation2 + $0x8] sm:$0xff] }
 0x2d5   : > { %v2854_v11 = vld [vmem:[%s16945_s1 + $0x740] sm:$0xff]  ;;  %v14677_v45 = vcombine.high %v2726_v41, %v2730_v0  ;;  %5823 = vmatprep.subr.bf16.mxu1 %v14813_v38  ;;  %v14676_v52 = vcombine.low %v2726_v41, %v2730_v0  ;;  %v17432_v0 = vld [vmem:[#allocation2 + $0x18] sm:$0xff] }
 0x2d6   : > { %v2858_v42 = vld [vmem:[%s16945_s1 + $0x760] sm:$0xff]  ;;  %5824 = vmatpush2.bf16.msra.mxu1 %v14812_v44 }
 0x2d7   : > { %v14805_v46 = vcombine.high %v2854_v11, %v2858_v42  ;;  %v2718_v48 = vld [vmem:[%s16945_s1 + $0x300] sm:$0xff]  ;;  %5784 = vmatprep.subr.bf16.mxu0 %v14677_v45  ;;  %v14804_v55 = vcombine.low %v2854_v11, %v2858_v42  ;;  %v17436_v11 = vcombine.low %v17372_v15, %v17372_v15 }
 0x2d8   : > { %v2722_v49 = vld [vmem:[%s16945_s1 + $0x320] sm:$0xff]  ;;  %5785 = vmatpush2.bf16.msra.mxu0 %v14676_v52 }
 0x2d9   : > { %v2846_v50 = vld [vmem:[%s16945_s1 + $0x700] sm:$0xff]  ;;  %v14669_v28 = vcombine.high %v2718_v48, %v2722_v49  ;;  %5825 = vmatprep.subr.bf16.mxu1 %v14805_v46  ;;  %v14668_v39 = vcombine.low %v2718_v48, %v2722_v49  ;;  %v17444_v49 = vcombine.high %v17432_v0, %v17432_v0 }
 0x2da   : > { %v2850_v51 = vld [vmem:[%s16945_s1 + $0x720] sm:$0xff]  ;;  %5826 = vmatpush2.bf16.msra.mxu1 %v14804_v55 }
 0x2db   : > { %v14797_v56 = vcombine.high %v2846_v50, %v2850_v51  ;;  %v2710_v57 = vld [vmem:[%s16945_s1 + $0x2c0] sm:$0xff]  ;;  %5786 = vmatprep.subr.bf16.mxu0 %v14669_v28  ;;  %v14796_v63 = vcombine.low %v2846_v50, %v2850_v51  ;;  %v17451_v51 = vcombine.high %v17438_v43, %v17438_v43 }
 0x2dc   : > { %v2714_v60 = vld [vmem:[%s16945_s1 + $0x2e0] sm:$0xff]  ;;  %5787 = vmatpush2.bf16.msra.mxu0 %v14668_v39 }
 0x2dd   : > { %v2838_v61 = vld [vmem:[%s16945_s1 + $0x6c0] sm:$0xff]  ;;  %v14661_v40 = vcombine.high %v2710_v57, %v2714_v60  ;;  %5827 = vmatprep.subr.bf16.mxu1 %v14797_v56  ;;  %v14660_v6 = vcombine.low %v2710_v57, %v2714_v60 }
 0x2de   : > { %v2842_v62 = vld [vmem:[%s16945_s1 + $0x6e0] sm:$0xff]  ;;  %5828 = vmatpush2.bf16.msra.mxu1 %v14796_v63 }
 0x2df   : > { %v14789_v1 = vcombine.high %v2838_v61, %v2842_v62  ;;  %v2702_v2 = vld [vmem:[%s16945_s1 + $0x280] sm:$0xff]  ;;  %5788 = vmatprep.subr.bf16.mxu0 %v14661_v40  ;;  %v14788_v8 = vcombine.low %v2838_v61, %v2842_v62 }
 0x2e0   : > { %v2706_v3 = vld [vmem:[%s16945_s1 + $0x2a0] sm:$0xff]  ;;  %5789 = vmatpush2.bf16.msra.mxu0 %v14660_v6 }
 0x2e1   : > { %v2830_v4 = vld [vmem:[%s16945_s1 + $0x680] sm:$0xff]  ;;  %v14653_v9 = vcombine.high %v2702_v2, %v2706_v3  ;;  %5829 = vmatprep.subr.bf16.mxu1 %v14789_v1  ;;  %v14652_v36 = vcombine.low %v2702_v2, %v2706_v3 }
 0x2e2   : > { %v2834_v5 = vld [vmem:[%s16945_s1 + $0x6a0] sm:$0xff]  ;;  %5830 = vmatpush2.bf16.msra.mxu1 %v14788_v8 }
 0x2e3   : > { %v14781_v10 = vcombine.high %v2830_v4, %v2834_v5  ;;  %v2694_v12 = vld [vmem:[%s16945_s1 + $0x240] sm:$0xff]  ;;  %5790 = vmatprep.subr.bf16.mxu0 %v14653_v9  ;;  %v14780_v18 = vcombine.low %v2830_v4, %v2834_v5 }
 0x2e4   : > { %v2698_v13 = vld [vmem:[%s16945_s1 + $0x260] sm:$0xff]  ;;  %5791 = vmatpush2.bf16.msra.mxu0 %v14652_v36 }
 0x2e5   : > { %v2822_v14 = vld [vmem:[%s16945_s1 + $0x640] sm:$0xff]  ;;  %v14645_v21 = vcombine.high %v2694_v12, %v2698_v13  ;;  %5831 = vmatprep.subr.bf16.mxu1 %v14781_v10  ;;  %v14644_v23 = vcombine.low %v2694_v12, %v2698_v13 }
 0x2e6   : > { %v2826_v17 = vld [vmem:[%s16945_s1 + $0x660] sm:$0xff]  ;;  %5832 = vmatpush2.bf16.msra.mxu1 %v14780_v18 }
 0x2e7   : > { %v14773_v16 = vcombine.high %v2822_v14, %v2826_v17  ;;  %v2686_v59 = vld [vmem:[%s16945_s1 + $0x200] sm:$0xff]  ;;  %5792 = vmatprep.subr.bf16.mxu0 %v14645_v21  ;;  %v14772_v24 = vcombine.low %v2822_v14, %v2826_v17 }
 0x2e8   : > { %v2690_v22 = vld [vmem:[%s16945_s1 + $0x220] sm:$0xff]  ;;  %5793 = vmatpush2.bf16.msra.mxu0 %v14644_v23 }
 0x2e9   : > { %v2814_v7 = vld [vmem:[%s16945_s1 + $0x600] sm:$0xff]  ;;  %v14637_v53 = vcombine.high %v2686_v59, %v2690_v22  ;;  %5833 = vmatprep.subr.bf16.mxu1 %v14773_v16  ;;  %v14636_v30 = vcombine.low %v2686_v59, %v2690_v22 }
 0x2ea   : > { %v2818_v19 = vld [vmem:[%s16945_s1 + $0x620] sm:$0xff]  ;;  %5834 = vmatpush2.bf16.msra.mxu1 %v14772_v24 }
 0x2eb   : > { %v14765_v25 = vcombine.high %v2814_v7, %v2818_v19  ;;  %v2934_v26 = vld [vmem:[%s16945_s1 + $0x9c0] sm:$0xff]  ;;  %5794 = vmatprep.subr.bf16.mxu0 %v14637_v53  ;;  %v14764_v31 = vcombine.low %v2814_v7, %v2818_v19 }
 0x2ec   : > { %v2938_v54 = vld [vmem:[%s16945_s1 + $0x9e0] sm:$0xff]  ;;  %5795 = vmatpush2.bf16.msra.mxu0 %v14636_v30 }
 0x2ed   : > { %v3062_v27 = vld [vmem:[%s16945_s1 + $0xdc0] sm:$0xff]  ;;  %v14885_v32 = vcombine.high %v2934_v26, %v2938_v54  ;;  %5835 = vmatprep.subr.bf16.mxu1 %v14765_v25  ;;  %v14884_v42 = vcombine.low %v2934_v26, %v2938_v54 }
 0x2ee   : > { %v3066_v29 = vld [vmem:[%s16945_s1 + $0xde0] sm:$0xff]  ;;  %5836 = vmatpush2.bf16.msra.mxu1 %v14764_v31 }
 0x2ef   : > { %v15013_v33 = vcombine.high %v3062_v27, %v3066_v29  ;;  %v2926_v34 = vld [vmem:[%s16945_s1 + $0x980] sm:$0xff]  ;;  %5846 = vmatprep.subr.bf16.mxu0 %v14885_v32  ;;  %v15012_v44 = vcombine.low %v3062_v27, %v3066_v29  ;;  %5797 = vmatmul.mubr.bf16.vlgmr.msra.gmra.mxu0 %v17428_v37 }
 0x2f0   : > { %v2930_v35 = vld [vmem:[%s16945_s1 + $0x9a0] sm:$0xff]  ;;  %5847 = vmatpush1.bf16.msra.mxu0 %v14884_v42  ;;  %5878 = vmatprep.mubr.bf16.mxu0 %v17444_v49 }
 0x2f1   : > { %v3054_v38 = vld [vmem:[%s16945_s1 + $0xd80] sm:$0xff]  ;;  %v14877_v45 = vcombine.high %v2926_v34, %v2930_v35  ;;  %5887 = vmatprep.subr.bf16.mxu1 %v15013_v33  ;;  %5838 = vmatmul.mubr.bf16.vlgmr.msra.gmra.mxu1 %v17436_v11  ;;  %v14876_v52 = vcombine.low %v2926_v34, %v2930_v35 }
 0x2f2   : > { %v3058_v41 = vld [vmem:[%s16945_s1 + $0xda0] sm:$0xff]  ;;  %5888 = vmatpush1.bf16.msra.mxu1 %v15012_v44  ;;  %5919 = vmatprep.mubr.bf16.mxu1 %v17451_v51 }
 0x2f3   : > { %v15005_v58 = vcombine.high %v3054_v38, %v3058_v41  ;;  %v2918_v46 = vld [vmem:[%s16945_s1 + $0x940] sm:$0xff]  ;;  %5848 = vmatprep.subr.bf16.mxu0 %v14877_v45  ;;  %v15004_v55 = vcombine.low %v3054_v38, %v3058_v41 }
 0x2f4   : > { %v2922_v48 = vld [vmem:[%s16945_s1 + $0x960] sm:$0xff]  ;;  %5849 = vmatpush1.bf16.msra.mxu0 %v14876_v52 }
 0x2f5   : > { %v3046_v15 = vld [vmem:[%s16945_s1 + $0xd40] sm:$0xff]  ;;  %v14869_v28 = vcombine.high %v2918_v46, %v2922_v48  ;;  %5889 = vmatprep.subr.bf16.mxu1 %v15005_v58  ;;  %v14868_v39 = vcombine.low %v2918_v46, %v2922_v48 }
 0x2f6   : > { %v3050_v50 = vld [vmem:[%s16945_s1 + $0xd60] sm:$0xff]  ;;  %5890 = vmatpush1.bf16.msra.mxu1 %v15004_v55 }
 0x2f7   : > { %v14997_v56 = vcombine.high %v3046_v15, %v3050_v50  ;;  %v2910_v57 = vld [vmem:[%s16945_s1 + $0x900] sm:$0xff]  ;;  %5850 = vmatprep.subr.bf16.mxu0 %v14869_v28  ;;  %v14996_v63 = vcombine.low %v3046_v15, %v3050_v50 }
 0x2f8   : > { %v2914_v60 = vld [vmem:[%s16945_s1 + $0x920] sm:$0xff]  ;;  %5851 = vmatpush1.bf16.msra.mxu0 %v14868_v39 }
 0x2f9   : > { %v3038_v61 = vld [vmem:[%s16945_s1 + $0xd00] sm:$0xff]  ;;  %v14861_v40 = vcombine.high %v2910_v57, %v2914_v60  ;;  %5891 = vmatprep.subr.bf16.mxu1 %v14997_v56  ;;  %v14860_v6 = vcombine.low %v2910_v57, %v2914_v60 }
 0x2fa   : > { %v3042_v62 = vld [vmem:[%s16945_s1 + $0xd20] sm:$0xff]  ;;  %5892 = vmatpush1.bf16.msra.mxu1 %v14996_v63 }
 0x2fb   : > { %v14989_v1 = vcombine.high %v3038_v61, %v3042_v62  ;;  %v2902_v2 = vld [vmem:[%s16945_s1 + $0x8c0] sm:$0xff]  ;;  %5852 = vmatprep.subr.bf16.mxu0 %v14861_v40  ;;  %v14988_v8 = vcombine.low %v3038_v61, %v3042_v62 }
 0x2fc   : > { %v2906_v3 = vld [vmem:[%s16945_s1 + $0x8e0] sm:$0xff]  ;;  %5853 = vmatpush1.bf16.msra.mxu0 %v14860_v6 }
 0x2fd   : > { %v3030_v4 = vld [vmem:[%s16945_s1 + $0xcc0] sm:$0xff]  ;;  %v14853_v9 = vcombine.high %v2902_v2, %v2906_v3  ;;  %5893 = vmatprep.subr.bf16.mxu1 %v14989_v1  ;;  %v14852_v36 = vcombine.low %v2902_v2, %v2906_v3 }
 0x2fe   : > { %v3034_v5 = vld [vmem:[%s16945_s1 + $0xce0] sm:$0xff]  ;;  %5894 = vmatpush1.bf16.msra.mxu1 %v14988_v8 }
 0x2ff   : > { %v14981_v10 = vcombine.high %v3030_v4, %v3034_v5  ;;  %v2894_v12 = vld [vmem:[%s16945_s1 + $0x880] sm:$0xff]  ;;  %5854 = vmatprep.subr.bf16.mxu0 %v14853_v9  ;;  %v14980_v18 = vcombine.low %v3030_v4, %v3034_v5 }
 0x300   : > { %v2898_v13 = vld [vmem:[%s16945_s1 + $0x8a0] sm:$0xff]  ;;  %5855 = vmatpush1.bf16.msra.mxu0 %v14852_v36 }
 0x301   : > { %v3022_v14 = vld [vmem:[%s16945_s1 + $0xc80] sm:$0xff]  ;;  %v14845_v21 = vcombine.high %v2894_v12, %v2898_v13  ;;  %5895 = vmatprep.subr.bf16.mxu1 %v14981_v10  ;;  %v14844_v23 = vcombine.low %v2894_v12, %v2898_v13 }
 0x302   : > { %v3026_v17 = vld [vmem:[%s16945_s1 + $0xca0] sm:$0xff]  ;;  %5896 = vmatpush1.bf16.msra.mxu1 %v14980_v18 }
 0x303   : > { %v14973_v16 = vcombine.high %v3022_v14, %v3026_v17  ;;  %v2886_v59 = vld [vmem:[%s16945_s1 + $0x840] sm:$0xff]  ;;  %5856 = vmatprep.subr.bf16.mxu0 %v14845_v21  ;;  %v14972_v24 = vcombine.low %v3022_v14, %v3026_v17 }
 0x304   : > { %v2890_v22 = vld [vmem:[%s16945_s1 + $0x860] sm:$0xff]  ;;  %5857 = vmatpush1.bf16.msra.mxu0 %v14844_v23 }
 0x305   : > { %v3014_v7 = vld [vmem:[%s16945_s1 + $0xc40] sm:$0xff]  ;;  %v14837_v53 = vcombine.high %v2886_v59, %v2890_v22  ;;  %5897 = vmatprep.subr.bf16.mxu1 %v14973_v16  ;;  %v14836_v30 = vcombine.low %v2886_v59, %v2890_v22 }
 0x306   : > { %v3018_v19 = vld [vmem:[%s16945_s1 + $0xc60] sm:$0xff]  ;;  %5898 = vmatpush1.bf16.msra.mxu1 %v14972_v24 }
 0x307   : > { %v14965_v25 = vcombine.high %v3014_v7, %v3018_v19  ;;  %v2878_v26 = vld [vmem:[%s16945_s1 + $0x800] sm:$0xff]  ;;  %5858 = vmatprep.subr.bf16.mxu0 %v14837_v53  ;;  %v14964_v31 = vcombine.low %v3014_v7, %v3018_v19 }
 0x308   : > { %v2882_v54 = vld [vmem:[%s16945_s1 + $0x820] sm:$0xff]  ;;  %5859 = vmatpush1.bf16.msra.mxu0 %v14836_v30 }
 0x309   : > { %v3006_v27 = vld [vmem:[%s16945_s1 + $0xc00] sm:$0xff]  ;;  %v14829_v32 = vcombine.high %v2878_v26, %v2882_v54  ;;  %5899 = vmatprep.subr.bf16.mxu1 %v14965_v25  ;;  %v14828_v42 = vcombine.low %v2878_v26, %v2882_v54 }
 0x30a   : > { %v3010_v29 = vld [vmem:[%s16945_s1 + $0xc20] sm:$0xff]  ;;  %5900 = vmatpush1.bf16.msra.mxu1 %v14964_v31 }
 0x30b   : > { %v14957_v33 = vcombine.high %v3006_v27, %v3010_v29  ;;  %v2998_v34 = vld [vmem:[%s16945_s1 + $0xbc0] sm:$0xff]  ;;  %5860 = vmatprep.subr.bf16.mxu0 %v14829_v32  ;;  %v14956_v44 = vcombine.low %v3006_v27, %v3010_v29 }
 0x30c   : > { %v3002_v35 = vld [vmem:[%s16945_s1 + $0xbe0] sm:$0xff]  ;;  %5861 = vmatpush1.bf16.msra.mxu0 %v14828_v42 }
 0x30d   : > { %v3126_v38 = vld [vmem:[%s16945_s1 + $0xfc0] sm:$0xff]  ;;  %v14949_v45 = vcombine.high %v2998_v34, %v3002_v35  ;;  %5901 = vmatprep.subr.bf16.mxu1 %v14957_v33  ;;  %v14948_v52 = vcombine.low %v2998_v34, %v3002_v35 }
 0x30e   : > { %v3130_v41 = vld [vmem:[%s16945_s1 + $0xfe0] sm:$0xff]  ;;  %5902 = vmatpush1.bf16.msra.mxu1 %v14956_v44 }
 0x30f   : > { %v15077_v58 = vcombine.high %v3126_v38, %v3130_v41  ;;  %v2990_v46 = vld [vmem:[%s16945_s1 + $0xb80] sm:$0xff]  ;;  %5862 = vmatprep.subr.bf16.mxu0 %v14949_v45  ;;  %v15076_v55 = vcombine.low %v3126_v38, %v3130_v41 }
 0x310   : > { %v2994_v48 = vld [vmem:[%s16945_s1 + $0xba0] sm:$0xff]  ;;  %5863 = vmatpush2.bf16.msra.mxu0 %v14948_v52 }
 0x311   : > { %v3118_v15 = vld [vmem:[%s16945_s1 + $0xf80] sm:$0xff]  ;;  %v14941_v28 = vcombine.high %v2990_v46, %v2994_v48  ;;  %5903 = vmatprep.subr.bf16.mxu1 %v15077_v58  ;;  %v14940_v39 = vcombine.low %v2990_v46, %v2994_v48  ;;  %v2679_v46 = vld [vmem:[%s16945_s1 + $0x1c8] sm:$0xff] }
 0x312   : > { %v3122_v50 = vld [vmem:[%s16945_s1 + $0xfa0] sm:$0xff]  ;;  %5904 = vmatpush2.bf16.msra.mxu1 %v15076_v55  ;;  %v2683_v48 = vld [vmem:[%s16945_s1 + $0x1e8] sm:$0xff] }
 0x313   : > { %v15069_v56 = vcombine.high %v3118_v15, %v3122_v50  ;;  %v2982_v57 = vld [vmem:[%s16945_s1 + $0xb40] sm:$0xff]  ;;  %5864 = vmatprep.subr.bf16.mxu0 %v14941_v28  ;;  %v15068_v63 = vcombine.low %v3118_v15, %v3122_v50  ;;  %v2807_v15 = vld [vmem:[%s16945_s1 + $0x5c8] sm:$0xff]  ;;  %v14631_v28 = vcombine.high %v2679_v46, %v2683_v48 }
 0x314   : > { %v2986_v60 = vld [vmem:[%s16945_s1 + $0xb60] sm:$0xff]  ;;  %5865 = vmatpush2.bf16.msra.mxu0 %v14940_v39  ;;  %v2811_v50 = vld [vmem:[%s16945_s1 + $0x5e8] sm:$0xff] }
 0x315   : > { %v3110_v61 = vld [vmem:[%s16945_s1 + $0xf40] sm:$0xff]  ;;  %v14933_v40 = vcombine.high %v2982_v57, %v2986_v60  ;;  %5905 = vmatprep.subr.bf16.mxu1 %v15069_v56  ;;  %v14932_v6 = vcombine.low %v2982_v57, %v2986_v60  ;;  %v14759_v56 = vcombine.high %v2807_v15, %v2811_v50  ;;  %v2671_v57 = vld [vmem:[%s16945_s1 + $0x188] sm:$0xff] }
 0x316   : > { %v3114_v62 = vld [vmem:[%s16945_s1 + $0xf60] sm:$0xff]  ;;  %5906 = vmatpush2.bf16.msra.mxu1 %v15068_v63  ;;  %v2675_v60 = vld [vmem:[%s16945_s1 + $0x1a8] sm:$0xff]  ;;  %v17522_v63 = vcombine.low %v17438_v43, %v17438_v43 }
 0x317   : > { %v15061_v1 = vcombine.high %v3110_v61, %v3114_v62  ;;  %v2974_v2 = vld [vmem:[%s16945_s1 + $0xb00] sm:$0xff]  ;;  %5866 = vmatprep.subr.bf16.mxu0 %v14933_v40  ;;  %v15060_v8 = vcombine.low %v3110_v61, %v3114_v62  ;;  %v17516_v61 = vcombine.low %v17432_v0, %v17432_v0  ;;  %v2799_v62 = vld [vmem:[%s16945_s1 + $0x588] sm:$0xff]  ;;  %v14630_v40 = vcombine.low %v2679_v46, %v2683_v48 }
 0x318   : > { %v2978_v3 = vld [vmem:[%s16945_s1 + $0xb20] sm:$0xff]  ;;  %5867 = vmatpush2.bf16.msra.mxu0 %v14932_v6  ;;  %v2803_v39 = vld [vmem:[%s16945_s1 + $0x5a8] sm:$0xff]  ;;  %v14622_v43 = vcombine.low %v2671_v57, %v2675_v60 }
 0x319   : > { %v3102_v4 = vld [vmem:[%s16945_s1 + $0xf00] sm:$0xff]  ;;  %v14925_v9 = vcombine.high %v2974_v2, %v2978_v3  ;;  %5907 = vmatprep.subr.bf16.mxu1 %v15061_v1  ;;  %v14924_v36 = vcombine.low %v2974_v2, %v2978_v3  ;;  %v14758_v1 = vcombine.low %v2807_v15, %v2811_v50  ;;  %v14623_v2 = vcombine.high %v2671_v57, %v2675_v60  ;;  %v2667_v0 = vld [vmem:[%s16945_s1 + $0x168] sm:$0xff] }
 0x31a   : > { %v3106_v5 = vld [vmem:[%s16945_s1 + $0xf20] sm:$0xff]  ;;  %5908 = vmatpush2.bf16.msra.mxu1 %v15060_v8  ;;  %v14751_v3 = vcombine.high %v2799_v62, %v2803_v39  ;;  %v2795_v6 = vld [vmem:[%s16945_s1 + $0x568] sm:$0xff]  ;;  %v14750_v8 = vcombine.low %v2799_v62, %v2803_v39 }
 0x31b   : > { %v15053_v10 = vcombine.high %v3102_v4, %v3106_v5  ;;  %v2966_v12 = vld [vmem:[%s16945_s1 + $0xac0] sm:$0xff]  ;;  %5868 = vmatprep.subr.bf16.mxu0 %v14925_v9  ;;  %v15052_v18 = vcombine.low %v3102_v4, %v3106_v5  ;;  %v2663_v4 = vld [vmem:[%s16945_s1 + $0x148] sm:$0xff] }
 0x31c   : > { %v2970_v13 = vld [vmem:[%s16945_s1 + $0xae0] sm:$0xff]  ;;  %5869 = vmatpush2.bf16.msra.mxu0 %v14924_v36  ;;  %v2791_v5 = vld [vmem:[%s16945_s1 + $0x548] sm:$0xff]  ;;  %v14615_v9 = vcombine.high %v2663_v4, %v2667_v0  ;;  %v14614_v36 = vcombine.low %v2663_v4, %v2667_v0 }
 0x31d   : > { %v3094_v14 = vld [vmem:[%s16945_s1 + $0xec0] sm:$0xff]  ;;  %v14917_v21 = vcombine.high %v2966_v12, %v2970_v13  ;;  %5909 = vmatprep.subr.bf16.mxu1 %v15053_v10  ;;  %v14916_v23 = vcombine.low %v2966_v12, %v2970_v13  ;;  %v14743_v10 = vcombine.high %v2791_v5, %v2795_v6  ;;  %v2655_v12 = vld [vmem:[%s16945_s1 + $0x108] sm:$0xff] }
 0x31e   : > { %v3098_v17 = vld [vmem:[%s16945_s1 + $0xee0] sm:$0xff]  ;;  %5910 = vmatpush2.bf16.msra.mxu1 %v15052_v18  ;;  %v2659_v13 = vld [vmem:[%s16945_s1 + $0x128] sm:$0xff]  ;;  %v14742_v18 = vcombine.low %v2791_v5, %v2795_v6 }
 0x31f   : > { %v15045_v16 = vcombine.high %v3094_v14, %v3098_v17  ;;  %v2958_v59 = vld [vmem:[%s16945_s1 + $0xa80] sm:$0xff]  ;;  %5870 = vmatprep.subr.bf16.mxu0 %v14917_v21  ;;  %v15044_v24 = vcombine.low %v3094_v14, %v3098_v17  ;;  %v2783_v14 = vld [vmem:[%s16945_s1 + $0x508] sm:$0xff]  ;;  %v14607_v21 = vcombine.high %v2655_v12, %v2659_v13 }
 0x320   : > { %v2962_v22 = vld [vmem:[%s16945_s1 + $0xaa0] sm:$0xff]  ;;  %5871 = vmatpush2.bf16.msra.mxu0 %v14916_v23  ;;  %v2787_v17 = vld [vmem:[%s16945_s1 + $0x528] sm:$0xff]  ;;  %v14606_v23 = vcombine.low %v2655_v12, %v2659_v13 }
 0x321   : > { %v3086_v7 = vld [vmem:[%s16945_s1 + $0xe80] sm:$0xff]  ;;  %v14909_v53 = vcombine.high %v2958_v59, %v2962_v22  ;;  %5911 = vmatprep.subr.bf16.mxu1 %v15045_v16  ;;  %v14908_v30 = vcombine.low %v2958_v59, %v2962_v22  ;;  %v14735_v16 = vcombine.high %v2783_v14, %v2787_v17  ;;  %v2647_v59 = vld [vmem:[%s16945_s1 + $0xc8] sm:$0xff] }
 0x322   : > { %v3090_v19 = vld [vmem:[%s16945_s1 + $0xea0] sm:$0xff]  ;;  %5912 = vmatpush2.bf16.msra.mxu1 %v15044_v24  ;;  %v2651_v22 = vld [vmem:[%s16945_s1 + $0xe8] sm:$0xff]  ;;  %v14734_v24 = vcombine.low %v2783_v14, %v2787_v17 }
 0x323   : > { %v15037_v25 = vcombine.high %v3086_v7, %v3090_v19  ;;  %v2950_v26 = vld [vmem:[%s16945_s1 + $0xa40] sm:$0xff]  ;;  %5872 = vmatprep.subr.bf16.mxu0 %v14909_v53  ;;  %v15036_v31 = vcombine.low %v3086_v7, %v3090_v19  ;;  %v2775_v7 = vld [vmem:[%s16945_s1 + $0x4c8] sm:$0xff]  ;;  %v14599_v53 = vcombine.high %v2647_v59, %v2651_v22 }
 0x324   : > { %v2954_v54 = vld [vmem:[%s16945_s1 + $0xa60] sm:$0xff]  ;;  %5873 = vmatpush2.bf16.msra.mxu0 %v14908_v30  ;;  %v2779_v19 = vld [vmem:[%s16945_s1 + $0x4e8] sm:$0xff]  ;;  %v14598_v30 = vcombine.low %v2647_v59, %v2651_v22 }
 0x325   : > { %v3078_v27 = vld [vmem:[%s16945_s1 + $0xe40] sm:$0xff]  ;;  %v14901_v32 = vcombine.high %v2950_v26, %v2954_v54  ;;  %5913 = vmatprep.subr.bf16.mxu1 %v15037_v25  ;;  %v14900_v42 = vcombine.low %v2950_v26, %v2954_v54  ;;  %v14727_v25 = vcombine.high %v2775_v7, %v2779_v19  ;;  %v2639_v26 = vld [vmem:[%s16945_s1 + $0x88] sm:$0xff] }
 0x326   : > { %v3082_v29 = vld [vmem:[%s16945_s1 + $0xe60] sm:$0xff]  ;;  %5914 = vmatpush2.bf16.msra.mxu1 %v15036_v31  ;;  %v2643_v54 = vld [vmem:[%s16945_s1 + $0xa8] sm:$0xff]  ;;  %v14726_v31 = vcombine.low %v2775_v7, %v2779_v19 }
 0x327   : > { %v15029_v33 = vcombine.high %v3078_v27, %v3082_v29  ;;  %v2942_v34 = vld [vmem:[%s16945_s1 + $0xa00] sm:$0xff]  ;;  %5874 = vmatprep.subr.bf16.mxu0 %v14901_v32  ;;  %v15028_v44 = vcombine.low %v3078_v27, %v3082_v29  ;;  %v2767_v27 = vld [vmem:[%s16945_s1 + $0x488] sm:$0xff]  ;;  %v14591_v32 = vcombine.high %v2639_v26, %v2643_v54 }
 0x328   : > { %v2946_v35 = vld [vmem:[%s16945_s1 + $0xa20] sm:$0xff]  ;;  %5875 = vmatpush2.bf16.msra.mxu0 %v14900_v42  ;;  %v2771_v29 = vld [vmem:[%s16945_s1 + $0x4a8] sm:$0xff]  ;;  %v14590_v42 = vcombine.low %v2639_v26, %v2643_v54 }
 0x329   : > { %v3070_v38 = vld [vmem:[%s16945_s1 + $0xe00] sm:$0xff]  ;;  %v14893_v45 = vcombine.high %v2942_v34, %v2946_v35  ;;  %5915 = vmatprep.subr.bf16.mxu1 %v15029_v33  ;;  %v14892_v52 = vcombine.low %v2942_v34, %v2946_v35  ;;  %v14719_v33 = vcombine.high %v2767_v27, %v2771_v29  ;;  %v2631_v34 = vld [vmem:[%s16945_s1 + $0x48] sm:$0xff] }
 0x32a   : > { %v3074_v41 = vld [vmem:[%s16945_s1 + $0xe20] sm:$0xff]  ;;  %5916 = vmatpush2.bf16.msra.mxu1 %v15028_v44  ;;  %v2635_v35 = vld [vmem:[%s16945_s1 + $0x68] sm:$0xff]  ;;  %v14718_v44 = vcombine.low %v2767_v27, %v2771_v29 }
 0x32b   : > { %v15021_v58 = vcombine.high %v3070_v38, %v3074_v41  ;;  %5876 = vmatprep.subr.bf16.mxu0 %v14893_v45  ;;  %v15020_v55 = vcombine.low %v3070_v38, %v3074_v41  ;;  %v2759_v38 = vld [vmem:[%s16945_s1 + $0x448] sm:$0xff]  ;;  %v14583_v45 = vcombine.high %v2631_v34, %v2635_v35 }
 0x32c   : > { %5877 = vmatpush2.bf16.msra.mxu0 %v14892_v52  ;;  %v2763_v41 = vld [vmem:[%s16945_s1 + $0x468] sm:$0xff]  ;;  %v14582_v52 = vcombine.low %v2631_v34, %v2635_v35 }
 0x32d   : > { %5917 = vmatprep.subr.bf16.mxu1 %v15021_v58  ;;  %5928 = vmatprep.subr.bf16.mxu0 %v14631_v28  ;;  %v14711_v58 = vcombine.high %v2759_v38, %v2763_v41  ;;  %v2623_v46 = vld [vmem:[%s16945_s1 + $0x8] sm:$0xff] }
 0x32e   : > { %5918 = vmatpush2.bf16.msra.mxu1 %v15020_v55  ;;  %v2627_v48 = vld [vmem:[%s16945_s1 + $0x28] sm:$0xff]  ;;  %v14710_v55 = vcombine.low %v2759_v38, %v2763_v41 }
 0x32f   : > { %5969 = vmatprep.subr.bf16.mxu1 %v14759_v56  ;;  %5879 = vmatmul.mubr.bf16.vlgmr.msra.gmra.mxu0 %v17516_v61  ;;  %v2751_v15 = vld [vmem:[%s16945_s1 + $0x408] sm:$0xff]  ;;  %v14575_v28 = vcombine.high %v2623_v46, %v2627_v48 }
 0x330   : > { %5929 = vmatpush1.bf16.msra.mxu0 %v14630_v40  ;;  %5960 = vmatprep.mubr.bf16.mxu0 %v17378_v20  ;;  %v2755_v50 = vld [vmem:[%s16945_s1 + $0x428] sm:$0xff]  ;;  %v14574_v40 = vcombine.low %v2623_v46, %v2627_v48 }
 0x331   : > { %5920 = vmatmul.mubr.bf16.vlgmr.msra.gmra.mxu1 %v17522_v63  ;;  %5930 = vmatprep.subr.bf16.mxu0 %v14623_v2  ;;  %v14703_v56 = vcombine.high %v2751_v15, %v2755_v50  ;;  %v2743_v57 = vld [vmem:[%s16945_s1 + $0x3c8] sm:$0xff] }
 0x332   : > { %5970 = vmatpush1.bf16.msra.mxu1 %v14758_v1  ;;  %6001 = vmatprep.mubr.bf16.mxu1 %v17382_v47  ;;  %v2747_v60 = vld [vmem:[%s16945_s1 + $0x3e8] sm:$0xff]  ;;  %v14702_v1 = vcombine.low %v2751_v15, %v2755_v50 }
 0x333   : > { %5971 = vmatprep.subr.bf16.mxu1 %v14751_v3  ;;  %v2871_v62 = vld [vmem:[%s16945_s1 + $0x7c8] sm:$0xff]  ;;  %v14695_v2 = vcombine.high %v2743_v57, %v2747_v60 }
 0x334   : > { %5931 = vmatpush1.bf16.msra.mxu0 %v14622_v43  ;;  %v2875_v39 = vld [vmem:[%s16945_s1 + $0x7e8] sm:$0xff]  ;;  %v14694_v43 = vcombine.low %v2743_v57, %v2747_v60 }
 0x335   : > { %5932 = vmatprep.subr.bf16.mxu0 %v14615_v9  ;;  %v14823_v3 = vcombine.high %v2871_v62, %v2875_v39  ;;  %v2735_v4 = vld [vmem:[%s16945_s1 + $0x388] sm:$0xff] }
 0x336   : > { %5972 = vmatpush1.bf16.msra.mxu1 %v14750_v8  ;;  %v2739_v0 = vld [vmem:[%s16945_s1 + $0x3a8] sm:$0xff]  ;;  %v14822_v8 = vcombine.low %v2871_v62, %v2875_v39 }
 0x337   : > { %5973 = vmatprep.subr.bf16.mxu1 %v14743_v10  ;;  %v2863_v5 = vld [vmem:[%s16945_s1 + $0x788] sm:$0xff]  ;;  %v14687_v9 = vcombine.high %v2735_v4, %v2739_v0 }
 0x338   : > { %5933 = vmatpush1.bf16.msra.mxu0 %v14614_v36  ;;  %v2867_v6 = vld [vmem:[%s16945_s1 + $0x7a8] sm:$0xff]  ;;  %v14686_v36 = vcombine.low %v2735_v4, %v2739_v0 }
 0x339   : > { %5934 = vmatprep.subr.bf16.mxu0 %v14607_v21  ;;  %v14815_v10 = vcombine.high %v2863_v5, %v2867_v6  ;;  %v2727_v12 = vld [vmem:[%s16945_s1 + $0x348] sm:$0xff] }
 0x33a   : > { %5974 = vmatpush1.bf16.msra.mxu1 %v14742_v18  ;;  %v2731_v13 = vld [vmem:[%s16945_s1 + $0x368] sm:$0xff]  ;;  %v14814_v18 = vcombine.low %v2863_v5, %v2867_v6 }
 0x33b   : > { %5975 = vmatprep.subr.bf16.mxu1 %v14735_v16  ;;  %v2855_v14 = vld [vmem:[%s16945_s1 + $0x748] sm:$0xff]  ;;  %v14679_v21 = vcombine.high %v2727_v12, %v2731_v13 }
 0x33c   : > { %5935 = vmatpush1.bf16.msra.mxu0 %v14606_v23  ;;  %v2859_v17 = vld [vmem:[%s16945_s1 + $0x768] sm:$0xff]  ;;  %v14678_v23 = vcombine.low %v2727_v12, %v2731_v13 }
 0x33d   : > { %5936 = vmatprep.subr.bf16.mxu0 %v14599_v53  ;;  %v14807_v16 = vcombine.high %v2855_v14, %v2859_v17  ;;  %v2719_v59 = vld [vmem:[%s16945_s1 + $0x308] sm:$0xff] }
 0x33e   : > { %5976 = vmatpush1.bf16.msra.mxu1 %v14734_v24  ;;  %v2723_v22 = vld [vmem:[%s16945_s1 + $0x328] sm:$0xff]  ;;  %v14806_v24 = vcombine.low %v2855_v14, %v2859_v17 }
 0x33f   : > { %5977 = vmatprep.subr.bf16.mxu1 %v14727_v25  ;;  %v2847_v7 = vld [vmem:[%s16945_s1 + $0x708] sm:$0xff]  ;;  %v14671_v53 = vcombine.high %v2719_v59, %v2723_v22 }
 0x340   : > { %5937 = vmatpush1.bf16.msra.mxu0 %v14598_v30  ;;  %v2851_v19 = vld [vmem:[%s16945_s1 + $0x728] sm:$0xff]  ;;  %v14670_v30 = vcombine.low %v2719_v59, %v2723_v22 }
 0x341   : > { %5938 = vmatprep.subr.bf16.mxu0 %v14591_v32  ;;  %v14799_v25 = vcombine.high %v2847_v7, %v2851_v19  ;;  %v2711_v26 = vld [vmem:[%s16945_s1 + $0x2c8] sm:$0xff] }
 0x342   : > { %5978 = vmatpush1.bf16.msra.mxu1 %v14726_v31  ;;  %v2715_v54 = vld [vmem:[%s16945_s1 + $0x2e8] sm:$0xff]  ;;  %v14798_v31 = vcombine.low %v2847_v7, %v2851_v19 }
 0x343   : > { %5979 = vmatprep.subr.bf16.mxu1 %v14719_v33  ;;  %v2839_v27 = vld [vmem:[%s16945_s1 + $0x6c8] sm:$0xff]  ;;  %v14663_v32 = vcombine.high %v2711_v26, %v2715_v54 }
 0x344   : > { %5939 = vmatpush1.bf16.msra.mxu0 %v14590_v42  ;;  %v2843_v29 = vld [vmem:[%s16945_s1 + $0x6e8] sm:$0xff]  ;;  %v14662_v42 = vcombine.low %v2711_v26, %v2715_v54 }
 0x345   : > { %5940 = vmatprep.subr.bf16.mxu0 %v14583_v45  ;;  %v14791_v33 = vcombine.high %v2839_v27, %v2843_v29  ;;  %v2703_v34 = vld [vmem:[%s16945_s1 + $0x288] sm:$0xff] }
 0x346   : > { %5980 = vmatpush1.bf16.msra.mxu1 %v14718_v44  ;;  %v2707_v35 = vld [vmem:[%s16945_s1 + $0x2a8] sm:$0xff]  ;;  %v14790_v44 = vcombine.low %v2839_v27, %v2843_v29 }
 0x347   : > { %5981 = vmatprep.subr.bf16.mxu1 %v14711_v58  ;;  %v2831_v38 = vld [vmem:[%s16945_s1 + $0x688] sm:$0xff]  ;;  %v14655_v45 = vcombine.high %v2703_v34, %v2707_v35 }
 0x348   : > { %5941 = vmatpush1.bf16.msra.mxu0 %v14582_v52  ;;  %v2835_v41 = vld [vmem:[%s16945_s1 + $0x6a8] sm:$0xff]  ;;  %v14654_v52 = vcombine.low %v2703_v34, %v2707_v35 }
 0x349   : > { %5942 = vmatprep.subr.bf16.mxu0 %v14575_v28  ;;  %v14783_v58 = vcombine.high %v2831_v38, %v2835_v41  ;;  %v2695_v46 = vld [vmem:[%s16945_s1 + $0x248] sm:$0xff] }
 0x34a   : > { %5982 = vmatpush1.bf16.msra.mxu1 %v14710_v55  ;;  %v2699_v48 = vld [vmem:[%s16945_s1 + $0x268] sm:$0xff]  ;;  %v14782_v55 = vcombine.low %v2831_v38, %v2835_v41 }
 0x34b   : > { %5983 = vmatprep.subr.bf16.mxu1 %v14703_v56  ;;  %v2823_v15 = vld [vmem:[%s16945_s1 + $0x648] sm:$0xff]  ;;  %v14647_v28 = vcombine.high %v2695_v46, %v2699_v48 }
 0x34c   : > { %5943 = vmatpush1.bf16.msra.mxu0 %v14574_v40  ;;  %v2827_v50 = vld [vmem:[%s16945_s1 + $0x668] sm:$0xff]  ;;  %v14646_v40 = vcombine.low %v2695_v46, %v2699_v48 }
 0x34d   : > { %5944 = vmatprep.subr.bf16.mxu0 %v14695_v2  ;;  %v14775_v56 = vcombine.high %v2823_v15, %v2827_v50  ;;  %v2687_v57 = vld [vmem:[%s16945_s1 + $0x208] sm:$0xff] }
 0x34e   : > { %5984 = vmatpush1.bf16.msra.mxu1 %v14702_v1  ;;  %v2691_v60 = vld [vmem:[%s16945_s1 + $0x228] sm:$0xff]  ;;  %v14774_v1 = vcombine.low %v2823_v15, %v2827_v50 }
 0x34f   : > { %5985 = vmatprep.subr.bf16.mxu1 %v14823_v3  ;;  %v2815_v62 = vld [vmem:[%s16945_s1 + $0x608] sm:$0xff]  ;;  %v14639_v2 = vcombine.high %v2687_v57, %v2691_v60 }
 0x350   : > { %5945 = vmatpush2.bf16.msra.mxu0 %v14694_v43  ;;  %v2819_v39 = vld [vmem:[%s16945_s1 + $0x628] sm:$0xff]  ;;  %v14638_v43 = vcombine.low %v2687_v57, %v2691_v60 }
 0x351   : > { %5946 = vmatprep.subr.bf16.mxu0 %v14687_v9  ;;  %v14767_v3 = vcombine.high %v2815_v62, %v2819_v39  ;;  %v2935_v4 = vld [vmem:[%s16945_s1 + $0x9c8] sm:$0xff] }
 0x352   : > { %5986 = vmatpush2.bf16.msra.mxu1 %v14822_v8  ;;  %v2939_v0 = vld [vmem:[%s16945_s1 + $0x9e8] sm:$0xff]  ;;  %v14766_v8 = vcombine.low %v2815_v62, %v2819_v39 }
 0x353   : > { %5987 = vmatprep.subr.bf16.mxu1 %v14815_v10  ;;  %v3063_v5 = vld [vmem:[%s16945_s1 + $0xdc8] sm:$0xff]  ;;  %v14887_v9 = vcombine.high %v2935_v4, %v2939_v0 }
 0x354   : > { %5947 = vmatpush2.bf16.msra.mxu0 %v14686_v36  ;;  %v3067_v6 = vld [vmem:[%s16945_s1 + $0xde8] sm:$0xff]  ;;  %v14886_v36 = vcombine.low %v2935_v4, %v2939_v0 }
 0x355   : > { %5948 = vmatprep.subr.bf16.mxu0 %v14679_v21  ;;  %v15015_v10 = vcombine.high %v3063_v5, %v3067_v6  ;;  %v2927_v12 = vld [vmem:[%s16945_s1 + $0x988] sm:$0xff] }
 0x356   : > { %5988 = vmatpush2.bf16.msra.mxu1 %v14814_v18  ;;  %v2931_v13 = vld [vmem:[%s16945_s1 + $0x9a8] sm:$0xff]  ;;  %v15014_v18 = vcombine.low %v3063_v5, %v3067_v6 }
 0x357   : > { %5989 = vmatprep.subr.bf16.mxu1 %v14807_v16  ;;  %v3055_v14 = vld [vmem:[%s16945_s1 + $0xd88] sm:$0xff]  ;;  %v14879_v21 = vcombine.high %v2927_v12, %v2931_v13 }
 0x358   : > { %5949 = vmatpush2.bf16.msra.mxu0 %v14678_v23  ;;  %v3059_v17 = vld [vmem:[%s16945_s1 + $0xda8] sm:$0xff]  ;;  %v14878_v23 = vcombine.low %v2927_v12, %v2931_v13 }
 0x359   : > { %5950 = vmatprep.subr.bf16.mxu0 %v14671_v53  ;;  %v15007_v16 = vcombine.high %v3055_v14, %v3059_v17  ;;  %v2919_v59 = vld [vmem:[%s16945_s1 + $0x948] sm:$0xff] }
 0x35a   : > { %5990 = vmatpush2.bf16.msra.mxu1 %v14806_v24  ;;  %v2923_v22 = vld [vmem:[%s16945_s1 + $0x968] sm:$0xff]  ;;  %v15006_v24 = vcombine.low %v3055_v14, %v3059_v17 }
 0x35b   : > { %5991 = vmatprep.subr.bf16.mxu1 %v14799_v25  ;;  %v3047_v7 = vld [vmem:[%s16945_s1 + $0xd48] sm:$0xff]  ;;  %v14871_v53 = vcombine.high %v2919_v59, %v2923_v22 }
 0x35c   : > { %5951 = vmatpush2.bf16.msra.mxu0 %v14670_v30  ;;  %v3051_v19 = vld [vmem:[%s16945_s1 + $0xd68] sm:$0xff]  ;;  %v14870_v30 = vcombine.low %v2919_v59, %v2923_v22 }
 0x35d   : > { %5952 = vmatprep.subr.bf16.mxu0 %v14663_v32  ;;  %v14999_v25 = vcombine.high %v3047_v7, %v3051_v19  ;;  %v2911_v26 = vld [vmem:[%s16945_s1 + $0x908] sm:$0xff] }
 0x35e   : > { %5992 = vmatpush2.bf16.msra.mxu1 %v14798_v31  ;;  %v2915_v54 = vld [vmem:[%s16945_s1 + $0x928] sm:$0xff]  ;;  %v14998_v31 = vcombine.low %v3047_v7, %v3051_v19 }
 0x35f   : > { %5993 = vmatprep.subr.bf16.mxu1 %v14791_v33  ;;  %v3039_v27 = vld [vmem:[%s16945_s1 + $0xd08] sm:$0xff]  ;;  %v14863_v32 = vcombine.high %v2911_v26, %v2915_v54 }
 0x360   : > { %5953 = vmatpush2.bf16.msra.mxu0 %v14662_v42  ;;  %v3043_v29 = vld [vmem:[%s16945_s1 + $0xd28] sm:$0xff]  ;;  %v14862_v42 = vcombine.low %v2911_v26, %v2915_v54 }
 0x361   : > { %5954 = vmatprep.subr.bf16.mxu0 %v14655_v45  ;;  %v14991_v33 = vcombine.high %v3039_v27, %v3043_v29  ;;  %v2903_v34 = vld [vmem:[%s16945_s1 + $0x8c8] sm:$0xff] }
 0x362   : > { %5994 = vmatpush2.bf16.msra.mxu1 %v14790_v44  ;;  %v2907_v35 = vld [vmem:[%s16945_s1 + $0x8e8] sm:$0xff]  ;;  %v14990_v44 = vcombine.low %v3039_v27, %v3043_v29 }
 0x363   : > { %5995 = vmatprep.subr.bf16.mxu1 %v14783_v58  ;;  %v3031_v38 = vld [vmem:[%s16945_s1 + $0xcc8] sm:$0xff]  ;;  %v14855_v45 = vcombine.high %v2903_v34, %v2907_v35 }
 0x364   : > { %5955 = vmatpush2.bf16.msra.mxu0 %v14654_v52  ;;  %v3035_v41 = vld [vmem:[%s16945_s1 + $0xce8] sm:$0xff]  ;;  %v14854_v52 = vcombine.low %v2903_v34, %v2907_v35 }
 0x365   : > { %5956 = vmatprep.subr.bf16.mxu0 %v14647_v28  ;;  %v14983_v58 = vcombine.high %v3031_v38, %v3035_v41  ;;  %v2895_v46 = vld [vmem:[%s16945_s1 + $0x888] sm:$0xff] }
 0x366   : > { %5996 = vmatpush2.bf16.msra.mxu1 %v14782_v55  ;;  %v2899_v48 = vld [vmem:[%s16945_s1 + $0x8a8] sm:$0xff]  ;;  %v14982_v55 = vcombine.low %v3031_v38, %v3035_v41 }
 0x367   : > { %5997 = vmatprep.subr.bf16.mxu1 %v14775_v56  ;;  %v3023_v15 = vld [vmem:[%s16945_s1 + $0xc88] sm:$0xff]  ;;  %v14847_v28 = vcombine.high %v2895_v46, %v2899_v48 }
 0x368   : > { %5957 = vmatpush2.bf16.msra.mxu0 %v14646_v40  ;;  %v3027_v50 = vld [vmem:[%s16945_s1 + $0xca8] sm:$0xff]  ;;  %v14846_v40 = vcombine.low %v2895_v46, %v2899_v48 }
 0x369   : > { %5958 = vmatprep.subr.bf16.mxu0 %v14639_v2  ;;  %v14975_v56 = vcombine.high %v3023_v15, %v3027_v50  ;;  %v2887_v57 = vld [vmem:[%s16945_s1 + $0x848] sm:$0xff] }
 0x36a   : > { %5998 = vmatpush2.bf16.msra.mxu1 %v14774_v1  ;;  %v2891_v60 = vld [vmem:[%s16945_s1 + $0x868] sm:$0xff]  ;;  %v14974_v1 = vcombine.low %v3023_v15, %v3027_v50 }
 0x36b   : > { %5999 = vmatprep.subr.bf16.mxu1 %v14767_v3  ;;  %v3015_v62 = vld [vmem:[%s16945_s1 + $0xc48] sm:$0xff]  ;;  %v14839_v2 = vcombine.high %v2887_v57, %v2891_v60 }
 0x36c   : > { %5959 = vmatpush2.bf16.msra.mxu0 %v14638_v43  ;;  %v3019_v39 = vld [vmem:[%s16945_s1 + $0xc68] sm:$0xff]  ;;  %v14838_v43 = vcombine.low %v2887_v57, %v2891_v60 }
 0x36d   : > { %6010 = vmatprep.subr.bf16.mxu0 %v14887_v9  ;;  %v14967_v3 = vcombine.high %v3015_v62, %v3019_v39  ;;  %v2879_v4 = vld [vmem:[%s16945_s1 + $0x808] sm:$0xff] }
 0x36e   : > { %6000 = vmatpush2.bf16.msra.mxu1 %v14766_v8  ;;  %v2883_v0 = vld [vmem:[%s16945_s1 + $0x828] sm:$0xff]  ;;  %v14966_v8 = vcombine.low %v3015_v62, %v3019_v39 }
 0x36f   : > { %6051 = vmatprep.subr.bf16.mxu1 %v15015_v10  ;;  %5961 = vmatmul.mubr.bf16.vlgmr.msra.gmra.mxu0 %v17428_v37  ;;  %v3007_v5 = vld [vmem:[%s16945_s1 + $0xc08] sm:$0xff]  ;;  %v14831_v9 = vcombine.high %v2879_v4, %v2883_v0 }
 0x370   : > { %6011 = vmatpush1.bf16.msra.mxu0 %v14886_v36  ;;  %6042 = vmatprep.mubr.bf16.mxu0 %v17444_v49  ;;  %v3011_v6 = vld [vmem:[%s16945_s1 + $0xc28] sm:$0xff]  ;;  %v14830_v36 = vcombine.low %v2879_v4, %v2883_v0 }
 0x371   : > { %6002 = vmatmul.mubr.bf16.vlgmr.msra.gmra.mxu1 %v17436_v11  ;;  %6012 = vmatprep.subr.bf16.mxu0 %v14879_v21  ;;  %v14959_v10 = vcombine.high %v3007_v5, %v3011_v6  ;;  %v2999_v12 = vld [vmem:[%s16945_s1 + $0xbc8] sm:$0xff] }
 0x372   : > { %6052 = vmatpush1.bf16.msra.mxu1 %v15014_v18  ;;  %6083 = vmatprep.mubr.bf16.mxu1 %v17451_v51  ;;  %v3003_v13 = vld [vmem:[%s16945_s1 + $0xbe8] sm:$0xff]  ;;  %v14958_v18 = vcombine.low %v3007_v5, %v3011_v6 }
 0x373   : > { %6053 = vmatprep.subr.bf16.mxu1 %v15007_v16  ;;  %v3127_v14 = vld [vmem:[%s16945_s1 + $0xfc8] sm:$0xff]  ;;  %v14951_v21 = vcombine.high %v2999_v12, %v3003_v13 }
 0x374   : > { %6013 = vmatpush1.bf16.msra.mxu0 %v14878_v23  ;;  %v3131_v17 = vld [vmem:[%s16945_s1 + $0xfe8] sm:$0xff]  ;;  %v14950_v23 = vcombine.low %v2999_v12, %v3003_v13 }
 0x375   : > { %6014 = vmatprep.subr.bf16.mxu0 %v14871_v53  ;;  %v15079_v16 = vcombine.high %v3127_v14, %v3131_v17  ;;  %v2991_v59 = vld [vmem:[%s16945_s1 + $0xb88] sm:$0xff] }
 0x376   : > { %6054 = vmatpush1.bf16.msra.mxu1 %v15006_v24  ;;  %v2995_v22 = vld [vmem:[%s16945_s1 + $0xba8] sm:$0xff]  ;;  %v15078_v24 = vcombine.low %v3127_v14, %v3131_v17 }
 0x377   : > { %6055 = vmatprep.subr.bf16.mxu1 %v14999_v25  ;;  %v3119_v7 = vld [vmem:[%s16945_s1 + $0xf88] sm:$0xff]  ;;  %v14943_v53 = vcombine.high %v2991_v59, %v2995_v22 }
 0x378   : > { %6015 = vmatpush1.bf16.msra.mxu0 %v14870_v30  ;;  %v3123_v19 = vld [vmem:[%s16945_s1 + $0xfa8] sm:$0xff]  ;;  %v14942_v30 = vcombine.low %v2991_v59, %v2995_v22 }
 0x379   : > { %6016 = vmatprep.subr.bf16.mxu0 %v14863_v32  ;;  %v15071_v25 = vcombine.high %v3119_v7, %v3123_v19  ;;  %v2983_v26 = vld [vmem:[%s16945_s1 + $0xb48] sm:$0xff] }
 0x37a   : > { %6056 = vmatpush1.bf16.msra.mxu1 %v14998_v31  ;;  %v2987_v54 = vld [vmem:[%s16945_s1 + $0xb68] sm:$0xff]  ;;  %v15070_v31 = vcombine.low %v3119_v7, %v3123_v19  ;;  %v2680_v7 = vld [vmem:[%s16945_s1 + $0x1d0] sm:$0xff] }
 0x37b   : > { %6057 = vmatprep.subr.bf16.mxu1 %v14991_v33  ;;  %v3111_v27 = vld [vmem:[%s16945_s1 + $0xf48] sm:$0xff]  ;;  %v14935_v32 = vcombine.high %v2983_v26, %v2987_v54  ;;  %v2684_v19 = vld [vmem:[%s16945_s1 + $0x1f0] sm:$0xff] }
 0x37c   : > { %6017 = vmatpush1.bf16.msra.mxu0 %v14862_v42  ;;  %v3115_v29 = vld [vmem:[%s16945_s1 + $0xf68] sm:$0xff]  ;;  %v14934_v42 = vcombine.low %v2983_v26, %v2987_v54 }
 0x37d   : > { %6018 = vmatprep.subr.bf16.mxu0 %v14855_v45  ;;  %v15063_v33 = vcombine.high %v3111_v27, %v3115_v29  ;;  %v2975_v34 = vld [vmem:[%s16945_s1 + $0xb08] sm:$0xff] }
 0x37e   : > { %6058 = vmatpush1.bf16.msra.mxu1 %v14990_v44  ;;  %v2979_v35 = vld [vmem:[%s16945_s1 + $0xb28] sm:$0xff]  ;;  %v15062_v44 = vcombine.low %v3111_v27, %v3115_v29  ;;  %v14633_v27 = vcombine.high %v2680_v7, %v2684_v19 }
 0x37f   : > { %6059 = vmatprep.subr.bf16.mxu1 %v14983_v58  ;;  %v3103_v38 = vld [vmem:[%s16945_s1 + $0xf08] sm:$0xff]  ;;  %v14927_v45 = vcombine.high %v2975_v34, %v2979_v35 }
 0x380   : > { %6019 = vmatpush1.bf16.msra.mxu0 %v14854_v52  ;;  %v3107_v41 = vld [vmem:[%s16945_s1 + $0xf28] sm:$0xff]  ;;  %v14926_v52 = vcombine.low %v2975_v34, %v2979_v35  ;;  %v2804_v34 = vld [vmem:[%s16945_s1 + $0x5b0] sm:$0xff] }
 0x381   : > { %6020 = vmatprep.subr.bf16.mxu0 %v14847_v28  ;;  %v15055_v58 = vcombine.high %v3103_v38, %v3107_v41  ;;  %v2967_v46 = vld [vmem:[%s16945_s1 + $0xac8] sm:$0xff] }
 0x382   : > { %6060 = vmatpush1.bf16.msra.mxu1 %v14982_v55  ;;  %v2971_v48 = vld [vmem:[%s16945_s1 + $0xae8] sm:$0xff]  ;;  %v15054_v55 = vcombine.low %v3103_v38, %v3107_v41  ;;  %v14632_v38 = vcombine.low %v2680_v7, %v2684_v19 }
 0x383   : > { %6061 = vmatprep.subr.bf16.mxu1 %v14975_v56  ;;  %v3095_v15 = vld [vmem:[%s16945_s1 + $0xec8] sm:$0xff]  ;;  %v14919_v28 = vcombine.high %v2967_v46, %v2971_v48 }
 0x384   : > { %6021 = vmatpush1.bf16.msra.mxu0 %v14846_v40  ;;  %v3099_v50 = vld [vmem:[%s16945_s1 + $0xee8] sm:$0xff]  ;;  %v14918_v40 = vcombine.low %v2967_v46, %v2971_v48  ;;  %v2668_v46 = vld [vmem:[%s16945_s1 + $0x170] sm:$0xff] }
 0x385   : > { %6022 = vmatprep.subr.bf16.mxu0 %v14839_v2  ;;  %v15047_v56 = vcombine.high %v3095_v15, %v3099_v50  ;;  %v2959_v57 = vld [vmem:[%s16945_s1 + $0xa88] sm:$0xff] }
 0x386   : > { %6062 = vmatpush1.bf16.msra.mxu1 %v14974_v1  ;;  %v2963_v60 = vld [vmem:[%s16945_s1 + $0xaa8] sm:$0xff]  ;;  %v15046_v1 = vcombine.low %v3095_v15, %v3099_v50  ;;  %v2792_v15 = vld [vmem:[%s16945_s1 + $0x550] sm:$0xff] }
 0x387   : > { %6063 = vmatprep.subr.bf16.mxu1 %v14967_v3  ;;  %v3087_v62 = vld [vmem:[%s16945_s1 + $0xe88] sm:$0xff]  ;;  %v14911_v2 = vcombine.high %v2959_v57, %v2963_v60  ;;  %v2796_v50 = vld [vmem:[%s16945_s1 + $0x570] sm:$0xff] }
 0x388   : > { %6023 = vmatpush1.bf16.msra.mxu0 %v14838_v43  ;;  %v3091_v39 = vld [vmem:[%s16945_s1 + $0xea8] sm:$0xff]  ;;  %v14910_v43 = vcombine.low %v2959_v57, %v2963_v60 }
 0x389   : > { %6024 = vmatprep.subr.bf16.mxu0 %v14831_v9  ;;  %v15039_v3 = vcombine.high %v3087_v62, %v3091_v39  ;;  %v2951_v4 = vld [vmem:[%s16945_s1 + $0xa48] sm:$0xff]  ;;  %v15038_v9 = vcombine.low %v3087_v62, %v3091_v39 }
 0x38a   : > { %6064 = vmatpush1.bf16.msra.mxu1 %v14966_v8  ;;  %v2955_v0 = vld [vmem:[%s16945_s1 + $0xa68] sm:$0xff]  ;;  %v3136_v8 = vlaneseq }
 0x38b   : > { %6065 = vmatprep.subr.bf16.mxu1 %v14959_v10  ;;  %v3079_v5 = vld [vmem:[%s16945_s1 + $0xe48] sm:$0xff]  ;;  %v14903_v10 = vcombine.high %v2951_v4, %v2955_v0 }
 0x38c   : > { %6025 = vmatpush1.bf16.msra.mxu0 %v14830_v36  ;;  %v3083_v6 = vld [vmem:[%s16945_s1 + $0xe68] sm:$0xff] }
 0x38d   : > { %6026 = vmatprep.subr.bf16.mxu0 %v14951_v21  ;;  %v15031_v12 = vcombine.high %v3079_v5, %v3083_v6  ;;  %v2943_v13 = vld [vmem:[%s16945_s1 + $0xa08] sm:$0xff]  ;;  %v17652_v21 = vshrl.u32 %v3136_v8, 7 }
 0x38e   : > { %6066 = vmatpush1.bf16.msra.mxu1 %v14958_v18  ;;  %v2947_v14 = vld [vmem:[%s16945_s1 + $0xa28] sm:$0xff]  ;;  %v14902_v18 = vcombine.low %v2951_v4, %v2955_v0  ;;  %v2784_v0 = vld [vmem:[%s16945_s1 + $0x510] sm:$0xff] }
 0x38f   : > { %6067 = vmatprep.subr.bf16.mxu1 %v15079_v16  ;;  %v3071_v17 = vld [vmem:[%s16945_s1 + $0xe08] sm:$0xff]  ;;  %v15030_v16 = vcombine.low %v3079_v5, %v3083_v6  ;;  %v14895_v59 = vcombine.high %v2943_v13, %v2947_v14  ;;  %v2788_v5 = vld [vmem:[%s16945_s1 + $0x530] sm:$0xff] }
 0x390   : > { %6027 = vmatpush2.bf16.msra.mxu0 %v14950_v23  ;;  %v3075_v36 = vld [vmem:[%s16945_s1 + $0xe28] sm:$0xff]  ;;  %v2808_v23 = vld [vmem:[%s16945_s1 + $0x5d0] sm:$0xff] }
 0x391   : > { %6028 = vmatprep.subr.bf16.mxu0 %v14943_v53  ;;  %v15023_v22 = vcombine.high %v3071_v17, %v3075_v36  ;;  %v14894_v53 = vcombine.low %v2943_v13, %v2947_v14  ;;  %v15022_v26 = vcombine.low %v3071_v17, %v3075_v36  ;;  %v17660_v54 = vld [vmem:[%s16951_s20] sm:$0xff]  ;;  %v14737_v14 = vcombine.high %v2784_v0, %v2788_v5  ;;  %v2648_v17 = vld [vmem:[%s16945_s1 + $0xd0] sm:$0xff] }
 0x392   : > { %6068 = vmatpush2.bf16.msra.mxu1 %v15078_v24  ;;  %v2812_v24 = vld [vmem:[%s16945_s1 + $0x5f0] sm:$0xff] }
 0x393   : > { %6069 = vmatprep.subr.bf16.mxu1 %v15071_v25  ;;  %v3138_v25 = vsub.s32 0, %v17652_v21  ;;  %v14761_v29 = vcombine.high %v2808_v23, %v2812_v24  ;;  %v14760_v41 = vcombine.low %v2808_v23, %v2812_v24  ;;  %v2652_v36 = vld [vmem:[%s16945_s1 + $0xf0] sm:$0xff] }
 0x394   : > { %6029 = vmatpush2.bf16.msra.mxu0 %v14942_v30  ;;  %v3142_v30 = vsub.s32 1, %v17652_v21  ;;  %v14601_v7 = vcombine.high %v2648_v17, %v2652_v36  ;;  %v2640_v23 = vld [vmem:[%s16945_s1 + $0x90] sm:$0xff] }
 0x395   : > { %6030 = vmatprep.subr.bf16.mxu0 %v14935_v32  ;;  %v2676_v32 = vld [vmem:[%s16945_s1 + $0x1b0] sm:$0xff]  ;;  %v3139_v35 = vrot.slane %v17660_v54, %v3138_v25 }
 0x396   : > { %6070 = vmatpush2.bf16.msra.mxu1 %v15070_v31  ;;  %v2672_v31 = vld [vmem:[%s16945_s1 + $0x190] sm:$0xff] }
 0x397   : > { %6071 = vmatprep.subr.bf16.mxu1 %v15063_v33  ;;  %v2800_v33 = vld [vmem:[%s16945_s1 + $0x590] sm:$0xff] }
 0x398   : > { %6031 = vmatpush2.bf16.msra.mxu0 %v14934_v42  ;;  %v14625_v42 = vcombine.high %v2672_v31, %v2676_v32  ;;  %v14752_v57 = vcombine.low %v2800_v33, %v2804_v34  ;;  %v2644_v24 = vld [vmem:[%s16945_s1 + $0xb0] sm:$0xff] }
 0x399   : > { %6032 = vmatprep.subr.bf16.mxu0 %v14927_v45  ;;  %v14753_v45 = vcombine.high %v2800_v33, %v2804_v34  ;;  %v2772_v25 = vld [vmem:[%s16945_s1 + $0x4b0] sm:$0xff] }
 0x39a   : > { %6072 = vmatpush2.bf16.msra.mxu1 %v15062_v44  ;;  %v3143_v44 = vrot.slane %v17660_v54, %v3142_v30  ;;  %v2760_v33 = vld [vmem:[%s16945_s1 + $0x450] sm:$0xff] }
 0x39b   : > { %6073 = vmatprep.subr.bf16.mxu1 %v15055_v58  ;;  %v2664_v58 = vld [vmem:[%s16945_s1 + $0x150] sm:$0xff] }
 0x39c   : > { %6033 = vmatpush2.bf16.msra.mxu0 %v14926_v52  ;;  %v14617_v60 = vcombine.high %v2664_v58, %v2668_v46  ;;  %v14616_v8 = vcombine.low %v2664_v58, %v2668_v46  ;;  %v2764_v34 = vld [vmem:[%s16945_s1 + $0x470] sm:$0xff] }
 0x39d   : > { %6034 = vmatprep.subr.bf16.mxu0 %v14919_v28  ;;  %v14624_v28 = vcombine.low %v2672_v31, %v2676_v32  ;;  %v2632_v31 = vld [vmem:[%s16945_s1 + $0x50] sm:$0xff] }
 0x39e   : > { %6074 = vmatpush2.bf16.msra.mxu1 %v15054_v55  ;;  %v2636_v32 = vld [vmem:[%s16945_s1 + $0x70] sm:$0xff] }
 0x39f   : > { %6075 = vmatprep.subr.bf16.mxu1 %v15047_v56  ;;  %v2752_v58 = vld [vmem:[%s16945_s1 + $0x410] sm:$0xff] }
 0x3a0   : > { %6035 = vmatpush2.bf16.msra.mxu0 %v14918_v40  ;;  %v2756_v46 = vld [vmem:[%s16945_s1 + $0x430] sm:$0xff] }
 0x3a1   : > { %6036 = vmatprep.subr.bf16.mxu0 %v14911_v2  ;;  %v2656_v2 = vld [vmem:[%s16945_s1 + $0x110] sm:$0xff] }
 0x3a2   : > { %6076 = vmatpush2.bf16.msra.mxu1 %v15046_v1  ;;  %v14745_v1 = vcombine.high %v2792_v15, %v2796_v50 }
 0x3a3   : > { %6077 = vmatprep.subr.bf16.mxu1 %v15039_v3  ;;  %v2660_v3 = vld [vmem:[%s16945_s1 + $0x130] sm:$0xff] }
 0x3a4   : > { %6037 = vmatpush2.bf16.msra.mxu0 %v14910_v43 }
 0x3a5   : > { %6038 = vmatprep.subr.bf16.mxu0 %v14903_v10  ;;  %v14744_v10 = vcombine.low %v2792_v15, %v2796_v50  ;;  %v14712_v15 = vcombine.low %v2760_v33, %v2764_v34 }
 0x3a6   : > { %6078 = vmatpush2.bf16.msra.mxu1 %v15038_v9 }
 0x3a7   : > { %6079 = vmatprep.subr.bf16.mxu1 %v15031_v12  ;;  %v14609_v12 = vcombine.high %v2656_v2, %v2660_v3 }
 0x3a8   : > { %6039 = vmatpush2.bf16.msra.mxu0 %v14902_v18  ;;  %v2776_v18 = vld [vmem:[%s16945_s1 + $0x4d0] sm:$0xff] }
 0x3a9   : > { %6040 = vmatprep.subr.bf16.mxu0 %v14895_v59  ;;  %v14608_v59 = vcombine.low %v2656_v2, %v2660_v3  ;;  %v2736_v2 = vld [vmem:[%s16945_s1 + $0x390] sm:$0xff] }
 0x3aa   : > { %6080 = vmatpush2.bf16.msra.mxu1 %v15030_v16  ;;  %v2780_v16 = vld [vmem:[%s16945_s1 + $0x4f0] sm:$0xff] }
 0x3ab   : > { %6081 = vmatprep.subr.bf16.mxu1 %v15023_v22  ;;  %v14736_v22 = vcombine.low %v2784_v0, %v2788_v5  ;;  %v14729_v19 = vcombine.high %v2776_v18, %v2780_v16  ;;  %v2740_v3 = vld [vmem:[%s16945_s1 + $0x3b0] sm:$0xff] }
 0x3ac   : > { %6041 = vmatpush2.bf16.msra.mxu0 %v14894_v53  ;;  %v2768_v53 = vld [vmem:[%s16945_s1 + $0x490] sm:$0xff] }
 0x3ad   : > { %6092 = vmatprep.subr.bf16.mxu0 %v14633_v27  ;;  %v14728_v27 = vcombine.low %v2776_v18, %v2780_v16  ;;  %v14721_v30 = vcombine.high %v2768_v53, %v2772_v25  ;;  %v2868_v0 = vld [vmem:[%s16945_s1 + $0x7b0] sm:$0xff] }
 0x3ae   : > { %6082 = vmatpush2.bf16.msra.mxu1 %v15022_v26  ;;  %v14600_v26 = vcombine.low %v2648_v17, %v2652_v36  ;;  %v14688_v17 = vcombine.low %v2736_v2, %v2740_v3 }
 0x3af   : > { %6133 = vmatprep.subr.bf16.mxu1 %v14761_v29  ;;  %v5798_v48 = vpop.f32.mrf.mxu0  ;;  %6043 = vmatmul.mubr.bf16.vlgmr.msra.gmra.mxu0 %v17516_v61  ;;  %v14593_v29 = vcombine.high %v2640_v23, %v2644_v24 }
 0x3b0   : > { %v5799_v52 = vadd.f32 %v5798_v48, %v3139_v35  ;;  %6093 = vmatpush1.bf16.msra.mxu0 %v14632_v38  ;;  %6124 = vmatprep.mubr.bf16.mxu0 %v17378_v20  ;;  %v14592_v35 = vcombine.low %v2640_v23, %v2644_v24  ;;  %v14720_v38 = vcombine.low %v2768_v53, %v2772_v25 }
 0x3b1   : > { %v5839_v55 = vpop.f32.mrf.mxu1  ;;  %6084 = vmatmul.mubr.bf16.vlgmr.msra.gmra.mxu1 %v17522_v63  ;;  %v5800_v56 = vpop.f32.mrf.mxu0  ;;  %6094 = vmatprep.subr.bf16.mxu0 %v14625_v42  ;;  %v14713_v42 = vcombine.high %v2760_v33, %v2764_v34  ;;  %v14584_v48 = vcombine.low %v2632_v31, %v2636_v32 }
 0x3b2   : > { %6134 = vmatpush1.bf16.msra.mxu1 %v14760_v41  ;;  %v17675_v62 = vadd.f32 %v5839_v55, %v5799_v52  ;;  %v5801_v39 = vadd.f32 %v5800_v56, %v3143_v44  ;;  %6165 = vmatprep.mubr.bf16.mxu1 %v17382_v47  ;;  %v14585_v41 = vcombine.high %v2632_v31, %v2636_v32  ;;  %v2624_v44 = vld [vmem:[%s16945_s1 + $0x10] sm:$0xff] }
 0x3b3   : > { %v5841_v40 = vpop.f32.mrf.mxu1  ;;  %6135 = vmatprep.subr.bf16.mxu1 %v14753_v45  ;;  %v5802_v4 = vpop.f32.mrf.mxu0  ;;  %v2628_v45 = vld [vmem:[%s16945_s1 + $0x30] sm:$0xff]  ;;  %v14705_v52 = vcombine.high %v2752_v58, %v2756_v46 }
 0x3b4   : > { %v17683_v6 = vadd.f32 %v5841_v40, %v5801_v39  ;;  %6095 = vmatpush1.bf16.msra.mxu0 %v14624_v28  ;;  %v14577_v50 = vcombine.high %v2624_v44, %v2628_v45  ;;  %v2744_v55 = vld [vmem:[%s16945_s1 + $0x3d0] sm:$0xff]  ;;  %v14704_v39 = vcombine.low %v2752_v58, %v2756_v46 }
 0x3b5   : > { %v5843_v43 = vpop.f32.mrf.mxu1  ;;  %v5803_v9 = vpop.f32.mrf.mxu0  ;;  %6096 = vmatprep.subr.bf16.mxu0 %v14617_v60  ;;  %v2748_v28 = vld [vmem:[%s16945_s1 + $0x3f0] sm:$0xff]  ;;  %v14576_v60 = vcombine.low %v2624_v44, %v2628_v45 }
 0x3b6   : > { %6136 = vmatpush1.bf16.msra.mxu1 %v14752_v57  ;;  %v2872_v56 = vld [vmem:[%s16945_s1 + $0x7d0] sm:$0xff]  ;;  %v14697_v40 = vcombine.high %v2744_v55, %v2748_v28  ;;  %v14696_v5 = vcombine.low %v2744_v55, %v2748_v28 }
 0x3b7   : > { %v5844_v13 = vpop.f32.mrf.mxu1  ;;  %6137 = vmatprep.subr.bf16.mxu1 %v14745_v1  ;;  %v2876_v57 = vld [vmem:[%s16945_s1 + $0x7f0] sm:$0xff] }
 0x3b8   : > { %6097 = vmatpush1.bf16.msra.mxu0 %v14616_v8  ;;  %v14825_v1 = vcombine.high %v2872_v56, %v2876_v57  ;;  %v2864_v4 = vld [vmem:[%s16945_s1 + $0x790] sm:$0xff]  ;;  %v14824_v43 = vcombine.low %v2872_v56, %v2876_v57  ;;  %v14689_v8 = vcombine.high %v2736_v2, %v2740_v3 }
 0x3b9   : > { %6098 = vmatprep.subr.bf16.mxu0 %v14609_v12  ;;  %v14817_v9 = vcombine.high %v2864_v4, %v2868_v0  ;;  %v2732_v12 = vld [vmem:[%s16945_s1 + $0x370] sm:$0xff]  ;;  %v14816_v36 = vcombine.low %v2864_v4, %v2868_v0 }
 0x3ba   : > { %6138 = vmatpush1.bf16.msra.mxu1 %v14744_v10  ;;  %v2728_v10 = vld [vmem:[%s16945_s1 + $0x350] sm:$0xff] }
 0x3bb   : > { %6139 = vmatprep.subr.bf16.mxu1 %v14737_v14  ;;  %v2856_v13 = vld [vmem:[%s16945_s1 + $0x750] sm:$0xff]  ;;  %v14681_v18 = vcombine.high %v2728_v10, %v2732_v12  ;;  %v14680_v23 = vcombine.low %v2728_v10, %v2732_v12 }
 0x3bc   : > { %6099 = vmatpush1.bf16.msra.mxu0 %v14608_v59  ;;  %v2860_v14 = vld [vmem:[%s16945_s1 + $0x770] sm:$0xff] }
 0x3bd   : > { %6100 = vmatprep.subr.bf16.mxu0 %v14601_v7  ;;  %v14809_v16 = vcombine.high %v2856_v13, %v2860_v14  ;;  %v2720_v59 = vld [vmem:[%s16945_s1 + $0x310] sm:$0xff]  ;;  %v14808_v24 = vcombine.low %v2856_v13, %v2860_v14 }
 0x3be   : > { %6140 = vmatpush1.bf16.msra.mxu1 %v14736_v22  ;;  %v2724_v22 = vld [vmem:[%s16945_s1 + $0x330] sm:$0xff] }
 0x3bf   : > { %6141 = vmatprep.subr.bf16.mxu1 %v14729_v19  ;;  %v2848_v7 = vld [vmem:[%s16945_s1 + $0x710] sm:$0xff]  ;;  %v14673_v53 = vcombine.high %v2720_v59, %v2724_v22  ;;  %v14672_v31 = vcombine.low %v2720_v59, %v2724_v22 }
 0x3c0   : > { %6101 = vmatpush1.bf16.msra.mxu0 %v14600_v26  ;;  %v2852_v19 = vld [vmem:[%s16945_s1 + $0x730] sm:$0xff] }
 0x3c1   : > { %6102 = vmatprep.subr.bf16.mxu0 %v14593_v29  ;;  %v14801_v25 = vcombine.high %v2848_v7, %v2852_v19  ;;  %v2712_v26 = vld [vmem:[%s16945_s1 + $0x2d0] sm:$0xff]  ;;  %v14800_v32 = vcombine.low %v2848_v7, %v2852_v19 }
 0x3c2   : > { %6142 = vmatpush1.bf16.msra.mxu1 %v14728_v27  ;;  %v2716_v27 = vld [vmem:[%s16945_s1 + $0x2f0] sm:$0xff] }
 0x3c3   : > { %6143 = vmatprep.subr.bf16.mxu1 %v14721_v30  ;;  %v2840_v29 = vld [vmem:[%s16945_s1 + $0x6d0] sm:$0xff]  ;;  %v14665_v33 = vcombine.high %v2712_v26, %v2716_v27  ;;  %v14664_v44 = vcombine.low %v2712_v26, %v2716_v27 }
 0x3c4   : > { %6103 = vmatpush1.bf16.msra.mxu0 %v14592_v35  ;;  %v2844_v30 = vld [vmem:[%s16945_s1 + $0x6f0] sm:$0xff] }
 0x3c5   : > { %6104 = vmatprep.subr.bf16.mxu0 %v14585_v41  ;;  %v14793_v34 = vcombine.high %v2840_v29, %v2844_v30  ;;  %v2704_v35 = vld [vmem:[%s16945_s1 + $0x290] sm:$0xff]  ;;  %v14792_v45 = vcombine.low %v2840_v29, %v2844_v30 }
 0x3c6   : > { %6144 = vmatpush1.bf16.msra.mxu1 %v14720_v38  ;;  %v2708_v38 = vld [vmem:[%s16945_s1 + $0x2b0] sm:$0xff] }
 0x3c7   : > { %6145 = vmatprep.subr.bf16.mxu1 %v14713_v42  ;;  %v2832_v41 = vld [vmem:[%s16945_s1 + $0x690] sm:$0xff]  ;;  %v14657_v58 = vcombine.high %v2704_v35, %v2708_v38  ;;  %v14656_v55 = vcombine.low %v2704_v35, %v2708_v38 }
 0x3c8   : > { %6105 = vmatpush1.bf16.msra.mxu0 %v14584_v48  ;;  %v2836_v42 = vld [vmem:[%s16945_s1 + $0x6b0] sm:$0xff] }
 0x3c9   : > { %6106 = vmatprep.subr.bf16.mxu0 %v14577_v50  ;;  %v14785_v46 = vcombine.high %v2832_v41, %v2836_v42  ;;  %v2696_v48 = vld [vmem:[%s16945_s1 + $0x250] sm:$0xff]  ;;  %v14784_v28 = vcombine.low %v2832_v41, %v2836_v42 }
 0x3ca   : > { %6146 = vmatpush1.bf16.msra.mxu1 %v14712_v15  ;;  %v2700_v15 = vld [vmem:[%s16945_s1 + $0x270] sm:$0xff] }
 0x3cb   : > { %6147 = vmatprep.subr.bf16.mxu1 %v14705_v52  ;;  %v2824_v50 = vld [vmem:[%s16945_s1 + $0x650] sm:$0xff]  ;;  %v14649_v56 = vcombine.high %v2696_v48, %v2700_v15  ;;  %v14648_v2 = vcombine.low %v2696_v48, %v2700_v15 }
 0x3cc   : > { %6107 = vmatpush1.bf16.msra.mxu0 %v14576_v60  ;;  %v2828_v52 = vld [vmem:[%s16945_s1 + $0x670] sm:$0xff] }
 0x3cd   : > { %6108 = vmatprep.subr.bf16.mxu0 %v14697_v40  ;;  %v14777_v57 = vcombine.high %v2824_v50, %v2828_v52  ;;  %v2688_v60 = vld [vmem:[%s16945_s1 + $0x210] sm:$0xff]  ;;  %v14776_v3 = vcombine.low %v2824_v50, %v2828_v52 }
 0x3ce   : > { %6148 = vmatpush1.bf16.msra.mxu1 %v14704_v39  ;;  %v2692_v39 = vld [vmem:[%s16945_s1 + $0x230] sm:$0xff] }
 0x3cf   : > { %6149 = vmatprep.subr.bf16.mxu1 %v14825_v1  ;;  %v2816_v40 = vld [vmem:[%s16945_s1 + $0x610] sm:$0xff]  ;;  %v14641_v4 = vcombine.high %v2688_v60, %v2692_v39  ;;  %v14640_v10 = vcombine.low %v2688_v60, %v2692_v39 }
 0x3d0   : > { %6109 = vmatpush2.bf16.msra.mxu0 %v14696_v5  ;;  %v2820_v1 = vld [vmem:[%s16945_s1 + $0x630] sm:$0xff] }
 0x3d1   : > { %6110 = vmatprep.subr.bf16.mxu0 %v14689_v8  ;;  %v14769_v0 = vcombine.high %v2816_v40, %v2820_v1  ;;  %v2936_v5 = vld [vmem:[%s16945_s1 + $0x9d0] sm:$0xff]  ;;  %v14768_v12 = vcombine.low %v2816_v40, %v2820_v1 }
 0x3d2   : > { %6150 = vmatpush2.bf16.msra.mxu1 %v14824_v43  ;;  %v2940_v43 = vld [vmem:[%s16945_s1 + $0x9f0] sm:$0xff] }
 0x3d3   : > { %6151 = vmatprep.subr.bf16.mxu1 %v14817_v9  ;;  %v3064_v8 = vld [vmem:[%s16945_s1 + $0xdd0] sm:$0xff]  ;;  %v14889_v13 = vcombine.high %v2936_v5, %v2940_v43  ;;  %v14888_v59 = vcombine.low %v2936_v5, %v2940_v43 }
 0x3d4   : > { %6111 = vmatpush2.bf16.msra.mxu0 %v14688_v17  ;;  %v3068_v9 = vld [vmem:[%s16945_s1 + $0xdf0] sm:$0xff] }
 0x3d5   : > { %6112 = vmatprep.subr.bf16.mxu0 %v14681_v18  ;;  %v15017_v14 = vcombine.high %v3064_v8, %v3068_v9  ;;  %v2928_v17 = vld [vmem:[%s16945_s1 + $0x990] sm:$0xff]  ;;  %v15016_v22 = vcombine.low %v3064_v8, %v3068_v9 }
 0x3d6   : > { %6152 = vmatpush2.bf16.msra.mxu1 %v14816_v36  ;;  %v2932_v36 = vld [vmem:[%s16945_s1 + $0x9b0] sm:$0xff] }
 0x3d7   : > { %6153 = vmatprep.subr.bf16.mxu1 %v14809_v16  ;;  %v3056_v18 = vld [vmem:[%s16945_s1 + $0xd90] sm:$0xff]  ;;  %v14881_v7 = vcombine.high %v2928_v17, %v2932_v36  ;;  %v14880_v30 = vcombine.low %v2928_v17, %v2932_v36 }
 0x3d8   : > { %6113 = vmatpush2.bf16.msra.mxu0 %v14680_v23  ;;  %v3060_v16 = vld [vmem:[%s16945_s1 + $0xdb0] sm:$0xff] }
 0x3d9   : > { %6114 = vmatprep.subr.bf16.mxu0 %v14673_v53  ;;  %v15009_v19 = vcombine.high %v3056_v18, %v3060_v16  ;;  %v2920_v23 = vld [vmem:[%s16945_s1 + $0x950] sm:$0xff] }
 0x3da   : > { %6154 = vmatpush2.bf16.msra.mxu1 %v14808_v24  ;;  %v2924_v24 = vld [vmem:[%s16945_s1 + $0x970] sm:$0xff] }
 0x3db   : > { %6155 = vmatprep.subr.bf16.mxu1 %v14801_v25  ;;  %v3048_v25 = vld [vmem:[%s16945_s1 + $0xd50] sm:$0xff] }
 0x3dc   : > { %6115 = vmatpush2.bf16.msra.mxu0 %v14672_v31  ;;  %v3052_v26 = vld [vmem:[%s16945_s1 + $0xd70] sm:$0xff] }
 0x3dd   : > { %6116 = vmatprep.subr.bf16.mxu0 %v14665_v33  ;;  %v14873_v33 = vcombine.high %v2920_v23, %v2924_v24  ;;  %v2912_v41 = vld [vmem:[%s16945_s1 + $0x910] sm:$0xff]  ;;  %v15000_v50 = vcombine.low %v3048_v25, %v3052_v26 }
 0x3de   : > { %6156 = vmatpush2.bf16.msra.mxu1 %v14800_v32  ;;  %v15008_v32 = vcombine.low %v3056_v18, %v3060_v16  ;;  %v2916_v42 = vld [vmem:[%s16945_s1 + $0x930] sm:$0xff] }
 0x3df   : > { %6157 = vmatprep.subr.bf16.mxu1 %v14793_v34  ;;  %v14865_v52 = vcombine.high %v2912_v41, %v2916_v42  ;;  %v3032_v60 = vld [vmem:[%s16945_s1 + $0xcd0] sm:$0xff]  ;;  %v14864_v40 = vcombine.low %v2912_v41, %v2916_v42 }
 0x3e0   : > { %6117 = vmatpush2.bf16.msra.mxu0 %v14664_v44  ;;  %v3036_v39 = vld [vmem:[%s16945_s1 + $0xcf0] sm:$0xff] }
 0x3e1   : > { %6118 = vmatprep.subr.bf16.mxu0 %v14657_v58  ;;  %v3044_v58 = vld [vmem:[%s16945_s1 + $0xd30] sm:$0xff]  ;;  %v14984_v9 = vcombine.low %v3032_v60, %v3036_v39 }
 0x3e2   : > { %6158 = vmatpush2.bf16.msra.mxu1 %v14792_v45  ;;  %v3040_v45 = vld [vmem:[%s16945_s1 + $0xd10] sm:$0xff] }
 0x3e3   : > { %6159 = vmatprep.subr.bf16.mxu1 %v14785_v46  ;;  %v14992_v1 = vcombine.low %v3040_v45, %v3044_v58  ;;  %v3024_v5 = vld [vmem:[%s16945_s1 + $0xc90] sm:$0xff] }
 0x3e4   : > { %6119 = vmatpush2.bf16.msra.mxu0 %v14656_v55  ;;  %v3028_v43 = vld [vmem:[%s16945_s1 + $0xcb0] sm:$0xff] }
 0x3e5   : > { %6120 = vmatprep.subr.bf16.mxu0 %v14649_v56  ;;  %v2904_v56 = vld [vmem:[%s16945_s1 + $0x8d0] sm:$0xff]  ;;  %v14976_v16 = vcombine.low %v3024_v5, %v3028_v43 }
 0x3e6   : > { %6160 = vmatpush2.bf16.msra.mxu1 %v14784_v28  ;;  %v14993_v28 = vcombine.high %v3040_v45, %v3044_v58  ;;  %v3016_v17 = vld [vmem:[%s16945_s1 + $0xc50] sm:$0xff] }
 0x3e7   : > { %6161 = vmatprep.subr.bf16.mxu1 %v14777_v57  ;;  %v2908_v57 = vld [vmem:[%s16945_s1 + $0x8f0] sm:$0xff] }
 0x3e8   : > { %6121 = vmatpush2.bf16.msra.mxu0 %v14648_v2  ;;  %v14857_v2 = vcombine.high %v2904_v56, %v2908_v57  ;;  %v14856_v8 = vcombine.low %v2904_v56, %v2908_v57  ;;  %v3020_v36 = vld [vmem:[%s16945_s1 + $0xc70] sm:$0xff] }
 0x3e9   : > { %6122 = vmatprep.subr.bf16.mxu0 %v14641_v4  ;;  %v2896_v4 = vld [vmem:[%s16945_s1 + $0x890] sm:$0xff] }
 0x3ea   : > { %6162 = vmatpush2.bf16.msra.mxu1 %v14776_v3  ;;  %v14985_v3 = vcombine.high %v3032_v60, %v3036_v39  ;;  %v2992_v41 = vld [vmem:[%s16945_s1 + $0xb90] sm:$0xff] }
 0x3eb   : > { %6163 = vmatprep.subr.bf16.mxu1 %v14769_v0  ;;  %v2900_v0 = vld [vmem:[%s16945_s1 + $0x8b0] sm:$0xff] }
 0x3ec   : > { %6123 = vmatpush2.bf16.msra.mxu0 %v14640_v10  ;;  %v14849_v10 = vcombine.high %v2896_v4, %v2900_v0  ;;  %v14848_v18 = vcombine.low %v2896_v4, %v2900_v0  ;;  %v2996_v42 = vld [vmem:[%s16945_s1 + $0xbb0] sm:$0xff] }
 0x3ed   : > { %6174 = vmatprep.subr.bf16.mxu0 %v14889_v13  ;;  %v2888_v13 = vld [vmem:[%s16945_s1 + $0x850] sm:$0xff]  ;;  %v14944_v56 = vcombine.low %v2992_v41, %v2996_v42 }
 0x3ee   : > { %6164 = vmatpush2.bf16.msra.mxu1 %v14768_v12  ;;  %v14977_v12 = vcombine.high %v3024_v5, %v3028_v43  ;;  %v3124_v45 = vld [vmem:[%s16945_s1 + $0xfb0] sm:$0xff] }
 0x3ef   : > { %6215 = vmatprep.subr.bf16.mxu1 %v15017_v14  ;;  %v5880_v53 = vpop.f32.mrf.mxu0  ;;  %6125 = vmatmul.mubr.bf16.vlgmr.msra.gmra.mxu0 %v17428_v37  ;;  %v2892_v14 = vld [vmem:[%s16945_s1 + $0x870] sm:$0xff] }
 0x3f0   : > { %v5881_v27 = vadd.f32 %v5880_v53, %v17675_v62  ;;  %6175 = vmatpush1.bf16.msra.mxu0 %v14888_v59  ;;  %v15001_v62 = vcombine.high %v3048_v25, %v3052_v26  ;;  %6206 = vmatprep.mubr.bf16.mxu0 %v17444_v49  ;;  %v14841_v59 = vcombine.high %v2888_v13, %v2892_v14 }
 0x3f1   : > { %v5921_v29 = vpop.f32.mrf.mxu1  ;;  %6166 = vmatmul.mubr.bf16.vlgmr.msra.gmra.mxu1 %v17436_v11  ;;  %v5882_v31 = vpop.f32.mrf.mxu0  ;;  %6176 = vmatprep.subr.bf16.mxu0 %v14881_v7  ;;  %v2880_v7 = vld [vmem:[%s16945_s1 + $0x810] sm:$0xff]  ;;  %v14840_v53 = vcombine.low %v2888_v13, %v2892_v14  ;;  %v14968_v25 = vcombine.low %v3016_v17, %v3020_v36 }
 0x3f2   : > { %6216 = vmatpush1.bf16.msra.mxu1 %v15016_v22  ;;  %v17748_v34 = vadd.f32 %v5921_v29, %v5881_v27  ;;  %v5883_v35 = vadd.f32 %v5882_v31, %v17683_v6  ;;  %6247 = vmatprep.mubr.bf16.mxu1 %v17451_v51  ;;  %v14872_v6 = vcombine.low %v2920_v23, %v2924_v24  ;;  %v3008_v23 = vld [vmem:[%s16945_s1 + $0xc10] sm:$0xff] }
 0x3f3   : > { %v5923_v38 = vpop.f32.mrf.mxu1  ;;  %6217 = vmatprep.subr.bf16.mxu1 %v15009_v19  ;;  %v5884_v44 = vpop.f32.mrf.mxu0  ;;  %v14969_v22 = vcombine.high %v3016_v17, %v3020_v36  ;;  %v2884_v19 = vld [vmem:[%s16945_s1 + $0x830] sm:$0xff] }
 0x3f4   : > { %v17757_v46 = vadd.f32 %v5923_v38, %v5883_v35  ;;  %6177 = vmatpush1.bf16.msra.mxu0 %v14880_v30  ;;  %v3012_v24 = vld [vmem:[%s16945_s1 + $0xc30] sm:$0xff]  ;;  %v14833_v26 = vcombine.high %v2880_v7, %v2884_v19 }
 0x3f5   : > { %v5925_v48 = vpop.f32.mrf.mxu1  ;;  %v5885_v15 = vpop.f32.mrf.mxu0  ;;  %6178 = vmatprep.subr.bf16.mxu0 %v14873_v33  ;;  %v14961_v27 = vcombine.high %v3008_v23, %v3012_v24  ;;  %v3000_v29 = vld [vmem:[%s16945_s1 + $0xbd0] sm:$0xff]  ;;  %v14832_v33 = vcombine.low %v2880_v7, %v2884_v19  ;;  %v14960_v35 = vcombine.low %v3008_v23, %v3012_v24 }
 0x3f6   : > { %6218 = vmatpush1.bf16.msra.mxu1 %v15008_v32  ;;  %v3004_v30 = vld [vmem:[%s16945_s1 + $0xbf0] sm:$0xff] }
 0x3f7   : > { %v5926_v55 = vpop.f32.mrf.mxu1  ;;  %6219 = vmatprep.subr.bf16.mxu1 %v15001_v62  ;;  %v3128_v31 = vld [vmem:[%s16945_s1 + $0xfd0] sm:$0xff]  ;;  %v14953_v38 = vcombine.high %v3000_v29, %v3004_v30  ;;  %v14952_v58 = vcombine.low %v3000_v29, %v3004_v30 }
 0x3f8   : > { %6179 = vmatpush1.bf16.msra.mxu0 %v14872_v6  ;;  %v3132_v32 = vld [vmem:[%s16945_s1 + $0xff0] sm:$0xff]  ;;  %v14945_v6 = vcombine.high %v2992_v41, %v2996_v42 }
 0x3f9   : > { %6180 = vmatprep.subr.bf16.mxu0 %v14865_v52  ;;  %v15081_v62 = vcombine.high %v3128_v31, %v3132_v32  ;;  %v3120_v44 = vld [vmem:[%s16945_s1 + $0xf90] sm:$0xff]  ;;  %v15080_v48 = vcombine.low %v3128_v31, %v3132_v32 }
 0x3fa   : > { %6220 = vmatpush1.bf16.msra.mxu1 %v15000_v50  ;;  %v15073_v15 = vcombine.high %v3120_v44, %v3124_v45  ;;  %v2984_v50 = vld [vmem:[%s16945_s1 + $0xb50] sm:$0xff]  ;;  %v15072_v57 = vcombine.low %v3120_v44, %v3124_v45 }
 0x3fb   : > { %6221 = vmatprep.subr.bf16.mxu1 %v14993_v28  ;;  %v2988_v52 = vld [vmem:[%s16945_s1 + $0xb70] sm:$0xff] }
 0x3fc   : > { %6181 = vmatpush1.bf16.msra.mxu0 %v14864_v40  ;;  %v3112_v55 = vld [vmem:[%s16945_s1 + $0xf50] sm:$0xff]  ;;  %v14937_v60 = vcombine.high %v2984_v50, %v2988_v52  ;;  %v14936_v4 = vcombine.low %v2984_v50, %v2988_v52  ;;  %v3146_v52 = vsub.s32 2, %v17652_v21 }
 0x3fd   : > { %6182 = vmatprep.subr.bf16.mxu0 %v14857_v2  ;;  %v3116_v28 = vld [vmem:[%s16945_s1 + $0xf70] sm:$0xff] }
 0x3fe   : > { %6222 = vmatpush1.bf16.msra.mxu1 %v14992_v1  ;;  %v15065_v39 = vcombine.high %v3112_v55, %v3116_v28  ;;  %v2976_v40 = vld [vmem:[%s16945_s1 + $0xb10] sm:$0xff]  ;;  %v15064_v0 = vcombine.low %v3112_v55, %v3116_v28 }
 0x3ff   : > { %6223 = vmatprep.subr.bf16.mxu1 %v14985_v3  ;;  %v2980_v1 = vld [vmem:[%s16945_s1 + $0xb30] sm:$0xff] }
 0x400   : > { %6183 = vmatpush1.bf16.msra.mxu0 %v14856_v8  ;;  %v3104_v2 = vld [vmem:[%s16945_s1 + $0xf10] sm:$0xff]  ;;  %v14929_v5 = vcombine.high %v2976_v40, %v2980_v1  ;;  %v14928_v13 = vcombine.low %v2976_v40, %v2980_v1  ;;  %v2801_v40 = vld [vmem:[%s16945_s1 + $0x598] sm:$0xff] }
 0x401   : > { %6184 = vmatprep.subr.bf16.mxu0 %v14849_v10  ;;  %v3108_v3 = vld [vmem:[%s16945_s1 + $0xf30] sm:$0xff]  ;;  %v2805_v1 = vld [vmem:[%s16945_s1 + $0x5b8] sm:$0xff] }
 0x402   : > { %6224 = vmatpush1.bf16.msra.mxu1 %v14984_v9  ;;  %v15057_v43 = vcombine.high %v3104_v2, %v3108_v3  ;;  %v2968_v8 = vld [vmem:[%s16945_s1 + $0xad0] sm:$0xff]  ;;  %v15056_v14 = vcombine.low %v3104_v2, %v3108_v3  ;;  %v3147_v2 = vrot.slane %v17660_v54, %v3146_v52 }
 0x403   : > { %6225 = vmatprep.subr.bf16.mxu1 %v14977_v12  ;;  %v2972_v9 = vld [vmem:[%s16945_s1 + $0xaf0] sm:$0xff] }
 0x404   : > { %6185 = vmatpush1.bf16.msra.mxu0 %v14848_v18  ;;  %v3096_v10 = vld [vmem:[%s16945_s1 + $0xed0] sm:$0xff]  ;;  %v14921_v17 = vcombine.high %v2968_v8, %v2972_v9  ;;  %v14920_v7 = vcombine.low %v2968_v8, %v2972_v9  ;;  %v2665_v8 = vld [vmem:[%s16945_s1 + $0x158] sm:$0xff] }
 0x405   : > { %6186 = vmatprep.subr.bf16.mxu0 %v14841_v59  ;;  %v3100_v12 = vld [vmem:[%s16945_s1 + $0xef0] sm:$0xff]  ;;  %v2669_v9 = vld [vmem:[%s16945_s1 + $0x178] sm:$0xff] }
 0x406   : > { %6226 = vmatpush1.bf16.msra.mxu1 %v14976_v16  ;;  %v15049_v36 = vcombine.high %v3096_v10, %v3100_v12  ;;  %v2960_v18 = vld [vmem:[%s16945_s1 + $0xa90] sm:$0xff]  ;;  %v15048_v19 = vcombine.low %v3096_v10, %v3100_v12  ;;  %v2793_v12 = vld [vmem:[%s16945_s1 + $0x558] sm:$0xff] }
 0x407   : > { %6227 = vmatprep.subr.bf16.mxu1 %v14969_v22  ;;  %v2964_v16 = vld [vmem:[%s16945_s1 + $0xab0] sm:$0xff] }
 0x408   : > { %6187 = vmatpush1.bf16.msra.mxu0 %v14840_v53  ;;  %v3088_v59 = vld [vmem:[%s16945_s1 + $0xe90] sm:$0xff]  ;;  %v14913_v23 = vcombine.high %v2960_v18, %v2964_v16  ;;  %v14912_v29 = vcombine.low %v2960_v18, %v2964_v16  ;;  %v14754_v18 = vcombine.low %v2801_v40, %v2805_v1  ;;  %v14619_v16 = vcombine.high %v2665_v8, %v2669_v9 }
 0x409   : > { %6188 = vmatprep.subr.bf16.mxu0 %v14833_v26  ;;  %v3092_v22 = vld [vmem:[%s16945_s1 + $0xeb0] sm:$0xff] }
 0x40a   : > { %6228 = vmatpush1.bf16.msra.mxu1 %v14968_v25  ;;  %v15041_v24 = vcombine.high %v3088_v59, %v3092_v22  ;;  %v2952_v53 = vld [vmem:[%s16945_s1 + $0xa50] sm:$0xff]  ;;  %v15040_v30 = vcombine.low %v3088_v59, %v3092_v22 }
 0x40b   : > { %6229 = vmatprep.subr.bf16.mxu1 %v14961_v27  ;;  %v2956_v25 = vld [vmem:[%s16945_s1 + $0xa70] sm:$0xff] }
 0x40c   : > { %6189 = vmatpush1.bf16.msra.mxu0 %v14832_v33  ;;  %v3080_v26 = vld [vmem:[%s16945_s1 + $0xe50] sm:$0xff]  ;;  %v14905_v31 = vcombine.high %v2952_v53, %v2956_v25  ;;  %v14904_v41 = vcombine.low %v2952_v53, %v2956_v25  ;;  %v2785_v25 = vld [vmem:[%s16945_s1 + $0x518] sm:$0xff] }
 0x40d   : > { %6190 = vmatprep.subr.bf16.mxu0 %v14953_v38  ;;  %v3084_v27 = vld [vmem:[%s16945_s1 + $0xe70] sm:$0xff] }
 0x40e   : > { %6230 = vmatpush1.bf16.msra.mxu1 %v14960_v35  ;;  %v15033_v32 = vcombine.high %v3080_v26, %v3084_v27  ;;  %v2944_v33 = vld [vmem:[%s16945_s1 + $0xa10] sm:$0xff]  ;;  %v15032_v42 = vcombine.low %v3080_v26, %v3084_v27  ;;  %v2789_v26 = vld [vmem:[%s16945_s1 + $0x538] sm:$0xff] }
 0x40f   : > { %6231 = vmatprep.subr.bf16.mxu1 %v15081_v62  ;;  %v2948_v35 = vld [vmem:[%s16945_s1 + $0xa30] sm:$0xff] }
 0x410   : > { %6191 = vmatpush2.bf16.msra.mxu0 %v14952_v58  ;;  %v3072_v38 = vld [vmem:[%s16945_s1 + $0xe10] sm:$0xff]  ;;  %v14897_v44 = vcombine.high %v2944_v33, %v2948_v35  ;;  %v2681_v58 = vld [vmem:[%s16945_s1 + $0x1d8] sm:$0xff]  ;;  %v14896_v50 = vcombine.low %v2944_v33, %v2948_v35  ;;  %v14739_v35 = vcombine.high %v2785_v25, %v2789_v26 }
 0x411   : > { %6192 = vmatprep.subr.bf16.mxu0 %v14945_v6  ;;  %v3076_v62 = vld [vmem:[%s16945_s1 + $0xe30] sm:$0xff]  ;;  %v2809_v6 = vld [vmem:[%s16945_s1 + $0x5d8] sm:$0xff] }
 0x412   : > { %6232 = vmatpush2.bf16.msra.mxu1 %v15080_v48  ;;  %v15025_v45 = vcombine.high %v3072_v38, %v3076_v62  ;;  %v2685_v48 = vld [vmem:[%s16945_s1 + $0x1f8] sm:$0xff]  ;;  %v15024_v55 = vcombine.low %v3072_v38, %v3076_v62 }
 0x413   : > { %6233 = vmatprep.subr.bf16.mxu1 %v15073_v15  ;;  %v2813_v15 = vld [vmem:[%s16945_s1 + $0x5f8] sm:$0xff]  ;;  %v14635_v28 = vcombine.high %v2681_v58, %v2685_v48  ;;  %v14634_v3 = vcombine.low %v2681_v58, %v2685_v48 }
 0x414   : > { %6193 = vmatpush2.bf16.msra.mxu0 %v14944_v56  ;;  %v14763_v56 = vcombine.high %v2809_v6, %v2813_v15  ;;  %v2649_v38 = vld [vmem:[%s16945_s1 + $0xd8] sm:$0xff] }
 0x415   : > { %6194 = vmatprep.subr.bf16.mxu0 %v14937_v60  ;;  %v2673_v60 = vld [vmem:[%s16945_s1 + $0x198] sm:$0xff] }
 0x416   : > { %6234 = vmatpush2.bf16.msra.mxu1 %v15072_v57  ;;  %v3150_v57 = vsub.s32 3, %v17652_v21  ;;  %v2777_v62 = vld [vmem:[%s16945_s1 + $0x4d8] sm:$0xff] }
 0x417   : > { %6235 = vmatprep.subr.bf16.mxu1 %v15065_v39  ;;  %v2677_v39 = vld [vmem:[%s16945_s1 + $0x1b8] sm:$0xff] }
 0x418   : > { %6195 = vmatpush2.bf16.msra.mxu0 %v14936_v4  ;;  %v14762_v4 = vcombine.low %v2809_v6, %v2813_v15  ;;  %v2641_v48 = vld [vmem:[%s16945_s1 + $0x98] sm:$0xff] }
 0x419   : > { %6196 = vmatprep.subr.bf16.mxu0 %v14929_v5  ;;  %v3151_v5 = vrot.slane %v17660_v54, %v3150_v57  ;;  %v2645_v6 = vld [vmem:[%s16945_s1 + $0xb8] sm:$0xff] }
 0x41a   : > { %6236 = vmatpush2.bf16.msra.mxu1 %v15064_v0  ;;  %v14627_v0 = vcombine.high %v2673_v60, %v2677_v39  ;;  %v2769_v15 = vld [vmem:[%s16945_s1 + $0x498] sm:$0xff] }
 0x41b   : > { %6237 = vmatprep.subr.bf16.mxu1 %v15057_v43  ;;  %v14755_v43 = vcombine.high %v2801_v40, %v2805_v1  ;;  %v2633_v57 = vld [vmem:[%s16945_s1 + $0x58] sm:$0xff]  ;;  %v14594_v1 = vcombine.low %v2641_v48, %v2645_v6 }
 0x41c   : > { %6197 = vmatpush2.bf16.msra.mxu0 %v14928_v13  ;;  %v2797_v13 = vld [vmem:[%s16945_s1 + $0x578] sm:$0xff] }
 0x41d   : > { %6198 = vmatprep.subr.bf16.mxu0 %v14921_v17  ;;  %v2765_v40 = vld [vmem:[%s16945_s1 + $0x478] sm:$0xff] }
 0x41e   : > { %6238 = vmatpush2.bf16.msra.mxu1 %v15056_v14 }
 0x41f   : > { %6239 = vmatprep.subr.bf16.mxu1 %v15049_v36  ;;  %v14626_v36 = vcombine.low %v2673_v60, %v2677_v39  ;;  %v2637_v60 = vld [vmem:[%s16945_s1 + $0x78] sm:$0xff] }
 0x420   : > { %6199 = vmatpush2.bf16.msra.mxu0 %v14920_v7  ;;  %v2761_v39 = vld [vmem:[%s16945_s1 + $0x458] sm:$0xff] }
 0x421   : > { %6200 = vmatprep.subr.bf16.mxu0 %v14913_v23  ;;  %v2657_v23 = vld [vmem:[%s16945_s1 + $0x118] sm:$0xff] }
 0x422   : > { %6240 = vmatpush2.bf16.msra.mxu1 %v15048_v19  ;;  %v14747_v19 = vcombine.high %v2793_v12, %v2797_v13 }
 0x423   : > { %6241 = vmatprep.subr.bf16.mxu1 %v15041_v24  ;;  %v2661_v24 = vld [vmem:[%s16945_s1 + $0x138] sm:$0xff] }
 0x424   : > { %6201 = vmatpush2.bf16.msra.mxu0 %v14912_v29  ;;  %v14611_v33 = vcombine.high %v2657_v23, %v2661_v24 }
 0x425   : > { %6202 = vmatprep.subr.bf16.mxu0 %v14905_v31 }
 0x426   : > { %6242 = vmatpush2.bf16.msra.mxu1 %v15040_v30  ;;  %v14618_v30 = vcombine.low %v2665_v8, %v2669_v9  ;;  %v2757_v8 = vld [vmem:[%s16945_s1 + $0x438] sm:$0xff]  ;;  %v14586_v9 = vcombine.low %v2633_v57, %v2637_v60 }
 0x427   : > { %6243 = vmatprep.subr.bf16.mxu1 %v15033_v32  ;;  %v14746_v32 = vcombine.low %v2793_v12, %v2797_v13 }
 0x428   : > { %6203 = vmatpush2.bf16.msra.mxu0 %v14904_v41  ;;  %v2781_v41 = vld [vmem:[%s16945_s1 + $0x4f8] sm:$0xff] }
 0x429   : > { %6204 = vmatprep.subr.bf16.mxu0 %v14897_v44  ;;  %v14738_v44 = vcombine.low %v2785_v25, %v2789_v26  ;;  %v14731_v58 = vcombine.high %v2777_v62, %v2781_v41 }
 0x42a   : > { %6244 = vmatpush2.bf16.msra.mxu1 %v15032_v42  ;;  %v14610_v42 = vcombine.low %v2657_v23, %v2661_v24  ;;  %v2741_v23 = vld [vmem:[%s16945_s1 + $0x3b8] sm:$0xff] }
 0x42b   : > { %6245 = vmatprep.subr.bf16.mxu1 %v15025_v45  ;;  %v2865_v24 = vld [vmem:[%s16945_s1 + $0x798] sm:$0xff] }
 0x42c   : > { %6205 = vmatpush2.bf16.msra.mxu0 %v14896_v50  ;;  %v2773_v50 = vld [vmem:[%s16945_s1 + $0x4b8] sm:$0xff] }
 0x42d   : > { %6256 = vmatprep.subr.bf16.mxu0 %v14635_v28  ;;  %v14595_v28 = vcombine.high %v2641_v48, %v2645_v6 }
 0x42e   : > { %6246 = vmatpush2.bf16.msra.mxu1 %v15024_v55  ;;  %v14730_v55 = vcombine.low %v2777_v62, %v2781_v41  ;;  %v2721_v41 = vld [vmem:[%s16945_s1 + $0x318] sm:$0xff] }
 0x42f   : > { %6297 = vmatprep.subr.bf16.mxu1 %v14763_v56  ;;  %v5962_v10 = vpop.f32.mrf.mxu0  ;;  %6207 = vmatmul.mubr.bf16.vlgmr.msra.gmra.mxu0 %v17516_v61  ;;  %v14723_v56 = vcombine.high %v2769_v15, %v2773_v50 }
 0x430   : > { %v5963_v14 = vadd.f32 %v5962_v10, %v3147_v2  ;;  %6257 = vmatpush1.bf16.msra.mxu0 %v14634_v3  ;;  %6288 = vmatprep.mubr.bf16.mxu0 %v17378_v20  ;;  %v14722_v2 = vcombine.low %v2769_v15, %v2773_v50  ;;  %v14587_v3 = vcombine.high %v2633_v57, %v2637_v60  ;;  %v2713_v50 = vld [vmem:[%s16945_s1 + $0x2d8] sm:$0xff] }
 0x431   : > { %v6003_v17 = vpop.f32.mrf.mxu1  ;;  %6248 = vmatmul.mubr.bf16.vlgmr.msra.gmra.mxu1 %v17522_v63  ;;  %v5964_v54 = vpop.f32.mrf.mxu0  ;;  %6258 = vmatprep.subr.bf16.mxu0 %v14627_v0  ;;  %v2625_v0 = vld [vmem:[%s16945_s1 + $0x18] sm:$0xff]  ;;  %v14714_v10 = vcombine.low %v2761_v39, %v2765_v40 }
 0x432   : > { %6298 = vmatpush1.bf16.msra.mxu1 %v14762_v4  ;;  %v17825_v59 = vadd.f32 %v6003_v17, %v5963_v14  ;;  %v5965_v22 = vadd.f32 %v5964_v54, %v3151_v5  ;;  %6329 = vmatprep.mubr.bf16.mxu1 %v17382_v47  ;;  %v2653_v47 = vld [vmem:[%s16945_s1 + $0xf8] sm:$0xff]  ;;  %v14715_v4 = vcombine.high %v2761_v39, %v2765_v40 }
 0x433   : > { %v6005_v7 = vpop.f32.mrf.mxu1  ;;  %6299 = vmatprep.subr.bf16.mxu1 %v14755_v43  ;;  %v5966_v53 = vpop.f32.mrf.mxu0  ;;  %v14603_v45 = vcombine.high %v2649_v38, %v2653_v47  ;;  %v14602_v52 = vcombine.low %v2649_v38, %v2653_v47  ;;  %v2629_v5 = vld [vmem:[%s16945_s1 + $0x38] sm:$0xff] }
 0x434   : > { %v17833_v27 = vadd.f32 %v6005_v7, %v5965_v22  ;;  %6259 = vmatpush1.bf16.msra.mxu0 %v14626_v36  ;;  %v2753_v43 = vld [vmem:[%s16945_s1 + $0x418] sm:$0xff]  ;;  %v14579_v12 = vcombine.high %v2625_v0, %v2629_v5 }
 0x435   : > { %v6007_v29 = vpop.f32.mrf.mxu1  ;;  %v5967_v31 = vpop.f32.mrf.mxu0  ;;  %6260 = vmatprep.subr.bf16.mxu0 %v14619_v16  ;;  %v14707_v13 = vcombine.high %v2753_v43, %v2757_v8  ;;  %v2745_v14 = vld [vmem:[%s16945_s1 + $0x3d8] sm:$0xff]  ;;  %v14706_v16 = vcombine.low %v2753_v43, %v2757_v8 }
 0x436   : > { %6300 = vmatpush1.bf16.msra.mxu1 %v14754_v18  ;;  %v2749_v17 = vld [vmem:[%s16945_s1 + $0x3f8] sm:$0xff]  ;;  %v14578_v18 = vcombine.low %v2625_v0, %v2629_v5 }
 0x437   : > { %v6008_v20 = vpop.f32.mrf.mxu1  ;;  %6301 = vmatprep.subr.bf16.mxu1 %v14747_v19  ;;  %v2873_v36 = vld [vmem:[%s16945_s1 + $0x7d8] sm:$0xff]  ;;  %v14699_v22 = vcombine.high %v2745_v14, %v2749_v17  ;;  %v14698_v25 = vcombine.low %v2745_v14, %v2749_v17 }
 0x438   : > { %6261 = vmatpush1.bf16.msra.mxu0 %v14618_v30  ;;  %v2877_v54 = vld [vmem:[%s16945_s1 + $0x7f8] sm:$0xff] }
 0x439   : > { %6262 = vmatprep.subr.bf16.mxu0 %v14611_v33  ;;  %v14827_v7 = vcombine.high %v2873_v36, %v2877_v54  ;;  %v2737_v19 = vld [vmem:[%s16945_s1 + $0x398] sm:$0xff]  ;;  %v14826_v26 = vcombine.low %v2873_v36, %v2877_v54 }
 0x43a   : > { %6302 = vmatpush1.bf16.msra.mxu1 %v14746_v32  ;;  %v2869_v53 = vld [vmem:[%s16945_s1 + $0x7b8] sm:$0xff]  ;;  %v14691_v29 = vcombine.high %v2737_v19, %v2741_v23 }
 0x43b   : > { %6303 = vmatprep.subr.bf16.mxu1 %v14739_v35  ;;  %v14819_v30 = vcombine.high %v2865_v24, %v2869_v53  ;;  %v2729_v31 = vld [vmem:[%s16945_s1 + $0x358] sm:$0xff]  ;;  %v14690_v35 = vcombine.low %v2737_v19, %v2741_v23  ;;  %v14818_v38 = vcombine.low %v2865_v24, %v2869_v53 }
 0x43c   : > { %6263 = vmatpush1.bf16.msra.mxu0 %v14610_v42  ;;  %v2733_v32 = vld [vmem:[%s16945_s1 + $0x378] sm:$0xff] }
 0x43d   : > { %6264 = vmatprep.subr.bf16.mxu0 %v14603_v45  ;;  %v2857_v33 = vld [vmem:[%s16945_s1 + $0x758] sm:$0xff]  ;;  %v14683_v47 = vcombine.high %v2729_v31, %v2733_v32 }
 0x43e   : > { %6304 = vmatpush1.bf16.msra.mxu1 %v14738_v44  ;;  %v2861_v20 = vld [vmem:[%s16945_s1 + $0x778] sm:$0xff] }
 0x43f   : > { %6305 = vmatprep.subr.bf16.mxu1 %v14731_v58  ;;  %v14811_v62 = vcombine.high %v2857_v33, %v2861_v20  ;;  %v2725_v42 = vld [vmem:[%s16945_s1 + $0x338] sm:$0xff]  ;;  %v14682_v58 = vcombine.low %v2729_v31, %v2733_v32  ;;  %v14810_v48 = vcombine.low %v2857_v33, %v2861_v20 }
 0x440   : > { %6265 = vmatpush1.bf16.msra.mxu0 %v14602_v52  ;;  %v2849_v44 = vld [vmem:[%s16945_s1 + $0x718] sm:$0xff]  ;;  %v14675_v6 = vcombine.high %v2721_v41, %v2725_v42 }
 0x441   : > { %6266 = vmatprep.subr.bf16.mxu0 %v14595_v28  ;;  %v2853_v45 = vld [vmem:[%s16945_s1 + $0x738] sm:$0xff] }
 0x442   : > { %6306 = vmatpush1.bf16.msra.mxu1 %v14730_v55  ;;  %v14803_v15 = vcombine.high %v2849_v44, %v2853_v45  ;;  %v2717_v52 = vld [vmem:[%s16945_s1 + $0x2f8] sm:$0xff]  ;;  %v14802_v57 = vcombine.low %v2849_v44, %v2853_v45 }
 0x443   : > { %6307 = vmatprep.subr.bf16.mxu1 %v14723_v56  ;;  %v2841_v55 = vld [vmem:[%s16945_s1 + $0x6d8] sm:$0xff]  ;;  %v14674_v56 = vcombine.low %v2721_v41, %v2725_v42  ;;  %v14667_v60 = vcombine.high %v2713_v50, %v2717_v52 }
 0x444   : > { %6267 = vmatpush1.bf16.msra.mxu0 %v14594_v1  ;;  %v2845_v28 = vld [vmem:[%s16945_s1 + $0x6f8] sm:$0xff] }
 0x445   : > { %6268 = vmatprep.subr.bf16.mxu0 %v14587_v3  ;;  %v14795_v39 = vcombine.high %v2841_v55, %v2845_v28  ;;  %v2705_v40 = vld [vmem:[%s16945_s1 + $0x298] sm:$0xff]  ;;  %v14794_v0 = vcombine.low %v2841_v55, %v2845_v28 }
 0x446   : > { %6308 = vmatpush1.bf16.msra.mxu1 %v14722_v2  ;;  %v2709_v1 = vld [vmem:[%s16945_s1 + $0x2b8] sm:$0xff] }
 0x447   : > { %6309 = vmatprep.subr.bf16.mxu1 %v14715_v4  ;;  %v2833_v2 = vld [vmem:[%s16945_s1 + $0x698] sm:$0xff]  ;;  %v14666_v4 = vcombine.low %v2713_v50, %v2717_v52  ;;  %v14659_v5 = vcombine.high %v2705_v40, %v2709_v1 }
 0x448   : > { %6269 = vmatpush1.bf16.msra.mxu0 %v14586_v9  ;;  %v2837_v3 = vld [vmem:[%s16945_s1 + $0x6b8] sm:$0xff] }
 0x449   : > { %6270 = vmatprep.subr.bf16.mxu0 %v14579_v12  ;;  %v14787_v43 = vcombine.high %v2833_v2, %v2837_v3  ;;  %v2697_v8 = vld [vmem:[%s16945_s1 + $0x258] sm:$0xff]  ;;  %v14786_v14 = vcombine.low %v2833_v2, %v2837_v3 }
 0x44a   : > { %6310 = vmatpush1.bf16.msra.mxu1 %v14714_v10  ;;  %v2701_v9 = vld [vmem:[%s16945_s1 + $0x278] sm:$0xff] }
 0x44b   : > { %6311 = vmatprep.subr.bf16.mxu1 %v14707_v13  ;;  %v2825_v10 = vld [vmem:[%s16945_s1 + $0x658] sm:$0xff]  ;;  %v14658_v13 = vcombine.low %v2705_v40, %v2709_v1  ;;  %v14651_v17 = vcombine.high %v2697_v8, %v2701_v9 }
 0x44c   : > { %6271 = vmatpush1.bf16.msra.mxu0 %v14578_v18  ;;  %v2829_v12 = vld [vmem:[%s16945_s1 + $0x678] sm:$0xff] }
 0x44d   : > { %6272 = vmatprep.subr.bf16.mxu0 %v14699_v22  ;;  %v14779_v36 = vcombine.high %v2825_v10, %v2829_v12  ;;  %v2689_v54 = vld [vmem:[%s16945_s1 + $0x218] sm:$0xff]  ;;  %v14778_v19 = vcombine.low %v2825_v10, %v2829_v12 }
 0x44e   : > { %6312 = vmatpush1.bf16.msra.mxu1 %v14706_v16  ;;  %v2693_v18 = vld [vmem:[%s16945_s1 + $0x238] sm:$0xff] }
 0x44f   : > { %6313 = vmatprep.subr.bf16.mxu1 %v14827_v7  ;;  %v2817_v16 = vld [vmem:[%s16945_s1 + $0x618] sm:$0xff]  ;;  %v14650_v7 = vcombine.low %v2697_v8, %v2701_v9  ;;  %v14643_v23 = vcombine.high %v2689_v54, %v2693_v18 }
 0x450   : > { %6273 = vmatpush2.bf16.msra.mxu0 %v14698_v25  ;;  %v2821_v22 = vld [vmem:[%s16945_s1 + $0x638] sm:$0xff] }
 0x451   : > { %6274 = vmatprep.subr.bf16.mxu0 %v14691_v29  ;;  %v14771_v24 = vcombine.high %v2817_v16, %v2821_v22  ;;  %v2937_v53 = vld [vmem:[%s16945_s1 + $0x9d8] sm:$0xff]  ;;  %v14770_v31 = vcombine.low %v2817_v16, %v2821_v22 }
 0x452   : > { %6314 = vmatpush2.bf16.msra.mxu1 %v14826_v26  ;;  %v2941_v25 = vld [vmem:[%s16945_s1 + $0x9f8] sm:$0xff] }
 0x453   : > { %6315 = vmatprep.subr.bf16.mxu1 %v14819_v30  ;;  %v3065_v26 = vld [vmem:[%s16945_s1 + $0xdd8] sm:$0xff]  ;;  %v14642_v30 = vcombine.low %v2689_v54, %v2693_v18  ;;  %v14891_v32 = vcombine.high %v2937_v53, %v2941_v25 }
 0x454   : > { %6275 = vmatpush2.bf16.msra.mxu0 %v14690_v35  ;;  %v3069_v29 = vld [vmem:[%s16945_s1 + $0xdf8] sm:$0xff] }
 0x455   : > { %6276 = vmatprep.subr.bf16.mxu0 %v14683_v47  ;;  %v15019_v33 = vcombine.high %v3065_v26, %v3069_v29  ;;  %v2929_v20 = vld [vmem:[%s16945_s1 + $0x998] sm:$0xff]  ;;  %v15018_v41 = vcombine.low %v3065_v26, %v3069_v29 }
 0x456   : > { %6316 = vmatpush2.bf16.msra.mxu1 %v14818_v38  ;;  %v2933_v35 = vld [vmem:[%s16945_s1 + $0x9b8] sm:$0xff] }
 0x457   : > { %6317 = vmatprep.subr.bf16.mxu1 %v14811_v62  ;;  %v3057_v38 = vld [vmem:[%s16945_s1 + $0xd98] sm:$0xff]  ;;  %v14890_v62 = vcombine.low %v2937_v53, %v2941_v25  ;;  %v14883_v42 = vcombine.high %v2929_v20, %v2933_v35  ;;  %v14882_v55 = vcombine.low %v2929_v20, %v2933_v35 }
 0x458   : > { %6277 = vmatpush2.bf16.msra.mxu0 %v14682_v58  ;;  %v3061_v47 = vld [vmem:[%s16945_s1 + $0xdb8] sm:$0xff] }
 0x459   : > { %6278 = vmatprep.subr.bf16.mxu0 %v14675_v6  ;;  %v15011_v44 = vcombine.high %v3057_v38, %v3061_v47  ;;  %v2921_v45 = vld [vmem:[%s16945_s1 + $0x958] sm:$0xff] }
 0x45a   : > { %6318 = vmatpush2.bf16.msra.mxu1 %v14810_v48  ;;  %v2925_v58 = vld [vmem:[%s16945_s1 + $0x978] sm:$0xff] }
 0x45b   : > { %6319 = vmatprep.subr.bf16.mxu1 %v14803_v15  ;;  %v3049_v6 = vld [vmem:[%s16945_s1 + $0xd58] sm:$0xff] }
 0x45c   : > { %6279 = vmatpush2.bf16.msra.mxu0 %v14674_v56  ;;  %v3053_v15 = vld [vmem:[%s16945_s1 + $0xd78] sm:$0xff]  ;;  %v15010_v56 = vcombine.low %v3057_v38, %v3061_v47 }
 0x45d   : > { %6280 = vmatprep.subr.bf16.mxu0 %v14667_v60  ;;  %v2917_v40 = vld [vmem:[%s16945_s1 + $0x938] sm:$0xff] }
 0x45e   : > { %6320 = vmatpush2.bf16.msra.mxu1 %v14802_v57  ;;  %v14875_v57 = vcombine.high %v2921_v45, %v2925_v58  ;;  %v3041_v1 = vld [vmem:[%s16945_s1 + $0xd18] sm:$0xff] }
 0x45f   : > { %6321 = vmatprep.subr.bf16.mxu1 %v14795_v39  ;;  %v15003_v39 = vcombine.high %v3049_v6, %v3053_v15  ;;  %v3045_v2 = vld [vmem:[%s16945_s1 + $0xd38] sm:$0xff] }
 0x460   : > { %6281 = vmatpush2.bf16.msra.mxu0 %v14666_v4  ;;  %v14874_v4 = vcombine.low %v2921_v45, %v2925_v58  ;;  %v2905_v9 = vld [vmem:[%s16945_s1 + $0x8d8] sm:$0xff] }
 0x461   : > { %6282 = vmatprep.subr.bf16.mxu0 %v14659_v5  ;;  %v15002_v5 = vcombine.low %v3049_v6, %v3053_v15  ;;  %v2909_v10 = vld [vmem:[%s16945_s1 + $0x8f8] sm:$0xff] }
 0x462   : > { %6322 = vmatpush2.bf16.msra.mxu1 %v14794_v0  ;;  %v3033_v12 = vld [vmem:[%s16945_s1 + $0xcd8] sm:$0xff] }
 0x463   : > { %6323 = vmatprep.subr.bf16.mxu1 %v14787_v43  ;;  %v2897_v54 = vld [vmem:[%s16945_s1 + $0x898] sm:$0xff] }
 0x464   : > { %6283 = vmatpush2.bf16.msra.mxu0 %v14658_v13  ;;  %v3037_v13 = vld [vmem:[%s16945_s1 + $0xcf8] sm:$0xff] }
 0x465   : > { %6284 = vmatprep.subr.bf16.mxu0 %v14651_v17  ;;  %v14859_v17 = vcombine.high %v2905_v9, %v2909_v10  ;;  %v2901_v18 = vld [vmem:[%s16945_s1 + $0x8b8] sm:$0xff] }
 0x466   : > { %6324 = vmatpush2.bf16.msra.mxu1 %v14786_v14  ;;  %v14994_v14 = vcombine.low %v3041_v1, %v3045_v2  ;;  %v3025_v16 = vld [vmem:[%s16945_s1 + $0xc98] sm:$0xff] }
 0x467   : > { %6325 = vmatprep.subr.bf16.mxu1 %v14779_v36  ;;  %v14987_v36 = vcombine.high %v3033_v12, %v3037_v13  ;;  %v3029_v22 = vld [vmem:[%s16945_s1 + $0xcb8] sm:$0xff] }
 0x468   : > { %6285 = vmatpush2.bf16.msra.mxu0 %v14650_v7  ;;  %v14858_v7 = vcombine.low %v2905_v9, %v2909_v10  ;;  %v2889_v53 = vld [vmem:[%s16945_s1 + $0x858] sm:$0xff] }
 0x469   : > { %6286 = vmatprep.subr.bf16.mxu0 %v14643_v23  ;;  %v14851_v23 = vcombine.high %v2897_v54, %v2901_v18  ;;  %v2893_v25 = vld [vmem:[%s16945_s1 + $0x878] sm:$0xff] }
 0x46a   : > { %6326 = vmatpush2.bf16.msra.mxu1 %v14778_v19  ;;  %v14986_v19 = vcombine.low %v3033_v12, %v3037_v13  ;;  %v3017_v26 = vld [vmem:[%s16945_s1 + $0xc58] sm:$0xff] }
 0x46b   : > { %6327 = vmatprep.subr.bf16.mxu1 %v14771_v24  ;;  %v14979_v24 = vcombine.high %v3025_v16, %v3029_v22  ;;  %v3021_v29 = vld [vmem:[%s16945_s1 + $0xc78] sm:$0xff] }
 0x46c   : > { %6287 = vmatpush2.bf16.msra.mxu0 %v14642_v30  ;;  %v14850_v30 = vcombine.low %v2897_v54, %v2901_v18  ;;  %v2881_v20 = vld [vmem:[%s16945_s1 + $0x818] sm:$0xff] }
 0x46d   : > { %6338 = vmatprep.subr.bf16.mxu0 %v14891_v32  ;;  %v14843_v32 = vcombine.high %v2889_v53, %v2893_v25  ;;  %v2885_v35 = vld [vmem:[%s16945_s1 + $0x838] sm:$0xff] }
 0x46e   : > { %6328 = vmatpush2.bf16.msra.mxu1 %v14770_v31  ;;  %v14978_v31 = vcombine.low %v3025_v16, %v3029_v22  ;;  %v3009_v38 = vld [vmem:[%s16945_s1 + $0xc18] sm:$0xff]  ;;  %v14834_v15 = vcombine.low %v2881_v20, %v2885_v35 }
 0x46f   : > { %6379 = vmatprep.subr.bf16.mxu1 %v15019_v33  ;;  %v6044_v48 = vpop.f32.mrf.mxu0  ;;  %6289 = vmatmul.mubr.bf16.vlgmr.msra.gmra.mxu0 %v17428_v37  ;;  %v14971_v33 = vcombine.high %v3017_v26, %v3021_v29  ;;  %v3013_v47 = vld [vmem:[%s16945_s1 + $0xc38] sm:$0xff] }
 0x470   : > { %v6045_v50 = vadd.f32 %v6044_v48, %v17825_v59  ;;  %6339 = vmatpush1.bf16.msra.mxu0 %v14890_v62  ;;  %v2913_v59 = vld [vmem:[%s16945_s1 + $0x918] sm:$0xff]  ;;  %6370 = vmatprep.mubr.bf16.mxu0 %v17444_v49  ;;  %v14995_v49 = vcombine.high %v3041_v1, %v3045_v2  ;;  %v14842_v62 = vcombine.low %v2889_v53, %v2893_v25 }
 0x471   : > { %v6085_v52 = vpop.f32.mrf.mxu1  ;;  %6330 = vmatmul.mubr.bf16.vlgmr.msra.gmra.mxu1 %v17436_v11  ;;  %v17898_v28 = vpop.f32.mrf.mxu0  ;;  %6340 = vmatprep.subr.bf16.mxu0 %v14883_v42  ;;  %v14867_v43 = vcombine.high %v2913_v59, %v2917_v40  ;;  %v14835_v42 = vcombine.high %v2881_v20, %v2885_v35  ;;  %v3001_v45 = vld [vmem:[%s16945_s1 + $0xbd8] sm:$0xff] }
 0x472   : > { %6380 = vmatpush1.bf16.msra.mxu1 %v15018_v41  ;;  %v17900_v37 = vadd.f32 %v6085_v52, %v6045_v50  ;;  %6411 = vmatprep.mubr.bf16.mxu1 %v17451_v51  ;;  %v14866_v51 = vcombine.low %v2913_v59, %v2917_v40  ;;  %v14970_v41 = vcombine.low %v3017_v26, %v3021_v29  ;;  %v3005_v58 = vld [vmem:[%s16945_s1 + $0xbf8] sm:$0xff] }
 0x473   : > { %v17902_v60 = vpop.f32.mrf.mxu1  ;;  %6381 = vmatprep.subr.bf16.mxu1 %v15011_v44  ;;  %v6048_v11 = vpop.f32.mrf.mxu0  ;;  %v14963_v44 = vcombine.high %v3009_v38, %v3013_v47  ;;  %v3129_v48 = vld [vmem:[%s16945_s1 + $0xfd8] sm:$0xff]  ;;  %v14962_v50 = vcombine.low %v3009_v38, %v3013_v47  ;;  %v14955_v52 = vcombine.high %v3001_v45, %v3005_v58  ;;  %v14954_v40 = vcombine.low %v3001_v45, %v3005_v58 }
 0x474   : > { %6341 = vmatpush1.bf16.msra.mxu0 %v14882_v55  ;;  %v3133_v6 = vld [vmem:[%s16945_s1 + $0xff8] sm:$0xff] }
 0x475   : > { %v6089_v3 = vpop.f32.mrf.mxu1  ;;  %v6049_v0 = vpop.f32.mrf.mxu0  ;;  %6342 = vmatprep.subr.bf16.mxu0 %v14875_v57  ;;  %v15083_v55 = vcombine.high %v3129_v48, %v3133_v6  ;;  %v2997_v57 = vld [vmem:[%s16945_s1 + $0xbb8] sm:$0xff]  ;;  %v15082_v11 = vcombine.low %v3129_v48, %v3133_v6 }
 0x476   : > { %6382 = vmatpush1.bf16.msra.mxu1 %v15010_v56  ;;  %v2993_v56 = vld [vmem:[%s16945_s1 + $0xb98] sm:$0xff] }
 0x477   : > { %v6090_v8 = vpop.f32.mrf.mxu1  ;;  %6383 = vmatprep.subr.bf16.mxu1 %v15003_v39  ;;  %v3121_v39 = vld [vmem:[%s16945_s1 + $0xf98] sm:$0xff]  ;;  %v14947_v1 = vcombine.high %v2993_v56, %v2997_v57 }
 0x478   : > { %6343 = vmatpush1.bf16.msra.mxu0 %v14874_v4  ;;  %v3125_v59 = vld [vmem:[%s16945_s1 + $0xfb8] sm:$0xff] }
 0x479   : > { %6344 = vmatprep.subr.bf16.mxu0 %v14867_v43  ;;  %v15075_v2 = vcombine.high %v3121_v39, %v3125_v59  ;;  %v2985_v3 = vld [vmem:[%s16945_s1 + $0xb58] sm:$0xff]  ;;  %v14946_v43 = vcombine.low %v2993_v56, %v2997_v57  ;;  %v15074_v8 = vcombine.low %v3121_v39, %v3125_v59  ;;  %v6564_v39 = vld [vmem:[%s16953_s14 + $0x380] sm:$0xff] }
 0x47a   : > { %6384 = vmatpush1.bf16.msra.mxu1 %v15002_v5  ;;  %v2989_v4 = vld [vmem:[%s16945_s1 + $0xb78] sm:$0xff]  ;;  %v6572_v59 = vld [vmem:[%s16953_s14 + $0x3c0] sm:$0xff] }
 0x47b   : > { %6385 = vmatprep.subr.bf16.mxu1 %v14995_v49  ;;  %v3113_v0 = vld [vmem:[%s16945_s1 + $0xf58] sm:$0xff]  ;;  %v14939_v49 = vcombine.high %v2985_v3, %v2989_v4 }
 0x47c   : > { %6345 = vmatpush1.bf16.msra.mxu0 %v14866_v51  ;;  %v3117_v5 = vld [vmem:[%s16945_s1 + $0xf78] sm:$0xff] }
 0x47d   : > { %6346 = vmatprep.subr.bf16.mxu0 %v14859_v17  ;;  %v15067_v9 = vcombine.high %v3113_v0, %v3117_v5  ;;  %v2977_v10 = vld [vmem:[%s16945_s1 + $0xb18] sm:$0xff]  ;;  %v15066_v17 = vcombine.low %v3113_v0, %v3117_v5  ;;  %v6421_v0 = vmax.f32 %v17757_v46, 0.0  ;;  %v6548_v5 = vld [vmem:[%s16953_s14 + $0x300] sm:$0xff] }
 0x47e   : > { %6386 = vmatpush1.bf16.msra.mxu1 %v14994_v14  ;;  %v2981_v12 = vld [vmem:[%s16945_s1 + $0xb38] sm:$0xff]  ;;  %v14938_v14 = vcombine.low %v2985_v3, %v2989_v4  ;;  %v15197_v3 = vcombine.high %v6564_v39, %v6572_v59  ;;  %v6532_v46 = vld [vmem:[%s16953_s14 + $0x280] sm:$0xff] }
 0x47f   : > { %6387 = vmatprep.subr.bf16.mxu1 %v14987_v36  ;;  %v3105_v13 = vld [vmem:[%s16945_s1 + $0xf18] sm:$0xff]  ;;  %v14931_v36 = vcombine.high %v2977_v10, %v2981_v12 }
 0x480   : > { %6347 = vmatpush1.bf16.msra.mxu0 %v14858_v7  ;;  %v3109_v51 = vld [vmem:[%s16945_s1 + $0xf38] sm:$0xff] }
 0x481   : > { %6348 = vmatprep.subr.bf16.mxu0 %v14851_v23  ;;  %v15059_v54 = vcombine.high %v3105_v13, %v3109_v51  ;;  %v2969_v18 = vld [vmem:[%s16945_s1 + $0xad8] sm:$0xff]  ;;  %v15058_v23 = vcombine.low %v3105_v13, %v3109_v51 }
 0x482   : > { %6388 = vmatpush1.bf16.msra.mxu1 %v14986_v19  ;;  %v2973_v16 = vld [vmem:[%s16945_s1 + $0xaf8] sm:$0xff]  ;;  %v14930_v19 = vcombine.low %v2977_v10, %v2981_v12  ;;  %v6804_v10 = vld [vmem:[%s16953_s14 + $0xb00] sm:$0xff] }
 0x483   : > { %6389 = vmatprep.subr.bf16.mxu1 %v14979_v24  ;;  %v3097_v22 = vld [vmem:[%s16945_s1 + $0xed8] sm:$0xff]  ;;  %v14923_v24 = vcombine.high %v2969_v18, %v2973_v16  ;;  %v6812_v12 = vld [vmem:[%s16953_s14 + $0xb40] sm:$0xff] }
 0x484   : > { %6349 = vmatpush1.bf16.msra.mxu0 %v14850_v30  ;;  %v3101_v7 = vld [vmem:[%s16945_s1 + $0xef8] sm:$0xff] }
 0x485   : > { %6350 = vmatprep.subr.bf16.mxu0 %v14843_v32  ;;  %v15051_v53 = vcombine.high %v3097_v22, %v3101_v7  ;;  %v2961_v25 = vld [vmem:[%s16945_s1 + $0xa98] sm:$0xff]  ;;  %v15050_v32 = vcombine.low %v3097_v22, %v3101_v7 }
 0x486   : > { %6390 = vmatpush1.bf16.msra.mxu1 %v14978_v31  ;;  %v2965_v26 = vld [vmem:[%s16945_s1 + $0xab8] sm:$0xff]  ;;  %v14922_v31 = vcombine.low %v2969_v18, %v2973_v16  ;;  %v6788_v18 = vld [vmem:[%s16953_s14 + $0xa80] sm:$0xff] }
 0x487   : > { %6391 = vmatprep.subr.bf16.mxu1 %v14971_v33  ;;  %v3089_v29 = vld [vmem:[%s16945_s1 + $0xe98] sm:$0xff]  ;;  %v14915_v33 = vcombine.high %v2961_v25, %v2965_v26  ;;  %v6796_v16 = vld [vmem:[%s16953_s14 + $0xac0] sm:$0xff] }
 0x488   : > { %6351 = vmatpush1.bf16.msra.mxu0 %v14842_v62  ;;  %v3093_v30 = vld [vmem:[%s16945_s1 + $0xeb8] sm:$0xff] }
 0x489   : > { %6352 = vmatprep.subr.bf16.mxu0 %v14835_v42  ;;  %v15043_v20 = vcombine.high %v3089_v29, %v3093_v30  ;;  %v2953_v35 = vld [vmem:[%s16945_s1 + $0xa58] sm:$0xff]  ;;  %v15042_v42 = vcombine.low %v3089_v29, %v3093_v30  ;;  %v15421_v29 = vcombine.high %v6788_v18, %v6796_v16  ;;  %v6524_v30 = vld [vmem:[%s16953_s14 + $0x240] sm:$0xff] }
 0x48a   : > { %6392 = vmatpush1.bf16.msra.mxu1 %v14970_v41  ;;  %v2957_v38 = vld [vmem:[%s16945_s1 + $0xa78] sm:$0xff]  ;;  %v14914_v41 = vcombine.low %v2961_v25, %v2965_v26 }
 0x48b   : > { %6393 = vmatprep.subr.bf16.mxu1 %v14963_v44  ;;  %v3081_v47 = vld [vmem:[%s16945_s1 + $0xe58] sm:$0xff]  ;;  %v14907_v44 = vcombine.high %v2953_v35, %v2957_v38 }
 0x48c   : > { %6353 = vmatpush1.bf16.msra.mxu0 %v14834_v15  ;;  %v3085_v62 = vld [vmem:[%s16945_s1 + $0xe78] sm:$0xff] }
 0x48d   : > { %6354 = vmatprep.subr.bf16.mxu0 %v14955_v52  ;;  %v15035_v45 = vcombine.high %v3081_v47, %v3085_v62  ;;  %v2945_v58 = vld [vmem:[%s16945_s1 + $0xa18] sm:$0xff]  ;;  %v14906_v52 = vcombine.low %v2953_v35, %v2957_v38 }
 0x48e   : > { %6394 = vmatpush1.bf16.msra.mxu1 %v14962_v50  ;;  %v2949_v48 = vld [vmem:[%s16945_s1 + $0xa38] sm:$0xff]  ;;  %v6047_v50 = vadd.f32 %v17898_v28, %v17833_v27  ;;  %v3154_v27 = vsub.s32 4, %v17652_v21 }
 0x48f   : > { %6395 = vmatprep.subr.bf16.mxu1 %v15083_v55  ;;  %v3073_v6 = vld [vmem:[%s16945_s1 + $0xe18] sm:$0xff]  ;;  %v15034_v55 = vcombine.low %v3081_v47, %v3085_v62  ;;  %v14899_v56 = vcombine.high %v2945_v58, %v2949_v48  ;;  %v15420_v47 = vcombine.low %v6788_v18, %v6796_v16  ;;  %v6956_v18 = vld [vmem:[%s16953_s14 + $0xfc0] sm:$0xff] }
 0x490   : > { %6355 = vmatpush2.bf16.msra.mxu0 %v14954_v40  ;;  %v3077_v15 = vld [vmem:[%s16945_s1 + $0xe38] sm:$0xff]  ;;  %v6820_v40 = vld [vmem:[%s16953_s14 + $0xb80] sm:$0xff] }
 0x491   : > { %6356 = vmatprep.subr.bf16.mxu0 %v14947_v1  ;;  %v15027_v57 = vcombine.high %v3073_v6, %v3077_v15  ;;  %v6088_v1 = vadd.f32 %v17902_v60, %v6047_v50  ;;  %v15026_v28 = vcombine.low %v3073_v6, %v3077_v15  ;;  %v17970_v60 = vld [vmem:[%s16951_s20] sm:$0xff] }
 0x492   : > { %6396 = vmatpush2.bf16.msra.mxu1 %v15082_v11  ;;  %v6828_v11 = vld [vmem:[%s16953_s14 + $0xbc0] sm:$0xff] }
 0x493   : > { %6397 = vmatprep.subr.bf16.mxu1 %v15075_v2  ;;  %v14898_v2 = vcombine.low %v2945_v58, %v2949_v48  ;;  %v15453_v4 = vcombine.high %v6820_v40, %v6828_v11  ;;  %v15452_v13 = vcombine.low %v6820_v40, %v6828_v11  ;;  %v6756_v58 = vld [vmem:[%s16953_s14 + $0x980] sm:$0xff] }
 0x494   : > { %6357 = vmatpush2.bf16.msra.mxu0 %v14946_v43  ;;  %v6556_v43 = vld [vmem:[%s16953_s14 + $0x340] sm:$0xff] }
 0x495   : > { %6358 = vmatprep.subr.bf16.mxu0 %v14939_v49  ;;  %v3155_v49 = vrot.slane %v17970_v60, %v3154_v27  ;;  %v15181_v51 = vcombine.high %v6548_v5, %v6556_v43  ;;  %v6764_v48 = vld [vmem:[%s16953_s14 + $0x9c0] sm:$0xff] }
 0x496   : > { %6398 = vmatpush2.bf16.msra.mxu1 %v15074_v8  ;;  %v6423_v8 = vmax.f32 %v6088_v1, 0.0  ;;  %v15388_v40 = vcombine.low %v6756_v58, %v6764_v48  ;;  %v6476_v27 = vld [vmem:[%s16953_s14 + $0xc0] sm:$0xff] }
 0x497   : > { %6399 = vmatprep.subr.bf16.mxu1 %v15067_v9  ;;  %v15196_v9 = vcombine.low %v6564_v39, %v6572_v59  ;;  %v6748_v39 = vld [vmem:[%s16953_s14 + $0x940] sm:$0xff] }
 0x498   : > { %6359 = vmatpush2.bf16.msra.mxu0 %v14938_v14  ;;  %v6540_v14 = vld [vmem:[%s16953_s14 + $0x2c0] sm:$0xff]  ;;  %v17982_v22 = vpack.c.bf16 %v6423_v8, %v6423_v8 }
 0x499   : > { %6360 = vmatprep.subr.bf16.mxu0 %v14931_v36  ;;  %v15164_v35 = vcombine.low %v6532_v46, %v6540_v14  ;;  %v6452_v8 = vld [vmem:[%s16953_s14] sm:$0xff] }
 0x49a   : > { %6400 = vmatpush2.bf16.msra.mxu1 %v15066_v17  ;;  %v17977_v17 = vpack.c.bf16 %v6421_v0, %v6421_v0 }
 0x49b   : > { %6401 = vmatprep.subr.bf16.mxu1 %v15059_v54  ;;  %v15437_v54 = vcombine.high %v6804_v10, %v6812_v12 }
 0x49c   : > { %6361 = vmatpush2.bf16.msra.mxu0 %v14930_v19 }
 0x49d   : > { %6362 = vmatprep.subr.bf16.mxu0 %v14923_v24 }
 0x49e   : > { %6402 = vmatpush2.bf16.msra.mxu1 %v15058_v23  ;;  %v15180_v23 = vcombine.low %v6548_v5, %v6556_v43 }
 0x49f   : > { %6403 = vmatprep.subr.bf16.mxu1 %v15051_v53  ;;  %v15165_v53 = vcombine.high %v6532_v46, %v6540_v14  ;;  %v6692_v14 = vld [vmem:[%s16953_s14 + $0x780] sm:$0xff] }
 0x4a0   : > { %6363 = vmatpush2.bf16.msra.mxu0 %v14922_v31 }
 0x4a1   : > { %6364 = vmatprep.subr.bf16.mxu0 %v14915_v33  ;;  %v6780_v33 = vld [vmem:[%s16953_s14 + $0xa40] sm:$0xff] }
 0x4a2   : > { %6404 = vmatpush2.bf16.msra.mxu1 %v15050_v32  ;;  %v6772_v32 = vld [vmem:[%s16953_s14 + $0xa00] sm:$0xff] }
 0x4a3   : > { %6405 = vmatprep.subr.bf16.mxu1 %v15043_v20  ;;  %v15404_v15 = vcombine.low %v6772_v32, %v6780_v33 }
 0x4a4   : > { %6365 = vmatpush2.bf16.msra.mxu0 %v14914_v41 }
 0x4a5   : > { %6366 = vmatprep.subr.bf16.mxu0 %v14907_v44  ;;  %v6500_v44 = vld [vmem:[%s16953_s14 + $0x180] sm:$0xff] }
 0x4a6   : > { %6406 = vmatpush2.bf16.msra.mxu1 %v15042_v42  ;;  %v15405_v42 = vcombine.high %v6772_v32, %v6780_v33 }
 0x4a7   : > { %6407 = vmatprep.subr.bf16.mxu1 %v15035_v45  ;;  %v6508_v45 = vld [vmem:[%s16953_s14 + $0x1c0] sm:$0xff] }
 0x4a8   : > { %6367 = vmatpush2.bf16.msra.mxu0 %v14906_v52  ;;  %v15133_v50 = vcombine.high %v6500_v44, %v6508_v45  ;;  %v15389_v52 = vcombine.high %v6756_v58, %v6764_v48  ;;  %v15132_v59 = vcombine.low %v6500_v44, %v6508_v45  ;;  %v6644_v45 = vld [vmem:[%s16953_s14 + $0x600] sm:$0xff] }
 0x4a9   : > { %6368 = vmatprep.subr.bf16.mxu0 %v14899_v56  ;;  %v6492_v56 = vld [vmem:[%s16953_s14 + $0x140] sm:$0xff] }
 0x4aa   : > { %6408 = vmatpush2.bf16.msra.mxu1 %v15034_v55  ;;  %v6484_v55 = vld [vmem:[%s16953_s14 + $0x100] sm:$0xff] }
 0x4ab   : > { %6409 = vmatprep.subr.bf16.mxu1 %v15027_v57  ;;  %v6740_v57 = vld [vmem:[%s16953_s14 + $0x900] sm:$0xff]  ;;  %v15117_v11 = vcombine.high %v6484_v55, %v6492_v56 }
 0x4ac   : > { %6369 = vmatpush2.bf16.msra.mxu0 %v14898_v2  ;;  %v15373_v1 = vcombine.high %v6740_v57, %v6748_v39  ;;  %v6468_v2 = vld [vmem:[%s16953_s14 + $0x80] sm:$0xff]  ;;  %v15372_v0 = vcombine.low %v6740_v57, %v6748_v39 }
 0x4ad   : > { %12596 = vmatprep.subr.bf16.mxu0 %v15197_v3  ;;  %v6732_v3 = vld [vmem:[%s16953_s14 + $0x8c0] sm:$0xff]  ;;  %v15101_v5 = vcombine.high %v6468_v2, %v6476_v27 }
 0x4ae   : > { %6410 = vmatpush2.bf16.msra.mxu1 %v15026_v28  ;;  %v6724_v28 = vld [vmem:[%s16953_s14 + $0x880] sm:$0xff] }
 0x4af   : > { %12637 = vmatprep.subr.bf16.mxu1 %v15453_v4  ;;  %v6126_v36 = vpop.f32.mrf.mxu0  ;;  %6371 = vmatmul.mubr.bf16.vlgmr.msra.gmra.mxu0 %v17516_v61  ;;  %v15436_v61 = vcombine.low %v6804_v10, %v6812_v12  ;;  %v15116_v4 = vcombine.low %v6484_v55, %v6492_v56  ;;  %v15357_v43 = vcombine.high %v6724_v28, %v6732_v3  ;;  %v6716_v10 = vld [vmem:[%s16953_s14 + $0x840] sm:$0xff] }
 0x4b0   : > { %v6127_v7 = vadd.f32 %v6126_v36, %v3155_v49  ;;  %12597 = vmatpush1.bf16.msra.mxu0 %v15196_v9  ;;  %12628 = vmatprep.mubr.bf16.mxu0 %v17977_v17  ;;  %v6460_v49 = vld [vmem:[%s16953_s14 + $0x40] sm:$0xff]  ;;  %v15100_v12 = vcombine.low %v6468_v2, %v6476_v27 }
 0x4b1   : > { %v6167_v19 = vpop.f32.mrf.mxu1  ;;  %6412 = vmatmul.mubr.bf16.vlgmr.msra.gmra.mxu1 %v17522_v63  ;;  %v17986_v24 = vpop.f32.mrf.mxu0  ;;  %12598 = vmatprep.subr.bf16.mxu0 %v15181_v51  ;;  %v6516_v63 = vld [vmem:[%s16953_s14 + $0x200] sm:$0xff]  ;;  %v15085_v51 = vcombine.high %v6452_v8, %v6460_v49  ;;  %v15084_v16 = vcombine.low %v6452_v8, %v6460_v49 }
 0x4b2   : > { %12638 = vmatpush1.bf16.msra.mxu1 %v15452_v13  ;;  %v17988_v25 = vadd.f32 %v6167_v19, %v6127_v7  ;;  %12669 = vmatprep.mubr.bf16.mxu1 %v17982_v22  ;;  %v15149_v62 = vcombine.high %v6516_v63, %v6524_v30  ;;  %v15148_v6 = vcombine.low %v6516_v63, %v6524_v30  ;;  %v6708_v9 = vld [vmem:[%s16953_s14 + $0x800] sm:$0xff] }
 0x4b3   : > { %v17991_v26 = vpop.f32.mrf.mxu1  ;;  %v6130_v31 = vpop.f32.mrf.mxu0  ;;  %12639 = vmatprep.subr.bf16.mxu1 %v15437_v54  ;;  %v15356_v13 = vcombine.low %v6724_v28, %v6732_v3  ;;  %v15341_v46 = vcombine.high %v6708_v9, %v6716_v10  ;;  %v6700_v36 = vld [vmem:[%s16953_s14 + $0x7c0] sm:$0xff]  ;;  %v15340_v7 = vcombine.low %v6708_v9, %v6716_v10 }
 0x4b4   : > { %12599 = vmatpush1.bf16.msra.mxu0 %v15180_v23  ;;  %v6948_v54 = vld [vmem:[%s16953_s14 + $0xf80] sm:$0xff]  ;;  %v15325_v19 = vcombine.high %v6692_v14, %v6700_v36  ;;  %v15324_v30 = vcombine.low %v6692_v14, %v6700_v36 }
 0x4b5   : > { %v6171_v20 = vpop.f32.mrf.mxu1  ;;  %v6131_v38 = vpop.f32.mrf.mxu0  ;;  %12600 = vmatprep.subr.bf16.mxu0 %v15165_v53  ;;  %v15581_v23 = vcombine.high %v6948_v54, %v6956_v18  ;;  %v6684_v53 = vld [vmem:[%s16953_s14 + $0x740] sm:$0xff]  ;;  %v15580_v31 = vcombine.low %v6948_v54, %v6956_v18 }
 0x4b6   : > { %12640 = vmatpush1.bf16.msra.mxu1 %v15436_v61  ;;  %v6676_v61 = vld [vmem:[%s16953_s14 + $0x700] sm:$0xff] }
 0x4b7   : > { %v6172_v41 = vpop.f32.mrf.mxu1  ;;  %12641 = vmatprep.subr.bf16.mxu1 %v15421_v29  ;;  %v6932_v29 = vld [vmem:[%s16953_s14 + $0xf00] sm:$0xff]  ;;  %v15309_v32 = vcombine.high %v6676_v61, %v6684_v53 }
 0x4b8   : > { %12601 = vmatpush1.bf16.msra.mxu0 %v15164_v35  ;;  %v6940_v63 = vld [vmem:[%s16953_s14 + $0xf40] sm:$0xff] }
 0x4b9   : > { %12602 = vmatprep.subr.bf16.mxu0 %v15149_v62  ;;  %v15565_v33 = vcombine.high %v6932_v29, %v6940_v63  ;;  %v6660_v20 = vld [vmem:[%s16953_s14 + $0x680] sm:$0xff]  ;;  %v15308_v62 = vcombine.low %v6676_v61, %v6684_v53  ;;  %v15564_v41 = vcombine.low %v6932_v29, %v6940_v63 }
 0x4ba   : > { %12642 = vmatpush1.bf16.msra.mxu1 %v15420_v47  ;;  %v6668_v35 = vld [vmem:[%s16953_s14 + $0x6c0] sm:$0xff] }
 0x4bb   : > { %12643 = vmatprep.subr.bf16.mxu1 %v15405_v42  ;;  %v6916_v38 = vld [vmem:[%s16953_s14 + $0xe80] sm:$0xff]  ;;  %v15293_v42 = vcombine.high %v6660_v20, %v6668_v35 }
 0x4bc   : > { %12603 = vmatpush1.bf16.msra.mxu0 %v15148_v6  ;;  %v6924_v47 = vld [vmem:[%s16953_s14 + $0xec0] sm:$0xff] }
 0x4bd   : > { %12604 = vmatprep.subr.bf16.mxu0 %v15133_v50  ;;  %v15549_v44 = vcombine.high %v6916_v38, %v6924_v47  ;;  %v6652_v58 = vld [vmem:[%s16953_s14 + $0x640] sm:$0xff]  ;;  %v15548_v50 = vcombine.low %v6916_v38, %v6924_v47  ;;  %v6422_v47 = vmax.f32 %v17900_v37, 0.0 }
 0x4be   : > { %12644 = vmatpush1.bf16.msra.mxu1 %v15404_v15  ;;  %v6900_v48 = vld [vmem:[%s16953_s14 + $0xe00] sm:$0xff]  ;;  %v15292_v15 = vcombine.low %v6660_v20, %v6668_v35  ;;  %v6420_v20 = vmax.f32 %v17748_v34, 0.0 }
 0x4bf   : > { %12645 = vmatprep.subr.bf16.mxu1 %v15389_v52  ;;  %v6908_v6 = vld [vmem:[%s16953_s14 + $0xe40] sm:$0xff]  ;;  %v15277_v52 = vcombine.high %v6644_v45, %v6652_v58 }
 0x4c0   : > { %12605 = vmatpush1.bf16.msra.mxu0 %v15132_v59  ;;  %v15533_v55 = vcombine.high %v6900_v48, %v6908_v6  ;;  %v6628_v56 = vld [vmem:[%s16953_s14 + $0x580] sm:$0xff] }
 0x4c1   : > { %12606 = vmatprep.subr.bf16.mxu0 %v15117_v11  ;;  %v6636_v57 = vld [vmem:[%s16953_s14 + $0x5c0] sm:$0xff]  ;;  %v15532_v11 = vcombine.low %v6900_v48, %v6908_v6  ;;  %v18060_v6 = vpack.c.bf16 %v6422_v47, %v6422_v47 }
 0x4c2   : > { %12646 = vmatpush1.bf16.msra.mxu1 %v15388_v40  ;;  %v6884_v39 = vld [vmem:[%s16953_s14 + $0xd80] sm:$0xff]  ;;  %v15276_v40 = vcombine.low %v6644_v45, %v6652_v58  ;;  %v18058_v58 = vpack.c.bf16 %v6420_v20, %v6420_v20 }
 0x4c3   : > { %12647 = vmatprep.subr.bf16.mxu1 %v15373_v1  ;;  %v6892_v59 = vld [vmem:[%s16953_s14 + $0xdc0] sm:$0xff]  ;;  %v15261_v1 = vcombine.high %v6628_v56, %v6636_v57 }
 0x4c4   : > { %12607 = vmatpush1.bf16.msra.mxu0 %v15116_v4  ;;  %v15517_v2 = vcombine.high %v6884_v39, %v6892_v59  ;;  %v6612_v27 = vld [vmem:[%s16953_s14 + $0x500] sm:$0xff] }
 0x4c5   : > { %12608 = vmatprep.subr.bf16.mxu0 %v15101_v5  ;;  %v6620_v28 = vld [vmem:[%s16953_s14 + $0x540] sm:$0xff]  ;;  %v15516_v5 = vcombine.low %v6884_v39, %v6892_v59 }
 0x4c6   : > { %12648 = vmatpush1.bf16.msra.mxu1 %v15372_v0  ;;  %v6868_v3 = vld [vmem:[%s16953_s14 + $0xd00] sm:$0xff]  ;;  %v15260_v0 = vcombine.low %v6628_v56, %v6636_v57 }
 0x4c7   : > { %12649 = vmatprep.subr.bf16.mxu1 %v15357_v43  ;;  %v6876_v4 = vld [vmem:[%s16953_s14 + $0xd40] sm:$0xff]  ;;  %v15245_v43 = vcombine.high %v6612_v27, %v6620_v28 }
 0x4c8   : > { %12609 = vmatpush1.bf16.msra.mxu0 %v15100_v12  ;;  %v15501_v8 = vcombine.high %v6868_v3, %v6876_v4  ;;  %v6596_v49 = vld [vmem:[%s16953_s14 + $0x480] sm:$0xff] }
 0x4c9   : > { %12610 = vmatprep.subr.bf16.mxu0 %v15085_v51  ;;  %v6604_v9 = vld [vmem:[%s16953_s14 + $0x4c0] sm:$0xff]  ;;  %v15500_v51 = vcombine.low %v6868_v3, %v6876_v4 }
 0x4ca   : > { %12650 = vmatpush1.bf16.msra.mxu1 %v15356_v13  ;;  %v6852_v10 = vld [vmem:[%s16953_s14 + $0xc80] sm:$0xff]  ;;  %v15244_v13 = vcombine.low %v6612_v27, %v6620_v28 }
 0x4cb   : > { %12651 = vmatprep.subr.bf16.mxu1 %v15341_v46  ;;  %v6860_v12 = vld [vmem:[%s16953_s14 + $0xcc0] sm:$0xff]  ;;  %v15229_v46 = vcombine.high %v6596_v49, %v6604_v9 }
 0x4cc   : > { %12611 = vmatpush1.bf16.msra.mxu0 %v15084_v16  ;;  %v15485_v14 = vcombine.high %v6852_v10, %v6860_v12  ;;  %v6580_v36 = vld [vmem:[%s16953_s14 + $0x400] sm:$0xff] }
 0x4cd   : > { %12612 = vmatprep.subr.bf16.mxu0 %v15325_v19  ;;  %v6588_v54 = vld [vmem:[%s16953_s14 + $0x440] sm:$0xff]  ;;  %v15228_v19 = vcombine.low %v6596_v49, %v6604_v9 }
 0x4ce   : > { %12652 = vmatpush1.bf16.msra.mxu1 %v15340_v7  ;;  %v6836_v18 = vld [vmem:[%s16953_s14 + $0xc00] sm:$0xff]  ;;  %v3158_v7 = vsub.s32 5, %v17652_v21  ;;  %v15213_v61 = vcombine.high %v6580_v36, %v6588_v54 }
 0x4cf   : > { %12653 = vmatprep.subr.bf16.mxu1 %v15581_v23  ;;  %v6844_v16 = vld [vmem:[%s16953_s14 + $0xc40] sm:$0xff]  ;;  %v15484_v23 = vcombine.low %v6852_v10, %v6860_v12 }
 0x4d0   : > { %12613 = vmatpush2.bf16.msra.mxu0 %v15324_v30  ;;  %v15469_v53 = vcombine.high %v6836_v18, %v6844_v16  ;;  %v7076_v29 = vld [vmem:[%s16953_s14 + $0x1380] sm:$0xff]  ;;  %v15468_v35 = vcombine.low %v6836_v18, %v6844_v16 }
 0x4d1   : > { %12614 = vmatprep.subr.bf16.mxu0 %v15309_v32  ;;  %v7084_v63 = vld [vmem:[%s16953_s14 + $0x13c0] sm:$0xff]  ;;  %v3159_v32 = vrot.slane %v17970_v60, %v3158_v7 }
 0x4d2   : > { %12654 = vmatpush2.bf16.msra.mxu1 %v15580_v31  ;;  %v7332_v30 = vld [vmem:[%s16953_s14 + $0x1b80] sm:$0xff]  ;;  %v15709_v38 = vcombine.high %v7076_v29, %v7084_v63  ;;  %v15708_v34 = vcombine.low %v7076_v29, %v7084_v63 }
 0x4d3   : > { %12655 = vmatprep.subr.bf16.mxu1 %v15565_v33  ;;  %v7340_v31 = vld [vmem:[%s16953_s14 + $0x1bc0] sm:$0xff]  ;;  %v15212_v33 = vcombine.low %v6580_v36, %v6588_v54  ;;  %v6129_v60 = vadd.f32 %v17986_v24, %v3159_v32 }
 0x4d4   : > { %12615 = vmatpush2.bf16.msra.mxu0 %v15308_v62  ;;  %v7060_v62 = vld [vmem:[%s16953_s14 + $0x1300] sm:$0xff]  ;;  %v15964_v37 = vcombine.low %v7332_v30, %v7340_v31 }
 0x4d5   : > { %12616 = vmatprep.subr.bf16.mxu0 %v15293_v42  ;;  %v15965_v42 = vcombine.high %v7332_v30, %v7340_v31  ;;  %v7324_v45 = vld [vmem:[%s16953_s14 + $0x1b40] sm:$0xff]  ;;  %v6170_v57 = vadd.f32 %v17991_v26, %v6129_v60 }
 0x4d6   : > { %12656 = vmatpush2.bf16.msra.mxu1 %v15564_v41  ;;  %v7068_v41 = vld [vmem:[%s16953_s14 + $0x1340] sm:$0xff] }
 0x4d7   : > { %12657 = vmatprep.subr.bf16.mxu1 %v15549_v44  ;;  %v7316_v44 = vld [vmem:[%s16953_s14 + $0x1b00] sm:$0xff]  ;;  %v15693_v48 = vcombine.high %v7060_v62, %v7068_v41  ;;  %v15692_v59 = vcombine.low %v7060_v62, %v7068_v41 }
 0x4d8   : > { %12617 = vmatpush2.bf16.msra.mxu0 %v15292_v15  ;;  %v7044_v15 = vld [vmem:[%s16953_s14 + $0x1280] sm:$0xff] }
 0x4d9   : > { %12618 = vmatprep.subr.bf16.mxu0 %v15277_v52  ;;  %v15949_v52 = vcombine.high %v7316_v44, %v7324_v45  ;;  %v7300_v24 = vld [vmem:[%s16953_s14 + $0x1a80] sm:$0xff] }
 0x4da   : > { %12658 = vmatpush2.bf16.msra.mxu1 %v15548_v50  ;;  %v7052_v50 = vld [vmem:[%s16953_s14 + $0x12c0] sm:$0xff] }
 0x4db   : > { %12659 = vmatprep.subr.bf16.mxu1 %v15533_v55  ;;  %v7308_v56 = vld [vmem:[%s16953_s14 + $0x1ac0] sm:$0xff]  ;;  %v15676_v49 = vcombine.low %v7044_v15, %v7052_v50 }
 0x4dc   : > { %12619 = vmatpush2.bf16.msra.mxu0 %v15276_v40  ;;  %v7028_v28 = vld [vmem:[%s16953_s14 + $0x1200] sm:$0xff]  ;;  %v15933_v26 = vcombine.high %v7300_v24, %v7308_v56  ;;  %v15932_v12 = vcombine.low %v7300_v24, %v7308_v56 }
 0x4dd   : > { %12620 = vmatprep.subr.bf16.mxu0 %v15261_v1  ;;  %v15948_v1 = vcombine.low %v7316_v44, %v7324_v45  ;;  %v7036_v3 = vld [vmem:[%s16953_s14 + $0x1240] sm:$0xff] }
 0x4de   : > { %12660 = vmatpush2.bf16.msra.mxu1 %v15532_v11  ;;  %v15677_v11 = vcombine.high %v7044_v15, %v7052_v50  ;;  %v15661_v10 = vcombine.high %v7028_v28, %v7036_v3  ;;  %v7268_v54 = vld [vmem:[%s16953_s14 + $0x1980] sm:$0xff]  ;;  %v15660_v7 = vcombine.low %v7028_v28, %v7036_v3 }
 0x4df   : > { %12661 = vmatprep.subr.bf16.mxu1 %v15517_v2  ;;  %v7276_v18 = vld [vmem:[%s16953_s14 + $0x19c0] sm:$0xff] }
 0x4e0   : > { %12621 = vmatpush2.bf16.msra.mxu0 %v15260_v0  ;;  %v7284_v0 = vld [vmem:[%s16953_s14 + $0x1a00] sm:$0xff]  ;;  %v15901_v30 = vcombine.high %v7268_v54, %v7276_v18 }
 0x4e1   : > { %12622 = vmatprep.subr.bf16.mxu0 %v15245_v43  ;;  %v6996_v29 = vld [vmem:[%s16953_s14 + $0x1100] sm:$0xff] }
 0x4e2   : > { %12662 = vmatpush2.bf16.msra.mxu1 %v15516_v5  ;;  %v7292_v5 = vld [vmem:[%s16953_s14 + $0x1a40] sm:$0xff] }
 0x4e3   : > { %12663 = vmatprep.subr.bf16.mxu1 %v15501_v8  ;;  %v15917_v36 = vcombine.high %v7284_v0, %v7292_v5  ;;  %v7004_v63 = vld [vmem:[%s16953_s14 + $0x1140] sm:$0xff] }
 0x4e4   : > { %12623 = vmatpush2.bf16.msra.mxu0 %v15244_v13  ;;  %v7252_v32 = vld [vmem:[%s16953_s14 + $0x1900] sm:$0xff]  ;;  %v15628_v45 = vcombine.low %v6996_v29, %v7004_v63 }
 0x4e5   : > { %12624 = vmatprep.subr.bf16.mxu0 %v15229_v46  ;;  %v7012_v46 = vld [vmem:[%s16953_s14 + $0x1180] sm:$0xff] }
 0x4e6   : > { %12664 = vmatpush2.bf16.msra.mxu1 %v15500_v51  ;;  %v6980_v47 = vld [vmem:[%s16953_s14 + $0x1080] sm:$0xff] }
 0x4e7   : > { %12665 = vmatprep.subr.bf16.mxu1 %v15485_v14  ;;  %v7020_v14 = vld [vmem:[%s16953_s14 + $0x11c0] sm:$0xff] }
 0x4e8   : > { %12625 = vmatpush2.bf16.msra.mxu0 %v15228_v19  ;;  %v15645_v19 = vcombine.high %v7012_v46, %v7020_v14  ;;  %v15644_v20 = vcombine.low %v7012_v46, %v7020_v14  ;;  %v6988_v62 = vld [vmem:[%s16953_s14 + $0x10c0] sm:$0xff] }
 0x4e9   : > { %12626 = vmatprep.subr.bf16.mxu0 %v15213_v61  ;;  %v18084_v61 = vld [vmem:[%s16953_s14 + $0xb88] sm:$0xff]  ;;  %v7244_v44 = vld [vmem:[%s16953_s14 + $0x18c0] sm:$0xff]  ;;  %v15613_v60 = vcombine.high %v6980_v47, %v6988_v62  ;;  %v15612_v24 = vcombine.low %v6980_v47, %v6988_v62 }
 0x4ea   : > { %12666 = vmatpush2.bf16.msra.mxu1 %v15484_v23  ;;  %v15916_v23 = vcombine.low %v7284_v0, %v7292_v5  ;;  %v7220_v50 = vld [vmem:[%s16953_s14 + $0x1800] sm:$0xff] }
 0x4eb   : > { %12667 = vmatprep.subr.bf16.mxu1 %v15469_v53  ;;  %v18087_v53 = vld [vmem:[%s16953_s14 + $0xbc8] sm:$0xff]  ;;  %v7444_v5 = vld [vmem:[%s16953_s14 + $0x1f00] sm:$0xff] }
 0x4ec   : > { %12627 = vmatpush2.bf16.msra.mxu0 %v15212_v33  ;;  %v15454_v31 = vcombine.low %v18084_v61, %v18087_v53  ;;  %v7260_v33 = vld [vmem:[%s16953_s14 + $0x1940] sm:$0xff] }
 0x4ed   : > { %12678 = vmatprep.subr.bf16.mxu0 %v15709_v38  ;;  %v15900_v38 = vcombine.low %v7268_v54, %v7276_v18  ;;  %v15885_v41 = vcombine.high %v7252_v32, %v7260_v33  ;;  %v7436_v46 = vld [vmem:[%s16953_s14 + $0x1ec0] sm:$0xff] }
 0x4ee   : > { %12668 = vmatpush2.bf16.msra.mxu1 %v15468_v35  ;;  %v15629_v35 = vcombine.high %v6996_v29, %v7004_v63  ;;  %v7156_v18 = vld [vmem:[%s16953_s14 + $0x1600] sm:$0xff] }
 0x4ef   : > { %12719 = vmatprep.subr.bf16.mxu1 %v15965_v42  ;;  %v18064_v55 = vpop.f32.mrf.mxu0  ;;  %12629 = vmatmul.mubr.bf16.vlgmr.msra.gmra.mxu0 %v18058_v58  ;;  %v7236_v42 = vld [vmem:[%s16953_s14 + $0x1880] sm:$0xff] }
 0x4f0   : > { %12679 = vmatpush1.bf16.msra.mxu0 %v15708_v34  ;;  %v15884_v34 = vcombine.low %v7252_v32, %v7260_v33  ;;  %v15869_v15 = vcombine.high %v7236_v42, %v7244_v44  ;;  %v7420_v29 = vld [vmem:[%s16953_s14 + $0x1e40] sm:$0xff] }
 0x4f1   : > { %v18070_v39 = vpop.f32.mrf.mxu1  ;;  %12670 = vmatmul.mubr.bf16.vlgmr.msra.gmra.mxu1 %v18060_v6  ;;  %v6210_v40 = vpop.f32.mrf.mxu0  ;;  %12680 = vmatprep.subr.bf16.mxu0 %v15693_v48  ;;  %v6964_v48 = vld [vmem:[%s16953_s14 + $0x1000] sm:$0xff] }
 0x4f2   : > { %12720 = vmatpush1.bf16.msra.mxu1 %v15964_v37  ;;  %v6211_v2 = vadd.f32 %v6210_v40, %v6170_v57  ;;  %v6972_v37 = vld [vmem:[%s16953_s14 + $0x1040] sm:$0xff]  ;;  %v15868_v57 = vcombine.low %v7236_v42, %v7244_v44 }
 0x4f3   : > { %v6251_v27 = vpop.f32.mrf.mxu1  ;;  %12721 = vmatprep.subr.bf16.mxu1 %v15949_v52  ;;  %v6212_v4 = vpop.f32.mrf.mxu0  ;;  %v7228_v52 = vld [vmem:[%s16953_s14 + $0x1840] sm:$0xff]  ;;  %v15597_v56 = vcombine.high %v6964_v48, %v6972_v37 }
 0x4f4   : > { %v6252_v43 = vadd.f32 %v6251_v27, %v6211_v2  ;;  %12681 = vmatpush1.bf16.msra.mxu0 %v15692_v59  ;;  %v7204_v59 = vld [vmem:[%s16953_s14 + $0x1780] sm:$0xff]  ;;  %v15596_v27 = vcombine.low %v6964_v48, %v6972_v37  ;;  %v15852_v3 = vcombine.low %v7220_v50, %v7228_v52 }
 0x4f5   : > { %v6253_v8 = vpop.f32.mrf.mxu1  ;;  %v6213_v9 = vpop.f32.mrf.mxu0  ;;  %12682 = vmatprep.subr.bf16.mxu0 %v15677_v11  ;;  %v7212_v40 = vld [vmem:[%s16953_s14 + $0x17c0] sm:$0xff]  ;;  %v15853_v11 = vcombine.high %v7220_v50, %v7228_v52 }
 0x4f6   : > { %12722 = vmatpush1.bf16.msra.mxu1 %v15948_v1  ;;  %v6425_v13 = vmax.f32 %v6252_v43, 0.0  ;;  %v7460_v1 = vld [vmem:[%s16953_s14 + $0x1f80] sm:$0xff]  ;;  %v15837_v28 = vcombine.high %v7204_v59, %v7212_v40  ;;  %v15836_v8 = vcombine.low %v7204_v59, %v7212_v40 }
 0x4f7   : > { %v6254_v51 = vpop.f32.mrf.mxu1  ;;  %12723 = vmatprep.subr.bf16.mxu1 %v15933_v26  ;;  %v7468_v2 = vld [vmem:[%s16953_s14 + $0x1fc0] sm:$0xff] }
 0x4f8   : > { %v18081_v16 = vpack.c.bf16 %v6425_v13, %v6425_v13  ;;  %12683 = vmatpush1.bf16.msra.mxu0 %v15676_v49  ;;  %v7188_v26 = vld [vmem:[%s16953_s14 + $0x1700] sm:$0xff]  ;;  %v16093_v0 = vcombine.high %v7460_v1, %v7468_v2  ;;  %v16092_v9 = vcombine.low %v7460_v1, %v7468_v2 }
 0x4f9   : > { %12684 = vmatprep.subr.bf16.mxu0 %v15661_v10  ;;  %v7196_v4 = vld [vmem:[%s16953_s14 + $0x1740] sm:$0xff] }
 0x4fa   : > { %12724 = vmatpush1.bf16.msra.mxu1 %v15932_v12  ;;  %12710 = vmatprep.mubr.bf16.mxu0 %v18081_v16  ;;  %v7452_v43 = vld [vmem:[%s16953_s14 + $0x1f40] sm:$0xff]  ;;  %v15821_v49 = vcombine.high %v7188_v26, %v7196_v4  ;;  %v15820_v14 = vcombine.low %v7188_v26, %v7196_v4 }
 0x4fb   : > { %12725 = vmatprep.subr.bf16.mxu1 %v15917_v36  ;;  %v7172_v10 = vld [vmem:[%s16953_s14 + $0x1680] sm:$0xff]  ;;  %v16077_v13 = vcombine.high %v7444_v5, %v7452_v43  ;;  %v16076_v54 = vcombine.low %v7444_v5, %v7452_v43  ;;  %v6565_v43 = vld [vmem:[%s16953_s14 + $0x388] sm:$0xff] }
 0x4fc   : > { %12685 = vmatpush1.bf16.msra.mxu0 %v15660_v7  ;;  %v7180_v12 = vld [vmem:[%s16953_s14 + $0x16c0] sm:$0xff] }
 0x4fd   : > { %12686 = vmatprep.subr.bf16.mxu0 %v15645_v19  ;;  %v7428_v51 = vld [vmem:[%s16953_s14 + $0x1e80] sm:$0xff]  ;;  %v15805_v36 = vcombine.high %v7172_v10, %v7180_v12  ;;  %v15804_v63 = vcombine.low %v7172_v10, %v7180_v12 }
 0x4fe   : > { %12726 = vmatpush1.bf16.msra.mxu1 %v15916_v23  ;;  %v7164_v7 = vld [vmem:[%s16953_s14 + $0x1640] sm:$0xff]  ;;  %v16061_v19 = vcombine.high %v7428_v51, %v7436_v46  ;;  %v16060_v32 = vcombine.low %v7428_v51, %v7436_v46  ;;  %v6557_v51 = vld [vmem:[%s16953_s14 + $0x348] sm:$0xff]  ;;  %v15455_v46 = vcombine.high %v18084_v61, %v18087_v53 }
 0x4ff   : > { %12727 = vmatprep.subr.bf16.mxu1 %v15901_v30  ;;  %v7412_v23 = vld [vmem:[%s16953_s14 + $0x1e00] sm:$0xff]  ;;  %v15789_v30 = vcombine.high %v7156_v18, %v7164_v7  ;;  %v15788_v62 = vcombine.low %v7156_v18, %v7164_v7  ;;  %v6533_v18 = vld [vmem:[%s16953_s14 + $0x288] sm:$0xff] }
 0x500   : > { %12687 = vmatpush1.bf16.msra.mxu0 %v15644_v20  ;;  %v7140_v33 = vld [vmem:[%s16953_s14 + $0x1580] sm:$0xff]  ;;  %v16044_v42 = vcombine.low %v7412_v23, %v7420_v29  ;;  %v6541_v7 = vld [vmem:[%s16953_s14 + $0x2c8] sm:$0xff] }
 0x501   : > { %12688 = vmatprep.subr.bf16.mxu0 %v15629_v35  ;;  %v7148_v20 = vld [vmem:[%s16953_s14 + $0x15c0] sm:$0xff]  ;;  %v16045_v35 = vcombine.high %v7412_v23, %v7420_v29 }
 0x502   : > { %12728 = vmatpush1.bf16.msra.mxu1 %v15900_v38  ;;  %v7396_v38 = vld [vmem:[%s16953_s14 + $0x1d80] sm:$0xff]  ;;  %v15772_v37 = vcombine.low %v7140_v33, %v7148_v20 }
 0x503   : > { %12729 = vmatprep.subr.bf16.mxu1 %v15885_v41  ;;  %v7404_v47 = vld [vmem:[%s16953_s14 + $0x1dc0] sm:$0xff]  ;;  %v15773_v41 = vcombine.high %v7140_v33, %v7148_v20  ;;  %v6517_v33 = vld [vmem:[%s16953_s14 + $0x208] sm:$0xff] }
 0x504   : > { %12689 = vmatpush1.bf16.msra.mxu0 %v15628_v45  ;;  %v7124_v44 = vld [vmem:[%s16953_s14 + $0x1500] sm:$0xff]  ;;  %v16028_v50 = vcombine.low %v7396_v38, %v7404_v47  ;;  %v6525_v20 = vld [vmem:[%s16953_s14 + $0x248] sm:$0xff] }
 0x505   : > { %12690 = vmatprep.subr.bf16.mxu0 %v15613_v60  ;;  %v7132_v45 = vld [vmem:[%s16953_s14 + $0x1540] sm:$0xff]  ;;  %v16029_v60 = vcombine.high %v7396_v38, %v7404_v47  ;;  %v15166_v47 = vcombine.low %v6533_v18, %v6541_v7 }
 0x506   : > { %12730 = vmatpush1.bf16.msra.mxu1 %v15884_v34  ;;  %v7380_v34 = vld [vmem:[%s16953_s14 + $0x1d00] sm:$0xff]  ;;  %v15756_v40 = vcombine.low %v7124_v44, %v7132_v45 }
 0x507   : > { %12731 = vmatprep.subr.bf16.mxu1 %v15869_v15  ;;  %v7388_v48 = vld [vmem:[%s16953_s14 + $0x1d40] sm:$0xff]  ;;  %v15757_v15 = vcombine.high %v7124_v44, %v7132_v45  ;;  %v6501_v44 = vld [vmem:[%s16953_s14 + $0x188] sm:$0xff] }
 0x508   : > { %12691 = vmatpush1.bf16.msra.mxu0 %v15612_v24  ;;  %v7108_v52 = vld [vmem:[%s16953_s14 + $0x1480] sm:$0xff]  ;;  %v16012_v2 = vcombine.low %v7380_v34, %v7388_v48  ;;  %v6509_v45 = vld [vmem:[%s16953_s14 + $0x1c8] sm:$0xff] }
 0x509   : > { %12692 = vmatprep.subr.bf16.mxu0 %v15597_v56  ;;  %v7116_v24 = vld [vmem:[%s16953_s14 + $0x14c0] sm:$0xff]  ;;  %v16013_v56 = vcombine.high %v7380_v34, %v7388_v48  ;;  %v15135_v34 = vcombine.high %v6501_v44, %v6509_v45  ;;  %v6485_v48 = vld [vmem:[%s16953_s14 + $0x108] sm:$0xff] }
 0x50a   : > { %12732 = vmatpush1.bf16.msra.mxu1 %v15868_v57  ;;  %v7364_v57 = vld [vmem:[%s16953_s14 + $0x1c80] sm:$0xff]  ;;  %v15741_v1 = vcombine.high %v7108_v52, %v7116_v24 }
 0x50b   : > { %12733 = vmatprep.subr.bf16.mxu1 %v15853_v11  ;;  %v7372_v59 = vld [vmem:[%s16953_s14 + $0x1cc0] sm:$0xff]  ;;  %v6209_v11 = vadd.f32 %v18064_v55, %v17988_v25 }
 0x50c   : > { %12693 = vmatpush1.bf16.msra.mxu0 %v15596_v27  ;;  %v7092_v27 = vld [vmem:[%s16953_s14 + $0x1400] sm:$0xff]  ;;  %v15996_v55 = vcombine.low %v7364_v57, %v7372_v59 }
 0x50d   : > { %12694 = vmatprep.subr.bf16.mxu0 %v15837_v28  ;;  %v7100_v28 = vld [vmem:[%s16953_s14 + $0x1440] sm:$0xff]  ;;  %v6250_v5 = vadd.f32 %v18070_v39, %v6209_v11  ;;  %v6549_v39 = vld [vmem:[%s16953_s14 + $0x308] sm:$0xff] }
 0x50e   : > { %12734 = vmatpush1.bf16.msra.mxu1 %v15852_v3  ;;  %v15997_v3 = vcombine.high %v7364_v57, %v7372_v59  ;;  %v7348_v26 = vld [vmem:[%s16953_s14 + $0x1c00] sm:$0xff]  ;;  %v15725_v25 = vcombine.high %v7092_v27, %v7100_v28  ;;  %v15182_v29 = vcombine.low %v6549_v39, %v6557_v51  ;;  %v6453_v59 = vld [vmem:[%s16953_s14 + $0x8] sm:$0xff] }
 0x50f   : > { %12735 = vmatprep.subr.bf16.mxu1 %v16093_v0  ;;  %v7356_v4 = vld [vmem:[%s16953_s14 + $0x1c40] sm:$0xff]  ;;  %v15740_v0 = vcombine.low %v7108_v52, %v7116_v24  ;;  %v6424_v10 = vmax.f32 %v6250_v5, 0.0  ;;  %v6469_v52 = vld [vmem:[%s16953_s14 + $0x88] sm:$0xff] }
 0x510   : > { %12695 = vmatpush2.bf16.msra.mxu0 %v15836_v8  ;;  %v6573_v8 = vld [vmem:[%s16953_s14 + $0x3c8] sm:$0xff] }
 0x511   : > { %12696 = vmatprep.subr.bf16.mxu0 %v15821_v49  ;;  %v15981_v49 = vcombine.high %v7348_v26, %v7356_v4  ;;  %v15199_v12 = vcombine.high %v6565_v43, %v6573_v8  ;;  %v6477_v24 = vld [vmem:[%s16953_s14 + $0xc8] sm:$0xff] }
 0x512   : > { %12736 = vmatpush2.bf16.msra.mxu1 %v16092_v9  ;;  %v15724_v9 = vcombine.low %v7092_v27, %v7100_v28  ;;  %v15103_v57 = vcombine.high %v6469_v52, %v6477_v24  ;;  %v15102_v11 = vcombine.low %v6469_v52, %v6477_v24  ;;  %v6701_v27 = vld [vmem:[%s16953_s14 + $0x7c8] sm:$0xff] }
 0x513   : > { %12737 = vmatprep.subr.bf16.mxu1 %v16077_v13  ;;  %v15980_v13 = vcombine.low %v7348_v26, %v7356_v4  ;;  %v6677_v26 = vld [vmem:[%s16953_s14 + $0x708] sm:$0xff] }
 0x514   : > { %12697 = vmatpush2.bf16.msra.mxu0 %v15820_v14  ;;  %v15198_v14 = vcombine.low %v6565_v43, %v6573_v8  ;;  %v6685_v4 = vld [vmem:[%s16953_s14 + $0x748] sm:$0xff] }
 0x515   : > { %12698 = vmatprep.subr.bf16.mxu0 %v15805_v36  ;;  %v18145_v36 = vpack.c.bf16 %v6424_v10, %v6424_v10  ;;  %v15311_v5 = vcombine.high %v6677_v26, %v6685_v4  ;;  %v15310_v43 = vcombine.low %v6677_v26, %v6685_v4  ;;  %v7061_v52 = vld [vmem:[%s16953_s14 + $0x1308] sm:$0xff] }
 0x516   : > { %12738 = vmatpush2.bf16.msra.mxu1 %v16076_v54  ;;  %v15183_v54 = vcombine.high %v6549_v39, %v6557_v51  ;;  %v6637_v39 = vld [vmem:[%s16953_s14 + $0x5c8] sm:$0xff] }
 0x517   : > { %12739 = vmatprep.subr.bf16.mxu1 %v16061_v19 }
 0x518   : > { %12699 = vmatpush2.bf16.msra.mxu0 %v15804_v63 }
 0x519   : > { %12700 = vmatprep.subr.bf16.mxu0 %v15789_v30  ;;  %v15167_v30 = vcombine.high %v6533_v18, %v6541_v7 }
 0x51a   : > { %12740 = vmatpush2.bf16.msra.mxu1 %v16060_v32 }
 0x51b   : > { %12741 = vmatprep.subr.bf16.mxu1 %v16045_v35 }
 0x51c   : > { %12701 = vmatpush2.bf16.msra.mxu0 %v15788_v62 }
 0x51d   : > { %12702 = vmatprep.subr.bf16.mxu0 %v15773_v41  ;;  %v15151_v41 = vcombine.high %v6517_v33, %v6525_v20 }
 0x51e   : > { %12742 = vmatpush2.bf16.msra.mxu1 %v16044_v42 }
 0x51f   : > { %12743 = vmatprep.subr.bf16.mxu1 %v16029_v60  ;;  %v15150_v60 = vcombine.low %v6517_v33, %v6525_v20 }
 0x520   : > { %12703 = vmatpush2.bf16.msra.mxu0 %v15772_v37  ;;  %v6493_v37 = vld [vmem:[%s16953_s14 + $0x148] sm:$0xff] }
 0x521   : > { %12704 = vmatprep.subr.bf16.mxu0 %v15757_v15  ;;  %v15134_v15 = vcombine.low %v6501_v44, %v6509_v45  ;;  %v16273_v44 = vld [vmem:[%s16951_s20] sm:$0xff] }
 0x522   : > { %12744 = vmatpush2.bf16.msra.mxu1 %v16028_v50  ;;  %v15119_v50 = vcombine.high %v6485_v48, %v6493_v37 }
 0x523   : > { %12745 = vmatprep.subr.bf16.mxu1 %v16013_v56  ;;  %v15118_v56 = vcombine.low %v6485_v48, %v6493_v37 }
 0x524   : > { %12705 = vmatpush2.bf16.msra.mxu0 %v15756_v40  ;;  %v6461_v40 = vld [vmem:[%s16953_s14 + $0x48] sm:$0xff] }
 0x525   : > { %12706 = vmatprep.subr.bf16.mxu0 %v15741_v1  ;;  %v15087_v1 = vcombine.high %v6453_v59, %v6461_v40  ;;  %v15086_v28 = vcombine.low %v6453_v59, %v6461_v40  ;;  %v7045_v40 = vld [vmem:[%s16953_s14 + $0x1288] sm:$0xff] }
 0x526   : > { %12746 = vmatpush2.bf16.msra.mxu1 %v16012_v2  ;;  %v6693_v2 = vld [vmem:[%s16953_s14 + $0x788] sm:$0xff] }
 0x527   : > { %12747 = vmatprep.subr.bf16.mxu1 %v15997_v3  ;;  %v15327_v3 = vcombine.high %v6693_v2, %v6701_v27 }
 0x528   : > { %12707 = vmatpush2.bf16.msra.mxu0 %v15740_v0  ;;  %v15326_v0 = vcombine.low %v6693_v2, %v6701_v27 }
 0x529   : > { %12708 = vmatprep.subr.bf16.mxu0 %v15725_v25  ;;  %v6661_v25 = vld [vmem:[%s16953_s14 + $0x688] sm:$0xff] }
 0x52a   : > { %12748 = vmatpush2.bf16.msra.mxu1 %v15996_v55  ;;  %v6669_v55 = vld [vmem:[%s16953_s14 + $0x6c8] sm:$0xff] }
 0x52b   : > { %12749 = vmatprep.subr.bf16.mxu1 %v15981_v49  ;;  %v15295_v8 = vcombine.high %v6661_v25, %v6669_v55  ;;  %v6645_v49 = vld [vmem:[%s16953_s14 + $0x608] sm:$0xff]  ;;  %v15294_v10 = vcombine.low %v6661_v25, %v6669_v55 }
 0x52c   : > { %12709 = vmatpush2.bf16.msra.mxu0 %v15724_v9  ;;  %v6653_v9 = vld [vmem:[%s16953_s14 + $0x648] sm:$0xff] }
 0x52d   : > { %12760 = vmatprep.subr.bf16.mxu0 %v15199_v12  ;;  %v15279_v12 = vcombine.high %v6645_v49, %v6653_v9  ;;  %v15278_v51 = vcombine.low %v6645_v49, %v6653_v9 }
 0x52e   : > { %12750 = vmatpush2.bf16.msra.mxu1 %v15980_v13  ;;  %v6629_v13 = vld [vmem:[%s16953_s14 + $0x588] sm:$0xff] }
 0x52f   : > { %12801 = vmatprep.subr.bf16.mxu1 %v15455_v46  ;;  %v18149_v19 = vpop.f32.mrf.mxu0  ;;  %12711 = vmatmul.mubr.bf16.vlgmr.msra.gmra.mxu0 %v18145_v36  ;;  %v15263_v46 = vcombine.high %v6629_v13, %v6637_v39  ;;  %v15262_v18 = vcombine.low %v6629_v13, %v6637_v39  ;;  %v6805_v13 = vld [vmem:[%s16953_s14 + $0xb08] sm:$0xff] }
 0x530   : > { %12761 = vmatpush1.bf16.msra.mxu0 %v15198_v14  ;;  %12792 = vmatprep.mubr.bf16.mxu0 %v17977_v17  ;;  %v6613_v14 = vld [vmem:[%s16953_s14 + $0x508] sm:$0xff] }
 0x531   : > { %v18152_v23 = vpop.f32.mrf.mxu1  ;;  %v18155_v63 = vpop.f32.mrf.mxu0  ;;  %12762 = vmatprep.subr.bf16.mxu0 %v15183_v54  ;;  %v6621_v54 = vld [vmem:[%s16953_s14 + $0x548] sm:$0xff] }
 0x532   : > { %v15247_v7 = vcombine.high %v6613_v14, %v6621_v54  ;;  %v15246_v33 = vcombine.low %v6613_v14, %v6621_v54  ;;  %v6813_v39 = vld [vmem:[%s16953_s14 + $0xb48] sm:$0xff] }
 0x533   : > { %v18157_v32 = vpop.f32.mrf.mxu1  ;;  %v6294_v35 = vpop.f32.mrf.mxu0 }
 0x534   : > { %12763 = vmatpush1.bf16.msra.mxu0 %v15182_v29  ;;  %v6597_v29 = vld [vmem:[%s16953_s14 + $0x488] sm:$0xff]  ;;  %v3162_v35 = vsub.s32 6, %v17652_v21 }
 0x535   : > { %v6335_v38 = vpop.f32.mrf.mxu1  ;;  %v6295_v62 = vpop.f32.mrf.mxu0  ;;  %12764 = vmatprep.subr.bf16.mxu0 %v15167_v30  ;;  %v6605_v30 = vld [vmem:[%s16953_s14 + $0x4c8] sm:$0xff] }
 0x536   : > { %v15231_v20 = vcombine.high %v6597_v29, %v6605_v30  ;;  %v6581_v38 = vld [vmem:[%s16953_s14 + $0x408] sm:$0xff]  ;;  %v3166_v62 = vsub.s32 7, %v17652_v21  ;;  %v3163_v45 = vrot.slane %v16273_v44, %v3162_v35 }
 0x537   : > { %v6336_v42 = vpop.f32.mrf.mxu1  ;;  %v7069_v21 = vld [vmem:[%s16953_s14 + $0x1348] sm:$0xff] }
 0x538   : > { %12765 = vmatpush1.bf16.msra.mxu0 %v15166_v47  ;;  %v6589_v47 = vld [vmem:[%s16953_s14 + $0x448] sm:$0xff]  ;;  %v3167_v48 = vrot.slane %v16273_v44, %v3166_v62 }
 0x539   : > { %12766 = vmatprep.subr.bf16.mxu0 %v15151_v41  ;;  %v15230_v41 = vcombine.low %v6597_v29, %v6605_v30  ;;  %v15215_v42 = vcombine.high %v6581_v38, %v6589_v47  ;;  %v15214_v37 = vcombine.low %v6581_v38, %v6589_v47  ;;  %v6789_v30 = vld [vmem:[%s16953_s14 + $0xa88] sm:$0xff]  ;;  %v15438_v38 = vcombine.low %v6805_v13, %v6813_v39 }
 0x53a   : > { %v6293_v24 = vadd.f32 %v18155_v63, %v3167_v48  ;;  %v15694_v63 = vcombine.low %v7061_v52, %v7069_v21  ;;  %v7005_v35 = vld [vmem:[%s16953_s14 + $0x1148] sm:$0xff] }
 0x53b   : > { %v6781_v44 = vld [vmem:[%s16953_s14 + $0xa48] sm:$0xff] }
 0x53c   : > { %12767 = vmatpush1.bf16.msra.mxu0 %v15150_v60  ;;  %v7077_v60 = vld [vmem:[%s16953_s14 + $0x1388] sm:$0xff]  ;;  %v6334_v2 = vadd.f32 %v18157_v32, %v6293_v24 }
 0x53d   : > { %12768 = vmatprep.subr.bf16.mxu0 %v15135_v34  ;;  %v7085_v34 = vld [vmem:[%s16953_s14 + $0x13c8] sm:$0xff] }
 0x53e   : > { %v6757_v48 = vld [vmem:[%s16953_s14 + $0x988] sm:$0xff] }
 0x540   : > { %12769 = vmatpush1.bf16.msra.mxu0 %v15134_v15  ;;  %v15711_v15 = vcombine.high %v7077_v60, %v7085_v34 }
 0x541   : > { %12770 = vmatprep.subr.bf16.mxu0 %v15119_v50  ;;  %v6291_v50 = vadd.f32 %v18149_v19, %v3163_v45  ;;  %v6981_v45 = vld [vmem:[%s16953_s14 + $0x1088] sm:$0xff] }
 0x543   : > { %v6332_v59 = vadd.f32 %v18152_v23, %v6291_v50  ;;  %v6973_v50 = vld [vmem:[%s16953_s14 + $0x1048] sm:$0xff] }
 0x544   : > { %12771 = vmatpush1.bf16.msra.mxu0 %v15118_v56  ;;  %v15710_v56 = vcombine.low %v7077_v60, %v7085_v34  ;;  %v6989_v60 = vld [vmem:[%s16953_s14 + $0x10c8] sm:$0xff] }
 0x545   : > { %12772 = vmatprep.subr.bf16.mxu0 %v15103_v57  ;;  %v15695_v57 = vcombine.high %v7061_v52, %v7069_v21  ;;  %v15615_v34 = vcombine.high %v6981_v45, %v6989_v60  ;;  %v15614_v21 = vcombine.low %v6981_v45, %v6989_v60  ;;  %v7125_v45 = vld [vmem:[%s16953_s14 + $0x1508] sm:$0xff] }
 0x546   : > { %v7133_v60 = vld [vmem:[%s16953_s14 + $0x1548] sm:$0xff] }
 0x548   : > { %12773 = vmatpush1.bf16.msra.mxu0 %v15102_v11  ;;  %v7053_v11 = vld [vmem:[%s16953_s14 + $0x12c8] sm:$0xff] }
 0x549   : > { %12774 = vmatprep.subr.bf16.mxu0 %v15087_v1 }
 0x54c   : > { %12775 = vmatpush1.bf16.msra.mxu0 %v15086_v28 }
 0x54d   : > { %12776 = vmatprep.subr.bf16.mxu0 %v15327_v3  ;;  %v15679_v3 = vcombine.high %v7045_v40, %v7053_v11 }
 0x550   : > { %12777 = vmatpush2.bf16.msra.mxu0 %v15326_v0  ;;  %v7029_v0 = vld [vmem:[%s16953_s14 + $0x1208] sm:$0xff] }
 0x551   : > { %12778 = vmatprep.subr.bf16.mxu0 %v15311_v5  ;;  %v7037_v5 = vld [vmem:[%s16953_s14 + $0x1248] sm:$0xff] }
 0x552   : > { %v15663_v9 = vcombine.high %v7029_v0, %v7037_v5 }
 0x554   : > { %12779 = vmatpush2.bf16.msra.mxu0 %v15310_v43  ;;  %v15678_v43 = vcombine.low %v7045_v40, %v7053_v11  ;;  %v7205_v40 = vld [vmem:[%s16953_s14 + $0x1788] sm:$0xff] }
 0x555   : > { %12780 = vmatprep.subr.bf16.mxu0 %v15295_v8  ;;  %v7213_v11 = vld [vmem:[%s16953_s14 + $0x17c8] sm:$0xff] }
 0x558   : > { %12781 = vmatpush2.bf16.msra.mxu0 %v15294_v10 }
 0x559   : > { %12782 = vmatprep.subr.bf16.mxu0 %v15279_v12 }
 0x55c   : > { %12783 = vmatpush2.bf16.msra.mxu0 %v15278_v51  ;;  %v7013_v51 = vld [vmem:[%s16953_s14 + $0x1188] sm:$0xff] }
 0x55d   : > { %12784 = vmatprep.subr.bf16.mxu0 %v15263_v46  ;;  %v7021_v46 = vld [vmem:[%s16953_s14 + $0x11c8] sm:$0xff] }
 0x55e   : > { %v15647_v29 = vcombine.high %v7013_v51, %v7021_v46  ;;  %v15646_v47 = vcombine.low %v7013_v51, %v7021_v46  ;;  %v7165_v51 = vld [vmem:[%s16953_s14 + $0x1648] sm:$0xff] }
 0x560   : > { %12785 = vmatpush2.bf16.msra.mxu0 %v15262_v18  ;;  %v15662_v18 = vcombine.low %v7029_v0, %v7037_v5 }
 0x561   : > { %12786 = vmatprep.subr.bf16.mxu0 %v15247_v7  ;;  %v15439_v7 = vcombine.high %v6805_v13, %v6813_v39  ;;  %v6957_v13 = vld [vmem:[%s16953_s14 + $0xfc8] sm:$0xff] }
 0x562   : > { %v7157_v39 = vld [vmem:[%s16953_s14 + $0x1608] sm:$0xff] }
 0x564   : > { %12787 = vmatpush2.bf16.msra.mxu0 %v15246_v33  ;;  %v6797_v33 = vld [vmem:[%s16953_s14 + $0xac8] sm:$0xff] }
 0x565   : > { %12788 = vmatprep.subr.bf16.mxu0 %v15231_v20  ;;  %v6997_v20 = vld [vmem:[%s16953_s14 + $0x1108] sm:$0xff]  ;;  %v15423_v62 = vcombine.high %v6789_v30, %v6797_v33  ;;  %v15422_v61 = vcombine.low %v6789_v30, %v6797_v33 }
 0x566   : > { %v15630_v53 = vcombine.low %v6997_v20, %v7005_v35  ;;  %v6933_v30 = vld [vmem:[%s16953_s14 + $0xf08] sm:$0xff] }
 0x567   : > { %v6941_v33 = vld [vmem:[%s16953_s14 + $0xf48] sm:$0xff] }
 0x568   : > { %12789 = vmatpush2.bf16.msra.mxu0 %v15230_v41  ;;  %v15631_v41 = vcombine.high %v6997_v20, %v7005_v35  ;;  %v7141_v20 = vld [vmem:[%s16953_s14 + $0x1588] sm:$0xff] }
 0x569   : > { %12790 = vmatprep.subr.bf16.mxu0 %v15215_v42  ;;  %v6773_v42 = vld [vmem:[%s16953_s14 + $0xa08] sm:$0xff] }
 0x56a   : > { %v15406_v52 = vcombine.low %v6773_v42, %v6781_v44  ;;  %v7149_v35 = vld [vmem:[%s16953_s14 + $0x15c8] sm:$0xff] }
 0x56c   : > { %12791 = vmatpush2.bf16.msra.mxu0 %v15214_v37  ;;  %v6765_v37 = vld [vmem:[%s16953_s14 + $0x9c8] sm:$0xff] }
 0x56d   : > { %12842 = vmatprep.subr.bf16.mxu0 %v15711_v15  ;;  %v6965_v15 = vld [vmem:[%s16953_s14 + $0x1008] sm:$0xff]  ;;  %v15391_v24 = vcombine.high %v6757_v48, %v6765_v37 }
 0x56f   : > { %v6372_v1 = vpop.f32.mrf.mxu0  ;;  %12793 = vmatmul.mubr.bf16.vlgmr.msra.gmra.mxu0 %v18058_v58 }
 0x570   : > { %v6373_v19 = vadd.f32 %v6372_v1, %v6332_v59  ;;  %12843 = vmatpush1.bf16.msra.mxu0 %v15710_v56  ;;  %12874 = vmatprep.mubr.bf16.mxu0 %v18081_v16  ;;  %v15599_v56 = vcombine.high %v6965_v15, %v6973_v50  ;;  %v6749_v59 = vld [vmem:[%s16953_s14 + $0x948] sm:$0xff]  ;;  %v15390_v1 = vcombine.low %v6757_v48, %v6765_v37 }
 0x571   : > { %v6413_v27 = vpop.f32.mrf.mxu1  ;;  %v6374_v28 = vpop.f32.mrf.mxu0  ;;  %12844 = vmatprep.subr.bf16.mxu0 %v15695_v57  ;;  %v6741_v57 = vld [vmem:[%s16953_s14 + $0x908] sm:$0xff] }
 0x572   : > { %v6414_v26 = vadd.f32 %v6413_v27, %v6373_v19  ;;  %v6375_v23 = vadd.f32 %v6374_v28, %v6334_v2  ;;  %v15598_v2 = vcombine.low %v6965_v15, %v6973_v50  ;;  %v15375_v19 = vcombine.high %v6741_v57, %v6749_v59  ;;  %v6733_v28 = vld [vmem:[%s16953_s14 + $0x8c8] sm:$0xff] }
 0x573   : > { %v6415_v4 = vpop.f32.mrf.mxu1  ;;  %v6376_v25 = vpop.f32.mrf.mxu0  ;;  %v15839_v27 = vcombine.high %v7205_v40, %v7213_v11  ;;  %v6901_v48 = vld [vmem:[%s16953_s14 + $0xe08] sm:$0xff] }
 0x574   : > { %v6416_v32 = vadd.f32 %v6415_v4, %v6375_v23  ;;  %12845 = vmatpush1.bf16.msra.mxu0 %v15694_v63  ;;  %v6426_v8 = vmax.f32 %v6414_v26, 0.0  ;;  %v6725_v63 = vld [vmem:[%s16953_s14 + $0x888] sm:$0xff]  ;;  %v15374_v23 = vcombine.low %v6741_v57, %v6749_v59  ;;  %v15838_v4 = vcombine.low %v7205_v40, %v7213_v11 }
 0x575   : > { %v6417_v55 = vpop.f32.mrf.mxu1  ;;  %v6377_v49 = vpop.f32.mrf.mxu0  ;;  %12846 = vmatprep.subr.bf16.mxu0 %v15679_v3  ;;  %v7189_v3 = vld [vmem:[%s16953_s14 + $0x1708] sm:$0xff]  ;;  %v15359_v0 = vcombine.high %v6725_v63, %v6733_v28 }
 0x576   : > { %v6427_v10 = vmax.f32 %v6416_v32, 0.0  ;;  %v18208_v54 = vpack.c.bf16 %v6426_v8, %v6426_v8  ;;  %v7197_v26 = vld [vmem:[%s16953_s14 + $0x1748] sm:$0xff]  ;;  %v15358_v8 = vcombine.low %v6725_v63, %v6733_v28 }
 0x577   : > { %v6418_v12 = vpop.f32.mrf.mxu1  ;;  %v15823_v5 = vcombine.high %v7189_v3, %v7197_v26  ;;  %v6709_v25 = vld [vmem:[%s16953_s14 + $0x808] sm:$0xff]  ;;  %v15822_v49 = vcombine.low %v7189_v3, %v7197_v26  ;;  %v6566_v3 = vld [vmem:[%s16953_s14 + $0x390] sm:$0xff] }
 0x578   : > { %v18206_v14 = vpack.c.bf16 %v6427_v10, %v6427_v10  ;;  %12847 = vmatpush1.bf16.msra.mxu0 %v15678_v43  ;;  %v6717_v32 = vld [vmem:[%s16953_s14 + $0x848] sm:$0xff]  ;;  %v6574_v26 = vld [vmem:[%s16953_s14 + $0x3d0] sm:$0xff] }
 0x579   : > { %12848 = vmatprep.subr.bf16.mxu0 %v15663_v9  ;;  %v7173_v55 = vld [vmem:[%s16953_s14 + $0x1688] sm:$0xff]  ;;  %v15343_v9 = vcombine.high %v6709_v25, %v6717_v32  ;;  %v15342_v46 = vcombine.low %v6709_v25, %v6717_v32 }
 0x57a   : > { %12751 = vmatprep.mubr.bf16.mxu1 %v18206_v14  ;;  %v7181_v43 = vld [vmem:[%s16953_s14 + $0x16c8] sm:$0xff] }
 0x57b   : > { %12752 = vmatmul.mubr.bf16.vlgmr.msra.gmra.mxu1 %v18208_v54  ;;  %v15807_v10 = vcombine.high %v7173_v55, %v7181_v43  ;;  %v6949_v12 = vld [vmem:[%s16953_s14 + $0xf88] sm:$0xff] }
 0x57c   : > { %12802 = vmatpush1.bf16.msra.mxu1 %v15454_v31  ;;  %12833 = vmatprep.mubr.bf16.mxu1 %v17982_v22  ;;  %v15407_v31 = vcombine.high %v6773_v42, %v6781_v44  ;;  %v6917_v42 = vld [vmem:[%s16953_s14 + $0xe88] sm:$0xff] }
 0x57d   : > { %12849 = vmatpush1.bf16.msra.mxu0 %v15662_v18  ;;  %12803 = vmatprep.subr.bf16.mxu1 %v15439_v7  ;;  %v15806_v18 = vcombine.low %v7173_v55, %v7181_v43  ;;  %v15583_v7 = vcombine.high %v6949_v12, %v6957_v13  ;;  %v6925_v44 = vld [vmem:[%s16953_s14 + $0xec8] sm:$0xff]  ;;  %v6550_v55 = vld [vmem:[%s16953_s14 + $0x310] sm:$0xff] }
 0x57e   : > { %12850 = vmatprep.subr.bf16.mxu0 %v15647_v29  ;;  %v15791_v29 = vcombine.high %v7157_v39, %v7165_v51  ;;  %v6909_v37 = vld [vmem:[%s16953_s14 + $0xe48] sm:$0xff]  ;;  %v6558_v43 = vld [vmem:[%s16953_s14 + $0x350] sm:$0xff] }
 0x57f   : > { %v7109_v15 = vld [vmem:[%s16953_s14 + $0x1488] sm:$0xff] }
 0x580   : > { %12804 = vmatpush1.bf16.msra.mxu1 %v15438_v38  ;;  %v15582_v38 = vcombine.low %v6949_v12, %v6957_v13  ;;  %v7117_v50 = vld [vmem:[%s16953_s14 + $0x14c8] sm:$0xff] }
 0x581   : > { %12851 = vmatpush1.bf16.msra.mxu0 %v15646_v47  ;;  %12805 = vmatprep.subr.bf16.mxu1 %v15423_v62  ;;  %v15790_v47 = vcombine.low %v7157_v39, %v7165_v51  ;;  %v15567_v62 = vcombine.high %v6933_v30, %v6941_v33  ;;  %v6885_v57 = vld [vmem:[%s16953_s14 + $0xd88] sm:$0xff]  ;;  %v6534_v51 = vld [vmem:[%s16953_s14 + $0x290] sm:$0xff] }
 0x582   : > { %12852 = vmatprep.subr.bf16.mxu0 %v15631_v41  ;;  %v15775_v41 = vcombine.high %v7141_v20, %v7149_v35  ;;  %v6893_v59 = vld [vmem:[%s16953_s14 + $0xdc8] sm:$0xff] }
 0x583   : > { %v7093_v40 = vld [vmem:[%s16953_s14 + $0x1408] sm:$0xff] }
 0x584   : > { %12806 = vmatpush1.bf16.msra.mxu1 %v15422_v61  ;;  %v15566_v61 = vcombine.low %v6933_v30, %v6941_v33  ;;  %v7101_v11 = vld [vmem:[%s16953_s14 + $0x1448] sm:$0xff]  ;;  %v15184_v33 = vcombine.low %v6550_v55, %v6558_v43 }
 0x585   : > { %12853 = vmatpush1.bf16.msra.mxu0 %v15630_v53  ;;  %12807 = vmatprep.subr.bf16.mxu1 %v15407_v31  ;;  %v15774_v53 = vcombine.low %v7141_v20, %v7149_v35  ;;  %v15551_v31 = vcombine.high %v6917_v42, %v6925_v44  ;;  %v6869_v63 = vld [vmem:[%s16953_s14 + $0xd08] sm:$0xff] }
 0x586   : > { %12854 = vmatprep.subr.bf16.mxu0 %v15615_v34  ;;  %v15759_v34 = vcombine.high %v7125_v45, %v7133_v60  ;;  %v6877_v28 = vld [vmem:[%s16953_s14 + $0xd48] sm:$0xff] }
 0x587   : > { %v6853_v25 = vld [vmem:[%s16953_s14 + $0xc88] sm:$0xff] }
 0x588   : > { %12808 = vmatpush1.bf16.msra.mxu1 %v15406_v52  ;;  %v15550_v52 = vcombine.low %v6917_v42, %v6925_v44  ;;  %v6861_v32 = vld [vmem:[%s16953_s14 + $0xcc8] sm:$0xff]  ;;  %v6518_v44 = vld [vmem:[%s16953_s14 + $0x210] sm:$0xff] }
 0x589   : > { %12855 = vmatpush1.bf16.msra.mxu0 %v15614_v21  ;;  %12809 = vmatprep.subr.bf16.mxu1 %v15391_v24  ;;  %v15758_v21 = vcombine.low %v7125_v45, %v7133_v60  ;;  %v15535_v24 = vcombine.high %v6901_v48, %v6909_v37  ;;  %v6837_v12 = vld [vmem:[%s16953_s14 + $0xc08] sm:$0xff]  ;;  %v6526_v45 = vld [vmem:[%s16953_s14 + $0x250] sm:$0xff] }
 0x58a   : > { %12856 = vmatprep.subr.bf16.mxu0 %v15599_v56  ;;  %v15743_v56 = vcombine.high %v7109_v15, %v7117_v50  ;;  %v6845_v13 = vld [vmem:[%s16953_s14 + $0xc48] sm:$0xff] }
 0x58b   : > { %v15471_v20 = vcombine.high %v6837_v12, %v6845_v13 }
 0x58c   : > { %12810 = vmatpush1.bf16.msra.mxu1 %v15390_v1  ;;  %v15534_v1 = vcombine.low %v6901_v48, %v6909_v37  ;;  %v15153_v37 = vcombine.high %v6518_v44, %v6526_v45 }
 0x58d   : > { %12857 = vmatpush1.bf16.msra.mxu0 %v15598_v2  ;;  %12811 = vmatprep.subr.bf16.mxu1 %v15375_v19  ;;  %v15742_v2 = vcombine.low %v7109_v15, %v7117_v50  ;;  %v15519_v19 = vcombine.high %v6885_v57, %v6893_v59  ;;  %v7317_v15 = vld [vmem:[%s16953_s14 + $0x1b08] sm:$0xff] }
 0x58e   : > { %12858 = vmatprep.subr.bf16.mxu0 %v15839_v27  ;;  %v15727_v27 = vcombine.high %v7093_v40, %v7101_v11  ;;  %v7325_v50 = vld [vmem:[%s16953_s14 + $0x1b48] sm:$0xff] }
 0x590   : > { %12812 = vmatpush1.bf16.msra.mxu1 %v15374_v23  ;;  %v15518_v23 = vcombine.low %v6885_v57, %v6893_v59  ;;  %v15951_v57 = vcombine.high %v7317_v15, %v7325_v50 }
 0x591   : > { %12859 = vmatpush2.bf16.msra.mxu0 %v15838_v4  ;;  %12813 = vmatprep.subr.bf16.mxu1 %v15359_v0  ;;  %v15726_v4 = vcombine.low %v7093_v40, %v7101_v11  ;;  %v15503_v0 = vcombine.high %v6869_v63, %v6877_v28  ;;  %v7301_v40 = vld [vmem:[%s16953_s14 + $0x1a88] sm:$0xff] }
 0x592   : > { %12860 = vmatprep.subr.bf16.mxu0 %v15823_v5  ;;  %v15201_v5 = vcombine.high %v6566_v3, %v6574_v26  ;;  %v7309_v11 = vld [vmem:[%s16953_s14 + $0x1ac8] sm:$0xff] }
 0x594   : > { %12814 = vmatpush1.bf16.msra.mxu1 %v15358_v8  ;;  %v15502_v8 = vcombine.low %v6869_v63, %v6877_v28  ;;  %v15935_v63 = vcombine.high %v7301_v40, %v7309_v11 }
 0x595   : > { %12861 = vmatpush2.bf16.msra.mxu0 %v15822_v49  ;;  %12815 = vmatprep.subr.bf16.mxu1 %v15343_v9  ;;  %v15200_v49 = vcombine.low %v6566_v3, %v6574_v26  ;;  %v15487_v9 = vcombine.high %v6853_v25, %v6861_v32  ;;  %v7285_v3 = vld [vmem:[%s16953_s14 + $0x1a08] sm:$0xff] }
 0x596   : > { %12862 = vmatprep.subr.bf16.mxu0 %v15807_v10  ;;  %v15185_v10 = vcombine.high %v6550_v55, %v6558_v43  ;;  %v7293_v26 = vld [vmem:[%s16953_s14 + $0x1a48] sm:$0xff] }
 0x597   : > { %v7269_v55 = vld [vmem:[%s16953_s14 + $0x1988] sm:$0xff] }
 0x598   : > { %12816 = vmatpush1.bf16.msra.mxu1 %v15342_v46  ;;  %v6542_v46 = vld [vmem:[%s16953_s14 + $0x2d0] sm:$0xff]  ;;  %v7277_v43 = vld [vmem:[%s16953_s14 + $0x19c8] sm:$0xff] }
 0x599   : > { %12863 = vmatpush2.bf16.msra.mxu0 %v15806_v18  ;;  %12817 = vmatprep.subr.bf16.mxu1 %v15583_v7  ;;  %v15486_v7 = vcombine.low %v6853_v25, %v6861_v32  ;;  %v15919_v25 = vcombine.high %v7285_v3, %v7293_v26 }
 0x59a   : > { %12864 = vmatprep.subr.bf16.mxu0 %v15791_v29 }
 0x59c   : > { %12818 = vmatpush2.bf16.msra.mxu1 %v15582_v38  ;;  %v15169_v38 = vcombine.high %v6534_v51, %v6542_v46 }
 0x59d   : > { %12865 = vmatpush2.bf16.msra.mxu0 %v15790_v47  ;;  %12819 = vmatprep.subr.bf16.mxu1 %v15567_v62  ;;  %v7333_v47 = vld [vmem:[%s16953_s14 + $0x1b88] sm:$0xff] }
 0x59e   : > { %12866 = vmatprep.subr.bf16.mxu0 %v15775_v41  ;;  %v7341_v62 = vld [vmem:[%s16953_s14 + $0x1bc8] sm:$0xff] }
 0x5a0   : > { %12820 = vmatpush2.bf16.msra.mxu1 %v15566_v61  ;;  %v15470_v61 = vcombine.low %v6837_v12, %v6845_v13  ;;  %v15903_v12 = vcombine.high %v7269_v55, %v7277_v43 }
 0x5a1   : > { %12867 = vmatpush2.bf16.msra.mxu0 %v15774_v53  ;;  %12821 = vmatprep.subr.bf16.mxu1 %v15551_v31  ;;  %v15168_v31 = vcombine.low %v6534_v51, %v6542_v46  ;;  %v7261_v51 = vld [vmem:[%s16953_s14 + $0x1948] sm:$0xff]  ;;  %v6694_v46 = vld [vmem:[%s16953_s14 + $0x790] sm:$0xff] }
 0x5a2   : > { %12868 = vmatprep.subr.bf16.mxu0 %v15759_v34  ;;  %v15967_v34 = vcombine.high %v7333_v47, %v7341_v62 }
 0x5a4   : > { %12822 = vmatpush2.bf16.msra.mxu1 %v15550_v52  ;;  %v6502_v52 = vld [vmem:[%s16953_s14 + $0x190] sm:$0xff] }
 0x5a5   : > { %12869 = vmatpush2.bf16.msra.mxu0 %v15758_v21  ;;  %12823 = vmatprep.subr.bf16.mxu1 %v15535_v24  ;;  %v6510_v21 = vld [vmem:[%s16953_s14 + $0x1d0] sm:$0xff]  ;;  %v15966_v24 = vcombine.low %v7333_v47, %v7341_v62 }
 0x5a6   : > { %12870 = vmatprep.subr.bf16.mxu0 %v15743_v56  ;;  %v15152_v56 = vcombine.low %v6518_v44, %v6526_v45  ;;  %v15137_v59 = vcombine.high %v6502_v52, %v6510_v21  ;;  %v6678_v47 = vld [vmem:[%s16953_s14 + $0x710] sm:$0xff] }
 0x5a7   : > { %v6686_v62 = vld [vmem:[%s16953_s14 + $0x750] sm:$0xff] }
 0x5a8   : > { %12824 = vmatpush2.bf16.msra.mxu1 %v15534_v1  ;;  %v6486_v1 = vld [vmem:[%s16953_s14 + $0x110] sm:$0xff] }
 0x5a9   : > { %12871 = vmatpush2.bf16.msra.mxu0 %v15742_v2  ;;  %12825 = vmatprep.subr.bf16.mxu1 %v15519_v19  ;;  %v6494_v2 = vld [vmem:[%s16953_s14 + $0x150] sm:$0xff]  ;;  %v15950_v19 = vcombine.low %v7317_v15, %v7325_v50 }
 0x5aa   : > { %12872 = vmatprep.subr.bf16.mxu0 %v15727_v27  ;;  %v15136_v27 = vcombine.low %v6502_v52, %v6510_v21  ;;  %v15121_v28 = vcombine.high %v6486_v1, %v6494_v2  ;;  %v7461_v52 = vld [vmem:[%s16953_s14 + $0x1f88] sm:$0xff] }
 0x5ab   : > { %v7469_v21 = vld [vmem:[%s16953_s14 + $0x1fc8] sm:$0xff] }
 0x5ac   : > { %12826 = vmatpush2.bf16.msra.mxu1 %v15518_v23  ;;  %v6470_v23 = vld [vmem:[%s16953_s14 + $0x90] sm:$0xff] }
 0x5ad   : > { %12873 = vmatpush2.bf16.msra.mxu0 %v15726_v4  ;;  %12827 = vmatprep.subr.bf16.mxu1 %v15503_v0  ;;  %v6478_v4 = vld [vmem:[%s16953_s14 + $0xd0] sm:$0xff]  ;;  %v15934_v0 = vcombine.low %v7301_v40, %v7309_v11  ;;  %v16095_v40 = vcombine.high %v7461_v52, %v7469_v21 }
 0x5ae   : > { %12924 = vmatprep.subr.bf16.mxu0 %v15201_v5  ;;  %v15120_v5 = vcombine.low %v6486_v1, %v6494_v2  ;;  %v15105_v32 = vcombine.high %v6470_v23, %v6478_v4  ;;  %v7445_v1 = vld [vmem:[%s16953_s14 + $0x1f08] sm:$0xff] }
 0x5af   : > { %v12630_v39 = vpop.f32.mrf.mxu0  ;;  %v7453_v2 = vld [vmem:[%s16953_s14 + $0x1f48] sm:$0xff] }
 0x5b0   : > { %12828 = vmatpush2.bf16.msra.mxu1 %v15502_v8  ;;  %12875 = vmatmul.mubr.bf16.vlgmr.msra.gmra.mxu0 %v18145_v36  ;;  %v6454_v8 = vld [vmem:[%s16953_s14 + $0x10] sm:$0xff] }
 0x5b1   : > { %v12671_v18 = vpop.f32.mrf.mxu1  ;;  %12925 = vmatpush1.bf16.msra.mxu0 %v15200_v49  ;;  %12956 = vmatprep.mubr.bf16.mxu0 %v17977_v17  ;;  %v12632_v30 = vpop.f32.mrf.mxu0  ;;  %v6462_v49 = vld [vmem:[%s16953_s14 + $0x50] sm:$0xff] }
 0x5b2   : > { %v18273_v29 = vadd.f32 %v12671_v18, %v12630_v39  ;;  %12829 = vmatprep.subr.bf16.mxu1 %v15487_v9  ;;  %12926 = vmatprep.subr.bf16.mxu0 %v15185_v10  ;;  %v15918_v9 = vcombine.low %v7285_v3, %v7293_v26  ;;  %v15104_v10 = vcombine.low %v6470_v23, %v6478_v4  ;;  %v7253_v39 = vld [vmem:[%s16953_s14 + $0x1908] sm:$0xff]  ;;  %v6702_v18 = vld [vmem:[%s16953_s14 + $0x7d0] sm:$0xff] }
 0x5b3   : > { %v12673_v35 = vpop.f32.mrf.mxu1  ;;  %v12634_v42 = vpop.f32.mrf.mxu0  ;;  %v15089_v13 = vcombine.high %v6454_v8, %v6462_v49  ;;  %v15328_v44 = vcombine.low %v6694_v46, %v6702_v18  ;;  %v16079_v3 = vcombine.high %v7445_v1, %v7453_v2  ;;  %v7429_v23 = vld [vmem:[%s16953_s14 + $0x1e88] sm:$0xff] }
 0x5b4   : > { %v18278_v41 = vadd.f32 %v12673_v35, %v12632_v30  ;;  %12830 = vmatpush2.bf16.msra.mxu1 %v15486_v7  ;;  %v15902_v7 = vcombine.low %v7269_v55, %v7277_v43  ;;  %v15088_v30 = vcombine.low %v6454_v8, %v6462_v49  ;;  %v7237_v35 = vld [vmem:[%s16953_s14 + $0x1888] sm:$0xff]  ;;  %v15886_v42 = vcombine.low %v7253_v39, %v7261_v51 }
 0x5b5   : > { %v12675_v60 = vpop.f32.mrf.mxu1  ;;  %12927 = vmatpush1.bf16.msra.mxu0 %v15184_v33  ;;  %v12635_v53 = vpop.f32.mrf.mxu0  ;;  %12831 = vmatprep.subr.bf16.mxu1 %v15471_v20  ;;  %v15887_v33 = vcombine.high %v7253_v39, %v7261_v51  ;;  %v15329_v20 = vcombine.high %v6694_v46, %v6702_v18  ;;  %v7437_v4 = vld [vmem:[%s16953_s14 + $0x1ec8] sm:$0xff] }
 0x5b6   : > { %12928 = vmatprep.subr.bf16.mxu0 %v15169_v38  ;;  %v7245_v38 = vld [vmem:[%s16953_s14 + $0x18c8] sm:$0xff]  ;;  %v15313_v60 = vcombine.high %v6678_v47, %v6686_v62  ;;  %v16063_v55 = vcombine.high %v7429_v23, %v7437_v4 }
 0x5b7   : > { %v12676_v48 = vpop.f32.mrf.mxu1  ;;  %v15871_v45 = vcombine.high %v7237_v35, %v7245_v38  ;;  %v7229_v53 = vld [vmem:[%s16953_s14 + $0x1848] sm:$0xff] }
 0x5b8   : > { %12832 = vmatpush2.bf16.msra.mxu1 %v15470_v61  ;;  %v7221_v61 = vld [vmem:[%s16953_s14 + $0x1808] sm:$0xff]  ;;  %v15870_v48 = vcombine.low %v7237_v35, %v7245_v38 }
 0x5b9   : > { %12929 = vmatpush1.bf16.msra.mxu0 %v15168_v31  ;;  %12883 = vmatprep.subr.bf16.mxu1 %v15967_v34  ;;  %v6662_v31 = vld [vmem:[%s16953_s14 + $0x690] sm:$0xff]  ;;  %v15855_v15 = vcombine.high %v7221_v61, %v7229_v53  ;;  %v7413_v8 = vld [vmem:[%s16953_s14 + $0x1e08] sm:$0xff] }
 0x5ba   : > { %12930 = vmatprep.subr.bf16.mxu0 %v15153_v37  ;;  %v6670_v34 = vld [vmem:[%s16953_s14 + $0x6d0] sm:$0xff]  ;;  %v15312_v37 = vcombine.low %v6678_v47, %v6686_v62  ;;  %v7421_v49 = vld [vmem:[%s16953_s14 + $0x1e48] sm:$0xff] }
 0x5bb   : > { %12834 = vmatmul.mubr.bf16.vlgmr.msra.gmra.mxu1 %v18060_v6  ;;  %v15297_v50 = vcombine.high %v6662_v31, %v6670_v34  ;;  %v16047_v39 = vcombine.high %v7413_v8, %v7421_v49  ;;  %v7397_v46 = vld [vmem:[%s16953_s14 + $0x1d88] sm:$0xff] }
 0x5bc   : > { %12884 = vmatpush1.bf16.msra.mxu1 %v15966_v24  ;;  %12915 = vmatprep.mubr.bf16.mxu1 %v18206_v14  ;;  %v6646_v24 = vld [vmem:[%s16953_s14 + $0x610] sm:$0xff]  ;;  %v7405_v18 = vld [vmem:[%s16953_s14 + $0x1dc8] sm:$0xff] }
 0x5bd   : > { %12931 = vmatpush1.bf16.msra.mxu0 %v15152_v56  ;;  %12885 = vmatprep.subr.bf16.mxu1 %v15951_v57  ;;  %v6654_v56 = vld [vmem:[%s16953_s14 + $0x650] sm:$0xff]  ;;  %v15854_v57 = vcombine.low %v7221_v61, %v7229_v53  ;;  %v16031_v35 = vcombine.high %v7397_v46, %v7405_v18  ;;  %v7381_v47 = vld [vmem:[%s16953_s14 + $0x1d08] sm:$0xff] }
 0x5be   : > { %12932 = vmatprep.subr.bf16.mxu0 %v15137_v59  ;;  %v15296_v59 = vcombine.low %v6662_v31, %v6670_v34  ;;  %v15281_v11 = vcombine.high %v6646_v24, %v6654_v56  ;;  %v7389_v62 = vld [vmem:[%s16953_s14 + $0x1d48] sm:$0xff] }
 0x5bf   : > { %v16015_v61 = vcombine.high %v7381_v47, %v7389_v62  ;;  %v7365_v31 = vld [vmem:[%s16953_s14 + $0x1c88] sm:$0xff] }
 0x5c0   : > { %12886 = vmatpush1.bf16.msra.mxu1 %v15950_v19  ;;  %v6630_v19 = vld [vmem:[%s16953_s14 + $0x590] sm:$0xff]  ;;  %v7373_v34 = vld [vmem:[%s16953_s14 + $0x1cc8] sm:$0xff] }
 0x5c1   : > { %12933 = vmatpush1.bf16.msra.mxu0 %v15136_v27  ;;  %12887 = vmatprep.subr.bf16.mxu1 %v15935_v63  ;;  %v6638_v27 = vld [vmem:[%s16953_s14 + $0x5d0] sm:$0xff]  ;;  %v16094_v63 = vcombine.low %v7461_v52, %v7469_v21  ;;  %v15999_v52 = vcombine.high %v7365_v31, %v7373_v34 }
 0x5c2   : > { %12934 = vmatprep.subr.bf16.mxu0 %v15121_v28  ;;  %v15280_v28 = vcombine.low %v6646_v24, %v6654_v56  ;;  %v15265_v26 = vcombine.high %v6630_v19, %v6638_v27  ;;  %v7349_v24 = vld [vmem:[%s16953_s14 + $0x1c08] sm:$0xff] }
 0x5c3   : > { %v7357_v56 = vld [vmem:[%s16953_s14 + $0x1c48] sm:$0xff] }
 0x5c4   : > { %12888 = vmatpush1.bf16.msra.mxu1 %v15934_v0  ;;  %v6614_v0 = vld [vmem:[%s16953_s14 + $0x510] sm:$0xff] }
 0x5c5   : > { %12935 = vmatpush1.bf16.msra.mxu0 %v15120_v5  ;;  %12889 = vmatprep.subr.bf16.mxu1 %v15919_v25  ;;  %v6622_v5 = vld [vmem:[%s16953_s14 + $0x550] sm:$0xff]  ;;  %v16078_v25 = vcombine.low %v7445_v1, %v7453_v2  ;;  %v15998_v1 = vcombine.low %v7365_v31, %v7373_v34 }
 0x5c6   : > { %12936 = vmatprep.subr.bf16.mxu0 %v15105_v32  ;;  %v15264_v32 = vcombine.low %v6630_v19, %v6638_v27  ;;  %v15249_v43 = vcombine.high %v6614_v0, %v6622_v5  ;;  %v15983_v27 = vcombine.high %v7349_v24, %v7357_v56  ;;  %v6966_v31 = vld [vmem:[%s16953_s14 + $0x1010] sm:$0xff] }
 0x5c7   : > { %v6974_v34 = vld [vmem:[%s16953_s14 + $0x1050] sm:$0xff] }
 0x5c8   : > { %12890 = vmatpush1.bf16.msra.mxu1 %v15918_v9  ;;  %v6598_v9 = vld [vmem:[%s16953_s14 + $0x490] sm:$0xff] }
 0x5c9   : > { %12937 = vmatpush1.bf16.msra.mxu0 %v15104_v10  ;;  %12891 = vmatprep.subr.bf16.mxu1 %v15903_v12  ;;  %v6606_v10 = vld [vmem:[%s16953_s14 + $0x4d0] sm:$0xff]  ;;  %v16062_v12 = vcombine.low %v7429_v23, %v7437_v4 }
 0x5ca   : > { %12938 = vmatprep.subr.bf16.mxu0 %v15089_v13  ;;  %v15248_v13 = vcombine.low %v6614_v0, %v6622_v5  ;;  %v15233_v51 = vcombine.high %v6598_v9, %v6606_v10  ;;  %v7030_v23 = vld [vmem:[%s16953_s14 + $0x1210] sm:$0xff]  ;;  %v15982_v0 = vcombine.low %v7349_v24, %v7357_v56 }
 0x5cb   : > { %v7038_v4 = vld [vmem:[%s16953_s14 + $0x1250] sm:$0xff] }
 0x5cc   : > { %12892 = vmatpush1.bf16.msra.mxu1 %v15902_v7  ;;  %v6582_v7 = vld [vmem:[%s16953_s14 + $0x410] sm:$0xff] }
 0x5cd   : > { %12939 = vmatpush1.bf16.msra.mxu0 %v15088_v30  ;;  %12893 = vmatprep.subr.bf16.mxu1 %v15887_v33  ;;  %v6590_v30 = vld [vmem:[%s16953_s14 + $0x450] sm:$0xff]  ;;  %v16046_v33 = vcombine.low %v7413_v8, %v7421_v49 }
 0x5ce   : > { %12940 = vmatprep.subr.bf16.mxu0 %v15329_v20  ;;  %v15232_v20 = vcombine.low %v6598_v9, %v6606_v10  ;;  %v15217_v38 = vcombine.high %v6582_v7, %v6590_v30  ;;  %v7014_v8 = vld [vmem:[%s16953_s14 + $0x1190] sm:$0xff]  ;;  %v15664_v10 = vcombine.low %v7030_v23, %v7038_v4 }
 0x5cf   : > { %v7022_v49 = vld [vmem:[%s16953_s14 + $0x11d0] sm:$0xff] }
 0x5d0   : > { %12894 = vmatpush1.bf16.msra.mxu1 %v15886_v42  ;;  %v7078_v42 = vld [vmem:[%s16953_s14 + $0x1390] sm:$0xff] }
 0x5d1   : > { %12941 = vmatpush2.bf16.msra.mxu0 %v15328_v44  ;;  %12895 = vmatprep.subr.bf16.mxu1 %v15871_v45  ;;  %v7086_v44 = vld [vmem:[%s16953_s14 + $0x13d0] sm:$0xff]  ;;  %v16030_v45 = vcombine.low %v7397_v46, %v7405_v18 }
 0x5d2   : > { %12942 = vmatprep.subr.bf16.mxu0 %v15313_v60  ;;  %v15216_v60 = vcombine.low %v6582_v7, %v6590_v30  ;;  %v15713_v53 = vcombine.high %v7078_v42, %v7086_v44  ;;  %v6998_v46 = vld [vmem:[%s16953_s14 + $0x1110] sm:$0xff]  ;;  %v15648_v30 = vcombine.low %v7014_v8, %v7022_v49 }
 0x5d3   : > { %v7006_v18 = vld [vmem:[%s16953_s14 + $0x1150] sm:$0xff] }
 0x5d4   : > { %12896 = vmatpush1.bf16.msra.mxu1 %v15870_v48  ;;  %v7062_v48 = vld [vmem:[%s16953_s14 + $0x1310] sm:$0xff] }
 0x5d5   : > { %12943 = vmatpush2.bf16.msra.mxu0 %v15312_v37  ;;  %12897 = vmatprep.subr.bf16.mxu1 %v15855_v15  ;;  %v7070_v37 = vld [vmem:[%s16953_s14 + $0x1350] sm:$0xff]  ;;  %v16014_v15 = vcombine.low %v7381_v47, %v7389_v62 }
 0x5d6   : > { %12944 = vmatprep.subr.bf16.mxu0 %v15297_v50  ;;  %v15712_v50 = vcombine.low %v7078_v42, %v7086_v44  ;;  %v15697_v21 = vcombine.high %v7062_v48, %v7070_v37  ;;  %v15696_v19 = vcombine.low %v7062_v48, %v7070_v37  ;;  %v6982_v47 = vld [vmem:[%s16953_s14 + $0x1090] sm:$0xff]  ;;  %v15632_v44 = vcombine.low %v6998_v46, %v7006_v18 }
 0x5d7   : > { %v6990_v62 = vld [vmem:[%s16953_s14 + $0x10d0] sm:$0xff] }
 0x5d8   : > { %12898 = vmatpush1.bf16.msra.mxu1 %v15854_v57  ;;  %v15616_v37 = vcombine.low %v6982_v47, %v6990_v62  ;;  %v7206_v24 = vld [vmem:[%s16953_s14 + $0x1790] sm:$0xff] }
 0x5d9   : > { %12945 = vmatpush2.bf16.msra.mxu0 %v15296_v59  ;;  %12899 = vmatprep.subr.bf16.mxu1 %v16095_v40  ;;  %v7046_v59 = vld [vmem:[%s16953_s14 + $0x1290] sm:$0xff] }
 0x5da   : > { %12946 = vmatprep.subr.bf16.mxu0 %v15281_v11  ;;  %v7054_v40 = vld [vmem:[%s16953_s14 + $0x12d0] sm:$0xff] }
 0x5db   : > { %v7214_v56 = vld [vmem:[%s16953_s14 + $0x17d0] sm:$0xff] }
 0x5dc   : > { %12900 = vmatpush2.bf16.msra.mxu1 %v16094_v63 }
 0x5dd   : > { %12947 = vmatpush2.bf16.msra.mxu0 %v15280_v28  ;;  %12901 = vmatprep.subr.bf16.mxu1 %v16079_v3  ;;  %v6822_v28 = vld [vmem:[%s16953_s14 + $0xb90] sm:$0xff] }
 0x5de   : > { %12948 = vmatprep.subr.bf16.mxu0 %v15265_v26  ;;  %v6830_v3 = vld [vmem:[%s16953_s14 + $0xbd0] sm:$0xff] }
 0x5df   : > { %v15456_v9 = vcombine.low %v6822_v28, %v6830_v3 }
 0x5e0   : > { %12902 = vmatpush2.bf16.msra.mxu1 %v16078_v25  ;;  %v15680_v25 = vcombine.low %v7046_v59, %v7054_v40 }
 0x5e1   : > { %12949 = vmatpush2.bf16.msra.mxu0 %v15264_v32  ;;  %12903 = vmatprep.subr.bf16.mxu1 %v16063_v55  ;;  %v15665_v32 = vcombine.high %v7030_v23, %v7038_v4  ;;  %v6806_v55 = vld [vmem:[%s16953_s14 + $0xb10] sm:$0xff] }
 0x5e2   : > { %12950 = vmatprep.subr.bf16.mxu0 %v15249_v43  ;;  %v6814_v43 = vld [vmem:[%s16953_s14 + $0xb50] sm:$0xff] }
 0x5e3   : > { %v15440_v7 = vcombine.low %v6806_v55, %v6814_v43  ;;  %v6710_v4 = vld [vmem:[%s16953_s14 + $0x810] sm:$0xff] }
 0x5e4   : > { %12904 = vmatpush2.bf16.msra.mxu1 %v16062_v12  ;;  %v15441_v12 = vcombine.high %v6806_v55, %v6814_v43 }
 0x5e5   : > { %12951 = vmatpush2.bf16.msra.mxu0 %v15248_v13  ;;  %12905 = vmatprep.subr.bf16.mxu1 %v16047_v39  ;;  %v15649_v13 = vcombine.high %v7014_v8, %v7022_v49  ;;  %v6790_v39 = vld [vmem:[%s16953_s14 + $0xa90] sm:$0xff] }
 0x5e6   : > { %12952 = vmatprep.subr.bf16.mxu0 %v15233_v51  ;;  %v6798_v51 = vld [vmem:[%s16953_s14 + $0xad0] sm:$0xff] }
 0x5e7   : > { %v15424_v42 = vcombine.low %v6790_v39, %v6798_v51  ;;  %v6950_v8 = vld [vmem:[%s16953_s14 + $0xf90] sm:$0xff] }
 0x5e8   : > { %12906 = vmatpush2.bf16.msra.mxu1 %v16046_v33  ;;  %v15425_v33 = vcombine.high %v6790_v39, %v6798_v51  ;;  %v6958_v49 = vld [vmem:[%s16953_s14 + $0xfd0] sm:$0xff] }
 0x5e9   : > { %12953 = vmatpush2.bf16.msra.mxu0 %v15232_v20  ;;  %12907 = vmatprep.subr.bf16.mxu1 %v16031_v35  ;;  %v15633_v20 = vcombine.high %v6998_v46, %v7006_v18  ;;  %v6774_v35 = vld [vmem:[%s16953_s14 + $0xa10] sm:$0xff]  ;;  %v15585_v39 = vcombine.high %v6950_v8, %v6958_v49 }
 0x5ea   : > { %12954 = vmatprep.subr.bf16.mxu0 %v15217_v38  ;;  %v6782_v38 = vld [vmem:[%s16953_s14 + $0xa50] sm:$0xff] }
 0x5eb   : > { %v15408_v48 = vcombine.low %v6774_v35, %v6782_v38  ;;  %v6934_v46 = vld [vmem:[%s16953_s14 + $0xf10] sm:$0xff] }
 0x5ec   : > { %12908 = vmatpush2.bf16.msra.mxu1 %v16030_v45  ;;  %v15409_v45 = vcombine.high %v6774_v35, %v6782_v38  ;;  %v6942_v18 = vld [vmem:[%s16953_s14 + $0xf50] sm:$0xff] }
 0x5ed   : > { %12955 = vmatpush2.bf16.msra.mxu0 %v15216_v60  ;;  %12909 = vmatprep.subr.bf16.mxu1 %v16015_v61  ;;  %v15617_v60 = vcombine.high %v6982_v47, %v6990_v62  ;;  %v6758_v61 = vld [vmem:[%s16953_s14 + $0x990] sm:$0xff]  ;;  %v15569_v35 = vcombine.high %v6934_v46, %v6942_v18 }
 0x5ee   : > { %13006 = vmatprep.subr.bf16.mxu0 %v15713_v53  ;;  %v6766_v53 = vld [vmem:[%s16953_s14 + $0x9d0] sm:$0xff] }
 0x5ef   : > { %v12712_v57 = vpop.f32.mrf.mxu0  ;;  %v6918_v47 = vld [vmem:[%s16953_s14 + $0xe90] sm:$0xff] }
 0x5f0   : > { %v18345_v11 = vadd.f32 %v12712_v57, %v18273_v29  ;;  %12910 = vmatpush2.bf16.msra.mxu1 %v16014_v15  ;;  %12957 = vmatmul.mubr.bf16.vlgmr.msra.gmra.mxu0 %v18058_v58  ;;  %v15681_v29 = vcombine.high %v7046_v59, %v7054_v40  ;;  %v15393_v15 = vcombine.high %v6758_v61, %v6766_v53  ;;  %v6926_v62 = vld [vmem:[%s16953_s14 + $0xed0] sm:$0xff] }
 0x5f1   : > { %13007 = vmatpush1.bf16.msra.mxu0 %v15712_v50  ;;  %13038 = vmatprep.mubr.bf16.mxu0 %v18081_v16  ;;  %v12714_v2 = vpop.f32.mrf.mxu0  ;;  %v15601_v50 = vcombine.high %v6966_v31, %v6974_v34  ;;  %v15392_v57 = vcombine.low %v6758_v61, %v6766_v53  ;;  %v15600_v59 = vcombine.low %v6966_v31, %v6974_v34  ;;  %v6902_v31 = vld [vmem:[%s16953_s14 + $0xe10] sm:$0xff] }
 0x5f2   : > { %v18350_v63 = vadd.f32 %v12714_v2, %v18278_v41  ;;  %12911 = vmatprep.subr.bf16.mxu1 %v15999_v52  ;;  %13008 = vmatprep.subr.bf16.mxu0 %v15697_v21  ;;  %v15457_v41 = vcombine.high %v6822_v28, %v6830_v3  ;;  %v6742_v52 = vld [vmem:[%s16953_s14 + $0x910] sm:$0xff]  ;;  %v15840_v3 = vcombine.low %v7206_v24, %v7214_v56 }
 0x5f3   : > { %v12716_v26 = vpop.f32.mrf.mxu0  ;;  %v6750_v21 = vld [vmem:[%s16953_s14 + $0x950] sm:$0xff]  ;;  %v15553_v61 = vcombine.high %v6918_v47, %v6926_v62 }
 0x5f4   : > { %12912 = vmatpush2.bf16.msra.mxu1 %v15998_v1  ;;  %v15377_v40 = vcombine.high %v6742_v52, %v6750_v21  ;;  %v15841_v1 = vcombine.high %v7206_v24, %v7214_v56  ;;  %v6726_v2 = vld [vmem:[%s16953_s14 + $0x890] sm:$0xff]  ;;  %v15376_v28 = vcombine.low %v6742_v52, %v6750_v21 }
 0x5f5   : > { %13009 = vmatpush1.bf16.msra.mxu0 %v15696_v19  ;;  %v12717_v5 = vpop.f32.mrf.mxu0  ;;  %12913 = vmatprep.subr.bf16.mxu1 %v15983_v27  ;;  %v6734_v19 = vld [vmem:[%s16953_s14 + $0x8d0] sm:$0xff] }
 0x5f6   : > { %13010 = vmatprep.subr.bf16.mxu0 %v15681_v29  ;;  %v7190_v27 = vld [vmem:[%s16953_s14 + $0x1710] sm:$0xff]  ;;  %v15361_v26 = vcombine.high %v6726_v2, %v6734_v19 }
 0x5f7   : > { %v7198_v29 = vld [vmem:[%s16953_s14 + $0x1750] sm:$0xff] }
 0x5f8   : > { %12914 = vmatpush2.bf16.msra.mxu1 %v15982_v0  ;;  %v15825_v23 = vcombine.high %v7190_v27, %v7198_v29  ;;  %v6718_v0 = vld [vmem:[%s16953_s14 + $0x850] sm:$0xff] }
 0x5f9   : > { %13011 = vmatpush1.bf16.msra.mxu0 %v15680_v25  ;;  %12965 = vmatprep.subr.bf16.mxu1 %v15457_v41  ;;  %v7174_v5 = vld [vmem:[%s16953_s14 + $0x1690] sm:$0xff]  ;;  %v15360_v41 = vcombine.low %v6726_v2, %v6734_v19  ;;  %v15345_v55 = vcombine.high %v6710_v4, %v6718_v0 }
 0x5fa   : > { %13012 = vmatprep.subr.bf16.mxu0 %v15665_v32  ;;  %v7182_v25 = vld [vmem:[%s16953_s14 + $0x16d0] sm:$0xff]  ;;  %v15824_v32 = vcombine.low %v7190_v27, %v7198_v29 }
 0x5fb   : > { %12916 = vmatmul.mubr.bf16.vlgmr.msra.gmra.mxu1 %v18208_v54  ;;  %v15809_v43 = vcombine.high %v7174_v5, %v7182_v25  ;;  %v6910_v34 = vld [vmem:[%s16953_s14 + $0xe50] sm:$0xff] }
 0x5fc   : > { %12966 = vmatpush1.bf16.msra.mxu1 %v15456_v9  ;;  %12997 = vmatprep.mubr.bf16.mxu1 %v17982_v22  ;;  %v7158_v9 = vld [vmem:[%s16953_s14 + $0x1610] sm:$0xff]  ;;  %v15537_v52 = vcombine.high %v6902_v31, %v6910_v34 }
 0x5fd   : > { %13013 = vmatpush1.bf16.msra.mxu0 %v15664_v10  ;;  %12967 = vmatprep.subr.bf16.mxu1 %v15441_v12  ;;  %v7166_v10 = vld [vmem:[%s16953_s14 + $0x1650] sm:$0xff]  ;;  %v15344_v12 = vcombine.low %v6710_v4, %v6718_v0 }
 0x5fe   : > { %13014 = vmatprep.subr.bf16.mxu0 %v15649_v13  ;;  %v15808_v13 = vcombine.low %v7174_v5, %v7182_v25  ;;  %v15793_v51 = vcombine.high %v7158_v9, %v7166_v10  ;;  %v6886_v24 = vld [vmem:[%s16953_s14 + $0xd90] sm:$0xff] }
 0x5ff   : > { %v6894_v56 = vld [vmem:[%s16953_s14 + $0xdd0] sm:$0xff] }
 0x600   : > { %12968 = vmatpush1.bf16.msra.mxu1 %v15440_v7  ;;  %v7142_v7 = vld [vmem:[%s16953_s14 + $0x1590] sm:$0xff]  ;;  %v15521_v2 = vcombine.high %v6886_v24, %v6894_v56 }
 0x601   : > { %13015 = vmatpush1.bf16.msra.mxu0 %v15648_v30  ;;  %12969 = vmatprep.subr.bf16.mxu1 %v15425_v33  ;;  %v7150_v30 = vld [vmem:[%s16953_s14 + $0x15d0] sm:$0xff]  ;;  %v15584_v33 = vcombine.low %v6950_v8, %v6958_v49 }
 0x602   : > { %13016 = vmatprep.subr.bf16.mxu0 %v15633_v20  ;;  %v15792_v20 = vcombine.low %v7158_v9, %v7166_v10  ;;  %v15777_v38 = vcombine.high %v7142_v7, %v7150_v30  ;;  %v6870_v27 = vld [vmem:[%s16953_s14 + $0xd10] sm:$0xff] }
 0x603   : > { %v6878_v29 = vld [vmem:[%s16953_s14 + $0xd50] sm:$0xff] }
 0x604   : > { %12970 = vmatpush1.bf16.msra.mxu1 %v15424_v42  ;;  %v7126_v42 = vld [vmem:[%s16953_s14 + $0x1510] sm:$0xff]  ;;  %v15505_v4 = vcombine.high %v6870_v27, %v6878_v29 }
 0x605   : > { %13017 = vmatpush1.bf16.msra.mxu0 %v15632_v44  ;;  %12971 = vmatprep.subr.bf16.mxu1 %v15409_v45  ;;  %v7134_v44 = vld [vmem:[%s16953_s14 + $0x1550] sm:$0xff]  ;;  %v15568_v45 = vcombine.low %v6934_v46, %v6942_v18 }
 0x606   : > { %13018 = vmatprep.subr.bf16.mxu0 %v15617_v60  ;;  %v15776_v60 = vcombine.low %v7142_v7, %v7150_v30  ;;  %v15761_v53 = vcombine.high %v7126_v42, %v7134_v44  ;;  %v6854_v5 = vld [vmem:[%s16953_s14 + $0xc90] sm:$0xff] }
 0x607   : > { %v6862_v25 = vld [vmem:[%s16953_s14 + $0xcd0] sm:$0xff] }
 0x608   : > { %12972 = vmatpush1.bf16.msra.mxu1 %v15408_v48  ;;  %v7110_v48 = vld [vmem:[%s16953_s14 + $0x1490] sm:$0xff]  ;;  %v15489_v8 = vcombine.high %v6854_v5, %v6862_v25 }
 0x609   : > { %13019 = vmatpush1.bf16.msra.mxu0 %v15616_v37  ;;  %12973 = vmatprep.subr.bf16.mxu1 %v15393_v15  ;;  %v7118_v37 = vld [vmem:[%s16953_s14 + $0x14d0] sm:$0xff]  ;;  %v15552_v15 = vcombine.low %v6918_v47, %v6926_v62  ;;  %v6527_v47 = vld [vmem:[%s16953_s14 + $0x258] sm:$0xff] }
 0x60a   : > { %13020 = vmatprep.subr.bf16.mxu0 %v15601_v50  ;;  %v15760_v50 = vcombine.low %v7126_v42, %v7134_v44  ;;  %v15745_v21 = vcombine.high %v7110_v48, %v7118_v37  ;;  %v6838_v9 = vld [vmem:[%s16953_s14 + $0xc10] sm:$0xff] }
 0x60b   : > { %v6846_v10 = vld [vmem:[%s16953_s14 + $0xc50] sm:$0xff] }
 0x60c   : > { %12974 = vmatpush1.bf16.msra.mxu1 %v15392_v57  ;;  %v7094_v57 = vld [vmem:[%s16953_s14 + $0x1410] sm:$0xff]  ;;  %v15473_v7 = vcombine.high %v6838_v9, %v6846_v10  ;;  %v15472_v62 = vcombine.low %v6838_v9, %v6846_v10  ;;  %v6455_v9 = vld [vmem:[%s16953_s14 + $0x18] sm:$0xff] }
 0x60d   : > { %13021 = vmatpush1.bf16.msra.mxu0 %v15600_v59  ;;  %12975 = vmatprep.subr.bf16.mxu1 %v15377_v40  ;;  %v7102_v59 = vld [vmem:[%s16953_s14 + $0x1450] sm:$0xff]  ;;  %v15536_v40 = vcombine.low %v6902_v31, %v6910_v34  ;;  %v6503_v31 = vld [vmem:[%s16953_s14 + $0x198] sm:$0xff] }
 0x60e   : > { %13022 = vmatprep.subr.bf16.mxu0 %v15841_v1  ;;  %v15744_v1 = vcombine.low %v7110_v48, %v7118_v37  ;;  %v15729_v19 = vcombine.high %v7094_v57, %v7102_v59  ;;  %v6511_v34 = vld [vmem:[%s16953_s14 + $0x1d8] sm:$0xff] }
 0x60f   : > { %v6463_v10 = vld [vmem:[%s16953_s14 + $0x58] sm:$0xff] }
 0x610   : > { %12976 = vmatpush1.bf16.msra.mxu1 %v15376_v28  ;;  %v6567_v28 = vld [vmem:[%s16953_s14 + $0x398] sm:$0xff] }
 0x611   : > { %13023 = vmatpush2.bf16.msra.mxu0 %v15840_v3  ;;  %12977 = vmatprep.subr.bf16.mxu1 %v15361_v26  ;;  %v6575_v3 = vld [vmem:[%s16953_s14 + $0x3d8] sm:$0xff]  ;;  %v15520_v26 = vcombine.low %v6886_v24, %v6894_v56  ;;  %v6428_v24 = vld [vmem:[%s16966_s19] sm:$0xff] }
 0x612   : > { %13024 = vmatprep.subr.bf16.mxu0 %v15825_v23  ;;  %v15728_v23 = vcombine.low %v7094_v57, %v7102_v59  ;;  %v15203_v0 = vcombine.high %v6567_v28, %v6575_v3  ;;  %v6487_v57 = vld [vmem:[%s16953_s14 + $0x118] sm:$0xff] }
 0x613   : > { %v6495_v59 = vld [vmem:[%s16953_s14 + $0x158] sm:$0xff] }
 0x614   : > { %12978 = vmatpush1.bf16.msra.mxu1 %v15360_v41  ;;  %v6551_v41 = vld [vmem:[%s16953_s14 + $0x318] sm:$0xff] }
 0x615   : > { %13025 = vmatpush2.bf16.msra.mxu0 %v15824_v32  ;;  %12979 = vmatprep.subr.bf16.mxu1 %v15345_v55  ;;  %v6559_v32 = vld [vmem:[%s16953_s14 + $0x358] sm:$0xff]  ;;  %v15504_v55 = vcombine.low %v6870_v27, %v6878_v29  ;;  %v15138_v27 = vcombine.low %v6503_v31, %v6511_v34 }
 0x616   : > { %13026 = vmatprep.subr.bf16.mxu0 %v15809_v43  ;;  %v15202_v43 = vcombine.low %v6567_v28, %v6575_v3  ;;  %v15187_v49 = vcombine.high %v6551_v41, %v6559_v32  ;;  %v15186_v18 = vcombine.low %v6551_v41, %v6559_v32 }
 0x618   : > { %12980 = vmatpush1.bf16.msra.mxu1 %v15344_v12 }
 0x619   : > { %13027 = vmatpush2.bf16.msra.mxu0 %v15808_v13  ;;  %12981 = vmatprep.subr.bf16.mxu1 %v15585_v39  ;;  %v6535_v13 = vld [vmem:[%s16953_s14 + $0x298] sm:$0xff] }
 0x61a   : > { %13028 = vmatprep.subr.bf16.mxu0 %v15793_v51  ;;  %v6543_v39 = vld [vmem:[%s16953_s14 + $0x2d8] sm:$0xff]  ;;  %v15488_v51 = vcombine.low %v6854_v5, %v6862_v25 }
 0x61b   : > { %v15171_v30 = vcombine.high %v6535_v13, %v6543_v39  ;;  %v15170_v44 = vcombine.low %v6535_v13, %v6543_v39  ;;  %v6479_v5 = vld [vmem:[%s16953_s14 + $0xd8] sm:$0xff] }
 0x61c   : > { %12982 = vmatpush2.bf16.msra.mxu1 %v15584_v33  ;;  %v7334_v33 = vld [vmem:[%s16953_s14 + $0x1b90] sm:$0xff] }
 0x61d   : > { %13029 = vmatpush2.bf16.msra.mxu0 %v15792_v20  ;;  %12983 = vmatprep.subr.bf16.mxu1 %v15569_v35  ;;  %v7342_v20 = vld [vmem:[%s16953_s14 + $0x1bd0] sm:$0xff] }
 0x61e   : > { %13030 = vmatprep.subr.bf16.mxu0 %v15777_v38  ;;  %v6519_v38 = vld [vmem:[%s16953_s14 + $0x218] sm:$0xff]  ;;  %v15968_v48 = vcombine.low %v7334_v33, %v7342_v20 }
 0x61f   : > { %v15154_v37 = vcombine.low %v6519_v38, %v6527_v47 }
 0x620   : > { %12984 = vmatpush2.bf16.msra.mxu1 %v15568_v45  ;;  %v15969_v45 = vcombine.high %v7334_v33, %v7342_v20  ;;  %v6695_v33 = vld [vmem:[%s16953_s14 + $0x798] sm:$0xff] }
 0x621   : > { %13031 = vmatpush2.bf16.msra.mxu0 %v15776_v60  ;;  %12985 = vmatprep.subr.bf16.mxu1 %v15553_v61  ;;  %v15155_v60 = vcombine.high %v6519_v38, %v6527_v47  ;;  %v7318_v61 = vld [vmem:[%s16953_s14 + $0x1b10] sm:$0xff]  ;;  %v6703_v20 = vld [vmem:[%s16953_s14 + $0x7d8] sm:$0xff]  ;;  %v15090_v38 = vcombine.low %v6455_v9, %v6463_v10 }
 0x622   : > { %13032 = vmatprep.subr.bf16.mxu0 %v15761_v53  ;;  %v7326_v53 = vld [vmem:[%s16953_s14 + $0x1b50] sm:$0xff] }
 0x624   : > { %12986 = vmatpush2.bf16.msra.mxu1 %v15552_v15  ;;  %v15953_v15 = vcombine.high %v7318_v61, %v7326_v53 }
 0x625   : > { %13033 = vmatpush2.bf16.msra.mxu0 %v15760_v50  ;;  %12987 = vmatprep.subr.bf16.mxu1 %v15537_v52  ;;  %v15139_v50 = vcombine.high %v6503_v31, %v6511_v34  ;;  %v7302_v52 = vld [vmem:[%s16953_s14 + $0x1a90] sm:$0xff] }
 0x626   : > { %13034 = vmatprep.subr.bf16.mxu0 %v15745_v21  ;;  %v7310_v21 = vld [vmem:[%s16953_s14 + $0x1ad0] sm:$0xff] }
 0x627   : > { %v15937_v29 = vcombine.high %v7302_v52, %v7310_v21  ;;  %v15936_v41 = vcombine.low %v7302_v52, %v7310_v21 }
 0x628   : > { %12988 = vmatpush2.bf16.msra.mxu1 %v15536_v40 }
 0x629   : > { %13035 = vmatpush2.bf16.msra.mxu0 %v15744_v1  ;;  %12989 = vmatprep.subr.bf16.mxu1 %v15521_v2  ;;  %v15952_v1 = vcombine.low %v7318_v61, %v7326_v53  ;;  %v6429_v2 = vld [vmem:[%s16966_s19 + $0x8] sm:$0xff]  ;;  %v15330_v53 = vcombine.low %v6695_v33, %v6703_v20 }
 0x62a   : > { %13036 = vmatprep.subr.bf16.mxu0 %v15729_v19 }
 0x62c   : > { %12990 = vmatpush2.bf16.msra.mxu1 %v15520_v26  ;;  %v15123_v26 = vcombine.high %v6487_v57, %v6495_v59 }
 0x62d   : > { %13037 = vmatpush2.bf16.msra.mxu0 %v15728_v23  ;;  %12991 = vmatprep.subr.bf16.mxu1 %v15505_v4  ;;  %v7294_v23 = vld [vmem:[%s16953_s14 + $0x1a50] sm:$0xff] }
 0x62e   : > { %13088 = vmatprep.subr.bf16.mxu0 %v15203_v0  ;;  %v6471_v0 = vld [vmem:[%s16953_s14 + $0x98] sm:$0xff] }
 0x62f   : > { %v18416_v12 = vpop.f32.mrf.mxu0  ;;  %v15106_v39 = vcombine.low %v6471_v0, %v6479_v5 }
 0x630   : > { %12992 = vmatpush2.bf16.msra.mxu1 %v15504_v55  ;;  %13039 = vmatmul.mubr.bf16.vlgmr.msra.gmra.mxu0 %v18145_v36 }
 0x631   : > { %13089 = vmatpush1.bf16.msra.mxu0 %v15202_v43  ;;  %13120 = vmatprep.mubr.bf16.mxu0 %v17977_v17  ;;  %v18422_v46 = vpop.f32.mrf.mxu0  ;;  %v15107_v43 = vcombine.high %v6471_v0, %v6479_v5 }
 0x632   : > { %12993 = vmatprep.subr.bf16.mxu1 %v15489_v8  ;;  %13090 = vmatprep.subr.bf16.mxu0 %v15187_v49  ;;  %v7270_v8 = vld [vmem:[%s16953_s14 + $0x1990] sm:$0xff] }
 0x633   : > { %v12798_v35 = vpop.f32.mrf.mxu0  ;;  %v7278_v49 = vld [vmem:[%s16953_s14 + $0x19d0] sm:$0xff] }
 0x634   : > { %12994 = vmatpush2.bf16.msra.mxu1 %v15488_v51  ;;  %v15905_v51 = vcombine.high %v7270_v8, %v7278_v49  ;;  %v15904_v35 = vcombine.low %v7270_v8, %v7278_v49 }
 0x635   : > { %13091 = vmatpush1.bf16.msra.mxu0 %v15186_v18  ;;  %v12799_v42 = vpop.f32.mrf.mxu0  ;;  %12995 = vmatprep.subr.bf16.mxu1 %v15473_v7  ;;  %v15091_v18 = vcombine.high %v6455_v9, %v6463_v10  ;;  %v7254_v7 = vld [vmem:[%s16953_s14 + $0x1910] sm:$0xff] }
 0x636   : > { %13092 = vmatprep.subr.bf16.mxu0 %v15171_v30  ;;  %v7262_v30 = vld [vmem:[%s16953_s14 + $0x1950] sm:$0xff] }
 0x637   : > { %v15889_v47 = vcombine.high %v7254_v7, %v7262_v30  ;;  %v7238_v42 = vld [vmem:[%s16953_s14 + $0x1890] sm:$0xff]  ;;  %v15888_v61 = vcombine.low %v7254_v7, %v7262_v30 }
 0x638   : > { %12996 = vmatpush2.bf16.msra.mxu1 %v15472_v62  ;;  %v15331_v62 = vcombine.high %v6695_v33, %v6703_v20  ;;  %v7414_v9 = vld [vmem:[%s16953_s14 + $0x1e10] sm:$0xff] }
 0x639   : > { %13093 = vmatpush1.bf16.msra.mxu0 %v15170_v44  ;;  %13047 = vmatprep.subr.bf16.mxu1 %v15969_v45  ;;  %v7246_v44 = vld [vmem:[%s16953_s14 + $0x18d0] sm:$0xff]  ;;  %v6679_v45 = vld [vmem:[%s16953_s14 + $0x718] sm:$0xff] }
 0x63a   : > { %13094 = vmatprep.subr.bf16.mxu0 %v15155_v60  ;;  %v6687_v60 = vld [vmem:[%s16953_s14 + $0x758] sm:$0xff]  ;;  %v15873_v31 = vcombine.high %v7238_v42, %v7246_v44  ;;  %v15872_v52 = vcombine.low %v7238_v42, %v7246_v44  ;;  %v7422_v10 = vld [vmem:[%s16953_s14 + $0x1e50] sm:$0xff] }
 0x63b   : > { %12998 = vmatmul.mubr.bf16.vlgmr.msra.gmra.mxu1 %v18060_v6  ;;  %v12753_v56 = vpop.f32.mrf.mxu1  ;;  %v15315_v34 = vcombine.high %v6679_v45, %v6687_v60  ;;  %v15314_v21 = vcombine.low %v6679_v45, %v6687_v60  ;;  %v16049_v7 = vcombine.high %v7414_v9, %v7422_v10  ;;  %v7398_v33 = vld [vmem:[%s16953_s14 + $0x1d90] sm:$0xff] }
 0x63c   : > { %v12754_v40 = vadd.f32 %v12753_v56, %v18345_v11  ;;  %13048 = vmatpush1.bf16.msra.mxu1 %v15968_v48  ;;  %13079 = vmatprep.mubr.bf16.mxu1 %v18206_v14  ;;  %v7286_v11 = vld [vmem:[%s16953_s14 + $0x1a10] sm:$0xff] }
 0x63d   : > { %13095 = vmatpush1.bf16.msra.mxu0 %v15154_v37  ;;  %v12755_v19 = vpop.f32.mrf.mxu1  ;;  %13049 = vmatprep.subr.bf16.mxu1 %v15953_v15  ;;  %v15921_v55 = vcombine.high %v7286_v11, %v7294_v23  ;;  %v15920_v13 = vcombine.low %v7286_v11, %v7294_v23  ;;  %v7222_v48 = vld [vmem:[%s16953_s14 + $0x1810] sm:$0xff]  ;;  %v6663_v15 = vld [vmem:[%s16953_s14 + $0x698] sm:$0xff] }
 0x63e   : > { %v13908_v28 = vadd.f32 %v12754_v40, %v6428_v24  ;;  %v12756_v3 = vadd.f32 %v12755_v19, %v18350_v63  ;;  %13096 = vmatprep.subr.bf16.mxu0 %v15139_v50  ;;  %v15122_v63 = vcombine.low %v6487_v57, %v6495_v59  ;;  %v7230_v37 = vld [vmem:[%s16953_s14 + $0x1850] sm:$0xff]  ;;  %v6671_v50 = vld [vmem:[%s16953_s14 + $0x6d8] sm:$0xff] }
 0x63f   : > { %v12757_v4 = vpop.f32.mrf.mxu1  ;;  %v15857_v24 = vcombine.high %v7222_v48, %v7230_v37  ;;  %v15299_v56 = vcombine.high %v6663_v15, %v6671_v50  ;;  %v7462_v57 = vld [vmem:[%s16953_s14 + $0x1f90] sm:$0xff]  ;;  %v6647_v40 = vld [vmem:[%s16953_s14 + $0x618] sm:$0xff]  ;;  %v15298_v19 = vcombine.low %v6663_v15, %v6671_v50 }
 0x640   : > { %13924 = vst [vmem:[%s16966_s19] sm:$0xff] %v13908_v28  ;;  %v13909_v25 = vadd.f32 %v12756_v3, %v6429_v2  ;;  %13050 = vmatpush1.bf16.msra.mxu1 %v15952_v1  ;;  %v7470_v59 = vld [vmem:[%s16953_s14 + $0x1fd0] sm:$0xff]  ;;  %v6655_v1 = vld [vmem:[%s16953_s14 + $0x658] sm:$0xff]  ;;  %v15856_v2 = vcombine.low %v7222_v48, %v7230_v37 }
 0x641   : > { %13097 = vmatpush1.bf16.msra.mxu0 %v15138_v27  ;;  %v12758_v32 = vpop.f32.mrf.mxu1  ;;  %13051 = vmatprep.subr.bf16.mxu1 %v15937_v29  ;;  %v16097_v27 = vcombine.high %v7462_v57, %v7470_v59  ;;  %v15283_v29 = vcombine.high %v6647_v40, %v6655_v1  ;;  %v7446_v28 = vld [vmem:[%s16953_s14 + $0x1f10] sm:$0xff]  ;;  %v6639_v11 = vld [vmem:[%s16953_s14 + $0x5d8] sm:$0xff]  ;;  %v16096_v23 = vcombine.low %v7462_v57, %v7470_v59 }
 0x642   : > { %13925 = vst [vmem:[%s16966_s19 + $0x8] sm:$0xff] %v13909_v25  ;;  %13098 = vmatprep.subr.bf16.mxu0 %v15123_v26  ;;  %v7454_v3 = vld [vmem:[%s16953_s14 + $0x1f50] sm:$0xff]  ;;  %v6631_v26 = vld [vmem:[%s16953_s14 + $0x598] sm:$0xff]  ;;  %v15282_v4 = vcombine.low %v6647_v40, %v6655_v1 }
 0x643   : > { %v16081_v0 = vcombine.high %v7446_v28, %v7454_v3  ;;  %v15267_v5 = vcombine.high %v6631_v26, %v6639_v11  ;;  %v7430_v25 = vld [vmem:[%s16953_s14 + $0x1e90] sm:$0xff]  ;;  %v6615_v32 = vld [vmem:[%s16953_s14 + $0x518] sm:$0xff] }
 0x644   : > { %13052 = vmatpush1.bf16.msra.mxu1 %v15936_v41  ;;  %v7438_v41 = vld [vmem:[%s16953_s14 + $0x1ed0] sm:$0xff] }
 0x645   : > { %13099 = vmatpush1.bf16.msra.mxu0 %v15122_v63  ;;  %13053 = vmatprep.subr.bf16.mxu1 %v15921_v55  ;;  %v6623_v63 = vld [vmem:[%s16953_s14 + $0x558] sm:$0xff]  ;;  %v16080_v55 = vcombine.low %v7446_v28, %v7454_v3  ;;  %v16065_v8 = vcombine.high %v7430_v25, %v7438_v41  ;;  %v7406_v20 = vld [vmem:[%s16953_s14 + $0x1dd0] sm:$0xff] }
 0x646   : > { %13100 = vmatprep.subr.bf16.mxu0 %v15107_v43  ;;  %v15266_v43 = vcombine.low %v6631_v26, %v6639_v11  ;;  %v15251_v49 = vcombine.high %v6615_v32, %v6623_v63  ;;  %v16033_v42 = vcombine.high %v7398_v33, %v7406_v20  ;;  %v7382_v45 = vld [vmem:[%s16953_s14 + $0x1d10] sm:$0xff] }
 0x647   : > { %v7390_v60 = vld [vmem:[%s16953_s14 + $0x1d50] sm:$0xff] }
 0x648   : > { %13054 = vmatpush1.bf16.msra.mxu1 %v15920_v13  ;;  %v6599_v13 = vld [vmem:[%s16953_s14 + $0x498] sm:$0xff]  ;;  %v16017_v48 = vcombine.high %v7382_v45, %v7390_v60  ;;  %v7366_v15 = vld [vmem:[%s16953_s14 + $0x1c90] sm:$0xff] }
 0x649   : > { %13101 = vmatpush1.bf16.msra.mxu0 %v15106_v39  ;;  %13055 = vmatprep.subr.bf16.mxu1 %v15905_v51  ;;  %v6607_v39 = vld [vmem:[%s16953_s14 + $0x4d8] sm:$0xff]  ;;  %v16064_v51 = vcombine.low %v7430_v25, %v7438_v41  ;;  %v7374_v50 = vld [vmem:[%s16953_s14 + $0x1cd0] sm:$0xff] }
 0x64a   : > { %13102 = vmatprep.subr.bf16.mxu0 %v15091_v18  ;;  %v15250_v18 = vcombine.low %v6615_v32, %v6623_v63  ;;  %v15235_v30 = vcombine.high %v6599_v13, %v6607_v39  ;;  %v16001_v57 = vcombine.high %v7366_v15, %v7374_v50  ;;  %v7350_v40 = vld [vmem:[%s16953_s14 + $0x1c10] sm:$0xff] }
 0x64b   : > { %v7358_v1 = vld [vmem:[%s16953_s14 + $0x1c50] sm:$0xff] }
 0x64c   : > { %13056 = vmatpush1.bf16.msra.mxu1 %v15904_v35  ;;  %v6583_v35 = vld [vmem:[%s16953_s14 + $0x418] sm:$0xff]  ;;  %v15985_v3 = vcombine.high %v7350_v40, %v7358_v1  ;;  %v15984_v41 = vcombine.low %v7350_v40, %v7358_v1 }
 0x64d   : > { %13103 = vmatpush1.bf16.msra.mxu0 %v15090_v38  ;;  %13057 = vmatprep.subr.bf16.mxu1 %v15889_v47  ;;  %v6591_v38 = vld [vmem:[%s16953_s14 + $0x458] sm:$0xff]  ;;  %v16048_v47 = vcombine.low %v7414_v9, %v7422_v10 }
 0x64e   : > { %13104 = vmatprep.subr.bf16.mxu0 %v15331_v62  ;;  %v15234_v62 = vcombine.low %v6599_v13, %v6607_v39  ;;  %v15219_v44 = vcombine.high %v6583_v35, %v6591_v38  ;;  %v7015_v9 = vld [vmem:[%s16953_s14 + $0x1198] sm:$0xff] }
 0x64f   : > { %v7023_v10 = vld [vmem:[%s16953_s14 + $0x11d8] sm:$0xff] }
 0x650   : > { %13058 = vmatpush1.bf16.msra.mxu1 %v15888_v61  ;;  %v7079_v61 = vld [vmem:[%s16953_s14 + $0x1398] sm:$0xff] }
 0x651   : > { %13105 = vmatpush2.bf16.msra.mxu0 %v15330_v53  ;;  %13059 = vmatprep.subr.bf16.mxu1 %v15873_v31  ;;  %v7087_v53 = vld [vmem:[%s16953_s14 + $0x13d8] sm:$0xff]  ;;  %v16032_v31 = vcombine.low %v7398_v33, %v7406_v20 }
 0x652   : > { %13106 = vmatprep.subr.bf16.mxu0 %v15315_v34  ;;  %v15218_v34 = vcombine.low %v6583_v35, %v6591_v38  ;;  %v15715_v37 = vcombine.high %v7079_v61, %v7087_v53  ;;  %v6999_v20 = vld [vmem:[%s16953_s14 + $0x1118] sm:$0xff] }
 0x653   : > { %v7007_v35 = vld [vmem:[%s16953_s14 + $0x1158] sm:$0xff] }
 0x654   : > { %13060 = vmatpush1.bf16.msra.mxu1 %v15872_v52  ;;  %v7063_v52 = vld [vmem:[%s16953_s14 + $0x1318] sm:$0xff] }
 0x655   : > { %13107 = vmatpush2.bf16.msra.mxu0 %v15314_v21  ;;  %13061 = vmatprep.subr.bf16.mxu1 %v15857_v24  ;;  %v7071_v21 = vld [vmem:[%s16953_s14 + $0x1358] sm:$0xff]  ;;  %v16016_v24 = vcombine.low %v7382_v45, %v7390_v60 }
 0x656   : > { %13108 = vmatprep.subr.bf16.mxu0 %v15299_v56  ;;  %v15714_v56 = vcombine.low %v7079_v61, %v7087_v53  ;;  %v15699_v59 = vcombine.high %v7063_v52, %v7071_v21  ;;  %v15698_v28 = vcombine.low %v7063_v52, %v7071_v21  ;;  %v6775_v45 = vld [vmem:[%s16953_s14 + $0xa18] sm:$0xff] }
 0x657   : > { %v6783_v60 = vld [vmem:[%s16953_s14 + $0xa58] sm:$0xff] }
 0x658   : > { %13062 = vmatpush1.bf16.msra.mxu1 %v15856_v2  ;;  %v7047_v2 = vld [vmem:[%s16953_s14 + $0x1298] sm:$0xff] }
 0x659   : > { %13109 = vmatpush2.bf16.msra.mxu0 %v15298_v19  ;;  %13063 = vmatprep.subr.bf16.mxu1 %v16097_v27  ;;  %v7055_v19 = vld [vmem:[%s16953_s14 + $0x12d8] sm:$0xff] }
 0x65a   : > { %13110 = vmatprep.subr.bf16.mxu0 %v15283_v29  ;;  %v16000_v29 = vcombine.low %v7366_v15, %v7374_v50  ;;  %v15683_v11 = vcombine.high %v7047_v2, %v7055_v19  ;;  %v15682_v32 = vcombine.low %v7047_v2, %v7055_v19  ;;  %v6983_v53 = vld [vmem:[%s16953_s14 + $0x1098] sm:$0xff]  ;;  %v15411_v15 = vcombine.high %v6775_v45, %v6783_v60 }
 0x65b   : > { %v6759_v52 = vld [vmem:[%s16953_s14 + $0x998] sm:$0xff] }
 0x65c   : > { %13064 = vmatpush2.bf16.msra.mxu1 %v16096_v23  ;;  %v6823_v23 = vld [vmem:[%s16953_s14 + $0xb98] sm:$0xff] }
 0x65d   : > { %13111 = vmatpush2.bf16.msra.mxu0 %v15282_v4  ;;  %13065 = vmatprep.subr.bf16.mxu1 %v16081_v0  ;;  %v6831_v4 = vld [vmem:[%s16953_s14 + $0xbd8] sm:$0xff] }
 0x65e   : > { %13112 = vmatprep.subr.bf16.mxu0 %v15267_v5  ;;  %v7031_v0 = vld [vmem:[%s16953_s14 + $0x1218] sm:$0xff]  ;;  %v15459_v63 = vcombine.high %v6823_v23, %v6831_v4  ;;  %v15458_v13 = vcombine.low %v6823_v23, %v6831_v4 }
 0x65f   : > { %v7039_v5 = vld [vmem:[%s16953_s14 + $0x1258] sm:$0xff] }
 0x660   : > { %13066 = vmatpush2.bf16.msra.mxu1 %v16080_v55  ;;  %v15666_v39 = vcombine.low %v7031_v0, %v7039_v5  ;;  %v6767_v21 = vld [vmem:[%s16953_s14 + $0x9d8] sm:$0xff] }
 0x661   : > { %13113 = vmatpush2.bf16.msra.mxu0 %v15266_v43  ;;  %13067 = vmatprep.subr.bf16.mxu1 %v16065_v8  ;;  %v15667_v43 = vcombine.high %v7031_v0, %v7039_v5  ;;  %v6807_v8 = vld [vmem:[%s16953_s14 + $0xb18] sm:$0xff]  ;;  %v15395_v40 = vcombine.high %v6759_v52, %v6767_v21 }
 0x662   : > { %13114 = vmatprep.subr.bf16.mxu0 %v15251_v49  ;;  %v6815_v49 = vld [vmem:[%s16953_s14 + $0xb58] sm:$0xff] }
 0x663   : > { %v15442_v38 = vcombine.low %v6807_v8, %v6815_v49  ;;  %v6743_v2 = vld [vmem:[%s16953_s14 + $0x918] sm:$0xff] }
 0x664   : > { %13068 = vmatpush2.bf16.msra.mxu1 %v16064_v51  ;;  %v15443_v51 = vcombine.high %v6807_v8, %v6815_v49  ;;  %v6751_v19 = vld [vmem:[%s16953_s14 + $0x958] sm:$0xff] }
 0x665   : > { %13115 = vmatpush2.bf16.msra.mxu0 %v15250_v18  ;;  %13069 = vmatprep.subr.bf16.mxu1 %v16049_v7  ;;  %v15651_v18 = vcombine.high %v7015_v9, %v7023_v10  ;;  %v6791_v7 = vld [vmem:[%s16953_s14 + $0xa98] sm:$0xff]  ;;  %v15379_v23 = vcombine.high %v6743_v2, %v6751_v19 }
 0x666   : > { %13116 = vmatprep.subr.bf16.mxu0 %v15235_v30  ;;  %v6799_v30 = vld [vmem:[%s16953_s14 + $0xad8] sm:$0xff] }
 0x667   : > { %v6727_v0 = vld [vmem:[%s16953_s14 + $0x898] sm:$0xff] }
 0x668   : > { %13070 = vmatpush2.bf16.msra.mxu1 %v16048_v47  ;;  %v6735_v5 = vld [vmem:[%s16953_s14 + $0x8d8] sm:$0xff] }
 0x669   : > { %13117 = vmatpush2.bf16.msra.mxu0 %v15234_v62  ;;  %13071 = vmatprep.subr.bf16.mxu1 %v16033_v42  ;;  %v15650_v62 = vcombine.low %v7015_v9, %v7023_v10  ;;  %v15427_v42 = vcombine.high %v6791_v7, %v6799_v30  ;;  %v6711_v8 = vld [vmem:[%s16953_s14 + $0x818] sm:$0xff] }
 0x66a   : > { %13118 = vmatprep.subr.bf16.mxu0 %v15219_v44  ;;  %v15635_v44 = vcombine.high %v6999_v20, %v7007_v35  ;;  %v6719_v49 = vld [vmem:[%s16953_s14 + $0x858] sm:$0xff] }
 0x66b   : > { %v7175_v9 = vld [vmem:[%s16953_s14 + $0x1698] sm:$0xff] }
 0x66c   : > { %13072 = vmatpush2.bf16.msra.mxu1 %v16032_v31  ;;  %v6991_v31 = vld [vmem:[%s16953_s14 + $0x10d8] sm:$0xff] }
 0x66d   : > { %13119 = vmatpush2.bf16.msra.mxu0 %v15218_v34  ;;  %13073 = vmatprep.subr.bf16.mxu1 %v16017_v48  ;;  %v15426_v34 = vcombine.low %v6791_v7, %v6799_v30  ;;  %v15619_v50 = vcombine.high %v6983_v53, %v6991_v31  ;;  %v7183_v10 = vld [vmem:[%s16953_s14 + $0x16d8] sm:$0xff] }
 0x66e   : > { %13170 = vmatprep.subr.bf16.mxu0 %v15715_v37  ;;  %v15634_v37 = vcombine.low %v6999_v20, %v7007_v35  ;;  %v6951_v7 = vld [vmem:[%s16953_s14 + $0xf98] sm:$0xff] }
 0x66f   : > { %v6959_v30 = vld [vmem:[%s16953_s14 + $0xfd8] sm:$0xff] }
 0x670   : > { %v18496_v27 = vpop.f32.mrf.mxu0  ;;  %13074 = vmatpush2.bf16.msra.mxu1 %v16016_v24  ;;  %13121 = vmatmul.mubr.bf16.vlgmr.msra.gmra.mxu0 %v18058_v58  ;;  %v6967_v24 = vld [vmem:[%s16953_s14 + $0x1018] sm:$0xff] }
 0x671   : > { %13171 = vmatpush1.bf16.msra.mxu0 %v15714_v56  ;;  %13202 = vmatprep.mubr.bf16.mxu0 %v18081_v16  ;;  %v6975_v56 = vld [vmem:[%s16953_s14 + $0x1058] sm:$0xff] }
 0x672   : > { %v18500_v26 = vpop.f32.mrf.mxu0  ;;  %13075 = vmatprep.subr.bf16.mxu1 %v16001_v57  ;;  %13172 = vmatprep.subr.bf16.mxu0 %v15699_v59  ;;  %v15410_v57 = vcombine.low %v6775_v45, %v6783_v60  ;;  %v15618_v59 = vcombine.low %v6983_v53, %v6991_v31  ;;  %v15603_v1 = vcombine.high %v6967_v24, %v6975_v56  ;;  %v7159_v20 = vld [vmem:[%s16953_s14 + $0x1618] sm:$0xff] }
 0x673   : > { %v7167_v35 = vld [vmem:[%s16953_s14 + $0x1658] sm:$0xff]  ;;  %v15586_v31 = vcombine.low %v6951_v7, %v6959_v30 }
 0x674   : > { %v12880_v25 = vpop.f32.mrf.mxu0  ;;  %13076 = vmatpush2.bf16.msra.mxu1 %v16000_v29  ;;  %v7207_v29 = vld [vmem:[%s16953_s14 + $0x1798] sm:$0xff] }
 0x675   : > { %13173 = vmatpush1.bf16.msra.mxu0 %v15698_v28  ;;  %13077 = vmatprep.subr.bf16.mxu1 %v15985_v3  ;;  %v7215_v28 = vld [vmem:[%s16953_s14 + $0x17d8] sm:$0xff]  ;;  %v15394_v3 = vcombine.low %v6759_v52, %v6767_v21 }
 0x676   : > { %v12881_v55 = vpop.f32.mrf.mxu0  ;;  %13174 = vmatprep.subr.bf16.mxu0 %v15683_v11  ;;  %v15602_v11 = vcombine.low %v6967_v24, %v6975_v56  ;;  %v15843_v4 = vcombine.high %v7207_v29, %v7215_v28  ;;  %v7191_v25 = vld [vmem:[%s16953_s14 + $0x1718] sm:$0xff] }
 0x677   : > { %v15363_v55 = vcombine.high %v6727_v0, %v6735_v5  ;;  %v6935_v45 = vld [vmem:[%s16953_s14 + $0xf18] sm:$0xff] }
 0x678   : > { %13078 = vmatpush2.bf16.msra.mxu1 %v15984_v41  ;;  %v7199_v41 = vld [vmem:[%s16953_s14 + $0x1758] sm:$0xff] }
 0x679   : > { %13175 = vmatpush1.bf16.msra.mxu0 %v15682_v32  ;;  %13129 = vmatprep.subr.bf16.mxu1 %v15459_v63  ;;  %v15378_v32 = vcombine.low %v6743_v2, %v6751_v19  ;;  %v15842_v63 = vcombine.low %v7207_v29, %v7215_v28  ;;  %v6943_v60 = vld [vmem:[%s16953_s14 + $0xf58] sm:$0xff] }
 0x67a   : > { %13176 = vmatprep.subr.bf16.mxu0 %v15667_v43  ;;  %v15827_v43 = vcombine.high %v7191_v25, %v7199_v41  ;;  %v7151_v53 = vld [vmem:[%s16953_s14 + $0x15d8] sm:$0xff]  ;;  %v15570_v24 = vcombine.low %v6935_v45, %v6943_v60 }
 0x67b   : > { %v18512_v33 = vpop.f32.mrf.mxu1  ;;  %13080 = vmatmul.mubr.bf16.vlgmr.msra.gmra.mxu1 %v18208_v54  ;;  %v7127_v52 = vld [vmem:[%s16953_s14 + $0x1518] sm:$0xff] }
 0x67c   : > { %13130 = vmatpush1.bf16.msra.mxu1 %v15458_v13  ;;  %13161 = vmatprep.mubr.bf16.mxu1 %v17982_v22  ;;  %v15362_v13 = vcombine.low %v6727_v0, %v6735_v5  ;;  %v7135_v21 = vld [vmem:[%s16953_s14 + $0x1558] sm:$0xff] }
 0x67d   : > { %v18518_v47 = vpop.f32.mrf.mxu1  ;;  %13177 = vmatpush1.bf16.msra.mxu0 %v15666_v39  ;;  %13131 = vmatprep.subr.bf16.mxu1 %v15443_v51  ;;  %v15826_v39 = vcombine.low %v7191_v25, %v7199_v41  ;;  %v15347_v51 = vcombine.high %v6711_v8, %v6719_v49  ;;  %v7111_v2 = vld [vmem:[%s16953_s14 + $0x1498] sm:$0xff]  ;;  %v15762_v28 = vcombine.low %v7127_v52, %v7135_v21 }
 0x67e   : > { %13178 = vmatprep.subr.bf16.mxu0 %v15651_v18  ;;  %v15811_v18 = vcombine.high %v7175_v9, %v7183_v10  ;;  %v7119_v19 = vld [vmem:[%s16953_s14 + $0x14d8] sm:$0xff] }
 0x67f   : > { %v12839_v61 = vpop.f32.mrf.mxu1  ;;  %v7095_v0 = vld [vmem:[%s16953_s14 + $0x1418] sm:$0xff]  ;;  %v15746_v41 = vcombine.low %v7111_v2, %v7119_v19 }
 0x680   : > { %13132 = vmatpush1.bf16.msra.mxu1 %v15442_v38  ;;  %v15346_v38 = vcombine.low %v6711_v8, %v6719_v49  ;;  %v7143_v61 = vld [vmem:[%s16953_s14 + $0x1598] sm:$0xff]  ;;  %v6568_v8 = vld [vmem:[%s16953_s14 + $0x3a0] sm:$0xff] }
 0x681   : > { %v12840_v48 = vpop.f32.mrf.mxu1  ;;  %13179 = vmatpush1.bf16.msra.mxu0 %v15650_v62  ;;  %13133 = vmatprep.subr.bf16.mxu1 %v15427_v42  ;;  %v15810_v62 = vcombine.low %v7175_v9, %v7183_v10  ;;  %v15587_v42 = vcombine.high %v6951_v7, %v6959_v30  ;;  %v15778_v56 = vcombine.low %v7143_v61, %v7151_v53  ;;  %v7103_v5 = vld [vmem:[%s16953_s14 + $0x1458] sm:$0xff]  ;;  %v6576_v49 = vld [vmem:[%s16953_s14 + $0x3e0] sm:$0xff] }
 0x682   : > { %13180 = vmatprep.subr.bf16.mxu0 %v15635_v44  ;;  %v15795_v44 = vcombine.high %v7159_v20, %v7167_v35  ;;  %v15571_v48 = vcombine.high %v6935_v45, %v6943_v60  ;;  %v15730_v10 = vcombine.low %v7095_v0, %v7103_v5  ;;  %v6552_v7 = vld [vmem:[%s16953_s14 + $0x320] sm:$0xff] }
 0x683   : > { %v6560_v30 = vld [vmem:[%s16953_s14 + $0x360] sm:$0xff] }
 0x684   : > { %13134 = vmatpush1.bf16.msra.mxu1 %v15426_v34  ;;  %v15794_v34 = vcombine.low %v7159_v20, %v7167_v35  ;;  %v15204_v35 = vcombine.low %v6568_v8, %v6576_v49  ;;  %v6536_v45 = vld [vmem:[%s16953_s14 + $0x2a0] sm:$0xff] }
 0x685   : > { %13181 = vmatpush1.bf16.msra.mxu0 %v15634_v37  ;;  %13135 = vmatprep.subr.bf16.mxu1 %v15411_v15  ;;  %v15779_v37 = vcombine.high %v7143_v61, %v7151_v53  ;;  %v6919_v15 = vld [vmem:[%s16953_s14 + $0xe98] sm:$0xff]  ;;  %v6544_v60 = vld [vmem:[%s16953_s14 + $0x2e0] sm:$0xff] }
 0x686   : > { %13182 = vmatprep.subr.bf16.mxu0 %v15619_v50  ;;  %v6927_v50 = vld [vmem:[%s16953_s14 + $0xed8] sm:$0xff] }
 0x687   : > { %v15554_v29 = vcombine.low %v6919_v15, %v6927_v50 }
 0x688   : > { %13136 = vmatpush1.bf16.msra.mxu1 %v15410_v57  ;;  %v15555_v57 = vcombine.high %v6919_v15, %v6927_v50  ;;  %v7335_v15 = vld [vmem:[%s16953_s14 + $0x1b98] sm:$0xff] }
 0x689   : > { %13183 = vmatpush1.bf16.msra.mxu0 %v15618_v59  ;;  %13137 = vmatprep.subr.bf16.mxu1 %v15395_v40  ;;  %v15763_v59 = vcombine.high %v7127_v52, %v7135_v21  ;;  %v6903_v40 = vld [vmem:[%s16953_s14 + $0xe18] sm:$0xff]  ;;  %v6520_v52 = vld [vmem:[%s16953_s14 + $0x220] sm:$0xff] }
 0x68a   : > { %13184 = vmatprep.subr.bf16.mxu0 %v15603_v1  ;;  %v6911_v1 = vld [vmem:[%s16953_s14 + $0xe58] sm:$0xff]  ;;  %v6528_v21 = vld [vmem:[%s16953_s14 + $0x260] sm:$0xff] }
 0x68b   : > { %v15538_v25 = vcombine.low %v6903_v40, %v6911_v1  ;;  %v7343_v50 = vld [vmem:[%s16953_s14 + $0x1bd8] sm:$0xff] }
 0x68c   : > { %13138 = vmatpush1.bf16.msra.mxu1 %v15394_v3  ;;  %v15539_v3 = vcombine.high %v6903_v40, %v6911_v1  ;;  %v12836_v40 = vadd.f32 %v18512_v33, %v18416_v12  ;;  %v15156_v12 = vcombine.low %v6520_v52, %v6528_v21 }
 0x68d   : > { %13185 = vmatpush1.bf16.msra.mxu0 %v15602_v11  ;;  %13139 = vmatprep.subr.bf16.mxu1 %v15379_v23  ;;  %v15747_v11 = vcombine.high %v7111_v2, %v7119_v19  ;;  %v6887_v23 = vld [vmem:[%s16953_s14 + $0xd98] sm:$0xff]  ;;  %v15157_v2 = vcombine.high %v6520_v52, %v6528_v21 }
 0x68e   : > { %13186 = vmatprep.subr.bf16.mxu0 %v15843_v4  ;;  %v6895_v4 = vld [vmem:[%s16953_s14 + $0xdd8] sm:$0xff] }
 0x68f   : > { %v15522_v9 = vcombine.low %v6887_v23, %v6895_v4  ;;  %v7319_v19 = vld [vmem:[%s16953_s14 + $0x1b18] sm:$0xff] }
 0x690   : > { %13140 = vmatpush1.bf16.msra.mxu1 %v15378_v32  ;;  %v15523_v32 = vcombine.high %v6887_v23, %v6895_v4  ;;  %v15970_v23 = vcombine.low %v7335_v15, %v7343_v50  ;;  %v12877_v4 = vadd.f32 %v18496_v27, %v12836_v40  ;;  %v7255_v52 = vld [vmem:[%s16953_s14 + $0x1918] sm:$0xff] }
 0x691   : > { %13187 = vmatpush2.bf16.msra.mxu0 %v15842_v63  ;;  %13141 = vmatprep.subr.bf16.mxu1 %v15363_v55  ;;  %v15731_v63 = vcombine.high %v7095_v0, %v7103_v5  ;;  %v6871_v55 = vld [vmem:[%s16953_s14 + $0xd18] sm:$0xff] }
 0x692   : > { %13188 = vmatprep.subr.bf16.mxu0 %v15827_v43  ;;  %v6879_v43 = vld [vmem:[%s16953_s14 + $0xd58] sm:$0xff] }
 0x693   : > { %v15506_v20 = vcombine.low %v6871_v55, %v6879_v43  ;;  %v7303_v5 = vld [vmem:[%s16953_s14 + $0x1a98] sm:$0xff] }
 0x694   : > { %13142 = vmatpush1.bf16.msra.mxu1 %v15362_v13  ;;  %v15507_v13 = vcombine.high %v6871_v55, %v6879_v43  ;;  %v6431_v43 = vld [vmem:[%s16966_s19 + $0x18] sm:$0xff] }
 0x695   : > { %13189 = vmatpush2.bf16.msra.mxu0 %v15826_v39  ;;  %13143 = vmatprep.subr.bf16.mxu1 %v15347_v51  ;;  %v15205_v39 = vcombine.high %v6568_v8, %v6576_v49  ;;  %v6855_v51 = vld [vmem:[%s16953_s14 + $0xc98] sm:$0xff] }
 0x696   : > { %13190 = vmatprep.subr.bf16.mxu0 %v15811_v18  ;;  %v6863_v18 = vld [vmem:[%s16953_s14 + $0xcd8] sm:$0xff] }
 0x697   : > { %v15490_v53 = vcombine.low %v6855_v51, %v6863_v18  ;;  %v7263_v21 = vld [vmem:[%s16953_s14 + $0x1958] sm:$0xff] }
 0x698   : > { %13144 = vmatpush1.bf16.msra.mxu1 %v15346_v38  ;;  %v15491_v38 = vcombine.high %v6855_v51, %v6863_v18  ;;  %v7287_v51 = vld [vmem:[%s16953_s14 + $0x1a18] sm:$0xff]  ;;  %v15891_v40 = vcombine.high %v7255_v52, %v7263_v21 }
 0x699   : > { %13191 = vmatpush2.bf16.msra.mxu0 %v15810_v62  ;;  %13145 = vmatprep.subr.bf16.mxu1 %v15587_v42  ;;  %v15189_v62 = vcombine.high %v6552_v7, %v6560_v30  ;;  %v6839_v42 = vld [vmem:[%s16953_s14 + $0xc18] sm:$0xff] }
 0x69a   : > { %13192 = vmatprep.subr.bf16.mxu0 %v15795_v44  ;;  %v6847_v44 = vld [vmem:[%s16953_s14 + $0xc58] sm:$0xff] }
 0x69b   : > { %v7295_v18 = vld [vmem:[%s16953_s14 + $0x1a58] sm:$0xff] }
 0x69c   : > { %13146 = vmatpush2.bf16.msra.mxu1 %v15586_v31  ;;  %v15188_v31 = vcombine.low %v6552_v7, %v6560_v30  ;;  %v6480_v30 = vld [vmem:[%s16953_s14 + $0xe0] sm:$0xff] }
 0x69d   : > { %13193 = vmatpush2.bf16.msra.mxu0 %v15794_v34  ;;  %13147 = vmatprep.subr.bf16.mxu1 %v15571_v48  ;;  %v15475_v34 = vcombine.high %v6839_v42, %v6847_v44 }
 0x69e   : > { %13194 = vmatprep.subr.bf16.mxu0 %v15779_v37  ;;  %v15173_v37 = vcombine.high %v6536_v45, %v6544_v60 }
 0x6a0   : > { %13148 = vmatpush2.bf16.msra.mxu1 %v15570_v24 }
 0x6a1   : > { %13195 = vmatpush2.bf16.msra.mxu0 %v15778_v56  ;;  %13149 = vmatprep.subr.bf16.mxu1 %v15555_v57  ;;  %v15474_v56 = vcombine.low %v6839_v42, %v6847_v44  ;;  %v15172_v57 = vcombine.low %v6536_v45, %v6544_v60  ;;  %v15923_v42 = vcombine.high %v7287_v51, %v7295_v18  ;;  %v7271_v45 = vld [vmem:[%s16953_s14 + $0x1998] sm:$0xff] }
 0x6a2   : > { %13196 = vmatprep.subr.bf16.mxu0 %v15763_v59  ;;  %v15971_v59 = vcombine.high %v7335_v15, %v7343_v50  ;;  %v7279_v60 = vld [vmem:[%s16953_s14 + $0x19d8] sm:$0xff] }
 0x6a3   : > { %v15907_v15 = vcombine.high %v7271_v45, %v7279_v60 }
 0x6a4   : > { %13150 = vmatpush2.bf16.msra.mxu1 %v15554_v29  ;;  %v7327_v29 = vld [vmem:[%s16953_s14 + $0x1b58] sm:$0xff] }
 0x6a5   : > { %13197 = vmatpush2.bf16.msra.mxu0 %v15762_v28  ;;  %13151 = vmatprep.subr.bf16.mxu1 %v15539_v3  ;;  %v6504_v28 = vld [vmem:[%s16953_s14 + $0x1a0] sm:$0xff]  ;;  %v15955_v33 = vcombine.high %v7319_v19, %v7327_v29  ;;  %v15954_v27 = vcombine.low %v7319_v19, %v7327_v29  ;;  %v7247_v19 = vld [vmem:[%s16953_s14 + $0x18d8] sm:$0xff] }
 0x6a6   : > { %13198 = vmatprep.subr.bf16.mxu0 %v15747_v11  ;;  %v6512_v3 = vld [vmem:[%s16953_s14 + $0x1e0] sm:$0xff]  ;;  %v12838_v11 = vadd.f32 %v18518_v47, %v18422_v46 }
 0x6a7   : > { %v15141_v0 = vcombine.high %v6504_v28, %v6512_v3  ;;  %v6496_v46 = vld [vmem:[%s16953_s14 + $0x160] sm:$0xff]  ;;  %v15140_v49 = vcombine.low %v6504_v28, %v6512_v3  ;;  %v15890_v3 = vcombine.low %v7255_v52, %v7263_v21 }
 0x6a8   : > { %13152 = vmatpush2.bf16.msra.mxu1 %v15538_v25  ;;  %v7311_v25 = vld [vmem:[%s16953_s14 + $0x1ad8] sm:$0xff]  ;;  %v12879_v55 = vadd.f32 %v18500_v26, %v12838_v11  ;;  %v6472_v26 = vld [vmem:[%s16953_s14 + $0xa0] sm:$0xff] }
 0x6a9   : > { %13199 = vmatpush2.bf16.msra.mxu0 %v15746_v41  ;;  %13153 = vmatprep.subr.bf16.mxu1 %v15523_v32  ;;  %v6430_v41 = vld [vmem:[%s16966_s19 + $0x10] sm:$0xff]  ;;  %v15109_v44 = vcombine.high %v6472_v26, %v6480_v30  ;;  %v6680_v29 = vld [vmem:[%s16953_s14 + $0x720] sm:$0xff] }
 0x6aa   : > { %13200 = vmatprep.subr.bf16.mxu0 %v15731_v63  ;;  %v6488_v63 = vld [vmem:[%s16953_s14 + $0x120] sm:$0xff] }
 0x6ab   : > { %v6688_v28 = vld [vmem:[%s16953_s14 + $0x760] sm:$0xff] }
 0x6ac   : > { %13154 = vmatpush2.bf16.msra.mxu1 %v15522_v9  ;;  %v15939_v9 = vcombine.high %v7303_v5, %v7311_v25 }
 0x6ad   : > { %13201 = vmatpush2.bf16.msra.mxu0 %v15730_v10  ;;  %13155 = vmatprep.subr.bf16.mxu1 %v15507_v13 }
 0x6ae   : > { %13252 = vmatprep.subr.bf16.mxu0 %v15205_v39  ;;  %v15125_v39 = vcombine.high %v6488_v63, %v6496_v46 }
 0x6b0   : > { %v18572_v61 = vpop.f32.mrf.mxu0  ;;  %13156 = vmatpush2.bf16.msra.mxu1 %v15506_v20  ;;  %13203 = vmatmul.mubr.bf16.vlgmr.msra.gmra.mxu0 %v18145_v36 }
 0x6b1   : > { %13253 = vmatpush1.bf16.msra.mxu0 %v15204_v35  ;;  %13284 = vmatprep.mubr.bf16.mxu0 %v17977_v17  ;;  %v15938_v35 = vcombine.low %v7303_v5, %v7311_v25  ;;  %v6672_v5 = vld [vmem:[%s16953_s14 + $0x6e0] sm:$0xff] }
 0x6b2   : > { %v18576_v48 = vpop.f32.mrf.mxu0  ;;  %13157 = vmatprep.subr.bf16.mxu1 %v15491_v38  ;;  %13254 = vmatprep.subr.bf16.mxu0 %v15189_v62  ;;  %v15124_v62 = vcombine.low %v6488_v63, %v6496_v46  ;;  %v7463_v46 = vld [vmem:[%s16953_s14 + $0x1f98] sm:$0xff] }
 0x6b4   : > { %v12962_v24 = vpop.f32.mrf.mxu0  ;;  %13158 = vmatpush2.bf16.msra.mxu1 %v15490_v53  ;;  %v6456_v53 = vld [vmem:[%s16953_s14 + $0x20] sm:$0xff] }
 0x6b5   : > { %13255 = vmatpush1.bf16.msra.mxu0 %v15188_v31  ;;  %13159 = vmatprep.subr.bf16.mxu1 %v15475_v34  ;;  %v6464_v31 = vld [vmem:[%s16953_s14 + $0x60] sm:$0xff]  ;;  %v15922_v34 = vcombine.low %v7287_v51, %v7295_v18 }
 0x6b6   : > { %v12963_v1 = vpop.f32.mrf.mxu0  ;;  %13256 = vmatprep.subr.bf16.mxu0 %v15173_v37  ;;  %v15108_v37 = vcombine.low %v6472_v26, %v6480_v30  ;;  %v15093_v50 = vcombine.high %v6456_v53, %v6464_v31  ;;  %v6696_v24 = vld [vmem:[%s16953_s14 + $0x7a0] sm:$0xff] }
 0x6b7   : > { %v6640_v51 = vld [vmem:[%s16953_s14 + $0x5e0] sm:$0xff] }
 0x6b8   : > { %13160 = vmatpush2.bf16.msra.mxu1 %v15474_v56  ;;  %v6704_v56 = vld [vmem:[%s16953_s14 + $0x7e0] sm:$0xff] }
 0x6b9   : > { %13257 = vmatpush1.bf16.msra.mxu0 %v15172_v57  ;;  %13211 = vmatprep.subr.bf16.mxu1 %v15971_v59  ;;  %v15906_v57 = vcombine.low %v7271_v45, %v7279_v60  ;;  %v15092_v59 = vcombine.low %v6456_v53, %v6464_v31  ;;  %v15333_v1 = vcombine.high %v6696_v24, %v6704_v56  ;;  %v7415_v53 = vld [vmem:[%s16953_s14 + $0x1e18] sm:$0xff] }
 0x6ba   : > { %13258 = vmatprep.subr.bf16.mxu0 %v15157_v2  ;;  %v7239_v2 = vld [vmem:[%s16953_s14 + $0x1898] sm:$0xff]  ;;  %v15332_v11 = vcombine.low %v6696_v24, %v6704_v56 }
 0x6bb   : > { %v12917_v32 = vpop.f32.mrf.mxu1  ;;  %13162 = vmatmul.mubr.bf16.vlgmr.msra.gmra.mxu1 %v18060_v6  ;;  %v15874_v25 = vcombine.low %v7239_v2, %v7247_v19  ;;  %v7423_v31 = vld [vmem:[%s16953_s14 + $0x1e58] sm:$0xff] }
 0x6bc   : > { %v12918_v47 = vadd.f32 %v12917_v32, %v12877_v4  ;;  %13212 = vmatpush1.bf16.msra.mxu1 %v15970_v23  ;;  %13243 = vmatprep.mubr.bf16.mxu1 %v18206_v14  ;;  %v15875_v23 = vcombine.high %v7239_v2, %v7247_v19  ;;  %v7231_v4 = vld [vmem:[%s16953_s14 + $0x1858] sm:$0xff]  ;;  %v16051_v52 = vcombine.high %v7415_v53, %v7423_v31 }
 0x6bd   : > { %v12919_v8 = vpop.f32.mrf.mxu1  ;;  %13259 = vmatpush1.bf16.msra.mxu0 %v15156_v12  ;;  %13213 = vmatprep.subr.bf16.mxu1 %v15955_v33  ;;  %v15317_v12 = vcombine.high %v6680_v29, %v6688_v28  ;;  %v7223_v33 = vld [vmem:[%s16953_s14 + $0x1818] sm:$0xff] }
 0x6be   : > { %v13910_v10 = vadd.f32 %v12918_v47, %v6430_v41  ;;  %v12920_v13 = vadd.f32 %v12919_v8, %v12879_v55  ;;  %13260 = vmatprep.subr.bf16.mxu0 %v15141_v0  ;;  %v6664_v0 = vld [vmem:[%s16953_s14 + $0x6a0] sm:$0xff]  ;;  %v15316_v41 = vcombine.low %v6680_v29, %v6688_v28  ;;  %v15859_v32 = vcombine.high %v7223_v33, %v7231_v4  ;;  %v7471_v47 = vld [vmem:[%s16953_s14 + $0x1fd8] sm:$0xff] }
 0x6bf   : > { %v12921_v7 = vpop.f32.mrf.mxu1  ;;  %v15301_v63 = vcombine.high %v6664_v0, %v6672_v5  ;;  %v6648_v55 = vld [vmem:[%s16953_s14 + $0x620] sm:$0xff]  ;;  %v15300_v8 = vcombine.low %v6664_v0, %v6672_v5  ;;  %v16098_v18 = vcombine.low %v7463_v46, %v7471_v47  ;;  %v7399_v24 = vld [vmem:[%s16953_s14 + $0x1d98] sm:$0xff] }
 0x6c0   : > { %13926 = vst [vmem:[%s16966_s19 + $0x10] sm:$0xff] %v13910_v10  ;;  %v13911_v20 = vadd.f32 %v12920_v13, %v6431_v43  ;;  %13214 = vmatpush1.bf16.msra.mxu1 %v15954_v27  ;;  %v6656_v27 = vld [vmem:[%s16953_s14 + $0x660] sm:$0xff]  ;;  %v15858_v43 = vcombine.low %v7223_v33, %v7231_v4  ;;  %v7447_v10 = vld [vmem:[%s16953_s14 + $0x1f18] sm:$0xff] }
 0x6c1   : > { %v12922_v38 = vpop.f32.mrf.mxu1  ;;  %13261 = vmatpush1.bf16.msra.mxu0 %v15140_v49  ;;  %13215 = vmatprep.subr.bf16.mxu1 %v15939_v9  ;;  %v16099_v49 = vcombine.high %v7463_v46, %v7471_v47  ;;  %v15285_v9 = vcombine.high %v6648_v55, %v6656_v27  ;;  %v7455_v13 = vld [vmem:[%s16953_s14 + $0x1f58] sm:$0xff]  ;;  %v15284_v7 = vcombine.low %v6648_v55, %v6656_v27 }
 0x6c2   : > { %13927 = vst [vmem:[%s16966_s19 + $0x18] sm:$0xff] %v13911_v20  ;;  %13262 = vmatprep.subr.bf16.mxu0 %v15125_v39  ;;  %v6632_v39 = vld [vmem:[%s16953_s14 + $0x5a0] sm:$0xff]  ;;  %v16083_v26 = vcombine.high %v7447_v10, %v7455_v13  ;;  %v7431_v20 = vld [vmem:[%s16953_s14 + $0x1e98] sm:$0xff] }
 0x6c3   : > { %v15269_v30 = vcombine.high %v6632_v39, %v6640_v51  ;;  %v6616_v38 = vld [vmem:[%s16953_s14 + $0x520] sm:$0xff]  ;;  %v7407_v56 = vld [vmem:[%s16953_s14 + $0x1dd8] sm:$0xff] }
 0x6c4   : > { %13216 = vmatpush1.bf16.msra.mxu1 %v15938_v35  ;;  %v7439_v35 = vld [vmem:[%s16953_s14 + $0x1ed8] sm:$0xff]  ;;  %v16035_v2 = vcombine.high %v7399_v24, %v7407_v56 }
 0x6c5   : > { %13263 = vmatpush1.bf16.msra.mxu0 %v15124_v62  ;;  %13217 = vmatprep.subr.bf16.mxu1 %v15923_v42  ;;  %v6624_v62 = vld [vmem:[%s16953_s14 + $0x560] sm:$0xff]  ;;  %v16082_v42 = vcombine.low %v7447_v10, %v7455_v13  ;;  %v16067_v45 = vcombine.high %v7431_v20, %v7439_v35  ;;  %v7383_v29 = vld [vmem:[%s16953_s14 + $0x1d18] sm:$0xff] }
 0x6c6   : > { %13264 = vmatprep.subr.bf16.mxu0 %v15109_v44  ;;  %v15268_v44 = vcombine.low %v6632_v39, %v6640_v51  ;;  %v15253_v60 = vcombine.high %v6616_v38, %v6624_v62  ;;  %v7391_v28 = vld [vmem:[%s16953_s14 + $0x1d58] sm:$0xff] }
 0x6c7   : > { %v16019_v33 = vcombine.high %v7383_v29, %v7391_v28  ;;  %v7367_v0 = vld [vmem:[%s16953_s14 + $0x1c98] sm:$0xff] }
 0x6c8   : > { %13218 = vmatpush1.bf16.msra.mxu1 %v15922_v34  ;;  %v6600_v34 = vld [vmem:[%s16953_s14 + $0x4a0] sm:$0xff]  ;;  %v7375_v5 = vld [vmem:[%s16953_s14 + $0x1cd8] sm:$0xff] }
 0x6c9   : > { %13265 = vmatpush1.bf16.msra.mxu0 %v15108_v37  ;;  %13219 = vmatprep.subr.bf16.mxu1 %v15907_v15  ;;  %v6608_v37 = vld [vmem:[%s16953_s14 + $0x4e0] sm:$0xff]  ;;  %v16066_v15 = vcombine.low %v7431_v20, %v7439_v35  ;;  %v16003_v46 = vcombine.high %v7367_v0, %v7375_v5  ;;  %v7351_v55 = vld [vmem:[%s16953_s14 + $0x1c18] sm:$0xff] }
 0x6ca   : > { %13266 = vmatprep.subr.bf16.mxu0 %v15093_v50  ;;  %v15252_v50 = vcombine.low %v6616_v38, %v6624_v62  ;;  %v15237_v21 = vcombine.high %v6600_v34, %v6608_v37  ;;  %v7359_v27 = vld [vmem:[%s16953_s14 + $0x1c58] sm:$0xff] }
 0x6cb   : > { %v15987_v13 = vcombine.high %v7351_v55, %v7359_v27  ;;  %v15986_v35 = vcombine.low %v7351_v55, %v7359_v27 }
 0x6cc   : > { %13220 = vmatpush1.bf16.msra.mxu1 %v15906_v57  ;;  %v6584_v57 = vld [vmem:[%s16953_s14 + $0x420] sm:$0xff] }
 0x6cd   : > { %13267 = vmatpush1.bf16.msra.mxu0 %v15092_v59  ;;  %13221 = vmatprep.subr.bf16.mxu1 %v15891_v40  ;;  %v6592_v59 = vld [vmem:[%s16953_s14 + $0x460] sm:$0xff]  ;;  %v16050_v40 = vcombine.low %v7415_v53, %v7423_v31 }
 0x6ce   : > { %13268 = vmatprep.subr.bf16.mxu0 %v15333_v1  ;;  %v15236_v1 = vcombine.low %v6600_v34, %v6608_v37  ;;  %v15221_v19 = vcombine.high %v6584_v57, %v6592_v59  ;;  %v7016_v53 = vld [vmem:[%s16953_s14 + $0x11a0] sm:$0xff] }
 0x6cf   : > { %v7024_v31 = vld [vmem:[%s16953_s14 + $0x11e0] sm:$0xff] }
 0x6d0   : > { %13222 = vmatpush1.bf16.msra.mxu1 %v15890_v3  ;;  %v7080_v3 = vld [vmem:[%s16953_s14 + $0x13a0] sm:$0xff] }
 0x6d1   : > { %13269 = vmatpush2.bf16.msra.mxu0 %v15332_v11  ;;  %13223 = vmatprep.subr.bf16.mxu1 %v15875_v23  ;;  %v7088_v11 = vld [vmem:[%s16953_s14 + $0x13e0] sm:$0xff]  ;;  %v16034_v23 = vcombine.low %v7399_v24, %v7407_v56 }
 0x6d2   : > { %13270 = vmatprep.subr.bf16.mxu0 %v15317_v12  ;;  %v15220_v12 = vcombine.low %v6584_v57, %v6592_v59  ;;  %v15717_v4 = vcombine.high %v7080_v3, %v7088_v11  ;;  %v7000_v56 = vld [vmem:[%s16953_s14 + $0x1120] sm:$0xff] }
 0x6d3   : > { %v7008_v57 = vld [vmem:[%s16953_s14 + $0x1160] sm:$0xff] }
 0x6d4   : > { %13224 = vmatpush1.bf16.msra.mxu1 %v15874_v25  ;;  %v7064_v25 = vld [vmem:[%s16953_s14 + $0x1320] sm:$0xff] }
 0x6d5   : > { %13271 = vmatpush2.bf16.msra.mxu0 %v15316_v41  ;;  %13225 = vmatprep.subr.bf16.mxu1 %v15859_v32  ;;  %v7072_v41 = vld [vmem:[%s16953_s14 + $0x1360] sm:$0xff]  ;;  %v16018_v32 = vcombine.low %v7383_v29, %v7391_v28 }
 0x6d6   : > { %13272 = vmatprep.subr.bf16.mxu0 %v15301_v63  ;;  %v15716_v63 = vcombine.low %v7080_v3, %v7088_v11  ;;  %v15701_v47 = vcombine.high %v7064_v25, %v7072_v41  ;;  %v15700_v10 = vcombine.low %v7064_v25, %v7072_v41  ;;  %v6776_v29 = vld [vmem:[%s16953_s14 + $0xa20] sm:$0xff] }
 0x6d7   : > { %v6784_v28 = vld [vmem:[%s16953_s14 + $0xa60] sm:$0xff] }
 0x6d8   : > { %13226 = vmatpush1.bf16.msra.mxu1 %v15858_v43  ;;  %v7048_v43 = vld [vmem:[%s16953_s14 + $0x12a0] sm:$0xff] }
 0x6d9   : > { %13273 = vmatpush2.bf16.msra.mxu0 %v15300_v8  ;;  %13227 = vmatprep.subr.bf16.mxu1 %v16099_v49  ;;  %v7056_v8 = vld [vmem:[%s16953_s14 + $0x12e0] sm:$0xff] }
 0x6da   : > { %13274 = vmatprep.subr.bf16.mxu0 %v15285_v9  ;;  %v16002_v9 = vcombine.low %v7367_v0, %v7375_v5  ;;  %v15685_v51 = vcombine.high %v7048_v43, %v7056_v8  ;;  %v15684_v38 = vcombine.low %v7048_v43, %v7056_v8  ;;  %v6984_v11 = vld [vmem:[%s16953_s14 + $0x10a0] sm:$0xff]  ;;  %v15413_v0 = vcombine.high %v6776_v29, %v6784_v28 }
 0x6db   : > { %v6760_v25 = vld [vmem:[%s16953_s14 + $0x9a0] sm:$0xff] }
 0x6dc   : > { %13228 = vmatpush2.bf16.msra.mxu1 %v16098_v18  ;;  %v6824_v18 = vld [vmem:[%s16953_s14 + $0xba0] sm:$0xff] }
 0x6dd   : > { %13275 = vmatpush2.bf16.msra.mxu0 %v15284_v7  ;;  %13229 = vmatprep.subr.bf16.mxu1 %v16083_v26  ;;  %v6832_v7 = vld [vmem:[%s16953_s14 + $0xbe0] sm:$0xff] }
 0x6de   : > { %13276 = vmatprep.subr.bf16.mxu0 %v15269_v30  ;;  %v7032_v26 = vld [vmem:[%s16953_s14 + $0x1220] sm:$0xff]  ;;  %v15461_v62 = vcombine.high %v6824_v18, %v6832_v7  ;;  %v15460_v34 = vcombine.low %v6824_v18, %v6832_v7 }
 0x6df   : > { %v7040_v30 = vld [vmem:[%s16953_s14 + $0x1260] sm:$0xff] }
 0x6e0   : > { %13230 = vmatpush2.bf16.msra.mxu1 %v16082_v42  ;;  %v15668_v37 = vcombine.low %v7032_v26, %v7040_v30  ;;  %v6768_v41 = vld [vmem:[%s16953_s14 + $0x9e0] sm:$0xff] }
 0x6e1   : > { %13277 = vmatpush2.bf16.msra.mxu0 %v15268_v44  ;;  %13231 = vmatprep.subr.bf16.mxu1 %v16067_v45  ;;  %v15669_v44 = vcombine.high %v7032_v26, %v7040_v30  ;;  %v6808_v45 = vld [vmem:[%s16953_s14 + $0xb20] sm:$0xff]  ;;  %v15397_v55 = vcombine.high %v6760_v25, %v6768_v41 }
 0x6e2   : > { %13278 = vmatprep.subr.bf16.mxu0 %v15253_v60  ;;  %v6816_v60 = vld [vmem:[%s16953_s14 + $0xb60] sm:$0xff] }
 0x6e3   : > { %v15444_v59 = vcombine.low %v6808_v45, %v6816_v60  ;;  %v6744_v43 = vld [vmem:[%s16953_s14 + $0x920] sm:$0xff] }
 0x6e4   : > { %13232 = vmatpush2.bf16.msra.mxu1 %v16066_v15  ;;  %v15445_v15 = vcombine.high %v6808_v45, %v6816_v60  ;;  %v6752_v8 = vld [vmem:[%s16953_s14 + $0x960] sm:$0xff] }
 0x6e5   : > { %13279 = vmatpush2.bf16.msra.mxu0 %v15252_v50  ;;  %13233 = vmatprep.subr.bf16.mxu1 %v16051_v52  ;;  %v15653_v50 = vcombine.high %v7016_v53, %v7024_v31  ;;  %v6792_v52 = vld [vmem:[%s16953_s14 + $0xaa0] sm:$0xff]  ;;  %v15381_v18 = vcombine.high %v6744_v43, %v6752_v8 }
 0x6e6   : > { %13280 = vmatprep.subr.bf16.mxu0 %v15237_v21  ;;  %v6800_v21 = vld [vmem:[%s16953_s14 + $0xae0] sm:$0xff] }
 0x6e7   : > { %v6728_v26 = vld [vmem:[%s16953_s14 + $0x8a0] sm:$0xff] }
 0x6e8   : > { %13234 = vmatpush2.bf16.msra.mxu1 %v16050_v40  ;;  %v6736_v30 = vld [vmem:[%s16953_s14 + $0x8e0] sm:$0xff] }
 0x6e9   : > { %13281 = vmatpush2.bf16.msra.mxu0 %v15236_v1  ;;  %13235 = vmatprep.subr.bf16.mxu1 %v16035_v2  ;;  %v15652_v1 = vcombine.low %v7016_v53, %v7024_v31  ;;  %v15429_v2 = vcombine.high %v6792_v52, %v6800_v21  ;;  %v6712_v45 = vld [vmem:[%s16953_s14 + $0x820] sm:$0xff] }
 0x6ea   : > { %13282 = vmatprep.subr.bf16.mxu0 %v15221_v19  ;;  %v15637_v19 = vcombine.high %v7000_v56, %v7008_v57  ;;  %v6720_v60 = vld [vmem:[%s16953_s14 + $0x860] sm:$0xff] }
 0x6eb   : > { %v7176_v53 = vld [vmem:[%s16953_s14 + $0x16a0] sm:$0xff] }
 0x6ec   : > { %13236 = vmatpush2.bf16.msra.mxu1 %v16034_v23  ;;  %v6992_v23 = vld [vmem:[%s16953_s14 + $0x10e0] sm:$0xff] }
 0x6ed   : > { %13283 = vmatpush2.bf16.msra.mxu0 %v15220_v12  ;;  %13237 = vmatprep.subr.bf16.mxu1 %v16019_v33  ;;  %v15428_v12 = vcombine.low %v6792_v52, %v6800_v21  ;;  %v15621_v5 = vcombine.high %v6984_v11, %v6992_v23  ;;  %v7184_v31 = vld [vmem:[%s16953_s14 + $0x16e0] sm:$0xff] }
 0x6ee   : > { %13334 = vmatprep.subr.bf16.mxu0 %v15717_v4  ;;  %v15636_v4 = vcombine.low %v7000_v56, %v7008_v57  ;;  %v6952_v52 = vld [vmem:[%s16953_s14 + $0xfa0] sm:$0xff] }
 0x6ef   : > { %v6960_v21 = vld [vmem:[%s16953_s14 + $0xfe0] sm:$0xff] }
 0x6f0   : > { %v18654_v49 = vpop.f32.mrf.mxu0  ;;  %13238 = vmatpush2.bf16.msra.mxu1 %v16018_v32  ;;  %13285 = vmatmul.mubr.bf16.vlgmr.msra.gmra.mxu0 %v18058_v58  ;;  %v6968_v32 = vld [vmem:[%s16953_s14 + $0x1020] sm:$0xff] }
 0x6f1   : > { %13335 = vmatpush1.bf16.msra.mxu0 %v15716_v63  ;;  %13366 = vmatprep.mubr.bf16.mxu0 %v18081_v16  ;;  %v6976_v63 = vld [vmem:[%s16953_s14 + $0x1060] sm:$0xff] }
 0x6f2   : > { %v18658_v39 = vpop.f32.mrf.mxu0  ;;  %13239 = vmatprep.subr.bf16.mxu1 %v16003_v46  ;;  %13336 = vmatprep.subr.bf16.mxu0 %v15701_v47  ;;  %v15412_v46 = vcombine.low %v6776_v29, %v6784_v28  ;;  %v15620_v47 = vcombine.low %v6984_v11, %v6992_v23  ;;  %v15605_v27 = vcombine.high %v6968_v32, %v6976_v63  ;;  %v7160_v56 = vld [vmem:[%s16953_s14 + $0x1620] sm:$0xff] }
 0x6f3   : > { %v7168_v57 = vld [vmem:[%s16953_s14 + $0x1660] sm:$0xff]  ;;  %v15588_v23 = vcombine.low %v6952_v52, %v6960_v21 }
 0x6f4   : > { %v13044_v20 = vpop.f32.mrf.mxu0  ;;  %13240 = vmatpush2.bf16.msra.mxu1 %v16002_v9  ;;  %v7208_v9 = vld [vmem:[%s16953_s14 + $0x17a0] sm:$0xff] }
 0x6f5   : > { %13337 = vmatpush1.bf16.msra.mxu0 %v15700_v10  ;;  %13241 = vmatprep.subr.bf16.mxu1 %v15987_v13  ;;  %v7216_v10 = vld [vmem:[%s16953_s14 + $0x17e0] sm:$0xff]  ;;  %v15396_v13 = vcombine.low %v6760_v25, %v6768_v41 }
 0x6f6   : > { %v13045_v42 = vpop.f32.mrf.mxu0  ;;  %13338 = vmatprep.subr.bf16.mxu0 %v15685_v51  ;;  %v15604_v51 = vcombine.low %v6968_v32, %v6976_v63  ;;  %v15845_v7 = vcombine.high %v7208_v9, %v7216_v10  ;;  %v7192_v20 = vld [vmem:[%s16953_s14 + $0x1720] sm:$0xff] }
 0x6f7   : > { %v15365_v42 = vcombine.high %v6728_v26, %v6736_v30  ;;  %v6936_v29 = vld [vmem:[%s16953_s14 + $0xf20] sm:$0xff] }
 0x6f8   : > { %13242 = vmatpush2.bf16.msra.mxu1 %v15986_v35  ;;  %v7200_v35 = vld [vmem:[%s16953_s14 + $0x1760] sm:$0xff] }
 0x6f9   : > { %13339 = vmatpush1.bf16.msra.mxu0 %v15684_v38  ;;  %13293 = vmatprep.subr.bf16.mxu1 %v15461_v62  ;;  %v15380_v38 = vcombine.low %v6744_v43, %v6752_v8  ;;  %v15844_v62 = vcombine.low %v7208_v9, %v7216_v10  ;;  %v6944_v28 = vld [vmem:[%s16953_s14 + $0xf60] sm:$0xff] }
 0x6fa   : > { %13340 = vmatprep.subr.bf16.mxu0 %v15669_v44  ;;  %v15829_v44 = vcombine.high %v7192_v20, %v7200_v35  ;;  %v7152_v11 = vld [vmem:[%s16953_s14 + $0x15e0] sm:$0xff]  ;;  %v15572_v32 = vcombine.low %v6936_v29, %v6944_v28 }
 0x6fb   : > { %v18670_v24 = vpop.f32.mrf.mxu1  ;;  %13244 = vmatmul.mubr.bf16.vlgmr.msra.gmra.mxu1 %v18208_v54  ;;  %v7128_v25 = vld [vmem:[%s16953_s14 + $0x1520] sm:$0xff] }
 0x6fc   : > { %13294 = vmatpush1.bf16.msra.mxu1 %v15460_v34  ;;  %13325 = vmatprep.mubr.bf16.mxu1 %v17982_v22  ;;  %v15364_v34 = vcombine.low %v6728_v26, %v6736_v30  ;;  %v7136_v41 = vld [vmem:[%s16953_s14 + $0x1560] sm:$0xff] }
 0x6fd   : > { %v18676_v40 = vpop.f32.mrf.mxu1  ;;  %13341 = vmatpush1.bf16.msra.mxu0 %v15668_v37  ;;  %13295 = vmatprep.subr.bf16.mxu1 %v15445_v15  ;;  %v15828_v37 = vcombine.low %v7192_v20, %v7200_v35  ;;  %v15349_v15 = vcombine.high %v6712_v45, %v6720_v60  ;;  %v7112_v43 = vld [vmem:[%s16953_s14 + $0x14a0] sm:$0xff]  ;;  %v15764_v10 = vcombine.low %v7128_v25, %v7136_v41 }
 0x6fe   : > { %13342 = vmatprep.subr.bf16.mxu0 %v15653_v50  ;;  %v15813_v50 = vcombine.high %v7176_v53, %v7184_v31  ;;  %v7120_v8 = vld [vmem:[%s16953_s14 + $0x14e0] sm:$0xff] }
 0x6ff   : > { %v13003_v3 = vpop.f32.mrf.mxu1  ;;  %v7096_v26 = vld [vmem:[%s16953_s14 + $0x1420] sm:$0xff]  ;;  %v15748_v35 = vcombine.low %v7112_v43, %v7120_v8 }
 0x700   : > { %13296 = vmatpush1.bf16.msra.mxu1 %v15444_v59  ;;  %v15348_v59 = vcombine.low %v6712_v45, %v6720_v60  ;;  %v7144_v3 = vld [vmem:[%s16953_s14 + $0x15a0] sm:$0xff]  ;;  %v6569_v45 = vld [vmem:[%s16953_s14 + $0x3a8] sm:$0xff] }
 0x701   : > { %v13004_v33 = vpop.f32.mrf.mxu1  ;;  %13343 = vmatpush1.bf16.msra.mxu0 %v15652_v1  ;;  %13297 = vmatprep.subr.bf16.mxu1 %v15429_v2  ;;  %v15812_v1 = vcombine.low %v7176_v53, %v7184_v31  ;;  %v15589_v2 = vcombine.high %v6952_v52, %v6960_v21  ;;  %v15780_v63 = vcombine.low %v7144_v3, %v7152_v11  ;;  %v7104_v30 = vld [vmem:[%s16953_s14 + $0x1460] sm:$0xff]  ;;  %v6577_v60 = vld [vmem:[%s16953_s14 + $0x3e8] sm:$0xff] }
 0x702   : > { %13344 = vmatprep.subr.bf16.mxu0 %v15637_v19  ;;  %v15797_v19 = vcombine.high %v7160_v56, %v7168_v57  ;;  %v15573_v33 = vcombine.high %v6936_v29, %v6944_v28  ;;  %v15732_v31 = vcombine.low %v7096_v26, %v7104_v30  ;;  %v6553_v52 = vld [vmem:[%s16953_s14 + $0x328] sm:$0xff] }
 0x703   : > { %v6561_v21 = vld [vmem:[%s16953_s14 + $0x368] sm:$0xff] }
 0x704   : > { %13298 = vmatpush1.bf16.msra.mxu1 %v15428_v12  ;;  %v15796_v12 = vcombine.low %v7160_v56, %v7168_v57  ;;  %v15206_v57 = vcombine.low %v6569_v45, %v6577_v60  ;;  %v6537_v29 = vld [vmem:[%s16953_s14 + $0x2a8] sm:$0xff] }
 0x705   : > { %13345 = vmatpush1.bf16.msra.mxu0 %v15636_v4  ;;  %13299 = vmatprep.subr.bf16.mxu1 %v15413_v0  ;;  %v15781_v4 = vcombine.high %v7144_v3, %v7152_v11  ;;  %v6920_v0 = vld [vmem:[%s16953_s14 + $0xea0] sm:$0xff]  ;;  %v6545_v28 = vld [vmem:[%s16953_s14 + $0x2e8] sm:$0xff] }
 0x706   : > { %13346 = vmatprep.subr.bf16.mxu0 %v15621_v5  ;;  %v6928_v5 = vld [vmem:[%s16953_s14 + $0xee0] sm:$0xff] }
 0x707   : > { %v15556_v9 = vcombine.low %v6920_v0, %v6928_v5 }
 0x708   : > { %13300 = vmatpush1.bf16.msra.mxu1 %v15412_v46  ;;  %v15557_v46 = vcombine.high %v6920_v0, %v6928_v5  ;;  %v7336_v0 = vld [vmem:[%s16953_s14 + $0x1ba0] sm:$0xff] }
 0x709   : > { %13347 = vmatpush1.bf16.msra.mxu0 %v15620_v47  ;;  %13301 = vmatprep.subr.bf16.mxu1 %v15397_v55  ;;  %v15765_v47 = vcombine.high %v7128_v25, %v7136_v41  ;;  %v6904_v55 = vld [vmem:[%s16953_s14 + $0xe20] sm:$0xff]  ;;  %v6521_v25 = vld [vmem:[%s16953_s14 + $0x228] sm:$0xff] }
 0x70a   : > { %13348 = vmatprep.subr.bf16.mxu0 %v15605_v27  ;;  %v6912_v27 = vld [vmem:[%s16953_s14 + $0xe60] sm:$0xff]  ;;  %v6529_v41 = vld [vmem:[%s16953_s14 + $0x268] sm:$0xff] }
 0x70b   : > { %v15540_v20 = vcombine.low %v6904_v55, %v6912_v27  ;;  %v7344_v5 = vld [vmem:[%s16953_s14 + $0x1be0] sm:$0xff] }
 0x70c   : > { %13302 = vmatpush1.bf16.msra.mxu1 %v15396_v13  ;;  %v15541_v13 = vcombine.high %v6904_v55, %v6912_v27  ;;  %v13000_v55 = vadd.f32 %v18670_v24, %v18572_v61  ;;  %v15158_v61 = vcombine.low %v6521_v25, %v6529_v41 }
 0x70d   : > { %13349 = vmatpush1.bf16.msra.mxu0 %v15604_v51  ;;  %13303 = vmatprep.subr.bf16.mxu1 %v15381_v18  ;;  %v15749_v51 = vcombine.high %v7112_v43, %v7120_v8  ;;  %v6888_v18 = vld [vmem:[%s16953_s14 + $0xda0] sm:$0xff]  ;;  %v15159_v43 = vcombine.high %v6521_v25, %v6529_v41 }
 0x70e   : > { %13350 = vmatprep.subr.bf16.mxu0 %v15845_v7  ;;  %v6896_v7 = vld [vmem:[%s16953_s14 + $0xde0] sm:$0xff] }
 0x70f   : > { %v15524_v53 = vcombine.low %v6888_v18, %v6896_v7  ;;  %v7320_v8 = vld [vmem:[%s16953_s14 + $0x1b20] sm:$0xff] }
 0x710   : > { %13304 = vmatpush1.bf16.msra.mxu1 %v15380_v38  ;;  %v15525_v38 = vcombine.high %v6888_v18, %v6896_v7  ;;  %v15972_v18 = vcombine.low %v7336_v0, %v7344_v5  ;;  %v13041_v7 = vadd.f32 %v18654_v49, %v13000_v55  ;;  %v7256_v25 = vld [vmem:[%s16953_s14 + $0x1920] sm:$0xff] }
 0x711   : > { %13351 = vmatpush2.bf16.msra.mxu0 %v15844_v62  ;;  %13305 = vmatprep.subr.bf16.mxu1 %v15365_v42  ;;  %v15733_v62 = vcombine.high %v7096_v26, %v7104_v30  ;;  %v6872_v42 = vld [vmem:[%s16953_s14 + $0xd20] sm:$0xff] }
 0x712   : > { %13352 = vmatprep.subr.bf16.mxu0 %v15829_v44  ;;  %v6880_v44 = vld [vmem:[%s16953_s14 + $0xd60] sm:$0xff] }
 0x713   : > { %v15508_v56 = vcombine.low %v6872_v42, %v6880_v44  ;;  %v7304_v30 = vld [vmem:[%s16953_s14 + $0x1aa0] sm:$0xff] }
 0x714   : > { %13306 = vmatpush1.bf16.msra.mxu1 %v15364_v34  ;;  %v15509_v34 = vcombine.high %v6872_v42, %v6880_v44  ;;  %v6433_v44 = vld [vmem:[%s16966_s19 + $0x28] sm:$0xff]  ;;  %v7264_v41 = vld [vmem:[%s16953_s14 + $0x1960] sm:$0xff] }
 0x715   : > { %13353 = vmatpush2.bf16.msra.mxu0 %v15828_v37  ;;  %13307 = vmatprep.subr.bf16.mxu1 %v15349_v15  ;;  %v15207_v37 = vcombine.high %v6569_v45, %v6577_v60  ;;  %v6856_v15 = vld [vmem:[%s16953_s14 + $0xca0] sm:$0xff]  ;;  %v15893_v55 = vcombine.high %v7256_v25, %v7264_v41 }
 0x716   : > { %13354 = vmatprep.subr.bf16.mxu0 %v15813_v50  ;;  %v6864_v50 = vld [vmem:[%s16953_s14 + $0xce0] sm:$0xff] }
 0x717   : > { %v15492_v11 = vcombine.low %v6856_v15, %v6864_v50 }
 0x718   : > { %13308 = vmatpush1.bf16.msra.mxu1 %v15348_v59  ;;  %v15493_v59 = vcombine.high %v6856_v15, %v6864_v50  ;;  %v7288_v15 = vld [vmem:[%s16953_s14 + $0x1a20] sm:$0xff] }
 0x719   : > { %13355 = vmatpush2.bf16.msra.mxu0 %v15812_v1  ;;  %13309 = vmatprep.subr.bf16.mxu1 %v15589_v2  ;;  %v15191_v1 = vcombine.high %v6553_v52, %v6561_v21  ;;  %v6840_v2 = vld [vmem:[%s16953_s14 + $0xc20] sm:$0xff] }
 0x71a   : > { %13356 = vmatprep.subr.bf16.mxu0 %v15797_v19  ;;  %v6848_v19 = vld [vmem:[%s16953_s14 + $0xc60] sm:$0xff] }
 0x71b   : > { %v7296_v50 = vld [vmem:[%s16953_s14 + $0x1a60] sm:$0xff] }
 0x71c   : > { %13310 = vmatpush2.bf16.msra.mxu1 %v15588_v23  ;;  %v15190_v23 = vcombine.low %v6553_v52, %v6561_v21  ;;  %v6481_v21 = vld [vmem:[%s16953_s14 + $0xe8] sm:$0xff] }
 0x71d   : > { %13357 = vmatpush2.bf16.msra.mxu0 %v15796_v12  ;;  %13311 = vmatprep.subr.bf16.mxu1 %v15573_v33  ;;  %v15477_v12 = vcombine.high %v6840_v2, %v6848_v19 }
 0x71e   : > { %13358 = vmatprep.subr.bf16.mxu0 %v15781_v4  ;;  %v15175_v4 = vcombine.high %v6537_v29, %v6545_v28 }
 0x720   : > { %13312 = vmatpush2.bf16.msra.mxu1 %v15572_v32 }
 0x721   : > { %13359 = vmatpush2.bf16.msra.mxu0 %v15780_v63  ;;  %13313 = vmatprep.subr.bf16.mxu1 %v15557_v46  ;;  %v15476_v63 = vcombine.low %v6840_v2, %v6848_v19  ;;  %v15174_v46 = vcombine.low %v6537_v29, %v6545_v28  ;;  %v15925_v2 = vcombine.high %v7288_v15, %v7296_v50  ;;  %v7272_v29 = vld [vmem:[%s16953_s14 + $0x19a0] sm:$0xff] }
 0x722   : > { %13360 = vmatprep.subr.bf16.mxu0 %v15765_v47  ;;  %v15973_v47 = vcombine.high %v7336_v0, %v7344_v5  ;;  %v7280_v28 = vld [vmem:[%s16953_s14 + $0x19e0] sm:$0xff] }
 0x723   : > { %v15909_v0 = vcombine.high %v7272_v29, %v7280_v28 }
 0x724   : > { %13314 = vmatpush2.bf16.msra.mxu1 %v15556_v9  ;;  %v7328_v9 = vld [vmem:[%s16953_s14 + $0x1b60] sm:$0xff] }
 0x725   : > { %13361 = vmatpush2.bf16.msra.mxu0 %v15764_v10  ;;  %13315 = vmatprep.subr.bf16.mxu1 %v15541_v13  ;;  %v6505_v10 = vld [vmem:[%s16953_s14 + $0x1a8] sm:$0xff]  ;;  %v15957_v24 = vcombine.high %v7320_v8, %v7328_v9  ;;  %v15956_v49 = vcombine.low %v7320_v8, %v7328_v9  ;;  %v7248_v8 = vld [vmem:[%s16953_s14 + $0x18e0] sm:$0xff] }
 0x726   : > { %13362 = vmatprep.subr.bf16.mxu0 %v15749_v51  ;;  %v6513_v13 = vld [vmem:[%s16953_s14 + $0x1e8] sm:$0xff]  ;;  %v13002_v51 = vadd.f32 %v18676_v40, %v18576_v48 }
 0x727   : > { %v15143_v26 = vcombine.high %v6505_v10, %v6513_v13  ;;  %v6497_v48 = vld [vmem:[%s16953_s14 + $0x168] sm:$0xff]  ;;  %v15142_v60 = vcombine.low %v6505_v10, %v6513_v13  ;;  %v15892_v13 = vcombine.low %v7256_v25, %v7264_v41 }
 0x728   : > { %13316 = vmatpush2.bf16.msra.mxu1 %v15540_v20  ;;  %v7312_v20 = vld [vmem:[%s16953_s14 + $0x1ae0] sm:$0xff]  ;;  %v13043_v42 = vadd.f32 %v18658_v39, %v13002_v51  ;;  %v6473_v39 = vld [vmem:[%s16953_s14 + $0xa8] sm:$0xff] }
 0x729   : > { %13363 = vmatpush2.bf16.msra.mxu0 %v15748_v35  ;;  %13317 = vmatprep.subr.bf16.mxu1 %v15525_v38  ;;  %v6432_v35 = vld [vmem:[%s16966_s19 + $0x20] sm:$0xff]  ;;  %v15111_v19 = vcombine.high %v6473_v39, %v6481_v21  ;;  %v6681_v9 = vld [vmem:[%s16953_s14 + $0x728] sm:$0xff] }
 0x72a   : > { %13364 = vmatprep.subr.bf16.mxu0 %v15733_v62  ;;  %v6489_v62 = vld [vmem:[%s16953_s14 + $0x128] sm:$0xff] }
 0x72b   : > { %v6689_v10 = vld [vmem:[%s16953_s14 + $0x768] sm:$0xff] }
 0x72c   : > { %13318 = vmatpush2.bf16.msra.mxu1 %v15524_v53  ;;  %v15941_v53 = vcombine.high %v7304_v30, %v7312_v20 }
 0x72d   : > { %13365 = vmatpush2.bf16.msra.mxu0 %v15732_v31  ;;  %13319 = vmatprep.subr.bf16.mxu1 %v15509_v34 }
 0x72e   : > { %13416 = vmatprep.subr.bf16.mxu0 %v15207_v37  ;;  %v15127_v37 = vcombine.high %v6489_v62, %v6497_v48 }
 0x730   : > { %v18730_v3 = vpop.f32.mrf.mxu0  ;;  %13320 = vmatpush2.bf16.msra.mxu1 %v15508_v56  ;;  %13367 = vmatmul.mubr.bf16.vlgmr.msra.gmra.mxu0 %v18145_v36 }
 0x731   : > { %13417 = vmatpush1.bf16.msra.mxu0 %v15206_v57  ;;  %13448 = vmatprep.mubr.bf16.mxu0 %v17977_v17  ;;  %v15940_v57 = vcombine.low %v7304_v30, %v7312_v20  ;;  %v6673_v30 = vld [vmem:[%s16953_s14 + $0x6e8] sm:$0xff] }
 0x732   : > { %v18734_v33 = vpop.f32.mrf.mxu0  ;;  %13321 = vmatprep.subr.bf16.mxu1 %v15493_v59  ;;  %13418 = vmatprep.subr.bf16.mxu0 %v15191_v1  ;;  %v15126_v1 = vcombine.low %v6489_v62, %v6497_v48  ;;  %v7464_v48 = vld [vmem:[%s16953_s14 + $0x1fa0] sm:$0xff] }
 0x734   : > { %v13126_v32 = vpop.f32.mrf.mxu0  ;;  %13322 = vmatpush2.bf16.msra.mxu1 %v15492_v11  ;;  %v6457_v11 = vld [vmem:[%s16953_s14 + $0x28] sm:$0xff] }
 0x735   : > { %13419 = vmatpush1.bf16.msra.mxu0 %v15190_v23  ;;  %13323 = vmatprep.subr.bf16.mxu1 %v15477_v12  ;;  %v6465_v23 = vld [vmem:[%s16953_s14 + $0x68] sm:$0xff]  ;;  %v15924_v12 = vcombine.low %v7288_v15, %v7296_v50 }
 0x736   : > { %v13127_v27 = vpop.f32.mrf.mxu0  ;;  %13420 = vmatprep.subr.bf16.mxu0 %v15175_v4  ;;  %v15110_v4 = vcombine.low %v6473_v39, %v6481_v21  ;;  %v15095_v5 = vcombine.high %v6457_v11, %v6465_v23  ;;  %v6697_v32 = vld [vmem:[%s16953_s14 + $0x7a8] sm:$0xff] }
 0x737   : > { %v6641_v15 = vld [vmem:[%s16953_s14 + $0x5e8] sm:$0xff] }
 0x738   : > { %13324 = vmatpush2.bf16.msra.mxu1 %v15476_v63  ;;  %v6705_v63 = vld [vmem:[%s16953_s14 + $0x7e8] sm:$0xff] }
 0x739   : > { %13421 = vmatpush1.bf16.msra.mxu0 %v15174_v46  ;;  %13375 = vmatprep.subr.bf16.mxu1 %v15973_v47  ;;  %v15908_v46 = vcombine.low %v7272_v29, %v7280_v28  ;;  %v15094_v47 = vcombine.low %v6457_v11, %v6465_v23  ;;  %v15335_v27 = vcombine.high %v6697_v32, %v6705_v63  ;;  %v7416_v11 = vld [vmem:[%s16953_s14 + $0x1e20] sm:$0xff] }
 0x73a   : > { %13422 = vmatprep.subr.bf16.mxu0 %v15159_v43  ;;  %v7240_v43 = vld [vmem:[%s16953_s14 + $0x18a0] sm:$0xff]  ;;  %v15334_v51 = vcombine.low %v6697_v32, %v6705_v63 }
 0x73b   : > { %v13081_v38 = vpop.f32.mrf.mxu1  ;;  %13326 = vmatmul.mubr.bf16.vlgmr.msra.gmra.mxu1 %v18060_v6  ;;  %v15876_v20 = vcombine.low %v7240_v43, %v7248_v8  ;;  %v7424_v23 = vld [vmem:[%s16953_s14 + $0x1e60] sm:$0xff] }
 0x73c   : > { %v13082_v40 = vadd.f32 %v13081_v38, %v13041_v7  ;;  %13376 = vmatpush1.bf16.msra.mxu1 %v15972_v18  ;;  %13407 = vmatprep.mubr.bf16.mxu1 %v18206_v14  ;;  %v15877_v18 = vcombine.high %v7240_v43, %v7248_v8  ;;  %v7232_v7 = vld [vmem:[%s16953_s14 + $0x1860] sm:$0xff]  ;;  %v16053_v25 = vcombine.high %v7416_v11, %v7424_v23 }
 0x73d   : > { %v13083_v45 = vpop.f32.mrf.mxu1  ;;  %13423 = vmatpush1.bf16.msra.mxu0 %v15158_v61  ;;  %13377 = vmatprep.subr.bf16.mxu1 %v15957_v24  ;;  %v15319_v61 = vcombine.high %v6681_v9, %v6689_v10  ;;  %v7224_v24 = vld [vmem:[%s16953_s14 + $0x1820] sm:$0xff] }
 0x73e   : > { %v13912_v31 = vadd.f32 %v13082_v40, %v6432_v35  ;;  %v13084_v34 = vadd.f32 %v13083_v45, %v13043_v42  ;;  %13424 = vmatprep.subr.bf16.mxu0 %v15143_v26  ;;  %v6665_v26 = vld [vmem:[%s16953_s14 + $0x6a8] sm:$0xff]  ;;  %v15318_v35 = vcombine.low %v6681_v9, %v6689_v10  ;;  %v15861_v38 = vcombine.high %v7224_v24, %v7232_v7  ;;  %v7472_v40 = vld [vmem:[%s16953_s14 + $0x1fe0] sm:$0xff] }
 0x73f   : > { %v13085_v52 = vpop.f32.mrf.mxu1  ;;  %v15303_v62 = vcombine.high %v6665_v26, %v6673_v30  ;;  %v6649_v42 = vld [vmem:[%s16953_s14 + $0x628] sm:$0xff]  ;;  %v15302_v45 = vcombine.low %v6665_v26, %v6673_v30  ;;  %v16100_v50 = vcombine.low %v7464_v48, %v7472_v40  ;;  %v7400_v32 = vld [vmem:[%s16953_s14 + $0x1da0] sm:$0xff] }
 0x740   : > { %13928 = vst [vmem:[%s16966_s19 + $0x20] sm:$0xff] %v13912_v31  ;;  %v13913_v56 = vadd.f32 %v13084_v34, %v6433_v44  ;;  %13378 = vmatpush1.bf16.msra.mxu1 %v15956_v49  ;;  %v6657_v49 = vld [vmem:[%s16953_s14 + $0x668] sm:$0xff]  ;;  %v15860_v44 = vcombine.low %v7224_v24, %v7232_v7  ;;  %v7448_v31 = vld [vmem:[%s16953_s14 + $0x1f20] sm:$0xff] }
 0x741   : > { %v13086_v59 = vpop.f32.mrf.mxu1  ;;  %13425 = vmatpush1.bf16.msra.mxu0 %v15142_v60  ;;  %13379 = vmatprep.subr.bf16.mxu1 %v15941_v53  ;;  %v16101_v60 = vcombine.high %v7464_v48, %v7472_v40  ;;  %v15287_v53 = vcombine.high %v6649_v42, %v6657_v49  ;;  %v7456_v34 = vld [vmem:[%s16953_s14 + $0x1f60] sm:$0xff]  ;;  %v15286_v52 = vcombine.low %v6649_v42, %v6657_v49 }
 0x742   : > { %13929 = vst [vmem:[%s16966_s19 + $0x28] sm:$0xff] %v13913_v56  ;;  %13426 = vmatprep.subr.bf16.mxu0 %v15127_v37  ;;  %v6633_v37 = vld [vmem:[%s16953_s14 + $0x5a8] sm:$0xff]  ;;  %v16085_v39 = vcombine.high %v7448_v31, %v7456_v34  ;;  %v7432_v56 = vld [vmem:[%s16953_s14 + $0x1ea0] sm:$0xff] }
 0x743   : > { %v15271_v21 = vcombine.high %v6633_v37, %v6641_v15  ;;  %v6617_v59 = vld [vmem:[%s16953_s14 + $0x528] sm:$0xff]  ;;  %v7408_v63 = vld [vmem:[%s16953_s14 + $0x1de0] sm:$0xff] }
 0x744   : > { %13380 = vmatpush1.bf16.msra.mxu1 %v15940_v57  ;;  %v7440_v57 = vld [vmem:[%s16953_s14 + $0x1ee0] sm:$0xff]  ;;  %v16037_v43 = vcombine.high %v7400_v32, %v7408_v63 }
 0x745   : > { %13427 = vmatpush1.bf16.msra.mxu0 %v15126_v1  ;;  %13381 = vmatprep.subr.bf16.mxu1 %v15925_v2  ;;  %v6625_v1 = vld [vmem:[%s16953_s14 + $0x568] sm:$0xff]  ;;  %v16084_v2 = vcombine.low %v7448_v31, %v7456_v34  ;;  %v16069_v29 = vcombine.high %v7432_v56, %v7440_v57  ;;  %v7384_v9 = vld [vmem:[%s16953_s14 + $0x1d20] sm:$0xff] }
 0x746   : > { %13428 = vmatprep.subr.bf16.mxu0 %v15111_v19  ;;  %v15270_v19 = vcombine.low %v6633_v37, %v6641_v15  ;;  %v15255_v28 = vcombine.high %v6617_v59, %v6625_v1  ;;  %v7392_v10 = vld [vmem:[%s16953_s14 + $0x1d60] sm:$0xff] }
 0x747   : > { %v16021_v24 = vcombine.high %v7384_v9, %v7392_v10  ;;  %v7368_v26 = vld [vmem:[%s16953_s14 + $0x1ca0] sm:$0xff] }
 0x748   : > { %13382 = vmatpush1.bf16.msra.mxu1 %v15924_v12  ;;  %v6601_v12 = vld [vmem:[%s16953_s14 + $0x4a8] sm:$0xff]  ;;  %v7376_v30 = vld [vmem:[%s16953_s14 + $0x1ce0] sm:$0xff] }
 0x749   : > { %13429 = vmatpush1.bf16.msra.mxu0 %v15110_v4  ;;  %13383 = vmatprep.subr.bf16.mxu1 %v15909_v0  ;;  %v6609_v4 = vld [vmem:[%s16953_s14 + $0x4e8] sm:$0xff]  ;;  %v16068_v0 = vcombine.low %v7432_v56, %v7440_v57  ;;  %v16005_v48 = vcombine.high %v7368_v26, %v7376_v30  ;;  %v7352_v42 = vld [vmem:[%s16953_s14 + $0x1c20] sm:$0xff] }
 0x74a   : > { %13430 = vmatprep.subr.bf16.mxu0 %v15095_v5  ;;  %v15254_v5 = vcombine.low %v6617_v59, %v6625_v1  ;;  %v15239_v41 = vcombine.high %v6601_v12, %v6609_v4  ;;  %v7360_v49 = vld [vmem:[%s16953_s14 + $0x1c60] sm:$0xff] }
 0x74b   : > { %v15989_v34 = vcombine.high %v7352_v42, %v7360_v49  ;;  %v15988_v57 = vcombine.low %v7352_v42, %v7360_v49 }
 0x74c   : > { %13384 = vmatpush1.bf16.msra.mxu1 %v15908_v46  ;;  %v6585_v46 = vld [vmem:[%s16953_s14 + $0x428] sm:$0xff] }
 0x74d   : > { %13431 = vmatpush1.bf16.msra.mxu0 %v15094_v47  ;;  %13385 = vmatprep.subr.bf16.mxu1 %v15893_v55  ;;  %v6593_v47 = vld [vmem:[%s16953_s14 + $0x468] sm:$0xff]  ;;  %v16052_v55 = vcombine.low %v7416_v11, %v7424_v23 }
 0x74e   : > { %13432 = vmatprep.subr.bf16.mxu0 %v15335_v27  ;;  %v15238_v27 = vcombine.low %v6601_v12, %v6609_v4  ;;  %v15223_v8 = vcombine.high %v6585_v46, %v6593_v47  ;;  %v7017_v11 = vld [vmem:[%s16953_s14 + $0x11a8] sm:$0xff] }
 0x74f   : > { %v7025_v23 = vld [vmem:[%s16953_s14 + $0x11e8] sm:$0xff] }
 0x750   : > { %13386 = vmatpush1.bf16.msra.mxu1 %v15892_v13  ;;  %v7081_v13 = vld [vmem:[%s16953_s14 + $0x13a8] sm:$0xff] }
 0x751   : > { %13433 = vmatpush2.bf16.msra.mxu0 %v15334_v51  ;;  %13387 = vmatprep.subr.bf16.mxu1 %v15877_v18  ;;  %v7089_v51 = vld [vmem:[%s16953_s14 + $0x13e8] sm:$0xff]  ;;  %v16036_v18 = vcombine.low %v7400_v32, %v7408_v63 }
 0x752   : > { %13434 = vmatprep.subr.bf16.mxu0 %v15319_v61  ;;  %v15222_v61 = vcombine.low %v6585_v46, %v6593_v47  ;;  %v15719_v7 = vcombine.high %v7081_v13, %v7089_v51  ;;  %v7001_v63 = vld [vmem:[%s16953_s14 + $0x1128] sm:$0xff] }
 0x753   : > { %v7009_v46 = vld [vmem:[%s16953_s14 + $0x1168] sm:$0xff] }
 0x754   : > { %13388 = vmatpush1.bf16.msra.mxu1 %v15876_v20  ;;  %v7065_v20 = vld [vmem:[%s16953_s14 + $0x1328] sm:$0xff] }
 0x755   : > { %13435 = vmatpush2.bf16.msra.mxu0 %v15318_v35  ;;  %13389 = vmatprep.subr.bf16.mxu1 %v15861_v38  ;;  %v7073_v35 = vld [vmem:[%s16953_s14 + $0x1368] sm:$0xff]  ;;  %v16020_v38 = vcombine.low %v7384_v9, %v7392_v10 }
 0x756   : > { %13436 = vmatprep.subr.bf16.mxu0 %v15303_v62  ;;  %v15718_v62 = vcombine.low %v7081_v13, %v7089_v51  ;;  %v15703_v40 = vcombine.high %v7065_v20, %v7073_v35  ;;  %v15702_v31 = vcombine.low %v7065_v20, %v7073_v35  ;;  %v6777_v9 = vld [vmem:[%s16953_s14 + $0xa28] sm:$0xff] }
 0x757   : > { %v6785_v10 = vld [vmem:[%s16953_s14 + $0xa68] sm:$0xff] }
 0x758   : > { %13390 = vmatpush1.bf16.msra.mxu1 %v15860_v44  ;;  %v7049_v44 = vld [vmem:[%s16953_s14 + $0x12a8] sm:$0xff] }
 0x759   : > { %13437 = vmatpush2.bf16.msra.mxu0 %v15302_v45  ;;  %13391 = vmatprep.subr.bf16.mxu1 %v16101_v60  ;;  %v7057_v45 = vld [vmem:[%s16953_s14 + $0x12e8] sm:$0xff] }
 0x75a   : > { %13438 = vmatprep.subr.bf16.mxu0 %v15287_v53  ;;  %v16004_v53 = vcombine.low %v7368_v26, %v7376_v30  ;;  %v15687_v15 = vcombine.high %v7049_v44, %v7057_v45  ;;  %v15686_v59 = vcombine.low %v7049_v44, %v7057_v45  ;;  %v6985_v51 = vld [vmem:[%s16953_s14 + $0x10a8] sm:$0xff]  ;;  %v15415_v26 = vcombine.high %v6777_v9, %v6785_v10 }
 0x75b   : > { %v6761_v20 = vld [vmem:[%s16953_s14 + $0x9a8] sm:$0xff] }
 0x75c   : > { %13392 = vmatpush2.bf16.msra.mxu1 %v16100_v50  ;;  %v6825_v50 = vld [vmem:[%s16953_s14 + $0xba8] sm:$0xff] }
 0x75d   : > { %13439 = vmatpush2.bf16.msra.mxu0 %v15286_v52  ;;  %13393 = vmatprep.subr.bf16.mxu1 %v16085_v39  ;;  %v6833_v52 = vld [vmem:[%s16953_s14 + $0xbe8] sm:$0xff] }
 0x75e   : > { %13440 = vmatprep.subr.bf16.mxu0 %v15271_v21  ;;  %v7033_v39 = vld [vmem:[%s16953_s14 + $0x1228] sm:$0xff]  ;;  %v15463_v1 = vcombine.high %v6825_v50, %v6833_v52  ;;  %v15462_v12 = vcombine.low %v6825_v50, %v6833_v52 }
 0x75f   : > { %v7041_v21 = vld [vmem:[%s16953_s14 + $0x1268] sm:$0xff] }
 0x760   : > { %13394 = vmatpush2.bf16.msra.mxu1 %v16084_v2  ;;  %v15670_v4 = vcombine.low %v7033_v39, %v7041_v21  ;;  %v6769_v35 = vld [vmem:[%s16953_s14 + $0x9e8] sm:$0xff] }
 0x761   : > { %13441 = vmatpush2.bf16.msra.mxu0 %v15270_v19  ;;  %13395 = vmatprep.subr.bf16.mxu1 %v16069_v29  ;;  %v15671_v19 = vcombine.high %v7033_v39, %v7041_v21  ;;  %v6809_v29 = vld [vmem:[%s16953_s14 + $0xb28] sm:$0xff]  ;;  %v15399_v42 = vcombine.high %v6761_v20, %v6769_v35 }
 0x762   : > { %13442 = vmatprep.subr.bf16.mxu0 %v15255_v28  ;;  %v6817_v28 = vld [vmem:[%s16953_s14 + $0xb68] sm:$0xff] }
 0x763   : > { %v15446_v47 = vcombine.low %v6809_v29, %v6817_v28  ;;  %v6745_v44 = vld [vmem:[%s16953_s14 + $0x928] sm:$0xff] }
 0x764   : > { %13396 = vmatpush2.bf16.msra.mxu1 %v16068_v0  ;;  %v15447_v0 = vcombine.high %v6809_v29, %v6817_v28  ;;  %v6753_v45 = vld [vmem:[%s16953_s14 + $0x968] sm:$0xff] }
 0x765   : > { %13443 = vmatpush2.bf16.msra.mxu0 %v15254_v5  ;;  %13397 = vmatprep.subr.bf16.mxu1 %v16053_v25  ;;  %v15655_v5 = vcombine.high %v7017_v11, %v7025_v23  ;;  %v6793_v25 = vld [vmem:[%s16953_s14 + $0xaa8] sm:$0xff]  ;;  %v15383_v50 = vcombine.high %v6745_v44, %v6753_v45 }
 0x766   : > { %13444 = vmatprep.subr.bf16.mxu0 %v15239_v41  ;;  %v6801_v41 = vld [vmem:[%s16953_s14 + $0xae8] sm:$0xff] }
 0x767   : > { %v6729_v39 = vld [vmem:[%s16953_s14 + $0x8a8] sm:$0xff] }
 0x768   : > { %13398 = vmatpush2.bf16.msra.mxu1 %v16052_v55  ;;  %v6737_v21 = vld [vmem:[%s16953_s14 + $0x8e8] sm:$0xff] }
 0x769   : > { %13445 = vmatpush2.bf16.msra.mxu0 %v15238_v27  ;;  %13399 = vmatprep.subr.bf16.mxu1 %v16037_v43  ;;  %v15654_v27 = vcombine.low %v7017_v11, %v7025_v23  ;;  %v15431_v43 = vcombine.high %v6793_v25, %v6801_v41  ;;  %v6713_v29 = vld [vmem:[%s16953_s14 + $0x828] sm:$0xff] }
 0x76a   : > { %13446 = vmatprep.subr.bf16.mxu0 %v15223_v8  ;;  %v15639_v8 = vcombine.high %v7001_v63, %v7009_v46  ;;  %v6721_v28 = vld [vmem:[%s16953_s14 + $0x868] sm:$0xff] }
 0x76b   : > { %v7177_v11 = vld [vmem:[%s16953_s14 + $0x16a8] sm:$0xff] }
 0x76c   : > { %13400 = vmatpush2.bf16.msra.mxu1 %v16036_v18  ;;  %v6993_v18 = vld [vmem:[%s16953_s14 + $0x10e8] sm:$0xff] }
 0x76d   : > { %13447 = vmatpush2.bf16.msra.mxu0 %v15222_v61  ;;  %13401 = vmatprep.subr.bf16.mxu1 %v16021_v24  ;;  %v15430_v61 = vcombine.low %v6793_v25, %v6801_v41  ;;  %v15623_v30 = vcombine.high %v6985_v51, %v6993_v18  ;;  %v7185_v23 = vld [vmem:[%s16953_s14 + $0x16e8] sm:$0xff] }
 0x76e   : > { %13498 = vmatprep.subr.bf16.mxu0 %v15719_v7  ;;  %v15638_v7 = vcombine.low %v7001_v63, %v7009_v46  ;;  %v6953_v25 = vld [vmem:[%s16953_s14 + $0xfa8] sm:$0xff] }
 0x76f   : > { %v6961_v41 = vld [vmem:[%s16953_s14 + $0xfe8] sm:$0xff] }
 0x770   : > { %v18812_v60 = vpop.f32.mrf.mxu0  ;;  %13402 = vmatpush2.bf16.msra.mxu1 %v16020_v38  ;;  %13449 = vmatmul.mubr.bf16.vlgmr.msra.gmra.mxu0 %v18058_v58  ;;  %v6969_v38 = vld [vmem:[%s16953_s14 + $0x1028] sm:$0xff] }
 0x771   : > { %13499 = vmatpush1.bf16.msra.mxu0 %v15718_v62  ;;  %13530 = vmatprep.mubr.bf16.mxu0 %v18081_v16  ;;  %v6977_v62 = vld [vmem:[%s16953_s14 + $0x1068] sm:$0xff] }
 0x772   : > { %v18816_v37 = vpop.f32.mrf.mxu0  ;;  %13403 = vmatprep.subr.bf16.mxu1 %v16005_v48  ;;  %13500 = vmatprep.subr.bf16.mxu0 %v15703_v40  ;;  %v15414_v48 = vcombine.low %v6777_v9, %v6785_v10  ;;  %v15622_v40 = vcombine.low %v6985_v51, %v6993_v18  ;;  %v15607_v49 = vcombine.high %v6969_v38, %v6977_v62  ;;  %v7161_v63 = vld [vmem:[%s16953_s14 + $0x1628] sm:$0xff] }
 0x773   : > { %v7169_v46 = vld [vmem:[%s16953_s14 + $0x1668] sm:$0xff]  ;;  %v15590_v18 = vcombine.low %v6953_v25, %v6961_v41 }
 0x774   : > { %v13208_v56 = vpop.f32.mrf.mxu0  ;;  %13404 = vmatpush2.bf16.msra.mxu1 %v16004_v53  ;;  %v7209_v53 = vld [vmem:[%s16953_s14 + $0x17a8] sm:$0xff] }
 0x775   : > { %13501 = vmatpush1.bf16.msra.mxu0 %v15702_v31  ;;  %13405 = vmatprep.subr.bf16.mxu1 %v15989_v34  ;;  %v7217_v31 = vld [vmem:[%s16953_s14 + $0x17e8] sm:$0xff]  ;;  %v15398_v34 = vcombine.low %v6761_v20, %v6769_v35 }
 0x776   : > { %v13209_v2 = vpop.f32.mrf.mxu0  ;;  %13502 = vmatprep.subr.bf16.mxu0 %v15687_v15  ;;  %v15606_v15 = vcombine.low %v6969_v38, %v6977_v62  ;;  %v15847_v52 = vcombine.high %v7209_v53, %v7217_v31  ;;  %v7193_v56 = vld [vmem:[%s16953_s14 + $0x1728] sm:$0xff] }
 0x777   : > { %v15367_v2 = vcombine.high %v6729_v39, %v6737_v21  ;;  %v6937_v9 = vld [vmem:[%s16953_s14 + $0xf28] sm:$0xff] }
 0x778   : > { %13406 = vmatpush2.bf16.msra.mxu1 %v15988_v57  ;;  %v7201_v57 = vld [vmem:[%s16953_s14 + $0x1768] sm:$0xff] }
 0x779   : > { %13503 = vmatpush1.bf16.msra.mxu0 %v15686_v59  ;;  %13457 = vmatprep.subr.bf16.mxu1 %v15463_v1  ;;  %v15382_v59 = vcombine.low %v6745_v44, %v6753_v45  ;;  %v15846_v1 = vcombine.low %v7209_v53, %v7217_v31  ;;  %v6945_v10 = vld [vmem:[%s16953_s14 + $0xf68] sm:$0xff] }
 0x77a   : > { %13504 = vmatprep.subr.bf16.mxu0 %v15671_v19  ;;  %v15831_v19 = vcombine.high %v7193_v56, %v7201_v57  ;;  %v7153_v51 = vld [vmem:[%s16953_s14 + $0x15e8] sm:$0xff]  ;;  %v15574_v38 = vcombine.low %v6937_v9, %v6945_v10 }
 0x77b   : > { %v18828_v32 = vpop.f32.mrf.mxu1  ;;  %13408 = vmatmul.mubr.bf16.vlgmr.msra.gmra.mxu1 %v18208_v54  ;;  %v7129_v20 = vld [vmem:[%s16953_s14 + $0x1528] sm:$0xff] }
 0x77c   : > { %13458 = vmatpush1.bf16.msra.mxu1 %v15462_v12  ;;  %13489 = vmatprep.mubr.bf16.mxu1 %v17982_v22  ;;  %v15366_v12 = vcombine.low %v6729_v39, %v6737_v21  ;;  %v7137_v35 = vld [vmem:[%s16953_s14 + $0x1568] sm:$0xff] }
 0x77d   : > { %v18834_v55 = vpop.f32.mrf.mxu1  ;;  %13505 = vmatpush1.bf16.msra.mxu0 %v15670_v4  ;;  %13459 = vmatprep.subr.bf16.mxu1 %v15447_v0  ;;  %v15830_v4 = vcombine.low %v7193_v56, %v7201_v57  ;;  %v15351_v0 = vcombine.high %v6713_v29, %v6721_v28  ;;  %v7113_v44 = vld [vmem:[%s16953_s14 + $0x14a8] sm:$0xff]  ;;  %v15766_v31 = vcombine.low %v7129_v20, %v7137_v35 }
 0x77e   : > { %13506 = vmatprep.subr.bf16.mxu0 %v15655_v5  ;;  %v15815_v5 = vcombine.high %v7177_v11, %v7185_v23  ;;  %v7121_v45 = vld [vmem:[%s16953_s14 + $0x14e8] sm:$0xff] }
 0x77f   : > { %v13167_v13 = vpop.f32.mrf.mxu1  ;;  %v7097_v39 = vld [vmem:[%s16953_s14 + $0x1428] sm:$0xff]  ;;  %v15750_v57 = vcombine.low %v7113_v44, %v7121_v45 }
 0x780   : > { %13460 = vmatpush1.bf16.msra.mxu1 %v15446_v47  ;;  %v15350_v47 = vcombine.low %v6713_v29, %v6721_v28  ;;  %v7145_v13 = vld [vmem:[%s16953_s14 + $0x15a8] sm:$0xff]  ;;  %v6570_v29 = vld [vmem:[%s16953_s14 + $0x3b0] sm:$0xff] }
 0x781   : > { %v13168_v24 = vpop.f32.mrf.mxu1  ;;  %13507 = vmatpush1.bf16.msra.mxu0 %v15654_v27  ;;  %13461 = vmatprep.subr.bf16.mxu1 %v15431_v43  ;;  %v15814_v27 = vcombine.low %v7177_v11, %v7185_v23  ;;  %v15591_v43 = vcombine.high %v6953_v25, %v6961_v41  ;;  %v15782_v62 = vcombine.low %v7145_v13, %v7153_v51  ;;  %v7105_v21 = vld [vmem:[%s16953_s14 + $0x1468] sm:$0xff]  ;;  %v6578_v28 = vld [vmem:[%s16953_s14 + $0x3f0] sm:$0xff] }
 0x782   : > { %13508 = vmatprep.subr.bf16.mxu0 %v15639_v8  ;;  %v15799_v8 = vcombine.high %v7161_v63, %v7169_v46  ;;  %v15575_v24 = vcombine.high %v6937_v9, %v6945_v10  ;;  %v15734_v23 = vcombine.low %v7097_v39, %v7105_v21  ;;  %v6554_v25 = vld [vmem:[%s16953_s14 + $0x330] sm:$0xff] }
 0x783   : > { %v6562_v41 = vld [vmem:[%s16953_s14 + $0x370] sm:$0xff] }
 0x784   : > { %13462 = vmatpush1.bf16.msra.mxu1 %v15430_v61  ;;  %v15798_v61 = vcombine.low %v7161_v63, %v7169_v46  ;;  %v15208_v46 = vcombine.low %v6570_v29, %v6578_v28  ;;  %v6538_v9 = vld [vmem:[%s16953_s14 + $0x2b0] sm:$0xff] }
 0x785   : > { %13509 = vmatpush1.bf16.msra.mxu0 %v15638_v7  ;;  %13463 = vmatprep.subr.bf16.mxu1 %v15415_v26  ;;  %v15783_v7 = vcombine.high %v7145_v13, %v7153_v51  ;;  %v6921_v26 = vld [vmem:[%s16953_s14 + $0xea8] sm:$0xff]  ;;  %v6546_v10 = vld [vmem:[%s16953_s14 + $0x2f0] sm:$0xff] }
 0x786   : > { %13510 = vmatprep.subr.bf16.mxu0 %v15623_v30  ;;  %v6929_v30 = vld [vmem:[%s16953_s14 + $0xee8] sm:$0xff] }
 0x787   : > { %v15558_v53 = vcombine.low %v6921_v26, %v6929_v30 }
 0x788   : > { %13464 = vmatpush1.bf16.msra.mxu1 %v15414_v48  ;;  %v15559_v48 = vcombine.high %v6921_v26, %v6929_v30  ;;  %v7337_v26 = vld [vmem:[%s16953_s14 + $0x1ba8] sm:$0xff] }
 0x789   : > { %13511 = vmatpush1.bf16.msra.mxu0 %v15622_v40  ;;  %13465 = vmatprep.subr.bf16.mxu1 %v15399_v42  ;;  %v15767_v40 = vcombine.high %v7129_v20, %v7137_v35  ;;  %v6905_v42 = vld [vmem:[%s16953_s14 + $0xe28] sm:$0xff]  ;;  %v6522_v20 = vld [vmem:[%s16953_s14 + $0x230] sm:$0xff] }
 0x78a   : > { %13512 = vmatprep.subr.bf16.mxu0 %v15607_v49  ;;  %v6913_v49 = vld [vmem:[%s16953_s14 + $0xe68] sm:$0xff]  ;;  %v6530_v35 = vld [vmem:[%s16953_s14 + $0x270] sm:$0xff] }
 0x78b   : > { %v15542_v56 = vcombine.low %v6905_v42, %v6913_v49  ;;  %v7345_v30 = vld [vmem:[%s16953_s14 + $0x1be8] sm:$0xff] }
 0x78c   : > { %13466 = vmatpush1.bf16.msra.mxu1 %v15398_v34  ;;  %v15543_v34 = vcombine.high %v6905_v42, %v6913_v49  ;;  %v13164_v42 = vadd.f32 %v18828_v32, %v18730_v3  ;;  %v15160_v3 = vcombine.low %v6522_v20, %v6530_v35 }
 0x78d   : > { %13513 = vmatpush1.bf16.msra.mxu0 %v15606_v15  ;;  %13467 = vmatprep.subr.bf16.mxu1 %v15383_v50  ;;  %v15751_v15 = vcombine.high %v7113_v44, %v7121_v45  ;;  %v6889_v50 = vld [vmem:[%s16953_s14 + $0xda8] sm:$0xff]  ;;  %v15161_v44 = vcombine.high %v6522_v20, %v6530_v35 }
 0x78e   : > { %13514 = vmatprep.subr.bf16.mxu0 %v15847_v52  ;;  %v6897_v52 = vld [vmem:[%s16953_s14 + $0xde8] sm:$0xff] }
 0x78f   : > { %v15526_v11 = vcombine.low %v6889_v50, %v6897_v52  ;;  %v7321_v45 = vld [vmem:[%s16953_s14 + $0x1b28] sm:$0xff] }
 0x790   : > { %13468 = vmatpush1.bf16.msra.mxu1 %v15382_v59  ;;  %v15527_v59 = vcombine.high %v6889_v50, %v6897_v52  ;;  %v15974_v50 = vcombine.low %v7337_v26, %v7345_v30  ;;  %v13205_v52 = vadd.f32 %v18812_v60, %v13164_v42  ;;  %v7257_v20 = vld [vmem:[%s16953_s14 + $0x1928] sm:$0xff] }
 0x791   : > { %13515 = vmatpush2.bf16.msra.mxu0 %v15846_v1  ;;  %13469 = vmatprep.subr.bf16.mxu1 %v15367_v2  ;;  %v15735_v1 = vcombine.high %v7097_v39, %v7105_v21  ;;  %v6873_v2 = vld [vmem:[%s16953_s14 + $0xd28] sm:$0xff] }
 0x792   : > { %13516 = vmatprep.subr.bf16.mxu0 %v15831_v19  ;;  %v6881_v19 = vld [vmem:[%s16953_s14 + $0xd68] sm:$0xff] }
 0x793   : > { %v15510_v63 = vcombine.low %v6873_v2, %v6881_v19  ;;  %v7305_v21 = vld [vmem:[%s16953_s14 + $0x1aa8] sm:$0xff] }
 0x794   : > { %13470 = vmatpush1.bf16.msra.mxu1 %v15366_v12  ;;  %v15511_v12 = vcombine.high %v6873_v2, %v6881_v19  ;;  %v6435_v19 = vld [vmem:[%s16966_s19 + $0x38] sm:$0xff]  ;;  %v7265_v35 = vld [vmem:[%s16953_s14 + $0x1968] sm:$0xff] }
 0x795   : > { %13517 = vmatpush2.bf16.msra.mxu0 %v15830_v4  ;;  %13471 = vmatprep.subr.bf16.mxu1 %v15351_v0  ;;  %v15209_v4 = vcombine.high %v6570_v29, %v6578_v28  ;;  %v6857_v0 = vld [vmem:[%s16953_s14 + $0xca8] sm:$0xff]  ;;  %v15895_v42 = vcombine.high %v7257_v20, %v7265_v35 }
 0x796   : > { %13518 = vmatprep.subr.bf16.mxu0 %v15815_v5  ;;  %v6865_v5 = vld [vmem:[%s16953_s14 + $0xce8] sm:$0xff] }
 0x797   : > { %v15494_v51 = vcombine.low %v6857_v0, %v6865_v5 }
 0x798   : > { %13472 = vmatpush1.bf16.msra.mxu1 %v15350_v47  ;;  %v15495_v47 = vcombine.high %v6857_v0, %v6865_v5  ;;  %v7289_v0 = vld [vmem:[%s16953_s14 + $0x1a28] sm:$0xff] }
 0x799   : > { %13519 = vmatpush2.bf16.msra.mxu0 %v15814_v27  ;;  %13473 = vmatprep.subr.bf16.mxu1 %v15591_v43  ;;  %v15193_v27 = vcombine.high %v6554_v25, %v6562_v41  ;;  %v6841_v43 = vld [vmem:[%s16953_s14 + $0xc28] sm:$0xff] }
 0x79a   : > { %13520 = vmatprep.subr.bf16.mxu0 %v15799_v8  ;;  %v6849_v8 = vld [vmem:[%s16953_s14 + $0xc68] sm:$0xff] }
 0x79b   : > { %v7297_v5 = vld [vmem:[%s16953_s14 + $0x1a68] sm:$0xff] }
 0x79c   : > { %13474 = vmatpush2.bf16.msra.mxu1 %v15590_v18  ;;  %v15192_v18 = vcombine.low %v6554_v25, %v6562_v41  ;;  %v6482_v41 = vld [vmem:[%s16953_s14 + $0xf0] sm:$0xff] }
 0x79d   : > { %13521 = vmatpush2.bf16.msra.mxu0 %v15798_v61  ;;  %13475 = vmatprep.subr.bf16.mxu1 %v15575_v24  ;;  %v15479_v61 = vcombine.high %v6841_v43, %v6849_v8 }
 0x79e   : > { %13522 = vmatprep.subr.bf16.mxu0 %v15783_v7  ;;  %v15177_v7 = vcombine.high %v6538_v9, %v6546_v10 }
 0x7a0   : > { %13476 = vmatpush2.bf16.msra.mxu1 %v15574_v38 }
 0x7a1   : > { %13523 = vmatpush2.bf16.msra.mxu0 %v15782_v62  ;;  %13477 = vmatprep.subr.bf16.mxu1 %v15559_v48  ;;  %v15478_v62 = vcombine.low %v6841_v43, %v6849_v8  ;;  %v15176_v48 = vcombine.low %v6538_v9, %v6546_v10  ;;  %v15927_v43 = vcombine.high %v7289_v0, %v7297_v5  ;;  %v7273_v9 = vld [vmem:[%s16953_s14 + $0x19a8] sm:$0xff] }
 0x7a2   : > { %13524 = vmatprep.subr.bf16.mxu0 %v15767_v40  ;;  %v15975_v40 = vcombine.high %v7337_v26, %v7345_v30  ;;  %v7281_v10 = vld [vmem:[%s16953_s14 + $0x19e8] sm:$0xff] }
 0x7a3   : > { %v15911_v26 = vcombine.high %v7273_v9, %v7281_v10 }
 0x7a4   : > { %13478 = vmatpush2.bf16.msra.mxu1 %v15558_v53  ;;  %v7329_v53 = vld [vmem:[%s16953_s14 + $0x1b68] sm:$0xff] }
 0x7a5   : > { %13525 = vmatpush2.bf16.msra.mxu0 %v15766_v31  ;;  %13479 = vmatprep.subr.bf16.mxu1 %v15543_v34  ;;  %v6506_v31 = vld [vmem:[%s16953_s14 + $0x1b0] sm:$0xff]  ;;  %v15959_v32 = vcombine.high %v7321_v45, %v7329_v53  ;;  %v15958_v60 = vcombine.low %v7321_v45, %v7329_v53  ;;  %v7249_v45 = vld [vmem:[%s16953_s14 + $0x18e8] sm:$0xff] }
 0x7a6   : > { %13526 = vmatprep.subr.bf16.mxu0 %v15751_v15  ;;  %v6514_v34 = vld [vmem:[%s16953_s14 + $0x1f0] sm:$0xff]  ;;  %v13166_v15 = vadd.f32 %v18834_v55, %v18734_v33 }
 0x7a7   : > { %v15145_v39 = vcombine.high %v6506_v31, %v6514_v34  ;;  %v6498_v33 = vld [vmem:[%s16953_s14 + $0x170] sm:$0xff]  ;;  %v15144_v28 = vcombine.low %v6506_v31, %v6514_v34  ;;  %v15894_v34 = vcombine.low %v7257_v20, %v7265_v35 }
 0x7a8   : > { %13480 = vmatpush2.bf16.msra.mxu1 %v15542_v56  ;;  %v7313_v56 = vld [vmem:[%s16953_s14 + $0x1ae8] sm:$0xff]  ;;  %v13207_v2 = vadd.f32 %v18816_v37, %v13166_v15  ;;  %v6474_v37 = vld [vmem:[%s16953_s14 + $0xb0] sm:$0xff] }
 0x7a9   : > { %13527 = vmatpush2.bf16.msra.mxu0 %v15750_v57  ;;  %13481 = vmatprep.subr.bf16.mxu1 %v15527_v59  ;;  %v6434_v57 = vld [vmem:[%s16966_s19 + $0x30] sm:$0xff]  ;;  %v15113_v8 = vcombine.high %v6474_v37, %v6482_v41 }
 0x7aa   : > { %13528 = vmatprep.subr.bf16.mxu0 %v15735_v1  ;;  %v6490_v1 = vld [vmem:[%s16953_s14 + $0x130] sm:$0xff] }
 0x7ab   : > { %v6682_v53 = vld [vmem:[%s16953_s14 + $0x730] sm:$0xff] }
 0x7ac   : > { %13482 = vmatpush2.bf16.msra.mxu1 %v15526_v11  ;;  %v15943_v11 = vcombine.high %v7305_v21, %v7313_v56  ;;  %v6690_v31 = vld [vmem:[%s16953_s14 + $0x770] sm:$0xff] }
 0x7ad   : > { %13529 = vmatpush2.bf16.msra.mxu0 %v15734_v23  ;;  %13483 = vmatprep.subr.bf16.mxu1 %v15511_v12 }
 0x7ae   : > { %13580 = vmatprep.subr.bf16.mxu0 %v15209_v4  ;;  %v15129_v4 = vcombine.high %v6490_v1, %v6498_v33 }
 0x7b0   : > { %v18888_v13 = vpop.f32.mrf.mxu0  ;;  %13484 = vmatpush2.bf16.msra.mxu1 %v15510_v63  ;;  %13531 = vmatmul.mubr.bf16.vlgmr.msra.gmra.mxu0 %v18145_v36 }
 0x7b1   : > { %13581 = vmatpush1.bf16.msra.mxu0 %v15208_v46  ;;  %13612 = vmatprep.mubr.bf16.mxu0 %v17977_v17  ;;  %v15942_v46 = vcombine.low %v7305_v21, %v7313_v56  ;;  %v6674_v21 = vld [vmem:[%s16953_s14 + $0x6f0] sm:$0xff] }
 0x7b2   : > { %v18892_v24 = vpop.f32.mrf.mxu0  ;;  %13485 = vmatprep.subr.bf16.mxu1 %v15495_v47  ;;  %13582 = vmatprep.subr.bf16.mxu0 %v15193_v27  ;;  %v15128_v27 = vcombine.low %v6490_v1, %v6498_v33  ;;  %v7465_v33 = vld [vmem:[%s16953_s14 + $0x1fa8] sm:$0xff] }
 0x7b4   : > { %v13290_v38 = vpop.f32.mrf.mxu0  ;;  %13486 = vmatpush2.bf16.msra.mxu1 %v15494_v51  ;;  %v6458_v51 = vld [vmem:[%s16953_s14 + $0x30] sm:$0xff] }
 0x7b5   : > { %13583 = vmatpush1.bf16.msra.mxu0 %v15192_v18  ;;  %13487 = vmatprep.subr.bf16.mxu1 %v15479_v61  ;;  %v6466_v18 = vld [vmem:[%s16953_s14 + $0x70] sm:$0xff]  ;;  %v15926_v61 = vcombine.low %v7289_v0, %v7297_v5 }
 0x7b6   : > { %v13291_v49 = vpop.f32.mrf.mxu0  ;;  %13584 = vmatprep.subr.bf16.mxu0 %v15177_v7  ;;  %v15112_v7 = vcombine.low %v6474_v37, %v6482_v41  ;;  %v15097_v30 = vcombine.high %v6458_v51, %v6466_v18  ;;  %v6698_v38 = vld [vmem:[%s16953_s14 + $0x7b0] sm:$0xff] }
 0x7b7   : > { %v6642_v0 = vld [vmem:[%s16953_s14 + $0x5f0] sm:$0xff] }
 0x7b8   : > { %13488 = vmatpush2.bf16.msra.mxu1 %v15478_v62  ;;  %v6706_v62 = vld [vmem:[%s16953_s14 + $0x7f0] sm:$0xff] }
 0x7b9   : > { %13585 = vmatpush1.bf16.msra.mxu0 %v15176_v48  ;;  %13539 = vmatprep.subr.bf16.mxu1 %v15975_v40  ;;  %v15910_v48 = vcombine.low %v7273_v9, %v7281_v10  ;;  %v15096_v40 = vcombine.low %v6458_v51, %v6466_v18  ;;  %v15337_v49 = vcombine.high %v6698_v38, %v6706_v62  ;;  %v7417_v51 = vld [vmem:[%s16953_s14 + $0x1e28] sm:$0xff] }
 0x7ba   : > { %13586 = vmatprep.subr.bf16.mxu0 %v15161_v44  ;;  %v7241_v44 = vld [vmem:[%s16953_s14 + $0x18a8] sm:$0xff]  ;;  %v15336_v15 = vcombine.low %v6698_v38, %v6706_v62 }
 0x7bb   : > { %v13245_v59 = vpop.f32.mrf.mxu1  ;;  %13490 = vmatmul.mubr.bf16.vlgmr.msra.gmra.mxu1 %v18060_v6  ;;  %v15878_v56 = vcombine.low %v7241_v44, %v7249_v45  ;;  %v7425_v18 = vld [vmem:[%s16953_s14 + $0x1e68] sm:$0xff] }
 0x7bc   : > { %v13246_v55 = vadd.f32 %v13245_v59, %v13205_v52  ;;  %13540 = vmatpush1.bf16.msra.mxu1 %v15974_v50  ;;  %13571 = vmatprep.mubr.bf16.mxu1 %v18206_v14  ;;  %v15879_v50 = vcombine.high %v7241_v44, %v7249_v45  ;;  %v7233_v52 = vld [vmem:[%s16953_s14 + $0x1868] sm:$0xff]  ;;  %v16055_v20 = vcombine.high %v7417_v51, %v7425_v18 }
 0x7bd   : > { %v13247_v29 = vpop.f32.mrf.mxu1  ;;  %13587 = vmatpush1.bf16.msra.mxu0 %v15160_v3  ;;  %13541 = vmatprep.subr.bf16.mxu1 %v15959_v32  ;;  %v15321_v3 = vcombine.high %v6682_v53, %v6690_v31  ;;  %v7225_v32 = vld [vmem:[%s16953_s14 + $0x1828] sm:$0xff] }
 0x7be   : > { %v13914_v23 = vadd.f32 %v13246_v55, %v6434_v57  ;;  %v13248_v12 = vadd.f32 %v13247_v29, %v13207_v2  ;;  %13588 = vmatprep.subr.bf16.mxu0 %v15145_v39  ;;  %v6666_v39 = vld [vmem:[%s16953_s14 + $0x6b0] sm:$0xff]  ;;  %v15320_v57 = vcombine.low %v6682_v53, %v6690_v31  ;;  %v15863_v59 = vcombine.high %v7225_v32, %v7233_v52  ;;  %v7473_v55 = vld [vmem:[%s16953_s14 + $0x1fe8] sm:$0xff] }
 0x7bf   : > { %v13249_v25 = vpop.f32.mrf.mxu1  ;;  %v15305_v1 = vcombine.high %v6666_v39, %v6674_v21  ;;  %v6650_v2 = vld [vmem:[%s16953_s14 + $0x630] sm:$0xff]  ;;  %v15304_v29 = vcombine.low %v6666_v39, %v6674_v21  ;;  %v16102_v5 = vcombine.low %v7465_v33, %v7473_v55  ;;  %v7401_v38 = vld [vmem:[%s16953_s14 + $0x1da8] sm:$0xff] }
 0x7c0   : > { %13930 = vst [vmem:[%s16966_s19 + $0x30] sm:$0xff] %v13914_v23  ;;  %v13915_v63 = vadd.f32 %v13248_v12, %v6435_v19  ;;  %13542 = vmatpush1.bf16.msra.mxu1 %v15958_v60  ;;  %v6658_v60 = vld [vmem:[%s16953_s14 + $0x670] sm:$0xff]  ;;  %v15862_v19 = vcombine.low %v7225_v32, %v7233_v52  ;;  %v7449_v23 = vld [vmem:[%s16953_s14 + $0x1f28] sm:$0xff] }
 0x7c1   : > { %v13250_v47 = vpop.f32.mrf.mxu1  ;;  %13589 = vmatpush1.bf16.msra.mxu0 %v15144_v28  ;;  %13543 = vmatprep.subr.bf16.mxu1 %v15943_v11  ;;  %v16103_v28 = vcombine.high %v7465_v33, %v7473_v55  ;;  %v15289_v11 = vcombine.high %v6650_v2, %v6658_v60  ;;  %v7457_v12 = vld [vmem:[%s16953_s14 + $0x1f68] sm:$0xff]  ;;  %v15288_v25 = vcombine.low %v6650_v2, %v6658_v60 }
 0x7c2   : > { %13931 = vst [vmem:[%s16966_s19 + $0x38] sm:$0xff] %v13915_v63  ;;  %13590 = vmatprep.subr.bf16.mxu0 %v15129_v4  ;;  %v6634_v4 = vld [vmem:[%s16953_s14 + $0x5b0] sm:$0xff]  ;;  %v16087_v37 = vcombine.high %v7449_v23, %v7457_v12  ;;  %v7433_v63 = vld [vmem:[%s16953_s14 + $0x1ea8] sm:$0xff] }
 0x7c3   : > { %v15273_v41 = vcombine.high %v6634_v4, %v6642_v0  ;;  %v6618_v47 = vld [vmem:[%s16953_s14 + $0x530] sm:$0xff]  ;;  %v7409_v62 = vld [vmem:[%s16953_s14 + $0x1de8] sm:$0xff] }
 0x7c4   : > { %13544 = vmatpush1.bf16.msra.mxu1 %v15942_v46  ;;  %v7441_v46 = vld [vmem:[%s16953_s14 + $0x1ee8] sm:$0xff]  ;;  %v16039_v44 = vcombine.high %v7401_v38, %v7409_v62 }
 0x7c5   : > { %13591 = vmatpush1.bf16.msra.mxu0 %v15128_v27  ;;  %13545 = vmatprep.subr.bf16.mxu1 %v15927_v43  ;;  %v6626_v27 = vld [vmem:[%s16953_s14 + $0x570] sm:$0xff]  ;;  %v16086_v43 = vcombine.low %v7449_v23, %v7457_v12  ;;  %v16071_v9 = vcombine.high %v7433_v63, %v7441_v46  ;;  %v7385_v53 = vld [vmem:[%s16953_s14 + $0x1d28] sm:$0xff] }
 0x7c6   : > { %13592 = vmatprep.subr.bf16.mxu0 %v15113_v8  ;;  %v15272_v8 = vcombine.low %v6634_v4, %v6642_v0  ;;  %v15257_v10 = vcombine.high %v6618_v47, %v6626_v27  ;;  %v7393_v31 = vld [vmem:[%s16953_s14 + $0x1d68] sm:$0xff] }
 0x7c7   : > { %v16023_v32 = vcombine.high %v7385_v53, %v7393_v31  ;;  %v7369_v39 = vld [vmem:[%s16953_s14 + $0x1ca8] sm:$0xff] }
 0x7c8   : > { %13546 = vmatpush1.bf16.msra.mxu1 %v15926_v61  ;;  %v6602_v61 = vld [vmem:[%s16953_s14 + $0x4b0] sm:$0xff]  ;;  %v7377_v21 = vld [vmem:[%s16953_s14 + $0x1ce8] sm:$0xff] }
 0x7c9   : > { %13593 = vmatpush1.bf16.msra.mxu0 %v15112_v7  ;;  %13547 = vmatprep.subr.bf16.mxu1 %v15911_v26  ;;  %v6610_v7 = vld [vmem:[%s16953_s14 + $0x4f0] sm:$0xff]  ;;  %v16070_v26 = vcombine.low %v7433_v63, %v7441_v46  ;;  %v16007_v33 = vcombine.high %v7369_v39, %v7377_v21  ;;  %v7353_v2 = vld [vmem:[%s16953_s14 + $0x1c28] sm:$0xff] }
 0x7ca   : > { %13594 = vmatprep.subr.bf16.mxu0 %v15097_v30  ;;  %v15256_v30 = vcombine.low %v6618_v47, %v6626_v27  ;;  %v15241_v35 = vcombine.high %v6602_v61, %v6610_v7  ;;  %v7361_v60 = vld [vmem:[%s16953_s14 + $0x1c68] sm:$0xff] }
 0x7cb   : > { %v15991_v12 = vcombine.high %v7353_v2, %v7361_v60  ;;  %v15990_v46 = vcombine.low %v7353_v2, %v7361_v60 }
 0x7cc   : > { %13548 = vmatpush1.bf16.msra.mxu1 %v15910_v48  ;;  %v6586_v48 = vld [vmem:[%s16953_s14 + $0x430] sm:$0xff] }
 0x7cd   : > { %13595 = vmatpush1.bf16.msra.mxu0 %v15096_v40  ;;  %13549 = vmatprep.subr.bf16.mxu1 %v15895_v42  ;;  %v6594_v40 = vld [vmem:[%s16953_s14 + $0x470] sm:$0xff]  ;;  %v16054_v42 = vcombine.low %v7417_v51, %v7425_v18 }
 0x7ce   : > { %13596 = vmatprep.subr.bf16.mxu0 %v15337_v49  ;;  %v15240_v49 = vcombine.low %v6602_v61, %v6610_v7  ;;  %v15225_v45 = vcombine.high %v6586_v48, %v6594_v40  ;;  %v7018_v51 = vld [vmem:[%s16953_s14 + $0x11b0] sm:$0xff] }
 0x7cf   : > { %v7026_v18 = vld [vmem:[%s16953_s14 + $0x11f0] sm:$0xff] }
 0x7d0   : > { %13550 = vmatpush1.bf16.msra.mxu1 %v15894_v34  ;;  %v7082_v34 = vld [vmem:[%s16953_s14 + $0x13b0] sm:$0xff] }
 0x7d1   : > { %13597 = vmatpush2.bf16.msra.mxu0 %v15336_v15  ;;  %13551 = vmatprep.subr.bf16.mxu1 %v15879_v50  ;;  %v7090_v15 = vld [vmem:[%s16953_s14 + $0x13f0] sm:$0xff]  ;;  %v16038_v50 = vcombine.low %v7401_v38, %v7409_v62 }
 0x7d2   : > { %13598 = vmatprep.subr.bf16.mxu0 %v15321_v3  ;;  %v15224_v3 = vcombine.low %v6586_v48, %v6594_v40  ;;  %v15721_v52 = vcombine.high %v7082_v34, %v7090_v15  ;;  %v7002_v62 = vld [vmem:[%s16953_s14 + $0x1130] sm:$0xff] }
 0x7d3   : > { %v7010_v48 = vld [vmem:[%s16953_s14 + $0x1170] sm:$0xff] }
 0x7d4   : > { %13552 = vmatpush1.bf16.msra.mxu1 %v15878_v56  ;;  %v7066_v56 = vld [vmem:[%s16953_s14 + $0x1330] sm:$0xff] }
 0x7d5   : > { %13599 = vmatpush2.bf16.msra.mxu0 %v15320_v57  ;;  %13553 = vmatprep.subr.bf16.mxu1 %v15863_v59  ;;  %v7074_v57 = vld [vmem:[%s16953_s14 + $0x1370] sm:$0xff]  ;;  %v16022_v59 = vcombine.low %v7385_v53, %v7393_v31 }
 0x7d6   : > { %13600 = vmatprep.subr.bf16.mxu0 %v15305_v1  ;;  %v15720_v1 = vcombine.low %v7082_v34, %v7090_v15  ;;  %v15705_v55 = vcombine.high %v7066_v56, %v7074_v57  ;;  %v15704_v23 = vcombine.low %v7066_v56, %v7074_v57  ;;  %v6778_v53 = vld [vmem:[%s16953_s14 + $0xa30] sm:$0xff] }
 0x7d7   : > { %v6786_v31 = vld [vmem:[%s16953_s14 + $0xa70] sm:$0xff] }
 0x7d8   : > { %13554 = vmatpush1.bf16.msra.mxu1 %v15862_v19  ;;  %v7050_v19 = vld [vmem:[%s16953_s14 + $0x12b0] sm:$0xff] }
 0x7d9   : > { %13601 = vmatpush2.bf16.msra.mxu0 %v15304_v29  ;;  %13555 = vmatprep.subr.bf16.mxu1 %v16103_v28  ;;  %v7058_v29 = vld [vmem:[%s16953_s14 + $0x12f0] sm:$0xff] }
 0x7da   : > { %13602 = vmatprep.subr.bf16.mxu0 %v15289_v11  ;;  %v16006_v11 = vcombine.low %v7369_v39, %v7377_v21  ;;  %v15689_v0 = vcombine.high %v7050_v19, %v7058_v29  ;;  %v15688_v47 = vcombine.low %v7050_v19, %v7058_v29  ;;  %v6986_v15 = vld [vmem:[%s16953_s14 + $0x10b0] sm:$0xff]  ;;  %v15417_v39 = vcombine.high %v6778_v53, %v6786_v31 }
 0x7db   : > { %v6762_v56 = vld [vmem:[%s16953_s14 + $0x9b0] sm:$0xff] }
 0x7dc   : > { %13556 = vmatpush2.bf16.msra.mxu1 %v16102_v5  ;;  %v6826_v5 = vld [vmem:[%s16953_s14 + $0xbb0] sm:$0xff] }
 0x7dd   : > { %13603 = vmatpush2.bf16.msra.mxu0 %v15288_v25  ;;  %13557 = vmatprep.subr.bf16.mxu1 %v16087_v37  ;;  %v6834_v25 = vld [vmem:[%s16953_s14 + $0xbf0] sm:$0xff] }
 0x7de   : > { %13604 = vmatprep.subr.bf16.mxu0 %v15273_v41  ;;  %v7034_v37 = vld [vmem:[%s16953_s14 + $0x1230] sm:$0xff]  ;;  %v15465_v27 = vcombine.high %v6826_v5, %v6834_v25  ;;  %v15464_v61 = vcombine.low %v6826_v5, %v6834_v25 }
 0x7df   : > { %v7042_v41 = vld [vmem:[%s16953_s14 + $0x1270] sm:$0xff] }
 0x7e0   : > { %13558 = vmatpush2.bf16.msra.mxu1 %v16086_v43  ;;  %v15672_v7 = vcombine.low %v7034_v37, %v7042_v41  ;;  %v6770_v57 = vld [vmem:[%s16953_s14 + $0x9f0] sm:$0xff] }
 0x7e1   : > { %13605 = vmatpush2.bf16.msra.mxu0 %v15272_v8  ;;  %13559 = vmatprep.subr.bf16.mxu1 %v16071_v9  ;;  %v15673_v8 = vcombine.high %v7034_v37, %v7042_v41  ;;  %v6810_v9 = vld [vmem:[%s16953_s14 + $0xb30] sm:$0xff]  ;;  %v15401_v2 = vcombine.high %v6762_v56, %v6770_v57 }
 0x7e2   : > { %13606 = vmatprep.subr.bf16.mxu0 %v15257_v10  ;;  %v6818_v10 = vld [vmem:[%s16953_s14 + $0xb70] sm:$0xff] }
 0x7e3   : > { %v15448_v40 = vcombine.low %v6810_v9, %v6818_v10  ;;  %v6746_v19 = vld [vmem:[%s16953_s14 + $0x930] sm:$0xff] }
 0x7e4   : > { %13560 = vmatpush2.bf16.msra.mxu1 %v16070_v26  ;;  %v15449_v26 = vcombine.high %v6810_v9, %v6818_v10  ;;  %v6754_v29 = vld [vmem:[%s16953_s14 + $0x970] sm:$0xff] }
 0x7e5   : > { %13607 = vmatpush2.bf16.msra.mxu0 %v15256_v30  ;;  %13561 = vmatprep.subr.bf16.mxu1 %v16055_v20  ;;  %v15657_v30 = vcombine.high %v7018_v51, %v7026_v18  ;;  %v6794_v20 = vld [vmem:[%s16953_s14 + $0xab0] sm:$0xff]  ;;  %v15385_v5 = vcombine.high %v6746_v19, %v6754_v29 }
 0x7e6   : > { %13608 = vmatprep.subr.bf16.mxu0 %v15241_v35  ;;  %v6802_v35 = vld [vmem:[%s16953_s14 + $0xaf0] sm:$0xff] }
 0x7e7   : > { %v6730_v37 = vld [vmem:[%s16953_s14 + $0x8b0] sm:$0xff] }
 0x7e8   : > { %13562 = vmatpush2.bf16.msra.mxu1 %v16054_v42  ;;  %v6738_v41 = vld [vmem:[%s16953_s14 + $0x8f0] sm:$0xff] }
 0x7e9   : > { %13609 = vmatpush2.bf16.msra.mxu0 %v15240_v49  ;;  %13563 = vmatprep.subr.bf16.mxu1 %v16039_v44  ;;  %v15656_v49 = vcombine.low %v7018_v51, %v7026_v18  ;;  %v15433_v44 = vcombine.high %v6794_v20, %v6802_v35  ;;  %v6714_v9 = vld [vmem:[%s16953_s14 + $0x830] sm:$0xff] }
 0x7ea   : > { %13610 = vmatprep.subr.bf16.mxu0 %v15225_v45  ;;  %v15641_v45 = vcombine.high %v7002_v62, %v7010_v48  ;;  %v6722_v10 = vld [vmem:[%s16953_s14 + $0x870] sm:$0xff] }
 0x7eb   : > { %v7178_v51 = vld [vmem:[%s16953_s14 + $0x16b0] sm:$0xff] }
 0x7ec   : > { %13564 = vmatpush2.bf16.msra.mxu1 %v16038_v50  ;;  %v6994_v50 = vld [vmem:[%s16953_s14 + $0x10f0] sm:$0xff] }
 0x7ed   : > { %13611 = vmatpush2.bf16.msra.mxu0 %v15224_v3  ;;  %13565 = vmatprep.subr.bf16.mxu1 %v16023_v32  ;;  %v15432_v3 = vcombine.low %v6794_v20, %v6802_v35  ;;  %v15625_v21 = vcombine.high %v6986_v15, %v6994_v50  ;;  %v7186_v18 = vld [vmem:[%s16953_s14 + $0x16f0] sm:$0xff] }
 0x7ee   : > { %13662 = vmatprep.subr.bf16.mxu0 %v15721_v52  ;;  %v15640_v52 = vcombine.low %v7002_v62, %v7010_v48  ;;  %v6954_v20 = vld [vmem:[%s16953_s14 + $0xfb0] sm:$0xff] }
 0x7ef   : > { %v6962_v35 = vld [vmem:[%s16953_s14 + $0xff0] sm:$0xff] }
 0x7f0   : > { %v18970_v28 = vpop.f32.mrf.mxu0  ;;  %13566 = vmatpush2.bf16.msra.mxu1 %v16022_v59  ;;  %13613 = vmatmul.mubr.bf16.vlgmr.msra.gmra.mxu0 %v18058_v58  ;;  %v6970_v59 = vld [vmem:[%s16953_s14 + $0x1030] sm:$0xff] }
 0x7f1   : > { %13663 = vmatpush1.bf16.msra.mxu0 %v15720_v1  ;;  %13694 = vmatprep.mubr.bf16.mxu0 %v18081_v16  ;;  %v6978_v1 = vld [vmem:[%s16953_s14 + $0x1070] sm:$0xff] }
 0x7f2   : > { %v18974_v4 = vpop.f32.mrf.mxu0  ;;  %13567 = vmatprep.subr.bf16.mxu1 %v16007_v33  ;;  %13664 = vmatprep.subr.bf16.mxu0 %v15705_v55  ;;  %v15416_v33 = vcombine.low %v6778_v53, %v6786_v31  ;;  %v15624_v55 = vcombine.low %v6986_v15, %v6994_v50  ;;  %v15609_v60 = vcombine.high %v6970_v59, %v6978_v1  ;;  %v7162_v62 = vld [vmem:[%s16953_s14 + $0x1630] sm:$0xff] }
 0x7f3   : > { %v7170_v48 = vld [vmem:[%s16953_s14 + $0x1670] sm:$0xff]  ;;  %v15592_v50 = vcombine.low %v6954_v20, %v6962_v35 }
 0x7f4   : > { %v13372_v63 = vpop.f32.mrf.mxu0  ;;  %13568 = vmatpush2.bf16.msra.mxu1 %v16006_v11  ;;  %v7210_v11 = vld [vmem:[%s16953_s14 + $0x17b0] sm:$0xff] }
 0x7f5   : > { %13665 = vmatpush1.bf16.msra.mxu0 %v15704_v23  ;;  %13569 = vmatprep.subr.bf16.mxu1 %v15991_v12  ;;  %v7218_v23 = vld [vmem:[%s16953_s14 + $0x17f0] sm:$0xff]  ;;  %v15400_v12 = vcombine.low %v6762_v56, %v6770_v57 }
 0x7f6   : > { %v13373_v43 = vpop.f32.mrf.mxu0  ;;  %13666 = vmatprep.subr.bf16.mxu0 %v15689_v0  ;;  %v15608_v0 = vcombine.low %v6970_v59, %v6978_v1  ;;  %v15849_v25 = vcombine.high %v7210_v11, %v7218_v23  ;;  %v7194_v63 = vld [vmem:[%s16953_s14 + $0x1730] sm:$0xff] }
 0x7f7   : > { %v15369_v43 = vcombine.high %v6730_v37, %v6738_v41  ;;  %v6938_v53 = vld [vmem:[%s16953_s14 + $0xf30] sm:$0xff] }
 0x7f8   : > { %13570 = vmatpush2.bf16.msra.mxu1 %v15990_v46  ;;  %v7202_v46 = vld [vmem:[%s16953_s14 + $0x1770] sm:$0xff] }
 0x7f9   : > { %13667 = vmatpush1.bf16.msra.mxu0 %v15688_v47  ;;  %13621 = vmatprep.subr.bf16.mxu1 %v15465_v27  ;;  %v15384_v47 = vcombine.low %v6746_v19, %v6754_v29  ;;  %v15848_v27 = vcombine.low %v7210_v11, %v7218_v23  ;;  %v6946_v31 = vld [vmem:[%s16953_s14 + $0xf70] sm:$0xff] }
 0x7fa   : > { %13668 = vmatprep.subr.bf16.mxu0 %v15673_v8  ;;  %v15833_v8 = vcombine.high %v7194_v63, %v7202_v46  ;;  %v7154_v15 = vld [vmem:[%s16953_s14 + $0x15f0] sm:$0xff]  ;;  %v15576_v59 = vcombine.low %v6938_v53, %v6946_v31 }
 0x7fb   : > { %v18986_v38 = vpop.f32.mrf.mxu1  ;;  %13572 = vmatmul.mubr.bf16.vlgmr.msra.gmra.mxu1 %v18208_v54  ;;  %v7130_v56 = vld [vmem:[%s16953_s14 + $0x1530] sm:$0xff] }
 0x7fc   : > { %13622 = vmatpush1.bf16.msra.mxu1 %v15464_v61  ;;  %13653 = vmatprep.mubr.bf16.mxu1 %v17982_v22  ;;  %v15368_v61 = vcombine.low %v6730_v37, %v6738_v41  ;;  %v7138_v57 = vld [vmem:[%s16953_s14 + $0x1570] sm:$0xff] }
 0x7fd   : > { %v18992_v42 = vpop.f32.mrf.mxu1  ;;  %13669 = vmatpush1.bf16.msra.mxu0 %v15672_v7  ;;  %13623 = vmatprep.subr.bf16.mxu1 %v15449_v26  ;;  %v15832_v7 = vcombine.low %v7194_v63, %v7202_v46  ;;  %v15353_v26 = vcombine.high %v6714_v9, %v6722_v10  ;;  %v7114_v19 = vld [vmem:[%s16953_s14 + $0x14b0] sm:$0xff]  ;;  %v15768_v23 = vcombine.low %v7130_v56, %v7138_v57 }
 0x7fe   : > { %13670 = vmatprep.subr.bf16.mxu0 %v15657_v30  ;;  %v15817_v30 = vcombine.high %v7178_v51, %v7186_v18  ;;  %v7122_v29 = vld [vmem:[%s16953_s14 + $0x14f0] sm:$0xff] }
 0x7ff   : > { %v13331_v34 = vpop.f32.mrf.mxu1  ;;  %v7098_v37 = vld [vmem:[%s16953_s14 + $0x1430] sm:$0xff]  ;;  %v15752_v46 = vcombine.low %v7114_v19, %v7122_v29 }
 0x800   : > { %13624 = vmatpush1.bf16.msra.mxu1 %v15448_v40  ;;  %v15352_v40 = vcombine.low %v6714_v9, %v6722_v10  ;;  %v7146_v34 = vld [vmem:[%s16953_s14 + $0x15b0] sm:$0xff]  ;;  %v6571_v9 = vld [vmem:[%s16953_s14 + $0x3b8] sm:$0xff] }
 0x801   : > { %v13332_v32 = vpop.f32.mrf.mxu1  ;;  %13671 = vmatpush1.bf16.msra.mxu0 %v15656_v49  ;;  %13625 = vmatprep.subr.bf16.mxu1 %v15433_v44  ;;  %v15816_v49 = vcombine.low %v7178_v51, %v7186_v18  ;;  %v15593_v44 = vcombine.high %v6954_v20, %v6962_v35  ;;  %v15784_v1 = vcombine.low %v7146_v34, %v7154_v15  ;;  %v7106_v41 = vld [vmem:[%s16953_s14 + $0x1470] sm:$0xff]  ;;  %v6579_v10 = vld [vmem:[%s16953_s14 + $0x3f8] sm:$0xff] }
 0x802   : > { %13672 = vmatprep.subr.bf16.mxu0 %v15641_v45  ;;  %v15801_v45 = vcombine.high %v7162_v62, %v7170_v48  ;;  %v15577_v32 = vcombine.high %v6938_v53, %v6946_v31  ;;  %v15736_v18 = vcombine.low %v7098_v37, %v7106_v41  ;;  %v6555_v20 = vld [vmem:[%s16953_s14 + $0x338] sm:$0xff] }
 0x803   : > { %v6563_v35 = vld [vmem:[%s16953_s14 + $0x378] sm:$0xff] }
 0x804   : > { %13626 = vmatpush1.bf16.msra.mxu1 %v15432_v3  ;;  %v15800_v3 = vcombine.low %v7162_v62, %v7170_v48  ;;  %v15210_v48 = vcombine.low %v6571_v9, %v6579_v10  ;;  %v6539_v53 = vld [vmem:[%s16953_s14 + $0x2b8] sm:$0xff] }
 0x805   : > { %13673 = vmatpush1.bf16.msra.mxu0 %v15640_v52  ;;  %13627 = vmatprep.subr.bf16.mxu1 %v15417_v39  ;;  %v15785_v52 = vcombine.high %v7146_v34, %v7154_v15  ;;  %v6922_v39 = vld [vmem:[%s16953_s14 + $0xeb0] sm:$0xff]  ;;  %v6547_v31 = vld [vmem:[%s16953_s14 + $0x2f8] sm:$0xff] }
 0x806   : > { %13674 = vmatprep.subr.bf16.mxu0 %v15625_v21  ;;  %v6930_v21 = vld [vmem:[%s16953_s14 + $0xef0] sm:$0xff] }
 0x807   : > { %v15560_v11 = vcombine.low %v6922_v39, %v6930_v21 }
 0x808   : > { %13628 = vmatpush1.bf16.msra.mxu1 %v15416_v33  ;;  %v15561_v33 = vcombine.high %v6922_v39, %v6930_v21  ;;  %v7338_v39 = vld [vmem:[%s16953_s14 + $0x1bb0] sm:$0xff] }
 0x809   : > { %13675 = vmatpush1.bf16.msra.mxu0 %v15624_v55  ;;  %13629 = vmatprep.subr.bf16.mxu1 %v15401_v2  ;;  %v15769_v55 = vcombine.high %v7130_v56, %v7138_v57  ;;  %v6906_v2 = vld [vmem:[%s16953_s14 + $0xe30] sm:$0xff]  ;;  %v6523_v56 = vld [vmem:[%s16953_s14 + $0x238] sm:$0xff] }
 0x80a   : > { %13676 = vmatprep.subr.bf16.mxu0 %v15609_v60  ;;  %v6914_v60 = vld [vmem:[%s16953_s14 + $0xe70] sm:$0xff]  ;;  %v6531_v57 = vld [vmem:[%s16953_s14 + $0x278] sm:$0xff] }
 0x80b   : > { %v15544_v63 = vcombine.low %v6906_v2, %v6914_v60  ;;  %v7346_v21 = vld [vmem:[%s16953_s14 + $0x1bf0] sm:$0xff] }
 0x80c   : > { %13630 = vmatpush1.bf16.msra.mxu1 %v15400_v12  ;;  %v15545_v12 = vcombine.high %v6906_v2, %v6914_v60  ;;  %v15163_v60 = vcombine.high %v6523_v56, %v6531_v57 }
 0x80d   : > { %13677 = vmatpush1.bf16.msra.mxu0 %v15608_v0  ;;  %13631 = vmatprep.subr.bf16.mxu1 %v15385_v5  ;;  %v15753_v0 = vcombine.high %v7114_v19, %v7122_v29  ;;  %v6890_v5 = vld [vmem:[%s16953_s14 + $0xdb0] sm:$0xff] }
 0x80e   : > { %13678 = vmatprep.subr.bf16.mxu0 %v15849_v25  ;;  %v6898_v25 = vld [vmem:[%s16953_s14 + $0xdf0] sm:$0xff] }
 0x80f   : > { %v15528_v51 = vcombine.low %v6890_v5, %v6898_v25  ;;  %v7322_v19 = vld [vmem:[%s16953_s14 + $0x1b30] sm:$0xff] }
 0x810   : > { %13632 = vmatpush1.bf16.msra.mxu1 %v15384_v47  ;;  %v15529_v47 = vcombine.high %v6890_v5, %v6898_v25  ;;  %v7330_v29 = vld [vmem:[%s16953_s14 + $0x1b70] sm:$0xff] }
 0x811   : > { %13679 = vmatpush2.bf16.msra.mxu0 %v15848_v27  ;;  %13633 = vmatprep.subr.bf16.mxu1 %v15369_v43  ;;  %v15737_v27 = vcombine.high %v7098_v37, %v7106_v41  ;;  %v6874_v43 = vld [vmem:[%s16953_s14 + $0xd30] sm:$0xff] }
 0x812   : > { %13680 = vmatprep.subr.bf16.mxu0 %v15833_v8  ;;  %v6882_v8 = vld [vmem:[%s16953_s14 + $0xd70] sm:$0xff] }
 0x813   : > { %v15512_v62 = vcombine.low %v6874_v43, %v6882_v8  ;;  %v7306_v37 = vld [vmem:[%s16953_s14 + $0x1ab0] sm:$0xff] }
 0x814   : > { %13634 = vmatpush1.bf16.msra.mxu1 %v15368_v61  ;;  %v15513_v61 = vcombine.high %v6874_v43, %v6882_v8  ;;  %v7314_v41 = vld [vmem:[%s16953_s14 + $0x1af0] sm:$0xff]  ;;  %v6437_v43 = vld [vmem:[%s16966_s19 + $0x48] sm:$0xff] }
 0x815   : > { %13681 = vmatpush2.bf16.msra.mxu0 %v15832_v7  ;;  %13635 = vmatprep.subr.bf16.mxu1 %v15353_v26  ;;  %v15211_v7 = vcombine.high %v6571_v9, %v6579_v10  ;;  %v6858_v26 = vld [vmem:[%s16953_s14 + $0xcb0] sm:$0xff]  ;;  %v15945_v10 = vcombine.high %v7306_v37, %v7314_v41 }
 0x816   : > { %13682 = vmatprep.subr.bf16.mxu0 %v15817_v30  ;;  %v6866_v30 = vld [vmem:[%s16953_s14 + $0xcf0] sm:$0xff] }
 0x817   : > { %v15496_v15 = vcombine.low %v6858_v26, %v6866_v30 }
 0x818   : > { %13636 = vmatpush1.bf16.msra.mxu1 %v15352_v40  ;;  %v15497_v40 = vcombine.high %v6858_v26, %v6866_v30  ;;  %v7298_v26 = vld [vmem:[%s16953_s14 + $0x1a70] sm:$0xff] }
 0x819   : > { %13683 = vmatpush2.bf16.msra.mxu0 %v15816_v49  ;;  %13637 = vmatprep.subr.bf16.mxu1 %v15593_v44  ;;  %v15195_v49 = vcombine.high %v6555_v20, %v6563_v35  ;;  %v6842_v44 = vld [vmem:[%s16953_s14 + $0xc30] sm:$0xff] }
 0x81a   : > { %13684 = vmatprep.subr.bf16.mxu0 %v15801_v45  ;;  %v6850_v45 = vld [vmem:[%s16953_s14 + $0xc70] sm:$0xff] }
 0x81c   : > { %13638 = vmatpush2.bf16.msra.mxu1 %v15592_v50  ;;  %v15194_v50 = vcombine.low %v6555_v20, %v6563_v35  ;;  %v6483_v20 = vld [vmem:[%s16953_s14 + $0xf8] sm:$0xff] }
 0x81d   : > { %13685 = vmatpush2.bf16.msra.mxu0 %v15800_v3  ;;  %13639 = vmatprep.subr.bf16.mxu1 %v15577_v32  ;;  %v15481_v3 = vcombine.high %v6842_v44, %v6850_v45 }
 0x81e   : > { %13686 = vmatprep.subr.bf16.mxu0 %v15785_v52  ;;  %v15179_v52 = vcombine.high %v6539_v53, %v6547_v31 }
 0x820   : > { %13640 = vmatpush2.bf16.msra.mxu1 %v15576_v59 }
 0x821   : > { %13687 = vmatpush2.bf16.msra.mxu0 %v15784_v1  ;;  %13641 = vmatprep.subr.bf16.mxu1 %v15561_v33  ;;  %v15480_v1 = vcombine.low %v6842_v44, %v6850_v45  ;;  %v15977_v33 = vcombine.high %v7338_v39, %v7346_v21  ;;  %v7274_v45 = vld [vmem:[%s16953_s14 + $0x19b0] sm:$0xff] }
 0x822   : > { %13688 = vmatprep.subr.bf16.mxu0 %v15769_v55  ;;  %v13328_v55 = vadd.f32 %v18986_v38, %v18888_v13  ;;  %v15162_v13 = vcombine.low %v6523_v56, %v6531_v57  ;;  %v15961_v38 = vcombine.high %v7322_v19, %v7330_v29  ;;  %v7266_v56 = vld [vmem:[%s16953_s14 + $0x1970] sm:$0xff]  ;;  %v6699_v57 = vld [vmem:[%s16953_s14 + $0x7b8] sm:$0xff] }
 0x824   : > { %13642 = vmatpush2.bf16.msra.mxu1 %v15560_v11  ;;  %v6507_v11 = vld [vmem:[%s16953_s14 + $0x1b8] sm:$0xff]  ;;  %v13369_v5 = vadd.f32 %v18970_v28, %v13328_v55  ;;  %v15960_v28 = vcombine.low %v7322_v19, %v7330_v29 }
 0x825   : > { %13689 = vmatpush2.bf16.msra.mxu0 %v15768_v23  ;;  %13643 = vmatprep.subr.bf16.mxu1 %v15545_v12  ;;  %v6515_v23 = vld [vmem:[%s16953_s14 + $0x1f8] sm:$0xff]  ;;  %v13330_v12 = vadd.f32 %v18992_v42, %v18892_v24 }
 0x826   : > { %13690 = vmatprep.subr.bf16.mxu0 %v15753_v0  ;;  %v15976_v0 = vcombine.low %v7338_v39, %v7346_v21  ;;  %v15147_v25 = vcombine.high %v6507_v11, %v6515_v23  ;;  %v6499_v24 = vld [vmem:[%s16953_s14 + $0x178] sm:$0xff]  ;;  %v15146_v9 = vcombine.low %v6507_v11, %v6515_v23  ;;  %v7258_v21 = vld [vmem:[%s16953_s14 + $0x1930] sm:$0xff] }
 0x827   : > { %v6683_v19 = vld [vmem:[%s16953_s14 + $0x738] sm:$0xff]  ;;  %v15896_v11 = vcombine.low %v7258_v21, %v7266_v56 }
 0x828   : > { %13644 = vmatpush2.bf16.msra.mxu1 %v15544_v63  ;;  %v6436_v63 = vld [vmem:[%s16966_s19 + $0x40] sm:$0xff]  ;;  %v6691_v29 = vld [vmem:[%s16953_s14 + $0x778] sm:$0xff] }
 0x829   : > { %13691 = vmatpush2.bf16.msra.mxu0 %v15752_v46  ;;  %13645 = vmatprep.subr.bf16.mxu1 %v15529_v47  ;;  %v6491_v47 = vld [vmem:[%s16953_s14 + $0x138] sm:$0xff] }
 0x82a   : > { %13692 = vmatprep.subr.bf16.mxu0 %v15737_v27  ;;  %v13371_v27 = vadd.f32 %v18974_v4, %v13330_v12  ;;  %v6475_v4 = vld [vmem:[%s16953_s14 + $0xb8] sm:$0xff] }
 0x82b   : > { %v15115_v44 = vcombine.high %v6475_v4, %v6483_v20 }
 0x82c   : > { %13646 = vmatpush2.bf16.msra.mxu1 %v15528_v51 }
 0x82d   : > { %13693 = vmatpush2.bf16.msra.mxu0 %v15736_v18  ;;  %13647 = vmatprep.subr.bf16.mxu1 %v15513_v61  ;;  %v15131_v61 = vcombine.high %v6491_v47, %v6499_v24 }
 0x82e   : > { %13744 = vmatprep.subr.bf16.mxu0 %v15211_v7  ;;  %v7290_v7 = vld [vmem:[%s16953_s14 + $0x1a30] sm:$0xff] }
 0x830   : > { %v19046_v34 = vpop.f32.mrf.mxu0  ;;  %13648 = vmatpush2.bf16.msra.mxu1 %v15512_v62  ;;  %13695 = vmatmul.mubr.bf16.vlgmr.msra.gmra.mxu0 %v18145_v36  ;;  %v15944_v62 = vcombine.low %v7306_v37, %v7314_v41  ;;  %v15322_v41 = vcombine.low %v6683_v19, %v6691_v29 }
 0x831   : > { %13745 = vmatpush1.bf16.msra.mxu0 %v15210_v48  ;;  %13776 = vmatprep.mubr.bf16.mxu0 %v17977_v17  ;;  %v15178_v17 = vcombine.low %v6539_v53, %v6547_v31  ;;  %v7282_v53 = vld [vmem:[%s16953_s14 + $0x19f0] sm:$0xff]  ;;  %v6459_v31 = vld [vmem:[%s16953_s14 + $0x38] sm:$0xff] }
 0x832   : > { %v19050_v32 = vpop.f32.mrf.mxu0  ;;  %13649 = vmatprep.subr.bf16.mxu1 %v15497_v40  ;;  %13746 = vmatprep.subr.bf16.mxu0 %v15195_v49  ;;  %v15130_v40 = vcombine.low %v6491_v47, %v6499_v24  ;;  %v15929_v49 = vcombine.high %v7290_v7, %v7298_v26  ;;  %v7466_v47 = vld [vmem:[%s16953_s14 + $0x1fb0] sm:$0xff] }
 0x833   : > { %v7474_v24 = vld [vmem:[%s16953_s14 + $0x1ff0] sm:$0xff] }
 0x834   : > { %v13454_v59 = vpop.f32.mrf.mxu0  ;;  %13650 = vmatpush2.bf16.msra.mxu1 %v15496_v15  ;;  %v6467_v15 = vld [vmem:[%s16953_s14 + $0x78] sm:$0xff] }
 0x835   : > { %13747 = vmatpush1.bf16.msra.mxu0 %v15194_v50  ;;  %13651 = vmatprep.subr.bf16.mxu1 %v15481_v3  ;;  %v15928_v50 = vcombine.low %v7290_v7, %v7298_v26  ;;  %v15114_v3 = vcombine.low %v6475_v4, %v6483_v20  ;;  %v15099_v39 = vcombine.high %v6459_v31, %v6467_v15  ;;  %v6707_v59 = vld [vmem:[%s16953_s14 + $0x7f8] sm:$0xff]  ;;  %v7434_v20 = vld [vmem:[%s16953_s14 + $0x1eb0] sm:$0xff] }
 0x836   : > { %v13455_v2 = vpop.f32.mrf.mxu0  ;;  %13748 = vmatprep.subr.bf16.mxu0 %v15179_v52  ;;  %v15913_v52 = vcombine.high %v7274_v45, %v7282_v53  ;;  %v15339_v55 = vcombine.high %v6699_v57, %v6707_v59  ;;  %v15338_v23 = vcombine.low %v6699_v57, %v6707_v59  ;;  %v16104_v7 = vcombine.low %v7466_v47, %v7474_v24  ;;  %v7410_v57 = vld [vmem:[%s16953_s14 + $0x1df0] sm:$0xff]  ;;  %v6587_v59 = vld [vmem:[%s16953_s14 + $0x438] sm:$0xff] }
 0x837   : > { %v7242_v2 = vld [vmem:[%s16953_s14 + $0x18b0] sm:$0xff] }
 0x838   : > { %13652 = vmatpush2.bf16.msra.mxu1 %v15480_v1  ;;  %v15912_v1 = vcombine.low %v7274_v45, %v7282_v53  ;;  %v7418_v53 = vld [vmem:[%s16953_s14 + $0x1e30] sm:$0xff] }
 0x839   : > { %13749 = vmatpush1.bf16.msra.mxu0 %v15178_v17  ;;  %13703 = vmatprep.subr.bf16.mxu1 %v15977_v33  ;;  %v15098_v17 = vcombine.low %v6459_v31, %v6467_v15  ;;  %v15897_v33 = vcombine.high %v7258_v21, %v7266_v56  ;;  %v7426_v31 = vld [vmem:[%s16953_s14 + $0x1e70] sm:$0xff]  ;;  %v6603_v15 = vld [vmem:[%s16953_s14 + $0x4b8] sm:$0xff] }
 0x83a   : > { %13750 = vmatprep.subr.bf16.mxu0 %v15163_v60  ;;  %v7250_v60 = vld [vmem:[%s16953_s14 + $0x18f0] sm:$0xff] }
 0x83b   : > { %v13409_v46 = vpop.f32.mrf.mxu1  ;;  %13654 = vmatmul.mubr.bf16.vlgmr.msra.gmra.mxu1 %v18060_v6  ;;  %v15881_v12 = vcombine.high %v7242_v2, %v7250_v60  ;;  %v15880_v37 = vcombine.low %v7242_v2, %v7250_v60  ;;  %v7402_v56 = vld [vmem:[%s16953_s14 + $0x1db0] sm:$0xff] }
 0x83c   : > { %v13410_v42 = vadd.f32 %v13409_v46, %v13369_v5  ;;  %13704 = vmatpush1.bf16.msra.mxu1 %v15976_v0  ;;  %13735 = vmatprep.mubr.bf16.mxu1 %v18206_v14  ;;  %v15323_v0 = vcombine.high %v6683_v19, %v6691_v29  ;;  %v6667_v5 = vld [vmem:[%s16953_s14 + $0x6b8] sm:$0xff]  ;;  %v7386_v60 = vld [vmem:[%s16953_s14 + $0x1d30] sm:$0xff] }
 0x83d   : > { %v13411_v8 = vpop.f32.mrf.mxu1  ;;  %13751 = vmatpush1.bf16.msra.mxu0 %v15162_v13  ;;  %13705 = vmatprep.subr.bf16.mxu1 %v15961_v38  ;;  %v7226_v13 = vld [vmem:[%s16953_s14 + $0x1830] sm:$0xff]  ;;  %v7083_v29 = vld [vmem:[%s16953_s14 + $0x13b8] sm:$0xff] }
 0x83e   : > { %v13916_v51 = vadd.f32 %v13410_v42, %v6436_v63  ;;  %v13412_v18 = vadd.f32 %v13411_v8, %v13371_v27  ;;  %13752 = vmatprep.subr.bf16.mxu0 %v15147_v25  ;;  %v7234_v38 = vld [vmem:[%s16953_s14 + $0x1870] sm:$0xff]  ;;  %v6675_v25 = vld [vmem:[%s16953_s14 + $0x6f8] sm:$0xff]  ;;  %v16105_v8 = vcombine.high %v7466_v47, %v7474_v24 }
 0x83f   : > { %v13413_v30 = vpop.f32.mrf.mxu1  ;;  %v15865_v63 = vcombine.high %v7226_v13, %v7234_v38  ;;  %v15307_v46 = vcombine.high %v6667_v5, %v6675_v25  ;;  %v6651_v42 = vld [vmem:[%s16953_s14 + $0x638] sm:$0xff]  ;;  %v7394_v19 = vld [vmem:[%s16953_s14 + $0x1d70] sm:$0xff] }
 0x840   : > { %13932 = vst [vmem:[%s16966_s19 + $0x40] sm:$0xff] %v13916_v51  ;;  %v13917_v35 = vadd.f32 %v13412_v18, %v6437_v43  ;;  %13706 = vmatpush1.bf16.msra.mxu1 %v15960_v28  ;;  %v6659_v27 = vld [vmem:[%s16953_s14 + $0x678] sm:$0xff]  ;;  %v15864_v28 = vcombine.low %v7226_v13, %v7234_v38  ;;  %v15306_v43 = vcombine.low %v6667_v5, %v6675_v25  ;;  %v7458_v51 = vld [vmem:[%s16953_s14 + $0x1f70] sm:$0xff] }
 0x841   : > { %v13414_v48 = vpop.f32.mrf.mxu1  ;;  %13753 = vmatpush1.bf16.msra.mxu0 %v15146_v9  ;;  %13707 = vmatprep.subr.bf16.mxu1 %v15945_v10  ;;  %v15291_v9 = vcombine.high %v6651_v42, %v6659_v27  ;;  %v7450_v10 = vld [vmem:[%s16953_s14 + $0x1f30] sm:$0xff]  ;;  %v6635_v18 = vld [vmem:[%s16953_s14 + $0x5b8] sm:$0xff]  ;;  %v15290_v26 = vcombine.low %v6651_v42, %v6659_v27 }
 0x842   : > { %13933 = vst [vmem:[%s16966_s19 + $0x48] sm:$0xff] %v13917_v35  ;;  %13754 = vmatprep.subr.bf16.mxu0 %v15131_v61  ;;  %v6643_v61 = vld [vmem:[%s16953_s14 + $0x5f8] sm:$0xff]  ;;  %v16089_v30 = vcombine.high %v7450_v10, %v7458_v51  ;;  %v7442_v35 = vld [vmem:[%s16953_s14 + $0x1ef0] sm:$0xff] }
 0x843   : > { %v15275_v4 = vcombine.high %v6635_v18, %v6643_v61  ;;  %v6627_v48 = vld [vmem:[%s16953_s14 + $0x578] sm:$0xff]  ;;  %v7370_v38 = vld [vmem:[%s16953_s14 + $0x1cb0] sm:$0xff] }
 0x844   : > { %13708 = vmatpush1.bf16.msra.mxu1 %v15944_v62  ;;  %v6619_v62 = vld [vmem:[%s16953_s14 + $0x538] sm:$0xff]  ;;  %v7378_v5 = vld [vmem:[%s16953_s14 + $0x1cf0] sm:$0xff] }
 0x845   : > { %13755 = vmatpush1.bf16.msra.mxu0 %v15130_v40  ;;  %13709 = vmatprep.subr.bf16.mxu1 %v15929_v49  ;;  %v16088_v40 = vcombine.low %v7450_v10, %v7458_v51  ;;  %v15274_v49 = vcombine.low %v6635_v18, %v6643_v61  ;;  %v15259_v45 = vcombine.high %v6619_v62, %v6627_v48  ;;  %v7067_v25 = vld [vmem:[%s16953_s14 + $0x1338] sm:$0xff]  ;;  %v7354_v24 = vld [vmem:[%s16953_s14 + $0x1c30] sm:$0xff] }
 0x846   : > { %13756 = vmatprep.subr.bf16.mxu0 %v15115_v44  ;;  %v16073_v44 = vcombine.high %v7434_v20, %v7442_v35  ;;  %v7362_v42 = vld [vmem:[%s16953_s14 + $0x1c70] sm:$0xff]  ;;  %v7051_v27 = vld [vmem:[%s16953_s14 + $0x12b8] sm:$0xff] }
 0x847   : > { %v15993_v10 = vcombine.high %v7354_v24, %v7362_v42  ;;  %v6827_v61 = vld [vmem:[%s16953_s14 + $0xbb8] sm:$0xff] }
 0x848   : > { %13710 = vmatpush1.bf16.msra.mxu1 %v15928_v50  ;;  %v6611_v50 = vld [vmem:[%s16953_s14 + $0x4f8] sm:$0xff] }
 0x849   : > { %13757 = vmatpush1.bf16.msra.mxu0 %v15114_v3  ;;  %13711 = vmatprep.subr.bf16.mxu1 %v15913_v52  ;;  %v16072_v3 = vcombine.low %v7434_v20, %v7442_v35  ;;  %v15258_v52 = vcombine.low %v6619_v62, %v6627_v48  ;;  %v15243_v21 = vcombine.high %v6603_v15, %v6611_v50  ;;  %v6811_v48 = vld [vmem:[%s16953_s14 + $0xb38] sm:$0xff] }
 0x84a   : > { %13758 = vmatprep.subr.bf16.mxu0 %v15099_v39  ;;  %v16057_v39 = vcombine.high %v7418_v53, %v7426_v31 }
 0x84c   : > { %13712 = vmatpush1.bf16.msra.mxu1 %v15912_v1  ;;  %v6595_v1 = vld [vmem:[%s16953_s14 + $0x478] sm:$0xff] }
 0x84d   : > { %13759 = vmatpush1.bf16.msra.mxu0 %v15098_v17  ;;  %13713 = vmatprep.subr.bf16.mxu1 %v15897_v33  ;;  %v16056_v17 = vcombine.low %v7418_v53, %v7426_v31  ;;  %v15242_v33 = vcombine.low %v6603_v15, %v6611_v50  ;;  %v15227_v2 = vcombine.high %v6587_v59, %v6595_v1  ;;  %v6795_v50 = vld [vmem:[%s16953_s14 + $0xab8] sm:$0xff] }
 0x84e   : > { %13760 = vmatprep.subr.bf16.mxu0 %v15339_v55  ;;  %v16041_v55 = vcombine.high %v7402_v56, %v7410_v57 }
 0x850   : > { %13714 = vmatpush1.bf16.msra.mxu1 %v15896_v11  ;;  %v7091_v11 = vld [vmem:[%s16953_s14 + $0x13f8] sm:$0xff] }
 0x851   : > { %13761 = vmatpush2.bf16.msra.mxu0 %v15338_v23  ;;  %13715 = vmatprep.subr.bf16.mxu1 %v15881_v12  ;;  %v16040_v23 = vcombine.low %v7402_v56, %v7410_v57  ;;  %v15226_v12 = vcombine.low %v6587_v59, %v6595_v1  ;;  %v15723_v13 = vcombine.high %v7083_v29, %v7091_v11 }
 0x852   : > { %13762 = vmatprep.subr.bf16.mxu0 %v15323_v0  ;;  %v16025_v0 = vcombine.high %v7386_v60, %v7394_v19 }
 0x854   : > { %13716 = vmatpush1.bf16.msra.mxu1 %v15880_v37  ;;  %v7075_v37 = vld [vmem:[%s16953_s14 + $0x1378] sm:$0xff] }
 0x855   : > { %13763 = vmatpush2.bf16.msra.mxu0 %v15322_v41  ;;  %13717 = vmatprep.subr.bf16.mxu1 %v15865_v63  ;;  %v16024_v41 = vcombine.low %v7386_v60, %v7394_v19  ;;  %v15722_v63 = vcombine.low %v7083_v29, %v7091_v11  ;;  %v15707_v47 = vcombine.high %v7067_v25, %v7075_v37  ;;  %v6987_v60 = vld [vmem:[%s16953_s14 + $0x10b8] sm:$0xff] }
 0x856   : > { %13764 = vmatprep.subr.bf16.mxu0 %v15307_v46  ;;  %v16009_v46 = vcombine.high %v7370_v38, %v7378_v5  ;;  %v6995_v19 = vld [vmem:[%s16953_s14 + $0x10f8] sm:$0xff] }
 0x858   : > { %13718 = vmatpush1.bf16.msra.mxu1 %v15864_v28  ;;  %v7059_v28 = vld [vmem:[%s16953_s14 + $0x12f8] sm:$0xff] }
 0x859   : > { %13765 = vmatpush2.bf16.msra.mxu0 %v15306_v43  ;;  %13719 = vmatprep.subr.bf16.mxu1 %v16105_v8  ;;  %v16008_v8 = vcombine.low %v7370_v38, %v7378_v5  ;;  %v15691_v18 = vcombine.high %v7051_v27, %v7059_v28  ;;  %v6971_v38 = vld [vmem:[%s16953_s14 + $0x1038] sm:$0xff] }
 0x85a   : > { %13766 = vmatprep.subr.bf16.mxu0 %v15291_v9  ;;  %v15706_v9 = vcombine.low %v7067_v25, %v7075_v37  ;;  %v6979_v5 = vld [vmem:[%s16953_s14 + $0x1078] sm:$0xff]  ;;  %v15626_v37 = vcombine.low %v6987_v60, %v6995_v19 }
 0x85c   : > { %13720 = vmatpush2.bf16.msra.mxu1 %v16104_v7  ;;  %v6835_v7 = vld [vmem:[%s16953_s14 + $0xbf8] sm:$0xff] }
 0x85d   : > { %13767 = vmatpush2.bf16.msra.mxu0 %v15290_v26  ;;  %13721 = vmatprep.subr.bf16.mxu1 %v16089_v30  ;;  %v7035_v26 = vld [vmem:[%s16953_s14 + $0x1238] sm:$0xff]  ;;  %v15467_v20 = vcombine.high %v6827_v61, %v6835_v7 }
 0x85e   : > { %13768 = vmatprep.subr.bf16.mxu0 %v15275_v4  ;;  %v7043_v30 = vld [vmem:[%s16953_s14 + $0x1278] sm:$0xff]  ;;  %v15992_v4 = vcombine.low %v7354_v24, %v7362_v42 }
 0x85f   : > { %v15675_v62 = vcombine.high %v7035_v26, %v7043_v30  ;;  %v15674_v53 = vcombine.low %v7035_v26, %v7043_v30  ;;  %v7211_v24 = vld [vmem:[%s16953_s14 + $0x17b8] sm:$0xff] }
 0x860   : > { %13722 = vmatpush2.bf16.msra.mxu1 %v16088_v40  ;;  %v6819_v40 = vld [vmem:[%s16953_s14 + $0xb78] sm:$0xff] }
 0x861   : > { %13769 = vmatpush2.bf16.msra.mxu0 %v15274_v49  ;;  %13723 = vmatprep.subr.bf16.mxu1 %v16073_v44  ;;  %v7019_v49 = vld [vmem:[%s16953_s14 + $0x11b8] sm:$0xff]  ;;  %v15451_v31 = vcombine.high %v6811_v48, %v6819_v40  ;;  %v15450_v56 = vcombine.low %v6811_v48, %v6819_v40 }
 0x862   : > { %13770 = vmatprep.subr.bf16.mxu0 %v15259_v45  ;;  %v7027_v44 = vld [vmem:[%s16953_s14 + $0x11f8] sm:$0xff]  ;;  %v15466_v45 = vcombine.low %v6827_v61, %v6835_v7 }
 0x863   : > { %v15659_v15 = vcombine.high %v7019_v49, %v7027_v44  ;;  %v15658_v59 = vcombine.low %v7019_v49, %v7027_v44  ;;  %v7219_v42 = vld [vmem:[%s16953_s14 + $0x17f8] sm:$0xff] }
 0x864   : > { %13724 = vmatpush2.bf16.msra.mxu1 %v16072_v3  ;;  %v6803_v3 = vld [vmem:[%s16953_s14 + $0xaf8] sm:$0xff]  ;;  %v15850_v30 = vcombine.low %v7211_v24, %v7219_v42 }
 0x865   : > { %13771 = vmatpush2.bf16.msra.mxu0 %v15258_v52  ;;  %13725 = vmatprep.subr.bf16.mxu1 %v16057_v39  ;;  %v7003_v39 = vld [vmem:[%s16953_s14 + $0x1138] sm:$0xff]  ;;  %v15435_v1 = vcombine.high %v6795_v50, %v6803_v3 }
 0x866   : > { %13772 = vmatprep.subr.bf16.mxu0 %v15243_v21  ;;  %v7011_v21 = vld [vmem:[%s16953_s14 + $0x1178] sm:$0xff] }
 0x867   : > { %v15642_v11 = vcombine.low %v7003_v39, %v7011_v21  ;;  %v7195_v61 = vld [vmem:[%s16953_s14 + $0x1738] sm:$0xff] }
 0x868   : > { %13726 = vmatpush2.bf16.msra.mxu1 %v16056_v17  ;;  %v15643_v17 = vcombine.high %v7003_v39, %v7011_v21  ;;  %v7203_v7 = vld [vmem:[%s16953_s14 + $0x1778] sm:$0xff] }
 0x869   : > { %13773 = vmatpush2.bf16.msra.mxu0 %v15242_v33  ;;  %13727 = vmatprep.subr.bf16.mxu1 %v16041_v55  ;;  %v6779_v33 = vld [vmem:[%s16953_s14 + $0xa38] sm:$0xff]  ;;  %v15834_v40 = vcombine.low %v7195_v61, %v7203_v7 }
 0x86a   : > { %13774 = vmatprep.subr.bf16.mxu0 %v15227_v2  ;;  %v6787_v55 = vld [vmem:[%s16953_s14 + $0xa78] sm:$0xff] }
 0x86b   : > { %v15418_v25 = vcombine.low %v6779_v33, %v6787_v55 }
 0x86c   : > { %13728 = vmatpush2.bf16.msra.mxu1 %v16040_v23  ;;  %v15419_v23 = vcombine.high %v6779_v33, %v6787_v55 }
 0x86d   : > { %13775 = vmatpush2.bf16.msra.mxu0 %v15226_v12  ;;  %13729 = vmatprep.subr.bf16.mxu1 %v16025_v0  ;;  %v15627_v12 = vcombine.high %v6987_v60, %v6995_v19  ;;  %v6763_v0 = vld [vmem:[%s16953_s14 + $0x9b8] sm:$0xff] }
 0x86e   : > { %13826 = vmatprep.subr.bf16.mxu0 %v15723_v13  ;;  %v6771_v13 = vld [vmem:[%s16953_s14 + $0x9f8] sm:$0xff] }
 0x86f   : > { %v6923_v19 = vld [vmem:[%s16953_s14 + $0xeb8] sm:$0xff] }
 0x870   : > { %v19128_v43 = vpop.f32.mrf.mxu0  ;;  %13730 = vmatpush2.bf16.msra.mxu1 %v16024_v41  ;;  %13777 = vmatmul.mubr.bf16.vlgmr.msra.gmra.mxu0 %v18058_v58  ;;  %v15403_v41 = vcombine.high %v6763_v0, %v6771_v13 }
 0x871   : > { %13827 = vmatpush1.bf16.msra.mxu0 %v15722_v63  ;;  %13858 = vmatprep.mubr.bf16.mxu0 %v18081_v16  ;;  %v15690_v16 = vcombine.low %v7051_v27, %v7059_v28  ;;  %v15611_v63 = vcombine.high %v6971_v38, %v6979_v5  ;;  %v15402_v27 = vcombine.low %v6763_v0, %v6771_v13 }
 0x872   : > { %v19132_v51 = vpop.f32.mrf.mxu0  ;;  %13731 = vmatprep.subr.bf16.mxu1 %v16009_v46  ;;  %13828 = vmatprep.subr.bf16.mxu0 %v15707_v47  ;;  %v6747_v46 = vld [vmem:[%s16953_s14 + $0x938] sm:$0xff]  ;;  %v15610_v28 = vcombine.low %v6971_v38, %v6979_v5 }
 0x873   : > { %v6755_v47 = vld [vmem:[%s16953_s14 + $0x978] sm:$0xff] }
 0x874   : > { %v13536_v58 = vpop.f32.mrf.mxu0  ;;  %13732 = vmatpush2.bf16.msra.mxu1 %v16008_v8  ;;  %v15387_v8 = vcombine.high %v6747_v46, %v6755_v47  ;;  %v15386_v26 = vcombine.low %v6747_v46, %v6755_v47  ;;  %v6907_v38 = vld [vmem:[%s16953_s14 + $0xe38] sm:$0xff] }
 0x875   : > { %13829 = vmatpush1.bf16.msra.mxu0 %v15706_v9  ;;  %13733 = vmatprep.subr.bf16.mxu1 %v15993_v10  ;;  %v15851_v9 = vcombine.high %v7211_v24, %v7219_v42  ;;  %v6731_v10 = vld [vmem:[%s16953_s14 + $0x8b8] sm:$0xff] }
 0x876   : > { %v13537_v35 = vpop.f32.mrf.mxu0  ;;  %13830 = vmatprep.subr.bf16.mxu0 %v15691_v18  ;;  %v6739_v18 = vld [vmem:[%s16953_s14 + $0x8f8] sm:$0xff] }
 0x877   : > { %v15371_v58 = vcombine.high %v6731_v10, %v6739_v18  ;;  %v7179_v35 = vld [vmem:[%s16953_s14 + $0x16b8] sm:$0xff]  ;;  %v15370_v48 = vcombine.low %v6731_v10, %v6739_v18 }
 0x878   : > { %13734 = vmatpush2.bf16.msra.mxu1 %v15992_v4  ;;  %v15835_v4 = vcombine.high %v7195_v61, %v7203_v7  ;;  %v6915_v5 = vld [vmem:[%s16953_s14 + $0xe78] sm:$0xff] }
 0x879   : > { %13831 = vmatpush1.bf16.msra.mxu0 %v15690_v16  ;;  %13785 = vmatprep.subr.bf16.mxu1 %v15467_v20  ;;  %v6715_v16 = vld [vmem:[%s16953_s14 + $0x838] sm:$0xff]  ;;  %v15547_v46 = vcombine.high %v6907_v38, %v6915_v5 }
 0x87a   : > { %13832 = vmatprep.subr.bf16.mxu0 %v15675_v62  ;;  %v6723_v20 = vld [vmem:[%s16953_s14 + $0x878] sm:$0xff] }
 0x87b   : > { %v19144_v52 = vpop.f32.mrf.mxu1  ;;  %13736 = vmatmul.mubr.bf16.vlgmr.msra.gmra.mxu1 %v18208_v54  ;;  %v7187_v62 = vld [vmem:[%s16953_s14 + $0x16f8] sm:$0xff]  ;;  %v15355_v49 = vcombine.high %v6715_v16, %v6723_v20 }
 0x87c   : > { %13786 = vmatpush1.bf16.msra.mxu1 %v15466_v45  ;;  %13817 = vmatprep.mubr.bf16.mxu1 %v17982_v22  ;;  %v15434_v22 = vcombine.low %v6795_v50, %v6803_v3  ;;  %v15819_v44 = vcombine.high %v7179_v35, %v7187_v62  ;;  %v6955_v45 = vld [vmem:[%s16953_s14 + $0xfb8] sm:$0xff]  ;;  %v15354_v50 = vcombine.low %v6715_v16, %v6723_v20 }
 0x87d   : > { %v19150_v57 = vpop.f32.mrf.mxu1  ;;  %13833 = vmatpush1.bf16.msra.mxu0 %v15674_v53  ;;  %13787 = vmatprep.subr.bf16.mxu1 %v15451_v31  ;;  %v6963_v53 = vld [vmem:[%s16953_s14 + $0xff8] sm:$0xff]  ;;  %v15818_v3 = vcombine.low %v7179_v35, %v7187_v62 }
 0x87e   : > { %13834 = vmatprep.subr.bf16.mxu0 %v15659_v15  ;;  %v7163_v31 = vld [vmem:[%s16953_s14 + $0x1638] sm:$0xff]  ;;  %v15595_v39 = vcombine.high %v6955_v45, %v6963_v53  ;;  %v15594_v33 = vcombine.low %v6955_v45, %v6963_v53 }
 0x87f   : > { %v13495_v2 = vpop.f32.mrf.mxu1  ;;  %v7171_v15 = vld [vmem:[%s16953_s14 + $0x1678] sm:$0xff] }
 0x880   : > { %13788 = vmatpush1.bf16.msra.mxu1 %v15450_v56  ;;  %v15803_v21 = vcombine.high %v7163_v31, %v7171_v15  ;;  %v6939_v56 = vld [vmem:[%s16953_s14 + $0xf38] sm:$0xff]  ;;  %v15802_v55 = vcombine.low %v7163_v31, %v7171_v15 }
 0x881   : > { %v13496_v29 = vpop.f32.mrf.mxu1  ;;  %13835 = vmatpush1.bf16.msra.mxu0 %v15658_v59  ;;  %13789 = vmatprep.subr.bf16.mxu1 %v15435_v1  ;;  %v6947_v59 = vld [vmem:[%s16953_s14 + $0xf78] sm:$0xff] }
 0x882   : > { %13836 = vmatprep.subr.bf16.mxu0 %v15643_v17  ;;  %v7147_v1 = vld [vmem:[%s16953_s14 + $0x15b8] sm:$0xff]  ;;  %v15579_v2 = vcombine.high %v6939_v56, %v6947_v59 }
 0x883   : > { %v7155_v17 = vld [vmem:[%s16953_s14 + $0x15f8] sm:$0xff] }
 0x884   : > { %13790 = vmatpush1.bf16.msra.mxu1 %v15434_v22  ;;  %v15787_v60 = vcombine.high %v7147_v1, %v7155_v17  ;;  %v6931_v22 = vld [vmem:[%s16953_s14 + $0xef8] sm:$0xff] }
 0x885   : > { %13837 = vmatpush1.bf16.msra.mxu0 %v15642_v11  ;;  %13791 = vmatprep.subr.bf16.mxu1 %v15419_v23  ;;  %v7131_v29 = vld [vmem:[%s16953_s14 + $0x1538] sm:$0xff]  ;;  %v15578_v23 = vcombine.low %v6939_v56, %v6947_v59  ;;  %v15563_v0 = vcombine.high %v6923_v19, %v6931_v22  ;;  %v13494_v59 = vadd.f32 %v19150_v57, %v19050_v32 }
 0x886   : > { %13838 = vmatprep.subr.bf16.mxu0 %v15627_v12  ;;  %v7139_v11 = vld [vmem:[%s16953_s14 + $0x1578] sm:$0xff]  ;;  %v15786_v12 = vcombine.low %v7147_v1, %v7155_v17 }
 0x887   : > { %v15771_v13 = vcombine.high %v7131_v29, %v7139_v11  ;;  %v6891_v24 = vld [vmem:[%s16953_s14 + $0xdb8] sm:$0xff]  ;;  %v13535_v32 = vadd.f32 %v19132_v51, %v13494_v59 }
 0x888   : > { %13792 = vmatpush1.bf16.msra.mxu1 %v15418_v25  ;;  %v7115_v25 = vld [vmem:[%s16953_s14 + $0x14b8] sm:$0xff] }
 0x889   : > { %13839 = vmatpush1.bf16.msra.mxu0 %v15626_v37  ;;  %13793 = vmatprep.subr.bf16.mxu1 %v15403_v41  ;;  %v7123_v37 = vld [vmem:[%s16953_s14 + $0x14f8] sm:$0xff]  ;;  %v15562_v41 = vcombine.low %v6923_v19, %v6931_v22 }
 0x88a   : > { %13840 = vmatprep.subr.bf16.mxu0 %v15611_v63  ;;  %v15770_v63 = vcombine.low %v7131_v29, %v7139_v11  ;;  %v15755_v47 = vcombine.high %v7115_v25, %v7123_v37  ;;  %v6899_v42 = vld [vmem:[%s16953_s14 + $0xdf8] sm:$0xff] }
 0x88b   : > { %v15531_v10 = vcombine.high %v6891_v24, %v6899_v42  ;;  %v6875_v61 = vld [vmem:[%s16953_s14 + $0xd38] sm:$0xff] }
 0x88c   : > { %13794 = vmatpush1.bf16.msra.mxu1 %v15402_v27  ;;  %v7099_v27 = vld [vmem:[%s16953_s14 + $0x1438] sm:$0xff] }
 0x88d   : > { %13841 = vmatpush1.bf16.msra.mxu0 %v15610_v28  ;;  %13795 = vmatprep.subr.bf16.mxu1 %v15387_v8  ;;  %v7107_v28 = vld [vmem:[%s16953_s14 + $0x1478] sm:$0xff]  ;;  %v15546_v8 = vcombine.low %v6907_v38, %v6915_v5 }
 0x88e   : > { %13842 = vmatprep.subr.bf16.mxu0 %v15851_v9  ;;  %v15754_v9 = vcombine.low %v7115_v25, %v7123_v37  ;;  %v15739_v18 = vcombine.high %v7099_v27, %v7107_v28  ;;  %v6883_v7 = vld [vmem:[%s16953_s14 + $0xd78] sm:$0xff] }
 0x88f   : > { %v6867_v16 = vld [vmem:[%s16953_s14 + $0xcf8] sm:$0xff]  ;;  %v15514_v20 = vcombine.low %v6875_v61, %v6883_v7 }
 0x890   : > { %13796 = vmatpush1.bf16.msra.mxu1 %v15386_v26  ;;  %v15530_v26 = vcombine.low %v6891_v24, %v6899_v42  ;;  %v6843_v62 = vld [vmem:[%s16953_s14 + $0xc38] sm:$0xff] }
 0x891   : > { %13843 = vmatpush2.bf16.msra.mxu0 %v15850_v30  ;;  %13797 = vmatprep.subr.bf16.mxu1 %v15371_v58  ;;  %v15738_v30 = vcombine.low %v7099_v27, %v7107_v28  ;;  %v15515_v58 = vcombine.high %v6875_v61, %v6883_v7  ;;  %v7339_v53 = vld [vmem:[%s16953_s14 + $0x1bb8] sm:$0xff] }
 0x892   : > { %13844 = vmatprep.subr.bf16.mxu0 %v15835_v4  ;;  %v6859_v4 = vld [vmem:[%s16953_s14 + $0xcb8] sm:$0xff] }
 0x893   : > { %v15499_v35 = vcombine.high %v6859_v4, %v6867_v16  ;;  %v7347_v31 = vld [vmem:[%s16953_s14 + $0x1bf8] sm:$0xff] }
 0x894   : > { %13798 = vmatpush1.bf16.msra.mxu1 %v15370_v48  ;;  %v6851_v48 = vld [vmem:[%s16953_s14 + $0xc78] sm:$0xff]  ;;  %v15978_v1 = vcombine.low %v7339_v53, %v7347_v31 }
 0x895   : > { %13845 = vmatpush2.bf16.msra.mxu0 %v15834_v40  ;;  %13799 = vmatprep.subr.bf16.mxu1 %v15355_v49  ;;  %v15498_v49 = vcombine.low %v6859_v4, %v6867_v16  ;;  %v7331_v56 = vld [vmem:[%s16953_s14 + $0x1b78] sm:$0xff] }
 0x896   : > { %13846 = vmatprep.subr.bf16.mxu0 %v15819_v44  ;;  %v15483_v44 = vcombine.high %v6843_v62, %v6851_v48  ;;  %v6439_v57 = vld [vmem:[%s16966_s19 + $0x58] sm:$0xff] }
 0x897   : > { %v7275_v38 = vld [vmem:[%s16953_s14 + $0x19b8] sm:$0xff] }
 0x898   : > { %13800 = vmatpush1.bf16.msra.mxu1 %v15354_v50  ;;  %v15482_v50 = vcombine.low %v6843_v62, %v6851_v48  ;;  %v7283_v5 = vld [vmem:[%s16953_s14 + $0x19f8] sm:$0xff] }
 0x899   : > { %13847 = vmatpush2.bf16.msra.mxu0 %v15818_v3  ;;  %13801 = vmatprep.subr.bf16.mxu1 %v15595_v39  ;;  %v15979_v3 = vcombine.high %v7339_v53, %v7347_v31  ;;  %v13492_v39 = vadd.f32 %v19144_v52, %v19046_v34  ;;  %v15915_v37 = vcombine.high %v7275_v38, %v7283_v5  ;;  %v7243_v24 = vld [vmem:[%s16953_s14 + $0x18b8] sm:$0xff] }
 0x89a   : > { %13848 = vmatprep.subr.bf16.mxu0 %v15803_v21  ;;  %v7251_v42 = vld [vmem:[%s16953_s14 + $0x18f8] sm:$0xff] }
 0x89b   : > { %v15883_v28 = vcombine.high %v7243_v24, %v7251_v42  ;;  %v7467_v61 = vld [vmem:[%s16953_s14 + $0x1fb8] sm:$0xff] }
 0x89c   : > { %13802 = vmatpush2.bf16.msra.mxu1 %v15594_v33  ;;  %v13533_v33 = vadd.f32 %v19128_v43, %v13492_v39  ;;  %v7475_v7 = vld [vmem:[%s16953_s14 + $0x1ff8] sm:$0xff] }
 0x89d   : > { %13849 = vmatpush2.bf16.msra.mxu0 %v15802_v55  ;;  %13803 = vmatprep.subr.bf16.mxu1 %v15579_v2  ;;  %v7307_v55 = vld [vmem:[%s16953_s14 + $0x1ab8] sm:$0xff]  ;;  %v16106_v16 = vcombine.low %v7467_v61, %v7475_v7 }
 0x89e   : > { %13850 = vmatprep.subr.bf16.mxu0 %v15787_v60  ;;  %v7315_v2 = vld [vmem:[%s16953_s14 + $0x1af8] sm:$0xff]  ;;  %v6438_v60 = vld [vmem:[%s16966_s19 + $0x50] sm:$0xff] }
 0x89f   : > { %v15947_v43 = vcombine.high %v7307_v55, %v7315_v2  ;;  %v7459_v4 = vld [vmem:[%s16953_s14 + $0x1f78] sm:$0xff] }
 0x8a0   : > { %13804 = vmatpush2.bf16.msra.mxu1 %v15578_v23  ;;  %v7291_v23 = vld [vmem:[%s16953_s14 + $0x1a38] sm:$0xff] }
 0x8a1   : > { %13851 = vmatpush2.bf16.msra.mxu0 %v15786_v12  ;;  %13805 = vmatprep.subr.bf16.mxu1 %v15563_v0  ;;  %v7299_v12 = vld [vmem:[%s16953_s14 + $0x1a78] sm:$0xff] }
 0x8a2   : > { %13852 = vmatprep.subr.bf16.mxu0 %v15771_v13  ;;  %v15931_v13 = vcombine.high %v7291_v23, %v7299_v12  ;;  %v15930_v25 = vcombine.low %v7291_v23, %v7299_v12  ;;  %v7443_v62 = vld [vmem:[%s16953_s14 + $0x1ef8] sm:$0xff] }
 0x8a3   : > { %v7427_v53 = vld [vmem:[%s16953_s14 + $0x1e78] sm:$0xff] }
 0x8a4   : > { %13806 = vmatpush2.bf16.msra.mxu1 %v15562_v41  ;;  %v7259_v41 = vld [vmem:[%s16953_s14 + $0x1938] sm:$0xff] }
 0x8a5   : > { %13853 = vmatpush2.bf16.msra.mxu0 %v15770_v63  ;;  %13807 = vmatprep.subr.bf16.mxu1 %v15547_v46  ;;  %v7267_v63 = vld [vmem:[%s16953_s14 + $0x1978] sm:$0xff]  ;;  %v15914_v46 = vcombine.low %v7275_v38, %v7283_v5 }
 0x8a6   : > { %13854 = vmatprep.subr.bf16.mxu0 %v15755_v47  ;;  %v15899_v47 = vcombine.high %v7259_v41, %v7267_v63  ;;  %v15898_v27 = vcombine.low %v7259_v41, %v7267_v63 }
 0x8a8   : > { %13808 = vmatpush2.bf16.msra.mxu1 %v15546_v8  ;;  %v7227_v8 = vld [vmem:[%s16953_s14 + $0x1838] sm:$0xff] }
 0x8a9   : > { %13855 = vmatpush2.bf16.msra.mxu0 %v15754_v9  ;;  %13809 = vmatprep.subr.bf16.mxu1 %v15531_v10  ;;  %v7235_v9 = vld [vmem:[%s16953_s14 + $0x1878] sm:$0xff]  ;;  %v15882_v10 = vcombine.low %v7243_v24, %v7251_v42 }
 0x8aa   : > { %13856 = vmatprep.subr.bf16.mxu0 %v15739_v18  ;;  %v15867_v18 = vcombine.high %v7227_v8, %v7235_v9 }
 0x8ac   : > { %13810 = vmatpush2.bf16.msra.mxu1 %v15530_v26  ;;  %v15866_v26 = vcombine.low %v7227_v8, %v7235_v9 }
 0x8ad   : > { %13857 = vmatpush2.bf16.msra.mxu0 %v15738_v30  ;;  %13811 = vmatprep.subr.bf16.mxu1 %v15515_v58  ;;  %v16107_v30 = vcombine.high %v7467_v61, %v7475_v7  ;;  %v7451_v58 = vld [vmem:[%s16953_s14 + $0x1f38] sm:$0xff] }
 0x8ae   : > { %v16090_v48 = vcombine.low %v7451_v58, %v7459_v4 }
 0x8b0   : > { %v19198_v40 = vpop.f32.mrf.mxu0  ;;  %13812 = vmatpush2.bf16.msra.mxu1 %v15514_v20  ;;  %13859 = vmatmul.mubr.bf16.vlgmr.msra.gmra.mxu0 %v18145_v36  ;;  %v7323_v36 = vld [vmem:[%s16953_s14 + $0x1b38] sm:$0xff]  ;;  %v16091_v20 = vcombine.high %v7451_v58, %v7459_v4 }
 0x8b1   : > { %13813 = vmatprep.subr.bf16.mxu1 %v15499_v35  ;;  %v15963_v17 = vcombine.high %v7323_v36, %v7331_v56  ;;  %v15962_v52 = vcombine.low %v7323_v36, %v7331_v56  ;;  %v7435_v35 = vld [vmem:[%s16953_s14 + $0x1eb8] sm:$0xff] }
 0x8b2   : > { %v19201_v45 = vpop.f32.mrf.mxu0  ;;  %v16074_v31 = vcombine.low %v7435_v35, %v7443_v62  ;;  %v7387_v36 = vld [vmem:[%s16953_s14 + $0x1d38] sm:$0xff] }
 0x8b3   : > { %v7395_v56 = vld [vmem:[%s16953_s14 + $0x1d78] sm:$0xff] }
 0x8b4   : > { %v13618_v15 = vpop.f32.mrf.mxu0  ;;  %13814 = vmatpush2.bf16.msra.mxu1 %v15498_v49  ;;  %v16075_v49 = vcombine.high %v7435_v35, %v7443_v62 }
 0x8b5   : > { %13815 = vmatprep.subr.bf16.mxu1 %v15483_v44  ;;  %v7419_v44 = vld [vmem:[%s16953_s14 + $0x1e38] sm:$0xff] }
 0x8b6   : > { %v13619_v21 = vpop.f32.mrf.mxu0  ;;  %v16059_v15 = vcombine.high %v7419_v44, %v7427_v53  ;;  %v16058_v39 = vcombine.low %v7419_v44, %v7427_v53 }
 0x8b8   : > { %13816 = vmatpush2.bf16.msra.mxu1 %v15482_v50  ;;  %v7403_v50 = vld [vmem:[%s16953_s14 + $0x1db8] sm:$0xff] }
 0x8b9   : > { %13867 = vmatprep.subr.bf16.mxu1 %v15979_v3  ;;  %v7411_v3 = vld [vmem:[%s16953_s14 + $0x1df8] sm:$0xff] }
 0x8ba   : > { %v16043_v21 = vcombine.high %v7403_v50, %v7411_v3  ;;  %v16042_v59 = vcombine.low %v7403_v50, %v7411_v3 }
 0x8bb   : > { %v13573_v19 = vpop.f32.mrf.mxu1  ;;  %13818 = vmatmul.mubr.bf16.vlgmr.msra.gmra.mxu1 %v18060_v6 }
 0x8bc   : > { %v13574_v34 = vadd.f32 %v13573_v19, %v13533_v33  ;;  %13868 = vmatpush1.bf16.msra.mxu1 %v15978_v1  ;;  %13899 = vmatprep.mubr.bf16.mxu1 %v18206_v14  ;;  %v15946_v14 = vcombine.low %v7307_v55, %v7315_v2  ;;  %v16027_v1 = vcombine.high %v7387_v36, %v7395_v56  ;;  %v7379_v33 = vld [vmem:[%s16953_s14 + $0x1cf8] sm:$0xff] }
 0x8bd   : > { %v13575_v22 = vpop.f32.mrf.mxu1  ;;  %13869 = vmatprep.subr.bf16.mxu1 %v15963_v17  ;;  %v7371_v17 = vld [vmem:[%s16953_s14 + $0x1cb8] sm:$0xff]  ;;  %v16026_v55 = vcombine.low %v7387_v36, %v7395_v56 }
 0x8be   : > { %v13918_v29 = vadd.f32 %v13574_v34, %v6438_v60  ;;  %v13576_v11 = vadd.f32 %v13575_v22, %v13535_v32  ;;  %v16011_v2 = vcombine.high %v7371_v17, %v7379_v33  ;;  %v7355_v60 = vld [vmem:[%s16953_s14 + $0x1c38] sm:$0xff]  ;;  %v16010_v32 = vcombine.low %v7371_v17, %v7379_v33 }
 0x8bf   : > { %v13577_v6 = vpop.f32.mrf.mxu1  ;;  %v7363_v19 = vld [vmem:[%s16953_s14 + $0x1c78] sm:$0xff] }
 0x8c0   : > { %13934 = vst [vmem:[%s16966_s19 + $0x50] sm:$0xff] %v13918_v29  ;;  %v13919_v0 = vadd.f32 %v13576_v11, %v6439_v57  ;;  %13870 = vmatpush1.bf16.msra.mxu1 %v15962_v52  ;;  %v15995_v52 = vcombine.high %v7355_v60, %v7363_v19 }
 0x8c1   : > { %v13578_v51 = vpop.f32.mrf.mxu1  ;;  %13871 = vmatprep.subr.bf16.mxu1 %v15947_v43  ;;  %v15994_v43 = vcombine.low %v7355_v60, %v7363_v19 }
 0x8c2   : > { %13935 = vst [vmem:[%s16966_s19 + $0x58] sm:$0xff] %v13919_v0 }
 0x8c4   : > { %13872 = vmatpush1.bf16.msra.mxu1 %v15946_v14 }
 0x8c5   : > { %13873 = vmatprep.subr.bf16.mxu1 %v15931_v13 }
 0x8c8   : > { %13874 = vmatpush1.bf16.msra.mxu1 %v15930_v25 }
 0x8c9   : > { %13875 = vmatprep.subr.bf16.mxu1 %v15915_v37  ;;  %v6440_v37 = vld [vmem:[%s16966_s19 + $0x60] sm:$0xff] }
 0x8cc   : > { %13876 = vmatpush1.bf16.msra.mxu1 %v15914_v46 }
 0x8cd   : > { %13877 = vmatprep.subr.bf16.mxu1 %v15899_v47  ;;  %v6441_v47 = vld [vmem:[%s16966_s19 + $0x68] sm:$0xff] }
 0x8d0   : > { %13878 = vmatpush1.bf16.msra.mxu1 %v15898_v27 }
 0x8d1   : > { %13879 = vmatprep.subr.bf16.mxu1 %v15883_v28 }
 0x8d4   : > { %13880 = vmatpush1.bf16.msra.mxu1 %v15882_v10 }
 0x8d5   : > { %13881 = vmatprep.subr.bf16.mxu1 %v15867_v18 }
 0x8d8   : > { %13882 = vmatpush1.bf16.msra.mxu1 %v15866_v26 }
 0x8d9   : > { %13883 = vmatprep.subr.bf16.mxu1 %v16107_v30 }
 0x8dc   : > { %13884 = vmatpush2.bf16.msra.mxu1 %v16106_v16  ;;  %v6442_v16 = vld [vmem:[%s16966_s19 + $0x70] sm:$0xff] }
 0x8dd   : > { %13885 = vmatprep.subr.bf16.mxu1 %v16091_v20 }
 0x8e0   : > { %13886 = vmatpush2.bf16.msra.mxu1 %v16090_v48  ;;  %v6443_v48 = vld [vmem:[%s16966_s19 + $0x78] sm:$0xff] }
 0x8e1   : > { %13887 = vmatprep.subr.bf16.mxu1 %v16075_v49 }
 0x8e4   : > { %13888 = vmatpush2.bf16.msra.mxu1 %v16074_v31 }
 0x8e5   : > { %13889 = vmatprep.subr.bf16.mxu1 %v16059_v15 }
 0x8e8   : > { %13890 = vmatpush2.bf16.msra.mxu1 %v16058_v39 }
 0x8e9   : > { %13891 = vmatprep.subr.bf16.mxu1 %v16043_v21 }
 0x8ec   : > { %13892 = vmatpush2.bf16.msra.mxu1 %v16042_v59 }
 0x8ed   : > { %13893 = vmatprep.subr.bf16.mxu1 %v16027_v1 }
 0x8f0   : > { %v13696_v34 = vpop.f32.mrf.mxu0  ;;  %13894 = vmatpush2.bf16.msra.mxu1 %v16026_v55 }
 0x8f1   : > { %13895 = vmatprep.subr.bf16.mxu1 %v16011_v2 }
 0x8f2   : > { %v13698_v57 = vpop.f32.mrf.mxu0 }
 0x8f4   : > { %v13700_v22 = vpop.f32.mrf.mxu0  ;;  %13896 = vmatpush2.bf16.msra.mxu1 %v16010_v32 }
 0x8f5   : > { %13897 = vmatprep.subr.bf16.mxu1 %v15995_v52 }
 0x8f6   : > { %v13701_v29 = vpop.f32.mrf.mxu0 }
 0x8f8   : > { %13898 = vmatpush2.bf16.msra.mxu1 %v15994_v43 }
 0x8fb   : > { %v13655_v11 = vpop.f32.mrf.mxu1  ;;  %13900 = vmatmul.mubr.bf16.vlgmr.msra.gmra.mxu1 %v18208_v54 }
 0x8fc   : > { %v13656_v13 = vadd.f32 %v13655_v11, %v19198_v40 }
 0x8fd   : > { %v13657_v23 = vpop.f32.mrf.mxu1 }
 0x8fe   : > { %v13658_v5 = vadd.f32 %v13657_v23, %v19201_v45  ;;  %v13697_v25 = vadd.f32 %v13696_v34, %v13656_v13 }
 0x8ff   : > { %v13659_v12 = vpop.f32.mrf.mxu1 }
 0x900   : > { %v13699_v46 = vadd.f32 %v13698_v57, %v13658_v5 }
 0x901   : > { %v13660_v6 = vpop.f32.mrf.mxu1 }
 0x930   : > { %v13778_v0 = vpop.f32.mrf.mxu0 }
 0x932   : > { %v13780_v14 = vpop.f32.mrf.mxu0 }
 0x934   : > { %v13782_v51 = vpop.f32.mrf.mxu0 }
 0x936   : > { %v13783_v38 = vpop.f32.mrf.mxu0 }
 0x93b   : > { %v13737_v41 = vpop.f32.mrf.mxu1 }
 0x93c   : > { %v13738_v63 = vadd.f32 %v13737_v41, %v13697_v25 }
 0x93d   : > { %v13739_v54 = vpop.f32.mrf.mxu1 }
 0x93e   : > { %v13920_v24 = vadd.f32 %v13738_v63, %v6440_v37  ;;  %v13740_v42 = vadd.f32 %v13739_v54, %v13699_v46 }
 0x93f   : > { %v13741_v27 = vpop.f32.mrf.mxu1 }
 0x940   : > { %13936 = vst [vmem:[%s16966_s19 + $0x60] sm:$0xff] %v13920_v24  ;;  %v13921_v28 = vadd.f32 %v13740_v42, %v6441_v47 }
 0x941   : > { %v13742_v8 = vpop.f32.mrf.mxu1 }
 0x942   : > { %13937 = vst [vmem:[%s16966_s19 + $0x68] sm:$0xff] %v13921_v28 }
 0x970   : > { %v13860_v40 = vpop.f32.mrf.mxu0 }
 0x972   : > { %v13862_v9 = vpop.f32.mrf.mxu0 }
 0x974   : > { %v13864_v10 = vpop.f32.mrf.mxu0 }
 0x976   : > { %v13865_v45 = vpop.f32.mrf.mxu0 }
 0x97b   : > { %v13819_v18 = vpop.f32.mrf.mxu1 }
 0x97c   : > { %v13820_v30 = vadd.f32 %v13819_v18, %v13778_v0 }
 0x97d   : > { %v13821_v61 = vpop.f32.mrf.mxu1 }
 0x97e   : > { %v13822_v58 = vadd.f32 %v13821_v61, %v13780_v14  ;;  %v13861_v4 = vadd.f32 %v13860_v40, %v13820_v30 }
 0x97f   : > { %v13823_v7 = vpop.f32.mrf.mxu1 }
 0x980   : > { %v13863_v62 = vadd.f32 %v13862_v9, %v13822_v58 }
 0x981   : > { %v13824_v26 = vpop.f32.mrf.mxu1 }
 0x9bb   : > { %v13901_v20 = vpop.f32.mrf.mxu1 }
 0x9bc   : > { %v13902_v35 = vadd.f32 %v13901_v20, %v13861_v4 }
 0x9bd   : > { %v13903_v49 = vpop.f32.mrf.mxu1 }
 0x9be   : > { %v13922_v44 = vadd.f32 %v13902_v35, %v6442_v16  ;;  %v13904_v53 = vadd.f32 %v13903_v49, %v13863_v62  ;;  %13943 = sbr.rel (%p16108_p7) target bundleno = 2697 (0xa89), region = 84 }
 0x9bf   : > { %v13905_v31 = vpop.f32.mrf.mxu1 }
 0x9c0   : > { %13938 = vst [vmem:[%s16966_s19 + $0x70] sm:$0xff] %v13922_v44  ;;  %v13923_v15 = vadd.f32 %v13904_v53, %v6443_v48 }
 0x9c1   : > { %v13906_v50 = vpop.f32.mrf.mxu1 }
 0x9c2   : > { %13939 = vst [vmem:[%s16966_s19 + $0x78] sm:$0xff] %v13923_v15 }
 0x9c3   : > { %v13944_v3 = vld [vmem:[%s16966_s19] sm:$0xff]  ;;  %v13945_v39 = vld [vmem:[%s16966_s19 + $0x8] sm:$0xff]  ;;  %v13946_v21 = vld [vmem:[%s16966_s19 + $0x10] sm:$0xff] }
 0x9c4   : > { %v13947_v36 = vld [vmem:[%s16966_s19 + $0x18] sm:$0xff]  ;;  %v13960_v56 = vmul.f32 %v13944_v3, %v13944_v3  ;;  %v13961_v59 = vmul.f32 %v13945_v39, %v13945_v39  ;;  %v13962_v1 = vmul.f32 %v13946_v21, %v13946_v21  ;;  %v13948_v17 = vld [vmem:[%s16966_s19 + $0x20] sm:$0xff]  ;;  %v13949_v2 = vld [vmem:[%s16966_s19 + $0x28] sm:$0xff] }
 0x9c5   : > { %v13963_v33 = vmul.f32 %v13947_v36, %v13947_v36  ;;  %v13964_v60 = vmul.f32 %v13948_v17, %v13948_v17  ;;  %v13950_v34 = vld [vmem:[%s16966_s19 + $0x30] sm:$0xff]  ;;  %v13965_v32 = vmul.f32 %v13949_v2, %v13949_v2  ;;  %v13951_v57 = vld [vmem:[%s16966_s19 + $0x38] sm:$0xff]  ;;  %v13952_v29 = vld [vmem:[%s16966_s19 + $0x40] sm:$0xff] }
 0x9c6   : > { %v13976_v55 = vadd.f32 %v13961_v59, %v13960_v56  ;;  %v13966_v22 = vmul.f32 %v13950_v34, %v13950_v34  ;;  %v13967_v11 = vmul.f32 %v13951_v57, %v13951_v57  ;;  %v13953_v12 = vld [vmem:[%s16966_s19 + $0x48] sm:$0xff]  ;;  %v13968_v6 = vmul.f32 %v13952_v29, %v13952_v29  ;;  %v13954_v14 = vld [vmem:[%s16966_s19 + $0x50] sm:$0xff]  ;;  %v13955_v38 = vld [vmem:[%s16966_s19 + $0x58] sm:$0xff] }
 0x9c7   : > { %v13969_v51 = vmul.f32 %v13953_v12, %v13953_v12  ;;  %v13970_v5 = vmul.f32 %v13954_v14, %v13954_v14  ;;  %v13956_v37 = vld [vmem:[%s16966_s19 + $0x60] sm:$0xff]  ;;  %v13971_v41 = vmul.f32 %v13955_v38, %v13955_v38  ;;  %v13957_v46 = vld [vmem:[%s16966_s19 + $0x68] sm:$0xff]  ;;  %v13958_v24 = vld [vmem:[%s16966_s19 + $0x70] sm:$0xff] }
 0x9c8   : > { %v13977_v19 = vadd.f32 %v13976_v55, %v13962_v1  ;;  %v13972_v47 = vmul.f32 %v13956_v37, %v13956_v37  ;;  %v13973_v42 = vmul.f32 %v13957_v46, %v13957_v46  ;;  %v13974_v8 = vmul.f32 %v13958_v24, %v13958_v24 }
 0x9c9   : > { %v13959_v28 = vld [vmem:[%s16966_s19 + $0x78] sm:$0xff] }
 0x9ca   : > { %v13978_v52 = vadd.f32 %v13977_v19, %v13963_v33  ;;  %v13975_v9 = vmul.f32 %v13959_v28, %v13959_v28 }
 0x9cc   : > { %v13979_v43 = vadd.f32 %v13978_v52, %v13964_v60 }
 0x9ce   : > { %v13980_v23 = vadd.f32 %v13979_v43, %v13965_v32 }
 0x9d0   : > { %v13981_v0 = vadd.f32 %v13980_v23, %v13966_v22 }
 0x9d2   : > { %v13982_v13 = vadd.f32 %v13981_v0, %v13967_v11 }
 0x9d4   : > { %v13983_v25 = vadd.f32 %v13982_v13, %v13968_v6 }
 0x9d6   : > { %v13984_v63 = vadd.f32 %v13983_v25, %v13969_v51 }
 0x9d8   : > { %v13985_v54 = vadd.f32 %v13984_v63, %v13970_v5 }
 0x9da   : > { %v13986_v27 = vadd.f32 %v13985_v54, %v13971_v41 }
 0x9dc   : > { %v13987_v40 = vadd.f32 %v13986_v27, %v13972_v47 }
 0x9de   : > { %v13988_v10 = vadd.f32 %v13987_v40, %v13973_v42 }
 0x9e0   : > { %v13989_v45 = vadd.f32 %v13988_v10, %v13974_v8 }
 0x9e2   : > { %v13990_v18 = vadd.f32 %v13989_v45, %v13975_v9 }
 0x9e4   : > { %13991 = vadd.xlane.f32.xlu0 %v13990_v18 }
 0xa6d   : > { %v13992_v61 = vpop.xlane.xlu0 %13991 }
 0xa6e   : > { %v13993_v7 = vmax.f32 %v13992_v61, 1e-24 }
 0xa70   : > { %16274 = vrsqrt.f32 %v13993_v7 }
 0xa7d   : > { %v16275_v26 = vpop.eup %16274 }
 0xa7e   : > { %v13995_v30 = vmul.f32 %v16275_v26, %v13944_v3  ;;  %v13996_v58 = vmul.f32 %v16275_v26, %v13945_v39  ;;  %v13997_v4 = vmul.f32 %v16275_v26, %v13946_v21  ;;  %v13998_v16 = vmul.f32 %v16275_v26, %v13947_v36 }
 0xa7f   : > { %v13999_v20 = vmul.f32 %v16275_v26, %v13948_v17  ;;  %v14000_v35 = vmul.f32 %v16275_v26, %v13949_v2  ;;  %v14001_v62 = vmul.f32 %v16275_v26, %v13950_v34  ;;  %v14002_v48 = vmul.f32 %v16275_v26, %v13951_v57 }
 0xa80   : > { %v14003_v49 = vmul.f32 %v16275_v26, %v13952_v29  ;;  %v14004_v44 = vmul.f32 %v16275_v26, %v13953_v12  ;;  %v14005_v53 = vmul.f32 %v16275_v26, %v13954_v14  ;;  %v14006_v31 = vmul.f32 %v16275_v26, %v13955_v38  ;;  %14011 = vst [vmem:[%s16966_s19] sm:$0xff] %v13995_v30 }
 0xa81   : > { %14012 = vst [vmem:[%s16966_s19 + $0x8] sm:$0xff] %v13996_v58  ;;  %14013 = vst [vmem:[%s16966_s19 + $0x10] sm:$0xff] %v13997_v4  ;;  %v14007_v15 = vmul.f32 %v16275_v26, %v13956_v37  ;;  %v14008_v50 = vmul.f32 %v16275_v26, %v13957_v46  ;;  %v14009_v3 = vmul.f32 %v16275_v26, %v13958_v24 }
 0xa82   : > { %14014 = vst [vmem:[%s16966_s19 + $0x18] sm:$0xff] %v13998_v16  ;;  %v14010_v39 = vmul.f32 %v16275_v26, %v13959_v28  ;;  %14015 = vst [vmem:[%s16966_s19 + $0x20] sm:$0xff] %v13999_v20 }
 0xa83   : > { %14016 = vst [vmem:[%s16966_s19 + $0x28] sm:$0xff] %v14000_v35  ;;  %14017 = vst [vmem:[%s16966_s19 + $0x30] sm:$0xff] %v14001_v62 }
 0xa84   : > { %14018 = vst [vmem:[%s16966_s19 + $0x38] sm:$0xff] %v14002_v48  ;;  %14019 = vst [vmem:[%s16966_s19 + $0x40] sm:$0xff] %v14003_v49 }
 0xa85   : > { %14020 = vst [vmem:[%s16966_s19 + $0x48] sm:$0xff] %v14004_v44  ;;  %14021 = vst [vmem:[%s16966_s19 + $0x50] sm:$0xff] %v14005_v53 }
 0xa86   : > { %14022 = vst [vmem:[%s16966_s19 + $0x58] sm:$0xff] %v14006_v31  ;;  %14023 = vst [vmem:[%s16966_s19 + $0x60] sm:$0xff] %v14007_v15 }
 0xa87   : > { %14024 = vst [vmem:[%s16966_s19 + $0x68] sm:$0xff] %v14008_v50  ;;  %14025 = vst [vmem:[%s16966_s19 + $0x70] sm:$0xff] %v14009_v3 }
 0xa88   : > { %14026 = vst [vmem:[%s16966_s19 + $0x78] sm:$0xff] %v14010_v39 }
 0xa89 PF: > { %s19429_s13 = sld [smem:[#allocation28_spill]]  ;;  %s14042_s3 = sshll.u32 %s16966_s19, 4  ;;  %s14043_s3 = int_to_ptr.vmem [resolvable:$true] %s14042_s3 }
 0xa8a   : > { %s19430_s26 = sld [smem:[#allocation31_spill]]  ;;  %s14028_s8 = scalar_lea.sflag [#allocation5], %s16923_s24 }
 0xa8b   : > { %s19431_s7 = sld [smem:[#allocation41_spill]]  ;;  %s16472_s30 = scalar_lea.vmem %s14043_s3, 2048 }
 0xa8c   : > { %p16473_p11 = scmp.ne.s32.totalorder %s14043_s3, %s16472_s30  ;;  %s16621_s29 = smov [#allocation15]  }
 0xa8d   : > { %s16476_s18 = sshll.u32 %s16621_s29, 4  ;;  %s16477_s18 = int_to_ptr.vmem [resolvable:$false] %s16476_s18 }
 0xa8e   : > { %s16478_s1 = scalar_lea.vmem %s16477_s18, 4096  ;;  %p16479_p3 = scmp.lt.s32.totalorder %s14043_s3, %s16477_s18 }
 0xa8f   : > { %s16123_s17 = sshll.u32 %s19429_s13, 11  ;;  %p16480_p6 = scmp.lt.s32.totalorder %s16478_s1, %s16472_s30 }
 0xa90   : > { %p19432_p0 = scmp.ne.s32.totalorder %s19430_s26, 0 }
 0xa91   : > { %s14040_s12 = scalar_lea.hbm %s19431_s7, %s16123_s17  ;;  %p16481_p9 = por %p16480_p6, %p16479_p3 }
 0xa92   : > { %p16474_p13 = pnand %p16473_p11, %p19432_p0 }
 0xa94   : > { %p16475_p4 = pneg %p16474_p13 }
 0xa96   : > { %p16482_p12 = pnand %p16481_p9, %p16475_p4 }
 0xa98   : > { %16485 = shalt.err (!%p16482_p12)
}
 0xa99   : > { %s16486_s25 = scalar_lea.hbm %s14040_s12, 2048  ;;  %s16490_s20 = scalar_lea.hbm %s19431_s7, 6144 }
 0xa9a   : > { %p16487_p1 = scmp.ne.s32.totalorder %s14040_s12, %s16486_s25  ;;  %p16491_p5 = scmp.lt.s32.totalorder %s14040_s12, %s19431_s7 }
 0xa9b   : > { %p16492_p8 = scmp.lt.s32.totalorder %s16490_s20, %s16486_s25 }
 0xa9c   : > { %p16488_p10 = pnand %p16487_p1, %p19432_p0 }
 0xa9d   : > { %p16493_p7 = por %p16492_p8, %p16491_p5 }
 0xa9e   : > { %p16489_p2 = pneg %p16488_p10 }
 0xaa0   : > { %p16494_p11 = pnand %p16493_p7, %p16489_p2 }
 0xaa2   : > { %16497 = shalt.err (!%p16494_p11)
}
 0xaa3   : > { %16138 = dma.vmem_to_hbm [thread:$0]  (%p19432_p0), %s14043_s3, 2048, %s14040_s12, %s14028_s8  }
 0xaa4 PF: > { %s19433_s27 = sld [smem:[#allocation24_spill]]  ;;  %p16167_p13 = scmp.ge.s32.totalorder %s16608_s11, 2 }
 0xaa5   : > { %s19434_s15 = sld [smem:[#allocation32_spill]] }
 0xaaa   : > { %s14054_s19 = sand.u32 1, %s19433_s27  }
 0xaab   : > { %p19435_p4 = scmp.ne.s32.totalorder %s19434_s15, 0  ;;  %s14055_s21 = scalar_lea.sflag [#allocation5], %s14054_s19 }
 0xaad   : > { %p16163_p3 = pnand %p16167_p13, %p19435_p4 }
 0xaaf   : > { %p16164_p6 = pneg %p16163_p3 }
 0xab1   : > { %16563 = dma.done.wait (%p16164_p6), %s14055_s21, 2048  }
 0xab2   : > { %16565 = vsyncadd (%p16164_p6), %s14055_s21, 4294965248  ;;  %s32_s11 = sadd.s32 1, %s16608_s11   ;;  %s19436_s24 = sld [smem:[#allocation22_spill]] }
 0xab3   : > { %p29_p9 = scmp.ge.s32.totalorder %s32_s11, 8   ;;  %s19437_s25 = sld [smem:[#allocation23_spill]] }
 0xab4   : > { %s19438_s26 = sld [smem:[#allocation37_spill]]  ;;  %s19444_s30 = smov %s16600_s9 }
 0xab5   : > { %s19439_s27 = sld [smem:[#allocation25_spill]]  ;;  %s19445_s8 = smov %s16604_s10 }
 0xab6   : > { %s19440_s28 = sld [smem:[#allocation26_spill]] }
 0xab7   : > { %s19441_s29 = sld [smem:[#allocation36_spill]] }
 0xab8   : > { %s19442_s23 = sld [smem:[#allocation34_spill]] }
 0xab9   : > { %s19443_s13 = sld [smem:[#allocation35_spill]] }
 0xabb   :  { %31 = sbr.rel (!%p29_p9) target bundleno = 20 (0x14), region = 173 }
 0xabe   : > { %s19446_s9 = smov %s19442_s23 }
 0xabf   : > { %s19447_s10 = smov %s19443_s13 }
 0xac0   :  { %14060 = vsyncpa [#allocation4], 1 }
 0xac1   :  { %14062 = vsyncpa [#allocation4 + $0x1], 1 }
 0xac2   :  { %14063 = vsyncpa [#allocation7], 1 }
 0xac3   :  { %14065 = vsyncpa [#allocation7 + $0x1], 1 }
 0xac4   :  { %14066 = vsyncpa [#allocation10], 1 }
 0xac5   :  { %14068 = vsyncpa [#allocation10 + $0x1], 1 }
 0xac6   :  { %14069 = vsyncpa [#allocation13], 1 }
 0xac7   :  { %14071 = vsyncpa [#allocation13 + $0x1], 1 }
 0xac8   :  { %14072 = vsyncpa [#allocation5], 1 }
 0xac9   :  { %14074 = vsyncpa [#allocation5 + $0x1], 1 }

</bundles_post_ra>
